<compile_context>
chip_gen: v7x
topology: tpu7x:2x2x1
jax: 0.10.0
libtpu: 0.0.40
codegen_flags: <defaults>
</compile_context>

<pallas_src>
import jax
import jax.numpy as jnp
from jax import lax
from jax.experimental import pallas as pl
from jax.experimental.pallas import tpu as pltpu


# ----------------------------------------------------------------------------
# Geometry / layout constants
# ----------------------------------------------------------------------------
_H1, _W1 = 28, 28            # conv1 / conv2 spatial size
_H2, _W2 = 14, 14            # conv3 spatial size (after the 2x2 pool)
_HW1 = _H1 * _W1             # 784
_HW2 = _H2 * _W2             # 196
_C1, _C2, _C3 = 8, 32, 64    # channel counts
_NCLS = 10
_EPS = 1e-5

_PAD = 128                          # lane-aligned zero pad in the shift scratch
_SCRATCH_W = _PAD + _HW1 + _PAD     # covers every +/-(W+1) shifted read

_K2 = 9 * _C1                       # 72  stacked-K for conv2
_K3 = 9 * _C2                       # 288 stacked-K for conv3
_POOLW = _HW1 - _W1 - 1             # 755: width of the 4-way shifted-max slab

# tap order idx = (dh+1)*3 + (dw+1) = kh*3 + kw
_OFFS = tuple((dh, dw) for dh in (-1, 0, 1) for dw in (-1, 0, 1))


# ----------------------------------------------------------------------------
# In-kernel helpers (traced inside the fused kernel)
# ----------------------------------------------------------------------------

def _stage_taps(xpad_ref, taps_ref, wmask, W, cin, hw):
    """Write the 9 shifted+masked bf16 taps of the staged map into the
    (9*cin, hw) region of the stacked-K scratch."""
    for idx, (dh, dw) in enumerate(_OFFS):
        s = dh * W + dw
        piece = xpad_ref[0:cin, _PAD + s:_PAD + s + hw]       # (cin, hw) bf16
        if dw != 0:
            piece = piece * wmask[dw + 1:dw + 2, 0:hw]        # kill row wrap
        taps_ref[idx * cin:(idx + 1) * cin, 0:hw] = piece


def _batch_stats(o_ref, n_batch, inv_count):
    """Per-channel mean / biased variance over (N, H*W) of an (N, C, HW) ref."""
    total = None
    for n in range(n_batch):
        s = jnp.sum(o_ref[n], axis=1, keepdims=True)          # (C, 1)
        total = s if total is None else total + s
    mean = total * inv_count
    ssq = None
    for n in range(n_batch):
        d = o_ref[n] - mean
        s = jnp.sum(d * d, axis=1, keepdims=True)
        ssq = s if ssq is None else ssq + s
    var = ssq * inv_count
    return mean, var


# ----------------------------------------------------------------------------
# The fused forward-pass kernel
# ----------------------------------------------------------------------------

def _fused_net_kernel(
        x_ref, w1_ref, w2s_ref, w3s_ref, wfc_ref, bfc_ref,
        g2_ref, b2_ref, g3_ref, b3_ref, wm1_ref, wm2_ref, psel_ref,
        out_ref, out1_ref, out2_bn_ref, out2_relu_ref,
        out2_conv_ref, out2_pl_ref, out3_conv_ref, out3_pl_ref,
        xpad_ref, taps_ref):
    n_batch = x_ref.shape[0]

    # Zero the two lane-pad bands of the bf16 shift scratch ONCE.
    xpad_ref[:, 0:_PAD] = jnp.zeros((_C2, _PAD), jnp.bfloat16)
    xpad_ref[:, _PAD + _HW1:] = jnp.zeros((_C2, _PAD), jnp.bfloat16)

    w1 = w1_ref[...]          # (9, 8, 1)  f32 — conv1 stays on the VPU
    wm1 = wm1_ref[...]        # (3, 784)   bf16 dw-validity masks
    wm2 = wm2_ref[...]        # (3, 196)   bf16

    # ---- conv1 (1 -> 8, 28x28): 9 VPU outer-product taps -------------------
    for n in range(n_batch):
        # Stage duplicated to 2 rows so the packed-bf16 store is sublane-whole.
        xpad_ref[0:2, _PAD:_PAD + _HW1] = jnp.broadcast_to(
            x_ref[n], (2, _HW1)).astype(jnp.bfloat16)
        acc = jnp.zeros((_C1, _HW1), jnp.float32)
        for idx, (dh, dw) in enumerate(_OFFS):
            s = dh * _W1 + dw
            piece = xpad_ref[0:1, _PAD + s:_PAD + s + _HW1]   # (1, 784) bf16
            if dw != 0:
                piece = piece * wm1[dw + 1:dw + 2, :]
            acc = acc + w1[idx] * piece.astype(jnp.float32)   # (8,1)*(1,784)
        out1_ref[n] = acc

    # ---- bn2 + relu: training-mode batch statistics over (N, H*W) ----------
    mean2, var2 = _batch_stats(out1_ref, n_batch, 1.0 / (n_batch * _HW1))
    scale2 = g2_ref[...] * lax.rsqrt(var2 + _EPS)
    shift2 = b2_ref[...] - mean2 * scale2

    w2s = w2s_ref[...]        # (32, 72)  bf16 stacked conv2 weights
    psel = psel_ref[...]      # (755, 196) f32 0/1 pool-selection matrix

    for n in range(n_batch):
        y2 = out1_ref[n] * scale2 + shift2
        out2_bn_ref[n] = y2
        r2 = jnp.maximum(y2, 0.0)
        out2_relu_ref[n] = r2

        # conv2 (8 -> 32): stage 9 shifted/masked bf16 taps, ONE K=72 matmul.
        xpad_ref[0:_C1, _PAD:_PAD + _HW1] = r2.astype(jnp.bfloat16)
        _stage_taps(xpad_ref, taps_ref, wm1, _W1, _C1, _HW1)
        c2 = jnp.dot(w2s, taps_ref[0:_K2, 0:_HW1],
                     preferred_element_type=jnp.float32)      # (32, 784) f32
        out2_conv_ref[n] = c2

        # Fused 2x2 max-pool: 4 lane-shifted reads of the stored conv2 map
        # (so c2 is not kept live), 3 VPU maxes, one selection matmul.  Only
        # columns t = 2*ho*28 + 2*wo are selected, so no masking is needed.
        s00 = out2_conv_ref[n, :, 0:_POOLW]
        s01 = out2_conv_ref[n, :, 1:1 + _POOLW]
        s10 = out2_conv_ref[n, :, _W1:_W1 + _POOLW]
        s11 = out2_conv_ref[n, :, _W1 + 1:_W1 + 1 + _POOLW]
        m4 = jnp.maximum(jnp.maximum(s00, s01), jnp.maximum(s10, s11))
        out2_pl_ref[n] = jnp.dot(m4, psel,
                                 preferred_element_type=jnp.float32)

    # ---- bn3 + relu (not returned), conv3, 14x14 pool, fc ------------------
    mean3, var3 = _batch_stats(out2_pl_ref, n_batch, 1.0 / (n_batch * _HW2))
    scale3 = g3_ref[...] * lax.rsqrt(var3 + _EPS)
    shift3 = b3_ref[...] - mean3 * scale3

    # Spatial extent shrinks 784 -> 196: zero the now-exposed scratch tail
    # ONCE so conv3's positive-shift reads see zeros, not stale conv2 data.
    xpad_ref[:, _PAD + _HW2:_PAD + _HW1] = jnp.zeros(
        (_C2, _HW1 - _HW2), jnp.bfloat16)

    w3s = w3s_ref[...]        # (64, 288) bf16 stacked conv3 weights
    wfc = wfc_ref[...]        # (64, 10)  f32
    bfc = bfc_ref[...]        # (1, 10)   f32

    for n in range(n_batch):
        r3 = jnp.maximum(out2_pl_ref[n] * scale3 + shift3, 0.0)   # (32, 196)

        # conv3 (32 -> 64): stage taps, ONE K=288 matmul.
        xpad_ref[0:_C2, _PAD:_PAD + _HW2] = r3.astype(jnp.bfloat16)
        _stage_taps(xpad_ref, taps_ref, wm2, _W2, _C2, _HW2)
        c3 = jnp.dot(w3s, taps_ref[0:_K3, 0:_HW2],
                     preferred_element_type=jnp.float32)      # (64, 196) f32
        out3_conv_ref[n] = c3

        # Global (14x14) max-pool and the Linear(64, 10) epilogue; the fc row
        # is stored directly (no masked accumulate).
        pooled3 = jnp.max(c3, axis=1, keepdims=True)              # (64, 1)
        out3_pl_ref[n] = pooled3
        fc_row = jnp.sum(wfc * pooled3, axis=0, keepdims=True) + bfc  # (1, 10)
        out_ref[n:n + 1, :] = fc_row


# ----------------------------------------------------------------------------
# Wrapper: layout prep (reshape-only at the boundaries) + pallas_call
# ----------------------------------------------------------------------------

def _prep_w1(w_oihw):
    """(8, 1, 3, 3) OIHW -> (9, 8, 1) f32, tap index = kh*3 + kw."""
    return jnp.transpose(w_oihw, (2, 3, 0, 1)).reshape(9, _C1, 1).astype(
        jnp.float32)


def _prep_w_stacked(w_oihw):
    """(Cout, Cin, 3, 3) OIHW -> (Cout, 9*Cin) bf16; column = (kh*3+kw)*Cin+ci,
    matching the stacked-taps scratch row order."""
    cout, cin = w_oihw.shape[0], w_oihw.shape[1]
    return jnp.transpose(w_oihw, (0, 2, 3, 1)).reshape(
        cout, 9 * cin).astype(jnp.bfloat16)


def _w_masks(H, W):
    """(3, H*W) bf16 column-validity masks for horizontal offsets dw=-1,0,+1."""
    w = jnp.arange(H * W, dtype=jnp.int32) % W
    rows = [((w + dw >= 0) & (w + dw < W)) for dw in (-1, 0, 1)]
    return jnp.stack(rows, axis=0).astype(jnp.bfloat16)


def _pool_select():
    """(755, 196) 0/1 matrix: output p = ho*14+wo picks source column
    t = 2*ho*28 + 2*wo of the 4-way shifted-max slab."""
    t = jnp.arange(_POOLW, dtype=jnp.int32)[:, None]
    p = jnp.arange(_HW2, dtype=jnp.int32)[None, :]
    ho, wo = p // _W2, p % _W2
    return (t == 2 * ho * _W1 + 2 * wo).astype(jnp.float32)


def _full_spec(shape):
    nd = len(shape)
    return pl.BlockSpec(shape, lambda i, _nd=nd: (0,) * _nd)


def net_forward(x_nchw, params):
    """Reproduces Net.forward.  x_nchw: (N, 1, 28, 28) float32 (PyTorch NCHW)."""
    x_nchw = x_nchw.astype(jnp.float32)
    n = x_nchw.shape[0]
    x = x_nchw.reshape(n, 1, _HW1)            # NCHW -> (N, C, H*W), reshape only

    inputs = (
        x,
        _prep_w1(params["conv1_w"]),                             # (9, 8, 1) f32
        _prep_w_stacked(params["conv2_w"]),                      # (32, 72)  bf16
        _prep_w_stacked(params["conv3_w"]),                      # (64, 288) bf16
        params["fc_w"].T.astype(jnp.float32),                    # (64, 10)
        params["fc_b"].reshape(1, _NCLS).astype(jnp.float32),    # (1, 10)
        params["bn2_g"].reshape(_C1, 1).astype(jnp.float32),
        params["bn2_b"].reshape(_C1, 1).astype(jnp.float32),
        params["bn3_g"].reshape(_C2, 1).astype(jnp.float32),
        params["bn3_b"].reshape(_C2, 1).astype(jnp.float32),
        _w_masks(_H1, _W1),                                      # (3, 784) bf16
        _w_masks(_H2, _W2),                                      # (3, 196) bf16
        _pool_select(),                                          # (755, 196) f32
    )

    out_shapes = (
        jax.ShapeDtypeStruct((n, _NCLS), jnp.float32),           # fc logits
        jax.ShapeDtypeStruct((n, _C1, _HW1), jnp.float32),       # out1
        jax.ShapeDtypeStruct((n, _C1, _HW1), jnp.float32),       # out2_bn
        jax.ShapeDtypeStruct((n, _C1, _HW1), jnp.float32),       # out2_relu
        jax.ShapeDtypeStruct((n, _C2, _HW1), jnp.float32),       # out2_conv
        jax.ShapeDtypeStruct((n, _C2, _HW2), jnp.float32),       # out2_pl
        jax.ShapeDtypeStruct((n, _C3, _HW2), jnp.float32),       # out3_conv
        jax.ShapeDtypeStruct((n, _C3, 1), jnp.float32),          # out3_pl
    )

    results = pl.pallas_call(
        _fused_net_kernel,
        out_shape=out_shapes,
        grid=(1,),
        in_specs=[_full_spec(a.shape) for a in inputs],
        out_specs=tuple(_full_spec(s.shape) for s in out_shapes),
        scratch_shapes=[
            pltpu.VMEM((_C2, _SCRATCH_W), jnp.bfloat16),   # padded shift scratch
            pltpu.VMEM((_K3, _HW1), jnp.bfloat16),         # stacked-taps scratch
        ],
        compiler_params=pltpu.CompilerParams(
            dimension_semantics=("arbitrary",)),
    )(*inputs)

    out, out1, out2_bn, out2_relu, out2_conv, out2_pl, out3_conv, out3_pl = results
    intermediates = (
        x_nchw,
        out1.reshape(n, _C1, _H1, _W1),
        out2_bn.reshape(n, _C1, _H1, _W1),
        out2_relu.reshape(n, _C1, _H1, _W1),
        out2_conv.reshape(n, _C2, _H1, _W1),
        out2_pl.reshape(n, _C2, _H2, _W2),
        out3_conv.reshape(n, _C3, _H2, _W2),
        out3_pl.reshape(n, _C3, 1, 1),
    )
    return out, intermediates


# ----------------------------------------------------------------------------
# Deterministic parameter init (shapes from Net.__init__)
# ----------------------------------------------------------------------------

def init_params(key):
    ks = jax.random.split(key, 4)
    return {
        # PyTorch conv weights are OIHW, no bias.
        "conv1_w": 0.1 * jax.random.normal(ks[0], (8, 1, 3, 3), jnp.float32),
        "conv2_w": 0.1 * jax.random.normal(ks[1], (32, 8, 3, 3), jnp.float32),
        "conv3_w": 0.1 * jax.random.normal(ks[2], (64, 32, 3, 3), jnp.float32),
        # BatchNorm affine params: PyTorch defaults (gamma=1, beta=0).
        "bn2_g": jnp.ones((8,), jnp.float32),
        "bn2_b": jnp.zeros((8,), jnp.float32),
        "bn3_g": jnp.ones((32,), jnp.float32),
        "bn3_b": jnp.zeros((32,), jnp.float32),
        # Linear(64, 10): PyTorch weight is (out, in).
        "fc_w": 0.1 * jax.random.normal(ks[3], (10, 64), jnp.float32),
        "fc_b": jnp.zeros((10,), jnp.float32),
    }


if __name__ == "__main__":
    key = jax.random.PRNGKey(0)
    k_x, k_p = jax.random.split(key)

    # Smallest shapes consistent with the module: pl3 pools a 14x14 map to
    # 1x1, which (after the 2x2 pool) requires 28x28 inputs — MNIST geometry.
    x = jax.random.normal(k_x, (2, 1, 28, 28), jnp.float32)
    params = init_params(k_p)

    out, interms = jax.jit(net_forward)(x, params)
    jax.block_until_ready(out)
    for t in interms:
        jax.block_until_ready(t)

    assert out.shape == (2, 10)
    assert interms[-1].shape == (2, 64, 1, 1)
    print("KERNEL_OK")
</pallas_src>

<mosaic_0001>
module attributes {stable_mosaic.version = 11 : i64} {
  func.func @_fused_net_kernel(%arg0: i32, %arg1: memref<2x1x784xf32, #tpu.memory_space<vmem>>, %arg2: memref<9x8x1xf32, #tpu.memory_space<vmem>>, %arg3: memref<32x72xbf16, #tpu.memory_space<vmem>>, %arg4: memref<64x288xbf16, #tpu.memory_space<vmem>>, %arg5: memref<64x10xf32, #tpu.memory_space<vmem>>, %arg6: memref<1x10xf32, #tpu.memory_space<vmem>>, %arg7: memref<8x1xf32, #tpu.memory_space<vmem>>, %arg8: memref<8x1xf32, #tpu.memory_space<vmem>>, %arg9: memref<32x1xf32, #tpu.memory_space<vmem>>, %arg10: memref<32x1xf32, #tpu.memory_space<vmem>>, %arg11: memref<3x784xbf16, #tpu.memory_space<vmem>>, %arg12: memref<3x196xbf16, #tpu.memory_space<vmem>>, %arg13: memref<755x196xf32, #tpu.memory_space<vmem>>, %arg14: memref<2x10xf32, #tpu.memory_space<vmem>>, %arg15: memref<2x8x784xf32, #tpu.memory_space<vmem>>, %arg16: memref<2x8x784xf32, #tpu.memory_space<vmem>>, %arg17: memref<2x8x784xf32, #tpu.memory_space<vmem>>, %arg18: memref<2x32x784xf32, #tpu.memory_space<vmem>>, %arg19: memref<2x32x196xf32, #tpu.memory_space<vmem>>, %arg20: memref<2x64x196xf32, #tpu.memory_space<vmem>>, %arg21: memref<2x64x1xf32, #tpu.memory_space<vmem>>, %arg22: memref<32x1040xbf16, #tpu.memory_space<vmem>>, %arg23: memref<288x784xbf16, #tpu.memory_space<vmem>>) attributes {dimension_semantics = [#tpu.dimension_semantics<arbitrary>], iteration_bounds = array<i64: 1>, scalar_prefetch = 0 : i64, scratch_operands = 2 : i64, tpu.core_type = #tpu.core_type<tc>, window_params = [{pipeline_mode = #tpu.pipeline_mode<synchronous>, transform_indices = @transform_0, window_bounds = array<i64: 2, 1, 784>}, {pipeline_mode = #tpu.pipeline_mode<synchronous>, transform_indices = @transform_1, window_bounds = array<i64: 9, 8, 1>}, {pipeline_mode = #tpu.pipeline_mode<synchronous>, transform_indices = @transform_2, window_bounds = array<i64: 32, 72>}, {pipeline_mode = #tpu.pipeline_mode<synchronous>, transform_indices = @transform_3, window_bounds = array<i64: 64, 288>}, {pipeline_mode = #tpu.pipeline_mode<synchronous>, transform_indices = @transform_4, window_bounds = array<i64: 64, 10>}, {pipeline_mode = #tpu.pipeline_mode<synchronous>, transform_indices = @transform_5, window_bounds = array<i64: 1, 10>}, {pipeline_mode = #tpu.pipeline_mode<synchronous>, transform_indices = @transform_6, window_bounds = array<i64: 8, 1>}, {pipeline_mode = #tpu.pipeline_mode<synchronous>, transform_indices = @transform_7, window_bounds = array<i64: 8, 1>}, {pipeline_mode = #tpu.pipeline_mode<synchronous>, transform_indices = @transform_8, window_bounds = array<i64: 32, 1>}, {pipeline_mode = #tpu.pipeline_mode<synchronous>, transform_indices = @transform_9, window_bounds = array<i64: 32, 1>}, {pipeline_mode = #tpu.pipeline_mode<synchronous>, transform_indices = @transform_10, window_bounds = array<i64: 3, 784>}, {pipeline_mode = #tpu.pipeline_mode<synchronous>, transform_indices = @transform_11, window_bounds = array<i64: 3, 196>}, {pipeline_mode = #tpu.pipeline_mode<synchronous>, transform_indices = @transform_12, window_bounds = array<i64: 755, 196>}, {pipeline_mode = #tpu.pipeline_mode<synchronous>, transform_indices = @transform_13, window_bounds = array<i64: 2, 10>}, {pipeline_mode = #tpu.pipeline_mode<synchronous>, transform_indices = @transform_14, window_bounds = array<i64: 2, 8, 784>}, {pipeline_mode = #tpu.pipeline_mode<synchronous>, transform_indices = @transform_15, window_bounds = array<i64: 2, 8, 784>}, {pipeline_mode = #tpu.pipeline_mode<synchronous>, transform_indices = @transform_16, window_bounds = array<i64: 2, 8, 784>}, {pipeline_mode = #tpu.pipeline_mode<synchronous>, transform_indices = @transform_17, window_bounds = array<i64: 2, 32, 784>}, {pipeline_mode = #tpu.pipeline_mode<synchronous>, transform_indices = @transform_18, window_bounds = array<i64: 2, 32, 196>}, {pipeline_mode = #tpu.pipeline_mode<synchronous>, transform_indices = @transform_19, window_bounds = array<i64: 2, 64, 196>}, {pipeline_mode = #tpu.pipeline_mode<synchronous>, transform_indices = @transform_20, window_bounds = array<i64: 2, 64, 1>}]} {
    %cst = arith.constant 0.000000e+00 : bf16
    %0 = vector.broadcast %cst : bf16 to vector<32x128xbf16>
    %c0 = arith.constant 0 : index
    %c0_0 = arith.constant 0 : index
    %1 = vector.load %arg22[%c0, %c0_0] : memref<32x1040xbf16, #tpu.memory_space<vmem>>, vector<32x128xbf16>
    tpu.vector_store %arg22[%c0, %c0_0], %0 {strides = array<i32>} : memref<32x1040xbf16, #tpu.memory_space<vmem>>, vector<32x128xbf16>,
    %cst_1 = arith.constant 0.000000e+00 : bf16
    %2 = vector.broadcast %cst_1 : bf16 to vector<32x128xbf16>
    %c0_2 = arith.constant 0 : index
    %c912 = arith.constant 912 : index
    %3 = vector.load %arg22[%c0_2, %c912] : memref<32x1040xbf16, #tpu.memory_space<vmem>>, vector<32x128xbf16>
    tpu.vector_store %arg22[%c0_2, %c912], %2 {strides = array<i32>} : memref<32x1040xbf16, #tpu.memory_space<vmem>>, vector<32x128xbf16>,
    %c0_3 = arith.constant 0 : index
    %c0_4 = arith.constant 0 : index
    %c0_5 = arith.constant 0 : index
    %4 = vector.load %arg2[%c0_3, %c0_4, %c0_5] : memref<9x8x1xf32, #tpu.memory_space<vmem>>, vector<9x8x1xf32>
    %c0_6 = arith.constant 0 : index
    %c0_7 = arith.constant 0 : index
    %5 = vector.load %arg11[%c0_6, %c0_7] : memref<3x784xbf16, #tpu.memory_space<vmem>>, vector<3x784xbf16>
    %c0_8 = arith.constant 0 : index
    %c0_9 = arith.constant 0 : index
    %6 = vector.load %arg12[%c0_8, %c0_9] : memref<3x196xbf16, #tpu.memory_space<vmem>>, vector<3x196xbf16>
    %c0_10 = arith.constant 0 : index
    %c0_11 = arith.constant 0 : index
    %c0_12 = arith.constant 0 : index
    %7 = vector.load %arg1[%c0_10, %c0_11, %c0_12] : memref<2x1x784xf32, #tpu.memory_space<vmem>>, vector<1x1x784xf32>
    %8 = vector.shape_cast %7 : vector<1x1x784xf32> to vector<1x784xf32>
    %9 = vector.shape_cast %8 : vector<1x784xf32> to vector<1x784xf32>
    %10 = vector.broadcast %9 : vector<1x784xf32> to vector<2x784xf32>
    %11 = arith.truncf %10 : vector<2x784xf32> to vector<2x784xbf16>
    %c0_13 = arith.constant 0 : index
    %c128 = arith.constant 128 : index
    %12 = vector.load %arg22[%c0_13, %c128] : memref<32x1040xbf16, #tpu.memory_space<vmem>>, vector<2x784xbf16>
    tpu.vector_store %arg22[%c0_13, %c128], %11 {strides = array<i32>} : memref<32x1040xbf16, #tpu.memory_space<vmem>>, vector<2x784xbf16>,
    %cst_14 = arith.constant 0.000000e+00 : f32
    %13 = vector.broadcast %cst_14 : f32 to vector<8x784xf32>
    %c0_15 = arith.constant 0 : index
    %c99 = arith.constant 99 : index
    %14 = vector.load %arg22[%c0_15, %c99] : memref<32x1040xbf16, #tpu.memory_space<vmem>>, vector<1x784xbf16>
    %15 = vector.extract_strided_slice %5 {offsets = [0, 0], sizes = [1, 784], strides = [1, 1]} : vector<3x784xbf16> to vector<1x784xbf16>
    %16 = arith.mulf %14, %15 : vector<1x784xbf16>
    %17 = vector.extract_strided_slice %4 {offsets = [0, 0, 0], sizes = [1, 8, 1], strides = [1, 1, 1]} : vector<9x8x1xf32> to vector<1x8x1xf32>
    %18 = vector.shape_cast %17 : vector<1x8x1xf32> to vector<8x1xf32>
    %19 = arith.extf %16 : vector<1x784xbf16> to vector<1x784xf32>
    %20 = vector.broadcast %18 : vector<8x1xf32> to vector<8x784xf32>
    %21 = vector.broadcast %19 : vector<1x784xf32> to vector<8x784xf32>
    %22 = arith.mulf %20, %21 : vector<8x784xf32>
    %23 = arith.addf %13, %22 : vector<8x784xf32>
    %c0_16 = arith.constant 0 : index
    %c100 = arith.constant 100 : index
    %24 = vector.load %arg22[%c0_16, %c100] : memref<32x1040xbf16, #tpu.memory_space<vmem>>, vector<1x784xbf16>
    %25 = vector.extract_strided_slice %4 {offsets = [1, 0, 0], sizes = [1, 8, 1], strides = [1, 1, 1]} : vector<9x8x1xf32> to vector<1x8x1xf32>
    %26 = vector.shape_cast %25 : vector<1x8x1xf32> to vector<8x1xf32>
    %27 = arith.extf %24 : vector<1x784xbf16> to vector<1x784xf32>
    %28 = vector.broadcast %26 : vector<8x1xf32> to vector<8x784xf32>
    %29 = vector.broadcast %27 : vector<1x784xf32> to vector<8x784xf32>
    %30 = arith.mulf %28, %29 : vector<8x784xf32>
    %31 = arith.addf %23, %30 : vector<8x784xf32>
    %c0_17 = arith.constant 0 : index
    %c101 = arith.constant 101 : index
    %32 = vector.load %arg22[%c0_17, %c101] : memref<32x1040xbf16, #tpu.memory_space<vmem>>, vector<1x784xbf16>
    %33 = vector.extract_strided_slice %5 {offsets = [2, 0], sizes = [1, 784], strides = [1, 1]} : vector<3x784xbf16> to vector<1x784xbf16>
    %34 = arith.mulf %32, %33 : vector<1x784xbf16>
    %35 = vector.extract_strided_slice %4 {offsets = [2, 0, 0], sizes = [1, 8, 1], strides = [1, 1, 1]} : vector<9x8x1xf32> to vector<1x8x1xf32>
    %36 = vector.shape_cast %35 : vector<1x8x1xf32> to vector<8x1xf32>
    %37 = arith.extf %34 : vector<1x784xbf16> to vector<1x784xf32>
    %38 = vector.broadcast %36 : vector<8x1xf32> to vector<8x784xf32>
    %39 = vector.broadcast %37 : vector<1x784xf32> to vector<8x784xf32>
    %40 = arith.mulf %38, %39 : vector<8x784xf32>
    %41 = arith.addf %31, %40 : vector<8x784xf32>
    %c0_18 = arith.constant 0 : index
    %c127 = arith.constant 127 : index
    %42 = vector.load %arg22[%c0_18, %c127] : memref<32x1040xbf16, #tpu.memory_space<vmem>>, vector<1x784xbf16>
    %43 = vector.extract_strided_slice %5 {offsets = [0, 0], sizes = [1, 784], strides = [1, 1]} : vector<3x784xbf16> to vector<1x784xbf16>
    %44 = arith.mulf %42, %43 : vector<1x784xbf16>
    %45 = vector.extract_strided_slice %4 {offsets = [3, 0, 0], sizes = [1, 8, 1], strides = [1, 1, 1]} : vector<9x8x1xf32> to vector<1x8x1xf32>
    %46 = vector.shape_cast %45 : vector<1x8x1xf32> to vector<8x1xf32>
    %47 = arith.extf %44 : vector<1x784xbf16> to vector<1x784xf32>
    %48 = vector.broadcast %46 : vector<8x1xf32> to vector<8x784xf32>
    %49 = vector.broadcast %47 : vector<1x784xf32> to vector<8x784xf32>
    %50 = arith.mulf %48, %49 : vector<8x784xf32>
    %51 = arith.addf %41, %50 : vector<8x784xf32>
    %c0_19 = arith.constant 0 : index
    %c128_20 = arith.constant 128 : index
    %52 = vector.load %arg22[%c0_19, %c128_20] : memref<32x1040xbf16, #tpu.memory_space<vmem>>, vector<1x784xbf16>
    %53 = vector.extract_strided_slice %4 {offsets = [4, 0, 0], sizes = [1, 8, 1], strides = [1, 1, 1]} : vector<9x8x1xf32> to vector<1x8x1xf32>
    %54 = vector.shape_cast %53 : vector<1x8x1xf32> to vector<8x1xf32>
    %55 = arith.extf %52 : vector<1x784xbf16> to vector<1x784xf32>
    %56 = vector.broadcast %54 : vector<8x1xf32> to vector<8x784xf32>
    %57 = vector.broadcast %55 : vector<1x784xf32> to vector<8x784xf32>
    %58 = arith.mulf %56, %57 : vector<8x784xf32>
    %59 = arith.addf %51, %58 : vector<8x784xf32>
    %c0_21 = arith.constant 0 : index
    %c129 = arith.constant 129 : index
    %60 = vector.load %arg22[%c0_21, %c129] : memref<32x1040xbf16, #tpu.memory_space<vmem>>, vector<1x784xbf16>
    %61 = vector.extract_strided_slice %5 {offsets = [2, 0], sizes = [1, 784], strides = [1, 1]} : vector<3x784xbf16> to vector<1x784xbf16>
    %62 = arith.mulf %60, %61 : vector<1x784xbf16>
    %63 = vector.extract_strided_slice %4 {offsets = [5, 0, 0], sizes = [1, 8, 1], strides = [1, 1, 1]} : vector<9x8x1xf32> to vector<1x8x1xf32>
    %64 = vector.shape_cast %63 : vector<1x8x1xf32> to vector<8x1xf32>
    %65 = arith.extf %62 : vector<1x784xbf16> to vector<1x784xf32>
    %66 = vector.broadcast %64 : vector<8x1xf32> to vector<8x784xf32>
    %67 = vector.broadcast %65 : vector<1x784xf32> to vector<8x784xf32>
    %68 = arith.mulf %66, %67 : vector<8x784xf32>
    %69 = arith.addf %59, %68 : vector<8x784xf32>
    %c0_22 = arith.constant 0 : index
    %c155 = arith.constant 155 : index
    %70 = vector.load %arg22[%c0_22, %c155] : memref<32x1040xbf16, #tpu.memory_space<vmem>>, vector<1x784xbf16>
    %71 = vector.extract_strided_slice %5 {offsets = [0, 0], sizes = [1, 784], strides = [1, 1]} : vector<3x784xbf16> to vector<1x784xbf16>
    %72 = arith.mulf %70, %71 : vector<1x784xbf16>
    %73 = vector.extract_strided_slice %4 {offsets = [6, 0, 0], sizes = [1, 8, 1], strides = [1, 1, 1]} : vector<9x8x1xf32> to vector<1x8x1xf32>
    %74 = vector.shape_cast %73 : vector<1x8x1xf32> to vector<8x1xf32>
    %75 = arith.extf %72 : vector<1x784xbf16> to vector<1x784xf32>
    %76 = vector.broadcast %74 : vector<8x1xf32> to vector<8x784xf32>
    %77 = vector.broadcast %75 : vector<1x784xf32> to vector<8x784xf32>
    %78 = arith.mulf %76, %77 : vector<8x784xf32>
    %79 = arith.addf %69, %78 : vector<8x784xf32>
    %c0_23 = arith.constant 0 : index
    %c156 = arith.constant 156 : index
    %80 = vector.load %arg22[%c0_23, %c156] : memref<32x1040xbf16, #tpu.memory_space<vmem>>, vector<1x784xbf16>
    %81 = vector.extract_strided_slice %4 {offsets = [7, 0, 0], sizes = [1, 8, 1], strides = [1, 1, 1]} : vector<9x8x1xf32> to vector<1x8x1xf32>
    %82 = vector.shape_cast %81 : vector<1x8x1xf32> to vector<8x1xf32>
    %83 = arith.extf %80 : vector<1x784xbf16> to vector<1x784xf32>
    %84 = vector.broadcast %82 : vector<8x1xf32> to vector<8x784xf32>
    %85 = vector.broadcast %83 : vector<1x784xf32> to vector<8x784xf32>
    %86 = arith.mulf %84, %85 : vector<8x784xf32>
    %87 = arith.addf %79, %86 : vector<8x784xf32>
    %c0_24 = arith.constant 0 : index
    %c157 = arith.constant 157 : index
    %88 = vector.load %arg22[%c0_24, %c157] : memref<32x1040xbf16, #tpu.memory_space<vmem>>, vector<1x784xbf16>
    %89 = vector.extract_strided_slice %5 {offsets = [2, 0], sizes = [1, 784], strides = [1, 1]} : vector<3x784xbf16> to vector<1x784xbf16>
    %90 = arith.mulf %88, %89 : vector<1x784xbf16>
    %91 = vector.extract_strided_slice %4 {offsets = [8, 0, 0], sizes = [1, 8, 1], strides = [1, 1, 1]} : vector<9x8x1xf32> to vector<1x8x1xf32>
    %92 = vector.shape_cast %91 : vector<1x8x1xf32> to vector<8x1xf32>
    %93 = arith.extf %90 : vector<1x784xbf16> to vector<1x784xf32>
    %94 = vector.broadcast %92 : vector<8x1xf32> to vector<8x784xf32>
    %95 = vector.broadcast %93 : vector<1x784xf32> to vector<8x784xf32>
    %96 = arith.mulf %94, %95 : vector<8x784xf32>
    %97 = arith.addf %87, %96 : vector<8x784xf32>
    %c0_25 = arith.constant 0 : index
    %c0_26 = arith.constant 0 : index
    %c0_27 = arith.constant 0 : index
    %98 = vector.load %arg15[%c0_25, %c0_26, %c0_27] : memref<2x8x784xf32, #tpu.memory_space<vmem>>, vector<1x8x784xf32>
    %99 = vector.shape_cast %98 : vector<1x8x784xf32> to vector<8x784xf32>
    %100 = vector.shape_cast %97 : vector<8x784xf32> to vector<1x8x784xf32>
    tpu.vector_store %arg15[%c0_25, %c0_26, %c0_27], %100 {strides = array<i32>} : memref<2x8x784xf32, #tpu.memory_space<vmem>>, vector<1x8x784xf32>,
    %c1 = arith.constant 1 : index
    %c0_28 = arith.constant 0 : index
    %c0_29 = arith.constant 0 : index
    %101 = vector.load %arg1[%c1, %c0_28, %c0_29] : memref<2x1x784xf32, #tpu.memory_space<vmem>>, vector<1x1x784xf32>
    %102 = vector.shape_cast %101 : vector<1x1x784xf32> to vector<1x784xf32>
    %103 = vector.shape_cast %102 : vector<1x784xf32> to vector<1x784xf32>
    %104 = vector.broadcast %103 : vector<1x784xf32> to vector<2x784xf32>
    %105 = arith.truncf %104 : vector<2x784xf32> to vector<2x784xbf16>
    %c0_30 = arith.constant 0 : index
    %c128_31 = arith.constant 128 : index
    %106 = vector.load %arg22[%c0_30, %c128_31] : memref<32x1040xbf16, #tpu.memory_space<vmem>>, vector<2x784xbf16>
    tpu.vector_store %arg22[%c0_30, %c128_31], %105 {strides = array<i32>} : memref<32x1040xbf16, #tpu.memory_space<vmem>>, vector<2x784xbf16>,
    %cst_32 = arith.constant 0.000000e+00 : f32
    %107 = vector.broadcast %cst_32 : f32 to vector<8x784xf32>
    %c0_33 = arith.constant 0 : index
    %c99_34 = arith.constant 99 : index
    %108 = vector.load %arg22[%c0_33, %c99_34] : memref<32x1040xbf16, #tpu.memory_space<vmem>>, vector<1x784xbf16>
    %109 = vector.extract_strided_slice %5 {offsets = [0, 0], sizes = [1, 784], strides = [1, 1]} : vector<3x784xbf16> to vector<1x784xbf16>
    %110 = arith.mulf %108, %109 : vector<1x784xbf16>
    %111 = vector.extract_strided_slice %4 {offsets = [0, 0, 0], sizes = [1, 8, 1], strides = [1, 1, 1]} : vector<9x8x1xf32> to vector<1x8x1xf32>
    %112 = vector.shape_cast %111 : vector<1x8x1xf32> to vector<8x1xf32>
    %113 = arith.extf %110 : vector<1x784xbf16> to vector<1x784xf32>
    %114 = vector.broadcast %112 : vector<8x1xf32> to vector<8x784xf32>
    %115 = vector.broadcast %113 : vector<1x784xf32> to vector<8x784xf32>
    %116 = arith.mulf %114, %115 : vector<8x784xf32>
    %117 = arith.addf %107, %116 : vector<8x784xf32>
    %c0_35 = arith.constant 0 : index
    %c100_36 = arith.constant 100 : index
    %118 = vector.load %arg22[%c0_35, %c100_36] : memref<32x1040xbf16, #tpu.memory_space<vmem>>, vector<1x784xbf16>
    %119 = vector.extract_strided_slice %4 {offsets = [1, 0, 0], sizes = [1, 8, 1], strides = [1, 1, 1]} : vector<9x8x1xf32> to vector<1x8x1xf32>
    %120 = vector.shape_cast %119 : vector<1x8x1xf32> to vector<8x1xf32>
    %121 = arith.extf %118 : vector<1x784xbf16> to vector<1x784xf32>
    %122 = vector.broadcast %120 : vector<8x1xf32> to vector<8x784xf32>
    %123 = vector.broadcast %121 : vector<1x784xf32> to vector<8x784xf32>
    %124 = arith.mulf %122, %123 : vector<8x784xf32>
    %125 = arith.addf %117, %124 : vector<8x784xf32>
    %c0_37 = arith.constant 0 : index
    %c101_38 = arith.constant 101 : index
    %126 = vector.load %arg22[%c0_37, %c101_38] : memref<32x1040xbf16, #tpu.memory_space<vmem>>, vector<1x784xbf16>
    %127 = vector.extract_strided_slice %5 {offsets = [2, 0], sizes = [1, 784], strides = [1, 1]} : vector<3x784xbf16> to vector<1x784xbf16>
    %128 = arith.mulf %126, %127 : vector<1x784xbf16>
    %129 = vector.extract_strided_slice %4 {offsets = [2, 0, 0], sizes = [1, 8, 1], strides = [1, 1, 1]} : vector<9x8x1xf32> to vector<1x8x1xf32>
    %130 = vector.shape_cast %129 : vector<1x8x1xf32> to vector<8x1xf32>
    %131 = arith.extf %128 : vector<1x784xbf16> to vector<1x784xf32>
    %132 = vector.broadcast %130 : vector<8x1xf32> to vector<8x784xf32>
    %133 = vector.broadcast %131 : vector<1x784xf32> to vector<8x784xf32>
    %134 = arith.mulf %132, %133 : vector<8x784xf32>
    %135 = arith.addf %125, %134 : vector<8x784xf32>
    %c0_39 = arith.constant 0 : index
    %c127_40 = arith.constant 127 : index
    %136 = vector.load %arg22[%c0_39, %c127_40] : memref<32x1040xbf16, #tpu.memory_space<vmem>>, vector<1x784xbf16>
    %137 = vector.extract_strided_slice %5 {offsets = [0, 0], sizes = [1, 784], strides = [1, 1]} : vector<3x784xbf16> to vector<1x784xbf16>
    %138 = arith.mulf %136, %137 : vector<1x784xbf16>
    %139 = vector.extract_strided_slice %4 {offsets = [3, 0, 0], sizes = [1, 8, 1], strides = [1, 1, 1]} : vector<9x8x1xf32> to vector<1x8x1xf32>
    %140 = vector.shape_cast %139 : vector<1x8x1xf32> to vector<8x1xf32>
    %141 = arith.extf %138 : vector<1x784xbf16> to vector<1x784xf32>
    %142 = vector.broadcast %140 : vector<8x1xf32> to vector<8x784xf32>
    %143 = vector.broadcast %141 : vector<1x784xf32> to vector<8x784xf32>
    %144 = arith.mulf %142, %143 : vector<8x784xf32>
    %145 = arith.addf %135, %144 : vector<8x784xf32>
    %c0_41 = arith.constant 0 : index
    %c128_42 = arith.constant 128 : index
    %146 = vector.load %arg22[%c0_41, %c128_42] : memref<32x1040xbf16, #tpu.memory_space<vmem>>, vector<1x784xbf16>
    %147 = vector.extract_strided_slice %4 {offsets = [4, 0, 0], sizes = [1, 8, 1], strides = [1, 1, 1]} : vector<9x8x1xf32> to vector<1x8x1xf32>
    %148 = vector.shape_cast %147 : vector<1x8x1xf32> to vector<8x1xf32>
    %149 = arith.extf %146 : vector<1x784xbf16> to vector<1x784xf32>
    %150 = vector.broadcast %148 : vector<8x1xf32> to vector<8x784xf32>
    %151 = vector.broadcast %149 : vector<1x784xf32> to vector<8x784xf32>
    %152 = arith.mulf %150, %151 : vector<8x784xf32>
    %153 = arith.addf %145, %152 : vector<8x784xf32>
    %c0_43 = arith.constant 0 : index
    %c129_44 = arith.constant 129 : index
    %154 = vector.load %arg22[%c0_43, %c129_44] : memref<32x1040xbf16, #tpu.memory_space<vmem>>, vector<1x784xbf16>
    %155 = vector.extract_strided_slice %5 {offsets = [2, 0], sizes = [1, 784], strides = [1, 1]} : vector<3x784xbf16> to vector<1x784xbf16>
    %156 = arith.mulf %154, %155 : vector<1x784xbf16>
    %157 = vector.extract_strided_slice %4 {offsets = [5, 0, 0], sizes = [1, 8, 1], strides = [1, 1, 1]} : vector<9x8x1xf32> to vector<1x8x1xf32>
    %158 = vector.shape_cast %157 : vector<1x8x1xf32> to vector<8x1xf32>
    %159 = arith.extf %156 : vector<1x784xbf16> to vector<1x784xf32>
    %160 = vector.broadcast %158 : vector<8x1xf32> to vector<8x784xf32>
    %161 = vector.broadcast %159 : vector<1x784xf32> to vector<8x784xf32>
    %162 = arith.mulf %160, %161 : vector<8x784xf32>
    %163 = arith.addf %153, %162 : vector<8x784xf32>
    %c0_45 = arith.constant 0 : index
    %c155_46 = arith.constant 155 : index
    %164 = vector.load %arg22[%c0_45, %c155_46] : memref<32x1040xbf16, #tpu.memory_space<vmem>>, vector<1x784xbf16>
    %165 = vector.extract_strided_slice %5 {offsets = [0, 0], sizes = [1, 784], strides = [1, 1]} : vector<3x784xbf16> to vector<1x784xbf16>
    %166 = arith.mulf %164, %165 : vector<1x784xbf16>
    %167 = vector.extract_strided_slice %4 {offsets = [6, 0, 0], sizes = [1, 8, 1], strides = [1, 1, 1]} : vector<9x8x1xf32> to vector<1x8x1xf32>
    %168 = vector.shape_cast %167 : vector<1x8x1xf32> to vector<8x1xf32>
    %169 = arith.extf %166 : vector<1x784xbf16> to vector<1x784xf32>
    %170 = vector.broadcast %168 : vector<8x1xf32> to vector<8x784xf32>
    %171 = vector.broadcast %169 : vector<1x784xf32> to vector<8x784xf32>
    %172 = arith.mulf %170, %171 : vector<8x784xf32>
    %173 = arith.addf %163, %172 : vector<8x784xf32>
    %c0_47 = arith.constant 0 : index
    %c156_48 = arith.constant 156 : index
    %174 = vector.load %arg22[%c0_47, %c156_48] : memref<32x1040xbf16, #tpu.memory_space<vmem>>, vector<1x784xbf16>
    %175 = vector.extract_strided_slice %4 {offsets = [7, 0, 0], sizes = [1, 8, 1], strides = [1, 1, 1]} : vector<9x8x1xf32> to vector<1x8x1xf32>
    %176 = vector.shape_cast %175 : vector<1x8x1xf32> to vector<8x1xf32>
    %177 = arith.extf %174 : vector<1x784xbf16> to vector<1x784xf32>
    %178 = vector.broadcast %176 : vector<8x1xf32> to vector<8x784xf32>
    %179 = vector.broadcast %177 : vector<1x784xf32> to vector<8x784xf32>
    %180 = arith.mulf %178, %179 : vector<8x784xf32>
    %181 = arith.addf %173, %180 : vector<8x784xf32>
    %c0_49 = arith.constant 0 : index
    %c157_50 = arith.constant 157 : index
    %182 = vector.load %arg22[%c0_49, %c157_50] : memref<32x1040xbf16, #tpu.memory_space<vmem>>, vector<1x784xbf16>
    %183 = vector.extract_strided_slice %5 {offsets = [2, 0], sizes = [1, 784], strides = [1, 1]} : vector<3x784xbf16> to vector<1x784xbf16>
    %184 = arith.mulf %182, %183 : vector<1x784xbf16>
    %185 = vector.extract_strided_slice %4 {offsets = [8, 0, 0], sizes = [1, 8, 1], strides = [1, 1, 1]} : vector<9x8x1xf32> to vector<1x8x1xf32>
    %186 = vector.shape_cast %185 : vector<1x8x1xf32> to vector<8x1xf32>
    %187 = arith.extf %184 : vector<1x784xbf16> to vector<1x784xf32>
    %188 = vector.broadcast %186 : vector<8x1xf32> to vector<8x784xf32>
    %189 = vector.broadcast %187 : vector<1x784xf32> to vector<8x784xf32>
    %190 = arith.mulf %188, %189 : vector<8x784xf32>
    %191 = arith.addf %181, %190 : vector<8x784xf32>
    %c1_51 = arith.constant 1 : index
    %c0_52 = arith.constant 0 : index
    %c0_53 = arith.constant 0 : index
    %192 = vector.load %arg15[%c1_51, %c0_52, %c0_53] : memref<2x8x784xf32, #tpu.memory_space<vmem>>, vector<1x8x784xf32>
    %193 = vector.shape_cast %192 : vector<1x8x784xf32> to vector<8x784xf32>
    %194 = vector.shape_cast %191 : vector<8x784xf32> to vector<1x8x784xf32>
    tpu.vector_store %arg15[%c1_51, %c0_52, %c0_53], %194 {strides = array<i32>} : memref<2x8x784xf32, #tpu.memory_space<vmem>>, vector<1x8x784xf32>,
    %c0_54 = arith.constant 0 : index
    %c0_55 = arith.constant 0 : index
    %c0_56 = arith.constant 0 : index
    %195 = vector.load %arg15[%c0_54, %c0_55, %c0_56] : memref<2x8x784xf32, #tpu.memory_space<vmem>>, vector<1x8x784xf32>
    %196 = vector.shape_cast %195 : vector<1x8x784xf32> to vector<8x784xf32>
    %cst_57 = arith.constant dense<0.000000e+00> : vector<8xf32>
    %197 = vector.multi_reduction <add>, %196, %cst_57 [1] : vector<8x784xf32> to vector<8xf32>
    %198 = vector.shape_cast %197 : vector<8xf32> to vector<8x1xf32>
    %c1_58 = arith.constant 1 : index
    %c0_59 = arith.constant 0 : index
    %c0_60 = arith.constant 0 : index
    %199 = vector.load %arg15[%c1_58, %c0_59, %c0_60] : memref<2x8x784xf32, #tpu.memory_space<vmem>>, vector<1x8x784xf32>
    %200 = vector.shape_cast %199 : vector<1x8x784xf32> to vector<8x784xf32>
    %cst_61 = arith.constant dense<0.000000e+00> : vector<8xf32>
    %201 = vector.multi_reduction <add>, %200, %cst_61 [1] : vector<8x784xf32> to vector<8xf32>
    %202 = vector.shape_cast %201 : vector<8xf32> to vector<8x1xf32>
    %203 = arith.addf %198, %202 : vector<8x1xf32>
    %cst_62 = arith.constant 6.37755089E-4 : f32
    %204 = vector.broadcast %cst_62 : f32 to vector<8x1xf32>
    %205 = arith.mulf %203, %204 : vector<8x1xf32>
    %c0_63 = arith.constant 0 : index
    %c0_64 = arith.constant 0 : index
    %c0_65 = arith.constant 0 : index
    %206 = vector.load %arg15[%c0_63, %c0_64, %c0_65] : memref<2x8x784xf32, #tpu.memory_space<vmem>>, vector<1x8x784xf32>
    %207 = vector.shape_cast %206 : vector<1x8x784xf32> to vector<8x784xf32>
    %208 = vector.broadcast %205 : vector<8x1xf32> to vector<8x784xf32>
    %209 = arith.subf %207, %208 : vector<8x784xf32>
    %210 = arith.mulf %209, %209 : vector<8x784xf32>
    %cst_66 = arith.constant dense<0.000000e+00> : vector<8xf32>
    %211 = vector.multi_reduction <add>, %210, %cst_66 [1] : vector<8x784xf32> to vector<8xf32>
    %212 = vector.shape_cast %211 : vector<8xf32> to vector<8x1xf32>
    %c1_67 = arith.constant 1 : index
    %c0_68 = arith.constant 0 : index
    %c0_69 = arith.constant 0 : index
    %213 = vector.load %arg15[%c1_67, %c0_68, %c0_69] : memref<2x8x784xf32, #tpu.memory_space<vmem>>, vector<1x8x784xf32>
    %214 = vector.shape_cast %213 : vector<1x8x784xf32> to vector<8x784xf32>
    %215 = vector.broadcast %205 : vector<8x1xf32> to vector<8x784xf32>
    %216 = arith.subf %214, %215 : vector<8x784xf32>
    %217 = arith.mulf %216, %216 : vector<8x784xf32>
    %cst_70 = arith.constant dense<0.000000e+00> : vector<8xf32>
    %218 = vector.multi_reduction <add>, %217, %cst_70 [1] : vector<8x784xf32> to vector<8xf32>
    %219 = vector.shape_cast %218 : vector<8xf32> to vector<8x1xf32>
    %220 = arith.addf %212, %219 : vector<8x1xf32>
    %cst_71 = arith.constant 6.37755089E-4 : f32
    %221 = vector.broadcast %cst_71 : f32 to vector<8x1xf32>
    %222 = arith.mulf %220, %221 : vector<8x1xf32>
    %c0_72 = arith.constant 0 : index
    %c0_73 = arith.constant 0 : index
    %223 = vector.load %arg7[%c0_72, %c0_73] : memref<8x1xf32, #tpu.memory_space<vmem>>, vector<8x1xf32>
    %cst_74 = arith.constant 9.99999974E-6 : f32
    %224 = vector.broadcast %cst_74 : f32 to vector<8x1xf32>
    %225 = arith.addf %222, %224 : vector<8x1xf32>
    %226 = math.rsqrt %225 : vector<8x1xf32>
    %227 = arith.mulf %223, %226 : vector<8x1xf32>
    %c0_75 = arith.constant 0 : index
    %c0_76 = arith.constant 0 : index
    %228 = vector.load %arg8[%c0_75, %c0_76] : memref<8x1xf32, #tpu.memory_space<vmem>>, vector<8x1xf32>
    %229 = arith.mulf %205, %227 : vector<8x1xf32>
    %230 = arith.subf %228, %229 : vector<8x1xf32>
    %c0_77 = arith.constant 0 : index
    %c0_78 = arith.constant 0 : index
    %231 = vector.load %arg3[%c0_77, %c0_78] : memref<32x72xbf16, #tpu.memory_space<vmem>>, vector<32x72xbf16>
    %c0_79 = arith.constant 0 : index
    %c0_80 = arith.constant 0 : index
    %232 = vector.load %arg13[%c0_79, %c0_80] : memref<755x196xf32, #tpu.memory_space<vmem>>, vector<755x196xf32>
    %c0_81 = arith.constant 0 : index
    %c0_82 = arith.constant 0 : index
    %c0_83 = arith.constant 0 : index
    %233 = vector.load %arg15[%c0_81, %c0_82, %c0_83] : memref<2x8x784xf32, #tpu.memory_space<vmem>>, vector<1x8x784xf32>
    %234 = vector.shape_cast %233 : vector<1x8x784xf32> to vector<8x784xf32>
    %235 = vector.broadcast %227 : vector<8x1xf32> to vector<8x784xf32>
    %236 = arith.mulf %234, %235 : vector<8x784xf32>
    %237 = vector.broadcast %230 : vector<8x1xf32> to vector<8x784xf32>
    %238 = arith.addf %236, %237 : vector<8x784xf32>
    %c0_84 = arith.constant 0 : index
    %c0_85 = arith.constant 0 : index
    %c0_86 = arith.constant 0 : index
    %239 = vector.load %arg16[%c0_84, %c0_85, %c0_86] : memref<2x8x784xf32, #tpu.memory_space<vmem>>, vector<1x8x784xf32>
    %240 = vector.shape_cast %239 : vector<1x8x784xf32> to vector<8x784xf32>
    %241 = vector.shape_cast %238 : vector<8x784xf32> to vector<1x8x784xf32>
    tpu.vector_store %arg16[%c0_84, %c0_85, %c0_86], %241 {strides = array<i32>} : memref<2x8x784xf32, #tpu.memory_space<vmem>>, vector<1x8x784xf32>,
    %cst_87 = arith.constant 0.000000e+00 : f32
    %242 = vector.broadcast %cst_87 : f32 to vector<8x784xf32>
    %243 = arith.maximumf %238, %242 : vector<8x784xf32>
    %c0_88 = arith.constant 0 : index
    %c0_89 = arith.constant 0 : index
    %c0_90 = arith.constant 0 : index
    %244 = vector.load %arg17[%c0_88, %c0_89, %c0_90] : memref<2x8x784xf32, #tpu.memory_space<vmem>>, vector<1x8x784xf32>
    %245 = vector.shape_cast %244 : vector<1x8x784xf32> to vector<8x784xf32>
    %246 = vector.shape_cast %243 : vector<8x784xf32> to vector<1x8x784xf32>
    tpu.vector_store %arg17[%c0_88, %c0_89, %c0_90], %246 {strides = array<i32>} : memref<2x8x784xf32, #tpu.memory_space<vmem>>, vector<1x8x784xf32>,
    %247 = arith.truncf %243 : vector<8x784xf32> to vector<8x784xbf16>
    %c0_91 = arith.constant 0 : index
    %c128_92 = arith.constant 128 : index
    %248 = vector.load %arg22[%c0_91, %c128_92] : memref<32x1040xbf16, #tpu.memory_space<vmem>>, vector<8x784xbf16>
    tpu.vector_store %arg22[%c0_91, %c128_92], %247 {strides = array<i32>} : memref<32x1040xbf16, #tpu.memory_space<vmem>>, vector<8x784xbf16>,
    %c0_93 = arith.constant 0 : index
    %c99_94 = arith.constant 99 : index
    %249 = vector.load %arg22[%c0_93, %c99_94] : memref<32x1040xbf16, #tpu.memory_space<vmem>>, vector<8x784xbf16>
    %250 = vector.extract_strided_slice %5 {offsets = [0, 0], sizes = [1, 784], strides = [1, 1]} : vector<3x784xbf16> to vector<1x784xbf16>
    %251 = vector.broadcast %250 : vector<1x784xbf16> to vector<8x784xbf16>
    %252 = arith.mulf %249, %251 : vector<8x784xbf16>
    %c0_95 = arith.constant 0 : index
    %c0_96 = arith.constant 0 : index
    %253 = vector.load %arg23[%c0_95, %c0_96] : memref<288x784xbf16, #tpu.memory_space<vmem>>, vector<8x784xbf16>
    tpu.vector_store %arg23[%c0_95, %c0_96], %252 {strides = array<i32>} : memref<288x784xbf16, #tpu.memory_space<vmem>>, vector<8x784xbf16>,
    %c0_97 = arith.constant 0 : index
    %c100_98 = arith.constant 100 : index
    %254 = vector.load %arg22[%c0_97, %c100_98] : memref<32x1040xbf16, #tpu.memory_space<vmem>>, vector<8x784xbf16>
    %c8 = arith.constant 8 : index
    %c0_99 = arith.constant 0 : index
    %255 = vector.load %arg23[%c8, %c0_99] : memref<288x784xbf16, #tpu.memory_space<vmem>>, vector<8x784xbf16>
    tpu.vector_store %arg23[%c8, %c0_99], %254 {strides = array<i32>} : memref<288x784xbf16, #tpu.memory_space<vmem>>, vector<8x784xbf16>,
    %c0_100 = arith.constant 0 : index
    %c101_101 = arith.constant 101 : index
    %256 = vector.load %arg22[%c0_100, %c101_101] : memref<32x1040xbf16, #tpu.memory_space<vmem>>, vector<8x784xbf16>
    %257 = vector.extract_strided_slice %5 {offsets = [2, 0], sizes = [1, 784], strides = [1, 1]} : vector<3x784xbf16> to vector<1x784xbf16>
    %258 = vector.broadcast %257 : vector<1x784xbf16> to vector<8x784xbf16>
    %259 = arith.mulf %256, %258 : vector<8x784xbf16>
    %c16 = arith.constant 16 : index
    %c0_102 = arith.constant 0 : index
    %260 = vector.load %arg23[%c16, %c0_102] : memref<288x784xbf16, #tpu.memory_space<vmem>>, vector<8x784xbf16>
    tpu.vector_store %arg23[%c16, %c0_102], %259 {strides = array<i32>} : memref<288x784xbf16, #tpu.memory_space<vmem>>, vector<8x784xbf16>,
    %c0_103 = arith.constant 0 : index
    %c127_104 = arith.constant 127 : index
    %261 = vector.load %arg22[%c0_103, %c127_104] : memref<32x1040xbf16, #tpu.memory_space<vmem>>, vector<8x784xbf16>
    %262 = vector.extract_strided_slice %5 {offsets = [0, 0], sizes = [1, 784], strides = [1, 1]} : vector<3x784xbf16> to vector<1x784xbf16>
    %263 = vector.broadcast %262 : vector<1x784xbf16> to vector<8x784xbf16>
    %264 = arith.mulf %261, %263 : vector<8x784xbf16>
    %c24 = arith.constant 24 : index
    %c0_105 = arith.constant 0 : index
    %265 = vector.load %arg23[%c24, %c0_105] : memref<288x784xbf16, #tpu.memory_space<vmem>>, vector<8x784xbf16>
    tpu.vector_store %arg23[%c24, %c0_105], %264 {strides = array<i32>} : memref<288x784xbf16, #tpu.memory_space<vmem>>, vector<8x784xbf16>,
    %c0_106 = arith.constant 0 : index
    %c128_107 = arith.constant 128 : index
    %266 = vector.load %arg22[%c0_106, %c128_107] : memref<32x1040xbf16, #tpu.memory_space<vmem>>, vector<8x784xbf16>
    %c32 = arith.constant 32 : index
    %c0_108 = arith.constant 0 : index
    %267 = vector.load %arg23[%c32, %c0_108] : memref<288x784xbf16, #tpu.memory_space<vmem>>, vector<8x784xbf16>
    tpu.vector_store %arg23[%c32, %c0_108], %266 {strides = array<i32>} : memref<288x784xbf16, #tpu.memory_space<vmem>>, vector<8x784xbf16>,
    %c0_109 = arith.constant 0 : index
    %c129_110 = arith.constant 129 : index
    %268 = vector.load %arg22[%c0_109, %c129_110] : memref<32x1040xbf16, #tpu.memory_space<vmem>>, vector<8x784xbf16>
    %269 = vector.extract_strided_slice %5 {offsets = [2, 0], sizes = [1, 784], strides = [1, 1]} : vector<3x784xbf16> to vector<1x784xbf16>
    %270 = vector.broadcast %269 : vector<1x784xbf16> to vector<8x784xbf16>
    %271 = arith.mulf %268, %270 : vector<8x784xbf16>
    %c40 = arith.constant 40 : index
    %c0_111 = arith.constant 0 : index
    %272 = vector.load %arg23[%c40, %c0_111] : memref<288x784xbf16, #tpu.memory_space<vmem>>, vector<8x784xbf16>
    tpu.vector_store %arg23[%c40, %c0_111], %271 {strides = array<i32>} : memref<288x784xbf16, #tpu.memory_space<vmem>>, vector<8x784xbf16>,
    %c0_112 = arith.constant 0 : index
    %c155_113 = arith.constant 155 : index
    %273 = vector.load %arg22[%c0_112, %c155_113] : memref<32x1040xbf16, #tpu.memory_space<vmem>>, vector<8x784xbf16>
    %274 = vector.extract_strided_slice %5 {offsets = [0, 0], sizes = [1, 784], strides = [1, 1]} : vector<3x784xbf16> to vector<1x784xbf16>
    %275 = vector.broadcast %274 : vector<1x784xbf16> to vector<8x784xbf16>
    %276 = arith.mulf %273, %275 : vector<8x784xbf16>
    %c48 = arith.constant 48 : index
    %c0_114 = arith.constant 0 : index
    %277 = vector.load %arg23[%c48, %c0_114] : memref<288x784xbf16, #tpu.memory_space<vmem>>, vector<8x784xbf16>
    tpu.vector_store %arg23[%c48, %c0_114], %276 {strides = array<i32>} : memref<288x784xbf16, #tpu.memory_space<vmem>>, vector<8x784xbf16>,
    %c0_115 = arith.constant 0 : index
    %c156_116 = arith.constant 156 : index
    %278 = vector.load %arg22[%c0_115, %c156_116] : memref<32x1040xbf16, #tpu.memory_space<vmem>>, vector<8x784xbf16>
    %c56 = arith.constant 56 : index
    %c0_117 = arith.constant 0 : index
    %279 = vector.load %arg23[%c56, %c0_117] : memref<288x784xbf16, #tpu.memory_space<vmem>>, vector<8x784xbf16>
    tpu.vector_store %arg23[%c56, %c0_117], %278 {strides = array<i32>} : memref<288x784xbf16, #tpu.memory_space<vmem>>, vector<8x784xbf16>,
    %c0_118 = arith.constant 0 : index
    %c157_119 = arith.constant 157 : index
    %280 = vector.load %arg22[%c0_118, %c157_119] : memref<32x1040xbf16, #tpu.memory_space<vmem>>, vector<8x784xbf16>
    %281 = vector.extract_strided_slice %5 {offsets = [2, 0], sizes = [1, 784], strides = [1, 1]} : vector<3x784xbf16> to vector<1x784xbf16>
    %282 = vector.broadcast %281 : vector<1x784xbf16> to vector<8x784xbf16>
    %283 = arith.mulf %280, %282 : vector<8x784xbf16>
    %c64 = arith.constant 64 : index
    %c0_120 = arith.constant 0 : index
    %284 = vector.load %arg23[%c64, %c0_120] : memref<288x784xbf16, #tpu.memory_space<vmem>>, vector<8x784xbf16>
    tpu.vector_store %arg23[%c64, %c0_120], %283 {strides = array<i32>} : memref<288x784xbf16, #tpu.memory_space<vmem>>, vector<8x784xbf16>,
    %c0_121 = arith.constant 0 : index
    %c0_122 = arith.constant 0 : index
    %285 = vector.load %arg23[%c0_121, %c0_122] : memref<288x784xbf16, #tpu.memory_space<vmem>>, vector<72x784xbf16>
    %cst_123 = arith.constant dense<0.000000e+00> : vector<32x784xf32>
    %286 = tpu.matmul %231, %285, %cst_123 {dimension_numbers = #tpu.dot_dimension_numbers<[1], [0], [0], [1], [0, 0, 1, 1], [], []>} : vector<32x72xbf16>, vector<72x784xbf16>, vector<32x784xf32> -> vector<32x784xf32>
    %c0_124 = arith.constant 0 : index
    %c0_125 = arith.constant 0 : index
    %c0_126 = arith.constant 0 : index
    %287 = vector.load %arg18[%c0_124, %c0_125, %c0_126] : memref<2x32x784xf32, #tpu.memory_space<vmem>>, vector<1x32x784xf32>
    %288 = vector.shape_cast %287 : vector<1x32x784xf32> to vector<32x784xf32>
    %289 = vector.shape_cast %286 : vector<32x784xf32> to vector<1x32x784xf32>
    tpu.vector_store %arg18[%c0_124, %c0_125, %c0_126], %289 {strides = array<i32>} : memref<2x32x784xf32, #tpu.memory_space<vmem>>, vector<1x32x784xf32>,
    %c0_127 = arith.constant 0 : index
    %c0_128 = arith.constant 0 : index
    %c0_129 = arith.constant 0 : index
    %290 = vector.load %arg18[%c0_127, %c0_128, %c0_129] : memref<2x32x784xf32, #tpu.memory_space<vmem>>, vector<1x32x755xf32>
    %291 = vector.shape_cast %290 : vector<1x32x755xf32> to vector<32x755xf32>
    %c0_130 = arith.constant 0 : index
    %c0_131 = arith.constant 0 : index
    %c1_132 = arith.constant 1 : index
    %292 = vector.load %arg18[%c0_130, %c0_131, %c1_132] : memref<2x32x784xf32, #tpu.memory_space<vmem>>, vector<1x32x755xf32>
    %293 = vector.shape_cast %292 : vector<1x32x755xf32> to vector<32x755xf32>
    %c0_133 = arith.constant 0 : index
    %c0_134 = arith.constant 0 : index
    %c28 = arith.constant 28 : index
    %294 = vector.load %arg18[%c0_133, %c0_134, %c28] : memref<2x32x784xf32, #tpu.memory_space<vmem>>, vector<1x32x755xf32>
    %295 = vector.shape_cast %294 : vector<1x32x755xf32> to vector<32x755xf32>
    %c0_135 = arith.constant 0 : index
    %c0_136 = arith.constant 0 : index
    %c29 = arith.constant 29 : index
    %296 = vector.load %arg18[%c0_135, %c0_136, %c29] : memref<2x32x784xf32, #tpu.memory_space<vmem>>, vector<1x32x755xf32>
    %297 = vector.shape_cast %296 : vector<1x32x755xf32> to vector<32x755xf32>
    %298 = arith.maximumf %291, %293 : vector<32x755xf32>
    %299 = arith.maximumf %295, %297 : vector<32x755xf32>
    %300 = arith.maximumf %298, %299 : vector<32x755xf32>
    %cst_137 = arith.constant dense<0.000000e+00> : vector<32x196xf32>
    %301 = tpu.matmul %300, %232, %cst_137 {dimension_numbers = #tpu.dot_dimension_numbers<[1], [0], [0], [1], [0, 0, 1, 1], [], []>} : vector<32x755xf32>, vector<755x196xf32>, vector<32x196xf32> -> vector<32x196xf32>
    %c0_138 = arith.constant 0 : index
    %c0_139 = arith.constant 0 : index
    %c0_140 = arith.constant 0 : index
    %302 = vector.load %arg19[%c0_138, %c0_139, %c0_140] : memref<2x32x196xf32, #tpu.memory_space<vmem>>, vector<1x32x196xf32>
    %303 = vector.shape_cast %302 : vector<1x32x196xf32> to vector<32x196xf32>
    %304 = vector.shape_cast %301 : vector<32x196xf32> to vector<1x32x196xf32>
    tpu.vector_store %arg19[%c0_138, %c0_139, %c0_140], %304 {strides = array<i32>} : memref<2x32x196xf32, #tpu.memory_space<vmem>>, vector<1x32x196xf32>,
    %c1_141 = arith.constant 1 : index
    %c0_142 = arith.constant 0 : index
    %c0_143 = arith.constant 0 : index
    %305 = vector.load %arg15[%c1_141, %c0_142, %c0_143] : memref<2x8x784xf32, #tpu.memory_space<vmem>>, vector<1x8x784xf32>
    %306 = vector.shape_cast %305 : vector<1x8x784xf32> to vector<8x784xf32>
    %307 = vector.broadcast %227 : vector<8x1xf32> to vector<8x784xf32>
    %308 = arith.mulf %306, %307 : vector<8x784xf32>
    %309 = vector.broadcast %230 : vector<8x1xf32> to vector<8x784xf32>
    %310 = arith.addf %308, %309 : vector<8x784xf32>
    %c1_144 = arith.constant 1 : index
    %c0_145 = arith.constant 0 : index
    %c0_146 = arith.constant 0 : index
    %311 = vector.load %arg16[%c1_144, %c0_145, %c0_146] : memref<2x8x784xf32, #tpu.memory_space<vmem>>, vector<1x8x784xf32>
    %312 = vector.shape_cast %311 : vector<1x8x784xf32> to vector<8x784xf32>
    %313 = vector.shape_cast %310 : vector<8x784xf32> to vector<1x8x784xf32>
    tpu.vector_store %arg16[%c1_144, %c0_145, %c0_146], %313 {strides = array<i32>} : memref<2x8x784xf32, #tpu.memory_space<vmem>>, vector<1x8x784xf32>,
    %cst_147 = arith.constant 0.000000e+00 : f32
    %314 = vector.broadcast %cst_147 : f32 to vector<8x784xf32>
    %315 = arith.maximumf %310, %314 : vector<8x784xf32>
    %c1_148 = arith.constant 1 : index
    %c0_149 = arith.constant 0 : index
    %c0_150 = arith.constant 0 : index
    %316 = vector.load %arg17[%c1_148, %c0_149, %c0_150] : memref<2x8x784xf32, #tpu.memory_space<vmem>>, vector<1x8x784xf32>
    %317 = vector.shape_cast %316 : vector<1x8x784xf32> to vector<8x784xf32>
    %318 = vector.shape_cast %315 : vector<8x784xf32> to vector<1x8x784xf32>
    tpu.vector_store %arg17[%c1_148, %c0_149, %c0_150], %318 {strides = array<i32>} : memref<2x8x784xf32, #tpu.memory_space<vmem>>, vector<1x8x784xf32>,
    %319 = arith.truncf %315 : vector<8x784xf32> to vector<8x784xbf16>
    %c0_151 = arith.constant 0 : index
    %c128_152 = arith.constant 128 : index
    %320 = vector.load %arg22[%c0_151, %c128_152] : memref<32x1040xbf16, #tpu.memory_space<vmem>>, vector<8x784xbf16>
    tpu.vector_store %arg22[%c0_151, %c128_152], %319 {strides = array<i32>} : memref<32x1040xbf16, #tpu.memory_space<vmem>>, vector<8x784xbf16>,
    %c0_153 = arith.constant 0 : index
    %c99_154 = arith.constant 99 : index
    %321 = vector.load %arg22[%c0_153, %c99_154] : memref<32x1040xbf16, #tpu.memory_space<vmem>>, vector<8x784xbf16>
    %322 = vector.extract_strided_slice %5 {offsets = [0, 0], sizes = [1, 784], strides = [1, 1]} : vector<3x784xbf16> to vector<1x784xbf16>
    %323 = vector.broadcast %322 : vector<1x784xbf16> to vector<8x784xbf16>
    %324 = arith.mulf %321, %323 : vector<8x784xbf16>
    %c0_155 = arith.constant 0 : index
    %c0_156 = arith.constant 0 : index
    %325 = vector.load %arg23[%c0_155, %c0_156] : memref<288x784xbf16, #tpu.memory_space<vmem>>, vector<8x784xbf16>
    tpu.vector_store %arg23[%c0_155, %c0_156], %324 {strides = array<i32>} : memref<288x784xbf16, #tpu.memory_space<vmem>>, vector<8x784xbf16>,
    %c0_157 = arith.constant 0 : index
    %c100_158 = arith.constant 100 : index
    %326 = vector.load %arg22[%c0_157, %c100_158] : memref<32x1040xbf16, #tpu.memory_space<vmem>>, vector<8x784xbf16>
    %c8_159 = arith.constant 8 : index
    %c0_160 = arith.constant 0 : index
    %327 = vector.load %arg23[%c8_159, %c0_160] : memref<288x784xbf16, #tpu.memory_space<vmem>>, vector<8x784xbf16>
    tpu.vector_store %arg23[%c8_159, %c0_160], %326 {strides = array<i32>} : memref<288x784xbf16, #tpu.memory_space<vmem>>, vector<8x784xbf16>,
    %c0_161 = arith.constant 0 : index
    %c101_162 = arith.constant 101 : index
    %328 = vector.load %arg22[%c0_161, %c101_162] : memref<32x1040xbf16, #tpu.memory_space<vmem>>, vector<8x784xbf16>
    %329 = vector.extract_strided_slice %5 {offsets = [2, 0], sizes = [1, 784], strides = [1, 1]} : vector<3x784xbf16> to vector<1x784xbf16>
    %330 = vector.broadcast %329 : vector<1x784xbf16> to vector<8x784xbf16>
    %331 = arith.mulf %328, %330 : vector<8x784xbf16>
    %c16_163 = arith.constant 16 : index
    %c0_164 = arith.constant 0 : index
    %332 = vector.load %arg23[%c16_163, %c0_164] : memref<288x784xbf16, #tpu.memory_space<vmem>>, vector<8x784xbf16>
    tpu.vector_store %arg23[%c16_163, %c0_164], %331 {strides = array<i32>} : memref<288x784xbf16, #tpu.memory_space<vmem>>, vector<8x784xbf16>,
    %c0_165 = arith.constant 0 : index
    %c127_166 = arith.constant 127 : index
    %333 = vector.load %arg22[%c0_165, %c127_166] : memref<32x1040xbf16, #tpu.memory_space<vmem>>, vector<8x784xbf16>
    %334 = vector.extract_strided_slice %5 {offsets = [0, 0], sizes = [1, 784], strides = [1, 1]} : vector<3x784xbf16> to vector<1x784xbf16>
    %335 = vector.broadcast %334 : vector<1x784xbf16> to vector<8x784xbf16>
    %336 = arith.mulf %333, %335 : vector<8x784xbf16>
    %c24_167 = arith.constant 24 : index
    %c0_168 = arith.constant 0 : index
    %337 = vector.load %arg23[%c24_167, %c0_168] : memref<288x784xbf16, #tpu.memory_space<vmem>>, vector<8x784xbf16>
    tpu.vector_store %arg23[%c24_167, %c0_168], %336 {strides = array<i32>} : memref<288x784xbf16, #tpu.memory_space<vmem>>, vector<8x784xbf16>,
    %c0_169 = arith.constant 0 : index
    %c128_170 = arith.constant 128 : index
    %338 = vector.load %arg22[%c0_169, %c128_170] : memref<32x1040xbf16, #tpu.memory_space<vmem>>, vector<8x784xbf16>
    %c32_171 = arith.constant 32 : index
    %c0_172 = arith.constant 0 : index
    %339 = vector.load %arg23[%c32_171, %c0_172] : memref<288x784xbf16, #tpu.memory_space<vmem>>, vector<8x784xbf16>
    tpu.vector_store %arg23[%c32_171, %c0_172], %338 {strides = array<i32>} : memref<288x784xbf16, #tpu.memory_space<vmem>>, vector<8x784xbf16>,
    %c0_173 = arith.constant 0 : index
    %c129_174 = arith.constant 129 : index
    %340 = vector.load %arg22[%c0_173, %c129_174] : memref<32x1040xbf16, #tpu.memory_space<vmem>>, vector<8x784xbf16>
    %341 = vector.extract_strided_slice %5 {offsets = [2, 0], sizes = [1, 784], strides = [1, 1]} : vector<3x784xbf16> to vector<1x784xbf16>
    %342 = vector.broadcast %341 : vector<1x784xbf16> to vector<8x784xbf16>
    %343 = arith.mulf %340, %342 : vector<8x784xbf16>
    %c40_175 = arith.constant 40 : index
    %c0_176 = arith.constant 0 : index
    %344 = vector.load %arg23[%c40_175, %c0_176] : memref<288x784xbf16, #tpu.memory_space<vmem>>, vector<8x784xbf16>
    tpu.vector_store %arg23[%c40_175, %c0_176], %343 {strides = array<i32>} : memref<288x784xbf16, #tpu.memory_space<vmem>>, vector<8x784xbf16>,
    %c0_177 = arith.constant 0 : index
    %c155_178 = arith.constant 155 : index
    %345 = vector.load %arg22[%c0_177, %c155_178] : memref<32x1040xbf16, #tpu.memory_space<vmem>>, vector<8x784xbf16>
    %346 = vector.extract_strided_slice %5 {offsets = [0, 0], sizes = [1, 784], strides = [1, 1]} : vector<3x784xbf16> to vector<1x784xbf16>
    %347 = vector.broadcast %346 : vector<1x784xbf16> to vector<8x784xbf16>
    %348 = arith.mulf %345, %347 : vector<8x784xbf16>
    %c48_179 = arith.constant 48 : index
    %c0_180 = arith.constant 0 : index
    %349 = vector.load %arg23[%c48_179, %c0_180] : memref<288x784xbf16, #tpu.memory_space<vmem>>, vector<8x784xbf16>
    tpu.vector_store %arg23[%c48_179, %c0_180], %348 {strides = array<i32>} : memref<288x784xbf16, #tpu.memory_space<vmem>>, vector<8x784xbf16>,
    %c0_181 = arith.constant 0 : index
    %c156_182 = arith.constant 156 : index
    %350 = vector.load %arg22[%c0_181, %c156_182] : memref<32x1040xbf16, #tpu.memory_space<vmem>>, vector<8x784xbf16>
    %c56_183 = arith.constant 56 : index
    %c0_184 = arith.constant 0 : index
    %351 = vector.load %arg23[%c56_183, %c0_184] : memref<288x784xbf16, #tpu.memory_space<vmem>>, vector<8x784xbf16>
    tpu.vector_store %arg23[%c56_183, %c0_184], %350 {strides = array<i32>} : memref<288x784xbf16, #tpu.memory_space<vmem>>, vector<8x784xbf16>,
    %c0_185 = arith.constant 0 : index
    %c157_186 = arith.constant 157 : index
    %352 = vector.load %arg22[%c0_185, %c157_186] : memref<32x1040xbf16, #tpu.memory_space<vmem>>, vector<8x784xbf16>
    %353 = vector.extract_strided_slice %5 {offsets = [2, 0], sizes = [1, 784], strides = [1, 1]} : vector<3x784xbf16> to vector<1x784xbf16>
    %354 = vector.broadcast %353 : vector<1x784xbf16> to vector<8x784xbf16>
    %355 = arith.mulf %352, %354 : vector<8x784xbf16>
    %c64_187 = arith.constant 64 : index
    %c0_188 = arith.constant 0 : index
    %356 = vector.load %arg23[%c64_187, %c0_188] : memref<288x784xbf16, #tpu.memory_space<vmem>>, vector<8x784xbf16>
    tpu.vector_store %arg23[%c64_187, %c0_188], %355 {strides = array<i32>} : memref<288x784xbf16, #tpu.memory_space<vmem>>, vector<8x784xbf16>,
    %c0_189 = arith.constant 0 : index
    %c0_190 = arith.constant 0 : index
    %357 = vector.load %arg23[%c0_189, %c0_190] : memref<288x784xbf16, #tpu.memory_space<vmem>>, vector<72x784xbf16>
    %cst_191 = arith.constant dense<0.000000e+00> : vector<32x784xf32>
    %358 = tpu.matmul %231, %357, %cst_191 {dimension_numbers = #tpu.dot_dimension_numbers<[1], [0], [0], [1], [0, 0, 1, 1], [], []>} : vector<32x72xbf16>, vector<72x784xbf16>, vector<32x784xf32> -> vector<32x784xf32>
    %c1_192 = arith.constant 1 : index
    %c0_193 = arith.constant 0 : index
    %c0_194 = arith.constant 0 : index
    %359 = vector.load %arg18[%c1_192, %c0_193, %c0_194] : memref<2x32x784xf32, #tpu.memory_space<vmem>>, vector<1x32x784xf32>
    %360 = vector.shape_cast %359 : vector<1x32x784xf32> to vector<32x784xf32>
    %361 = vector.shape_cast %358 : vector<32x784xf32> to vector<1x32x784xf32>
    tpu.vector_store %arg18[%c1_192, %c0_193, %c0_194], %361 {strides = array<i32>} : memref<2x32x784xf32, #tpu.memory_space<vmem>>, vector<1x32x784xf32>,
    %c1_195 = arith.constant 1 : index
    %c0_196 = arith.constant 0 : index
    %c0_197 = arith.constant 0 : index
    %362 = vector.load %arg18[%c1_195, %c0_196, %c0_197] : memref<2x32x784xf32, #tpu.memory_space<vmem>>, vector<1x32x755xf32>
    %363 = vector.shape_cast %362 : vector<1x32x755xf32> to vector<32x755xf32>
    %c1_198 = arith.constant 1 : index
    %c0_199 = arith.constant 0 : index
    %c1_200 = arith.constant 1 : index
    %364 = vector.load %arg18[%c1_198, %c0_199, %c1_200] : memref<2x32x784xf32, #tpu.memory_space<vmem>>, vector<1x32x755xf32>
    %365 = vector.shape_cast %364 : vector<1x32x755xf32> to vector<32x755xf32>
    %c1_201 = arith.constant 1 : index
    %c0_202 = arith.constant 0 : index
    %c28_203 = arith.constant 28 : index
    %366 = vector.load %arg18[%c1_201, %c0_202, %c28_203] : memref<2x32x784xf32, #tpu.memory_space<vmem>>, vector<1x32x755xf32>
    %367 = vector.shape_cast %366 : vector<1x32x755xf32> to vector<32x755xf32>
    %c1_204 = arith.constant 1 : index
    %c0_205 = arith.constant 0 : index
    %c29_206 = arith.constant 29 : index
    %368 = vector.load %arg18[%c1_204, %c0_205, %c29_206] : memref<2x32x784xf32, #tpu.memory_space<vmem>>, vector<1x32x755xf32>
    %369 = vector.shape_cast %368 : vector<1x32x755xf32> to vector<32x755xf32>
    %370 = arith.maximumf %363, %365 : vector<32x755xf32>
    %371 = arith.maximumf %367, %369 : vector<32x755xf32>
    %372 = arith.maximumf %370, %371 : vector<32x755xf32>
    %cst_207 = arith.constant dense<0.000000e+00> : vector<32x196xf32>
    %373 = tpu.matmul %372, %232, %cst_207 {dimension_numbers = #tpu.dot_dimension_numbers<[1], [0], [0], [1], [0, 0, 1, 1], [], []>} : vector<32x755xf32>, vector<755x196xf32>, vector<32x196xf32> -> vector<32x196xf32>
    %c1_208 = arith.constant 1 : index
    %c0_209 = arith.constant 0 : index
    %c0_210 = arith.constant 0 : index
    %374 = vector.load %arg19[%c1_208, %c0_209, %c0_210] : memref<2x32x196xf32, #tpu.memory_space<vmem>>, vector<1x32x196xf32>
    %375 = vector.shape_cast %374 : vector<1x32x196xf32> to vector<32x196xf32>
    %376 = vector.shape_cast %373 : vector<32x196xf32> to vector<1x32x196xf32>
    tpu.vector_store %arg19[%c1_208, %c0_209, %c0_210], %376 {strides = array<i32>} : memref<2x32x196xf32, #tpu.memory_space<vmem>>, vector<1x32x196xf32>,
    %c0_211 = arith.constant 0 : index
    %c0_212 = arith.constant 0 : index
    %c0_213 = arith.constant 0 : index
    %377 = vector.load %arg19[%c0_211, %c0_212, %c0_213] : memref<2x32x196xf32, #tpu.memory_space<vmem>>, vector<1x32x196xf32>
    %378 = vector.shape_cast %377 : vector<1x32x196xf32> to vector<32x196xf32>
    %cst_214 = arith.constant dense<0.000000e+00> : vector<32xf32>
    %379 = vector.multi_reduction <add>, %378, %cst_214 [1] : vector<32x196xf32> to vector<32xf32>
    %380 = vector.shape_cast %379 : vector<32xf32> to vector<32x1xf32>
    %c1_215 = arith.constant 1 : index
    %c0_216 = arith.constant 0 : index
    %c0_217 = arith.constant 0 : index
    %381 = vector.load %arg19[%c1_215, %c0_216, %c0_217] : memref<2x32x196xf32, #tpu.memory_space<vmem>>, vector<1x32x196xf32>
    %382 = vector.shape_cast %381 : vector<1x32x196xf32> to vector<32x196xf32>
    %cst_218 = arith.constant dense<0.000000e+00> : vector<32xf32>
    %383 = vector.multi_reduction <add>, %382, %cst_218 [1] : vector<32x196xf32> to vector<32xf32>
    %384 = vector.shape_cast %383 : vector<32xf32> to vector<32x1xf32>
    %385 = arith.addf %380, %384 : vector<32x1xf32>
    %cst_219 = arith.constant 0.00255102036 : f32
    %386 = vector.broadcast %cst_219 : f32 to vector<32x1xf32>
    %387 = arith.mulf %385, %386 : vector<32x1xf32>
    %c0_220 = arith.constant 0 : index
    %c0_221 = arith.constant 0 : index
    %c0_222 = arith.constant 0 : index
    %388 = vector.load %arg19[%c0_220, %c0_221, %c0_222] : memref<2x32x196xf32, #tpu.memory_space<vmem>>, vector<1x32x196xf32>
    %389 = vector.shape_cast %388 : vector<1x32x196xf32> to vector<32x196xf32>
    %390 = vector.broadcast %387 : vector<32x1xf32> to vector<32x196xf32>
    %391 = arith.subf %389, %390 : vector<32x196xf32>
    %392 = arith.mulf %391, %391 : vector<32x196xf32>
    %cst_223 = arith.constant dense<0.000000e+00> : vector<32xf32>
    %393 = vector.multi_reduction <add>, %392, %cst_223 [1] : vector<32x196xf32> to vector<32xf32>
    %394 = vector.shape_cast %393 : vector<32xf32> to vector<32x1xf32>
    %c1_224 = arith.constant 1 : index
    %c0_225 = arith.constant 0 : index
    %c0_226 = arith.constant 0 : index
    %395 = vector.load %arg19[%c1_224, %c0_225, %c0_226] : memref<2x32x196xf32, #tpu.memory_space<vmem>>, vector<1x32x196xf32>
    %396 = vector.shape_cast %395 : vector<1x32x196xf32> to vector<32x196xf32>
    %397 = vector.broadcast %387 : vector<32x1xf32> to vector<32x196xf32>
    %398 = arith.subf %396, %397 : vector<32x196xf32>
    %399 = arith.mulf %398, %398 : vector<32x196xf32>
    %cst_227 = arith.constant dense<0.000000e+00> : vector<32xf32>
    %400 = vector.multi_reduction <add>, %399, %cst_227 [1] : vector<32x196xf32> to vector<32xf32>
    %401 = vector.shape_cast %400 : vector<32xf32> to vector<32x1xf32>
    %402 = arith.addf %394, %401 : vector<32x1xf32>
    %cst_228 = arith.constant 0.00255102036 : f32
    %403 = vector.broadcast %cst_228 : f32 to vector<32x1xf32>
    %404 = arith.mulf %402, %403 : vector<32x1xf32>
    %c0_229 = arith.constant 0 : index
    %c0_230 = arith.constant 0 : index
    %405 = vector.load %arg9[%c0_229, %c0_230] : memref<32x1xf32, #tpu.memory_space<vmem>>, vector<32x1xf32>
    %cst_231 = arith.constant 9.99999974E-6 : f32
    %406 = vector.broadcast %cst_231 : f32 to vector<32x1xf32>
    %407 = arith.addf %404, %406 : vector<32x1xf32>
    %408 = math.rsqrt %407 : vector<32x1xf32>
    %409 = arith.mulf %405, %408 : vector<32x1xf32>
    %c0_232 = arith.constant 0 : index
    %c0_233 = arith.constant 0 : index
    %410 = vector.load %arg10[%c0_232, %c0_233] : memref<32x1xf32, #tpu.memory_space<vmem>>, vector<32x1xf32>
    %411 = arith.mulf %387, %409 : vector<32x1xf32>
    %412 = arith.subf %410, %411 : vector<32x1xf32>
    %cst_234 = arith.constant 0.000000e+00 : bf16
    %413 = vector.broadcast %cst_234 : bf16 to vector<32x588xbf16>
    %c0_235 = arith.constant 0 : index
    %c324 = arith.constant 324 : index
    %414 = vector.load %arg22[%c0_235, %c324] : memref<32x1040xbf16, #tpu.memory_space<vmem>>, vector<32x588xbf16>
    tpu.vector_store %arg22[%c0_235, %c324], %413 {strides = array<i32>} : memref<32x1040xbf16, #tpu.memory_space<vmem>>, vector<32x588xbf16>,
    %c0_236 = arith.constant 0 : index
    %c0_237 = arith.constant 0 : index
    %415 = vector.load %arg4[%c0_236, %c0_237] : memref<64x288xbf16, #tpu.memory_space<vmem>>, vector<64x288xbf16>
    %c0_238 = arith.constant 0 : index
    %c0_239 = arith.constant 0 : index
    %416 = vector.load %arg5[%c0_238, %c0_239] : memref<64x10xf32, #tpu.memory_space<vmem>>, vector<64x10xf32>
    %c0_240 = arith.constant 0 : index
    %c0_241 = arith.constant 0 : index
    %417 = vector.load %arg6[%c0_240, %c0_241] : memref<1x10xf32, #tpu.memory_space<vmem>>, vector<1x10xf32>
    %c0_242 = arith.constant 0 : index
    %c0_243 = arith.constant 0 : index
    %c0_244 = arith.constant 0 : index
    %418 = vector.load %arg19[%c0_242, %c0_243, %c0_244] : memref<2x32x196xf32, #tpu.memory_space<vmem>>, vector<1x32x196xf32>
    %419 = vector.shape_cast %418 : vector<1x32x196xf32> to vector<32x196xf32>
    %420 = vector.broadcast %409 : vector<32x1xf32> to vector<32x196xf32>
    %421 = arith.mulf %419, %420 : vector<32x196xf32>
    %422 = vector.broadcast %412 : vector<32x1xf32> to vector<32x196xf32>
    %423 = arith.addf %421, %422 : vector<32x196xf32>
    %cst_245 = arith.constant 0.000000e+00 : f32
    %424 = vector.broadcast %cst_245 : f32 to vector<32x196xf32>
    %425 = arith.maximumf %423, %424 : vector<32x196xf32>
    %426 = arith.truncf %425 : vector<32x196xf32> to vector<32x196xbf16>
    %c0_246 = arith.constant 0 : index
    %c128_247 = arith.constant 128 : index
    %427 = vector.load %arg22[%c0_246, %c128_247] : memref<32x1040xbf16, #tpu.memory_space<vmem>>, vector<32x196xbf16>
    tpu.vector_store %arg22[%c0_246, %c128_247], %426 {strides = array<i32>} : memref<32x1040xbf16, #tpu.memory_space<vmem>>, vector<32x196xbf16>,
    %c0_248 = arith.constant 0 : index
    %c113 = arith.constant 113 : index
    %428 = vector.load %arg22[%c0_248, %c113] : memref<32x1040xbf16, #tpu.memory_space<vmem>>, vector<32x196xbf16>
    %429 = vector.extract_strided_slice %6 {offsets = [0, 0], sizes = [1, 196], strides = [1, 1]} : vector<3x196xbf16> to vector<1x196xbf16>
    %430 = vector.broadcast %429 : vector<1x196xbf16> to vector<32x196xbf16>
    %431 = arith.mulf %428, %430 : vector<32x196xbf16>
    %c0_249 = arith.constant 0 : index
    %c0_250 = arith.constant 0 : index
    %432 = vector.load %arg23[%c0_249, %c0_250] : memref<288x784xbf16, #tpu.memory_space<vmem>>, vector<32x196xbf16>
    tpu.vector_store %arg23[%c0_249, %c0_250], %431 {strides = array<i32>} : memref<288x784xbf16, #tpu.memory_space<vmem>>, vector<32x196xbf16>,
    %c0_251 = arith.constant 0 : index
    %c114 = arith.constant 114 : index
    %433 = vector.load %arg22[%c0_251, %c114] : memref<32x1040xbf16, #tpu.memory_space<vmem>>, vector<32x196xbf16>
    %c32_252 = arith.constant 32 : index
    %c0_253 = arith.constant 0 : index
    %434 = vector.load %arg23[%c32_252, %c0_253] : memref<288x784xbf16, #tpu.memory_space<vmem>>, vector<32x196xbf16>
    tpu.vector_store %arg23[%c32_252, %c0_253], %433 {strides = array<i32>} : memref<288x784xbf16, #tpu.memory_space<vmem>>, vector<32x196xbf16>,
    %c0_254 = arith.constant 0 : index
    %c115 = arith.constant 115 : index
    %435 = vector.load %arg22[%c0_254, %c115] : memref<32x1040xbf16, #tpu.memory_space<vmem>>, vector<32x196xbf16>
    %436 = vector.extract_strided_slice %6 {offsets = [2, 0], sizes = [1, 196], strides = [1, 1]} : vector<3x196xbf16> to vector<1x196xbf16>
    %437 = vector.broadcast %436 : vector<1x196xbf16> to vector<32x196xbf16>
    %438 = arith.mulf %435, %437 : vector<32x196xbf16>
    %c64_255 = arith.constant 64 : index
    %c0_256 = arith.constant 0 : index
    %439 = vector.load %arg23[%c64_255, %c0_256] : memref<288x784xbf16, #tpu.memory_space<vmem>>, vector<32x196xbf16>
    tpu.vector_store %arg23[%c64_255, %c0_256], %438 {strides = array<i32>} : memref<288x784xbf16, #tpu.memory_space<vmem>>, vector<32x196xbf16>,
    %c0_257 = arith.constant 0 : index
    %c127_258 = arith.constant 127 : index
    %440 = vector.load %arg22[%c0_257, %c127_258] : memref<32x1040xbf16, #tpu.memory_space<vmem>>, vector<32x196xbf16>
    %441 = vector.extract_strided_slice %6 {offsets = [0, 0], sizes = [1, 196], strides = [1, 1]} : vector<3x196xbf16> to vector<1x196xbf16>
    %442 = vector.broadcast %441 : vector<1x196xbf16> to vector<32x196xbf16>
    %443 = arith.mulf %440, %442 : vector<32x196xbf16>
    %c96 = arith.constant 96 : index
    %c0_259 = arith.constant 0 : index
    %444 = vector.load %arg23[%c96, %c0_259] : memref<288x784xbf16, #tpu.memory_space<vmem>>, vector<32x196xbf16>
    tpu.vector_store %arg23[%c96, %c0_259], %443 {strides = array<i32>} : memref<288x784xbf16, #tpu.memory_space<vmem>>, vector<32x196xbf16>,
    %c0_260 = arith.constant 0 : index
    %c128_261 = arith.constant 128 : index
    %445 = vector.load %arg22[%c0_260, %c128_261] : memref<32x1040xbf16, #tpu.memory_space<vmem>>, vector<32x196xbf16>
    %c128_262 = arith.constant 128 : index
    %c0_263 = arith.constant 0 : index
    %446 = vector.load %arg23[%c128_262, %c0_263] : memref<288x784xbf16, #tpu.memory_space<vmem>>, vector<32x196xbf16>
    tpu.vector_store %arg23[%c128_262, %c0_263], %445 {strides = array<i32>} : memref<288x784xbf16, #tpu.memory_space<vmem>>, vector<32x196xbf16>,
    %c0_264 = arith.constant 0 : index
    %c129_265 = arith.constant 129 : index
    %447 = vector.load %arg22[%c0_264, %c129_265] : memref<32x1040xbf16, #tpu.memory_space<vmem>>, vector<32x196xbf16>
    %448 = vector.extract_strided_slice %6 {offsets = [2, 0], sizes = [1, 196], strides = [1, 1]} : vector<3x196xbf16> to vector<1x196xbf16>
    %449 = vector.broadcast %448 : vector<1x196xbf16> to vector<32x196xbf16>
    %450 = arith.mulf %447, %449 : vector<32x196xbf16>
    %c160 = arith.constant 160 : index
    %c0_266 = arith.constant 0 : index
    %451 = vector.load %arg23[%c160, %c0_266] : memref<288x784xbf16, #tpu.memory_space<vmem>>, vector<32x196xbf16>
    tpu.vector_store %arg23[%c160, %c0_266], %450 {strides = array<i32>} : memref<288x784xbf16, #tpu.memory_space<vmem>>, vector<32x196xbf16>,
    %c0_267 = arith.constant 0 : index
    %c141 = arith.constant 141 : index
    %452 = vector.load %arg22[%c0_267, %c141] : memref<32x1040xbf16, #tpu.memory_space<vmem>>, vector<32x196xbf16>
    %453 = vector.extract_strided_slice %6 {offsets = [0, 0], sizes = [1, 196], strides = [1, 1]} : vector<3x196xbf16> to vector<1x196xbf16>
    %454 = vector.broadcast %453 : vector<1x196xbf16> to vector<32x196xbf16>
    %455 = arith.mulf %452, %454 : vector<32x196xbf16>
    %c192 = arith.constant 192 : index
    %c0_268 = arith.constant 0 : index
    %456 = vector.load %arg23[%c192, %c0_268] : memref<288x784xbf16, #tpu.memory_space<vmem>>, vector<32x196xbf16>
    tpu.vector_store %arg23[%c192, %c0_268], %455 {strides = array<i32>} : memref<288x784xbf16, #tpu.memory_space<vmem>>, vector<32x196xbf16>,
    %c0_269 = arith.constant 0 : index
    %c142 = arith.constant 142 : index
    %457 = vector.load %arg22[%c0_269, %c142] : memref<32x1040xbf16, #tpu.memory_space<vmem>>, vector<32x196xbf16>
    %c224 = arith.constant 224 : index
    %c0_270 = arith.constant 0 : index
    %458 = vector.load %arg23[%c224, %c0_270] : memref<288x784xbf16, #tpu.memory_space<vmem>>, vector<32x196xbf16>
    tpu.vector_store %arg23[%c224, %c0_270], %457 {strides = array<i32>} : memref<288x784xbf16, #tpu.memory_space<vmem>>, vector<32x196xbf16>,
    %c0_271 = arith.constant 0 : index
    %c143 = arith.constant 143 : index
    %459 = vector.load %arg22[%c0_271, %c143] : memref<32x1040xbf16, #tpu.memory_space<vmem>>, vector<32x196xbf16>
    %460 = vector.extract_strided_slice %6 {offsets = [2, 0], sizes = [1, 196], strides = [1, 1]} : vector<3x196xbf16> to vector<1x196xbf16>
    %461 = vector.broadcast %460 : vector<1x196xbf16> to vector<32x196xbf16>
    %462 = arith.mulf %459, %461 : vector<32x196xbf16>
    %c256 = arith.constant 256 : index
    %c0_272 = arith.constant 0 : index
    %463 = vector.load %arg23[%c256, %c0_272] : memref<288x784xbf16, #tpu.memory_space<vmem>>, vector<32x196xbf16>
    tpu.vector_store %arg23[%c256, %c0_272], %462 {strides = array<i32>} : memref<288x784xbf16, #tpu.memory_space<vmem>>, vector<32x196xbf16>,
    %c0_273 = arith.constant 0 : index
    %c0_274 = arith.constant 0 : index
    %464 = vector.load %arg23[%c0_273, %c0_274] : memref<288x784xbf16, #tpu.memory_space<vmem>>, vector<288x196xbf16>
    %cst_275 = arith.constant dense<0.000000e+00> : vector<64x196xf32>
    %465 = tpu.matmul %415, %464, %cst_275 {dimension_numbers = #tpu.dot_dimension_numbers<[1], [0], [0], [1], [0, 0, 1, 1], [], []>} : vector<64x288xbf16>, vector<288x196xbf16>, vector<64x196xf32> -> vector<64x196xf32>
    %c0_276 = arith.constant 0 : index
    %c0_277 = arith.constant 0 : index
    %c0_278 = arith.constant 0 : index
    %466 = vector.load %arg20[%c0_276, %c0_277, %c0_278] : memref<2x64x196xf32, #tpu.memory_space<vmem>>, vector<1x64x196xf32>
    %467 = vector.shape_cast %466 : vector<1x64x196xf32> to vector<64x196xf32>
    %468 = vector.shape_cast %465 : vector<64x196xf32> to vector<1x64x196xf32>
    tpu.vector_store %arg20[%c0_276, %c0_277, %c0_278], %468 {strides = array<i32>} : memref<2x64x196xf32, #tpu.memory_space<vmem>>, vector<1x64x196xf32>,
    %cst_279 = arith.constant dense<0xFF800000> : vector<64xf32>
    %469 = vector.multi_reduction <maximumf>, %465, %cst_279 [1] : vector<64x196xf32> to vector<64xf32>
    %470 = vector.shape_cast %469 : vector<64xf32> to vector<64x1xf32>
    %c0_280 = arith.constant 0 : index
    %c0_281 = arith.constant 0 : index
    %c0_282 = arith.constant 0 : index
    %471 = vector.load %arg21[%c0_280, %c0_281, %c0_282] : memref<2x64x1xf32, #tpu.memory_space<vmem>>, vector<1x64x1xf32>
    %472 = vector.shape_cast %471 : vector<1x64x1xf32> to vector<64x1xf32>
    %473 = vector.shape_cast %470 : vector<64x1xf32> to vector<1x64x1xf32>
    tpu.vector_store %arg21[%c0_280, %c0_281, %c0_282], %473 {strides = array<i32>} : memref<2x64x1xf32, #tpu.memory_space<vmem>>, vector<1x64x1xf32>,
    %474 = vector.broadcast %470 : vector<64x1xf32> to vector<64x10xf32>
    %475 = arith.mulf %416, %474 : vector<64x10xf32>
    %cst_283 = arith.constant dense<0.000000e+00> : vector<10xf32>
    %476 = vector.multi_reduction <add>, %475, %cst_283 [0] : vector<64x10xf32> to vector<10xf32>
    %477 = vector.shape_cast %476 : vector<10xf32> to vector<1x10xf32>
    %478 = arith.addf %477, %417 : vector<1x10xf32>
    %c0_284 = arith.constant 0 : index
    %c0_285 = arith.constant 0 : index
    %479 = vector.load %arg14[%c0_284, %c0_285] : memref<2x10xf32, #tpu.memory_space<vmem>>, vector<1x10xf32>
    tpu.vector_store %arg14[%c0_284, %c0_285], %478 {strides = array<i32>} : memref<2x10xf32, #tpu.memory_space<vmem>>, vector<1x10xf32>,
    %c1_286 = arith.constant 1 : index
    %c0_287 = arith.constant 0 : index
    %c0_288 = arith.constant 0 : index
    %480 = vector.load %arg19[%c1_286, %c0_287, %c0_288] : memref<2x32x196xf32, #tpu.memory_space<vmem>>, vector<1x32x196xf32>
    %481 = vector.shape_cast %480 : vector<1x32x196xf32> to vector<32x196xf32>
    %482 = vector.broadcast %409 : vector<32x1xf32> to vector<32x196xf32>
    %483 = arith.mulf %481, %482 : vector<32x196xf32>
    %484 = vector.broadcast %412 : vector<32x1xf32> to vector<32x196xf32>
    %485 = arith.addf %483, %484 : vector<32x196xf32>
    %cst_289 = arith.constant 0.000000e+00 : f32
    %486 = vector.broadcast %cst_289 : f32 to vector<32x196xf32>
    %487 = arith.maximumf %485, %486 : vector<32x196xf32>
    %488 = arith.truncf %487 : vector<32x196xf32> to vector<32x196xbf16>
    %c0_290 = arith.constant 0 : index
    %c128_291 = arith.constant 128 : index
    %489 = vector.load %arg22[%c0_290, %c128_291] : memref<32x1040xbf16, #tpu.memory_space<vmem>>, vector<32x196xbf16>
    tpu.vector_store %arg22[%c0_290, %c128_291], %488 {strides = array<i32>} : memref<32x1040xbf16, #tpu.memory_space<vmem>>, vector<32x196xbf16>,
    %c0_292 = arith.constant 0 : index
    %c113_293 = arith.constant 113 : index
    %490 = vector.load %arg22[%c0_292, %c113_293] : memref<32x1040xbf16, #tpu.memory_space<vmem>>, vector<32x196xbf16>
    %491 = vector.extract_strided_slice %6 {offsets = [0, 0], sizes = [1, 196], strides = [1, 1]} : vector<3x196xbf16> to vector<1x196xbf16>
    %492 = vector.broadcast %491 : vector<1x196xbf16> to vector<32x196xbf16>
    %493 = arith.mulf %490, %492 : vector<32x196xbf16>
    %c0_294 = arith.constant 0 : index
    %c0_295 = arith.constant 0 : index
    %494 = vector.load %arg23[%c0_294, %c0_295] : memref<288x784xbf16, #tpu.memory_space<vmem>>, vector<32x196xbf16>
    tpu.vector_store %arg23[%c0_294, %c0_295], %493 {strides = array<i32>} : memref<288x784xbf16, #tpu.memory_space<vmem>>, vector<32x196xbf16>,
    %c0_296 = arith.constant 0 : index
    %c114_297 = arith.constant 114 : index
    %495 = vector.load %arg22[%c0_296, %c114_297] : memref<32x1040xbf16, #tpu.memory_space<vmem>>, vector<32x196xbf16>
    %c32_298 = arith.constant 32 : index
    %c0_299 = arith.constant 0 : index
    %496 = vector.load %arg23[%c32_298, %c0_299] : memref<288x784xbf16, #tpu.memory_space<vmem>>, vector<32x196xbf16>
    tpu.vector_store %arg23[%c32_298, %c0_299], %495 {strides = array<i32>} : memref<288x784xbf16, #tpu.memory_space<vmem>>, vector<32x196xbf16>,
    %c0_300 = arith.constant 0 : index
    %c115_301 = arith.constant 115 : index
    %497 = vector.load %arg22[%c0_300, %c115_301] : memref<32x1040xbf16, #tpu.memory_space<vmem>>, vector<32x196xbf16>
    %498 = vector.extract_strided_slice %6 {offsets = [2, 0], sizes = [1, 196], strides = [1, 1]} : vector<3x196xbf16> to vector<1x196xbf16>
    %499 = vector.broadcast %498 : vector<1x196xbf16> to vector<32x196xbf16>
    %500 = arith.mulf %497, %499 : vector<32x196xbf16>
    %c64_302 = arith.constant 64 : index
    %c0_303 = arith.constant 0 : index
    %501 = vector.load %arg23[%c64_302, %c0_303] : memref<288x784xbf16, #tpu.memory_space<vmem>>, vector<32x196xbf16>
    tpu.vector_store %arg23[%c64_302, %c0_303], %500 {strides = array<i32>} : memref<288x784xbf16, #tpu.memory_space<vmem>>, vector<32x196xbf16>,
    %c0_304 = arith.constant 0 : index
    %c127_305 = arith.constant 127 : index
    %502 = vector.load %arg22[%c0_304, %c127_305] : memref<32x1040xbf16, #tpu.memory_space<vmem>>, vector<32x196xbf16>
    %503 = vector.extract_strided_slice %6 {offsets = [0, 0], sizes = [1, 196], strides = [1, 1]} : vector<3x196xbf16> to vector<1x196xbf16>
    %504 = vector.broadcast %503 : vector<1x196xbf16> to vector<32x196xbf16>
    %505 = arith.mulf %502, %504 : vector<32x196xbf16>
    %c96_306 = arith.constant 96 : index
    %c0_307 = arith.constant 0 : index
    %506 = vector.load %arg23[%c96_306, %c0_307] : memref<288x784xbf16, #tpu.memory_space<vmem>>, vector<32x196xbf16>
    tpu.vector_store %arg23[%c96_306, %c0_307], %505 {strides = array<i32>} : memref<288x784xbf16, #tpu.memory_space<vmem>>, vector<32x196xbf16>,
    %c0_308 = arith.constant 0 : index
    %c128_309 = arith.constant 128 : index
    %507 = vector.load %arg22[%c0_308, %c128_309] : memref<32x1040xbf16, #tpu.memory_space<vmem>>, vector<32x196xbf16>
    %c128_310 = arith.constant 128 : index
    %c0_311 = arith.constant 0 : index
    %508 = vector.load %arg23[%c128_310, %c0_311] : memref<288x784xbf16, #tpu.memory_space<vmem>>, vector<32x196xbf16>
    tpu.vector_store %arg23[%c128_310, %c0_311], %507 {strides = array<i32>} : memref<288x784xbf16, #tpu.memory_space<vmem>>, vector<32x196xbf16>,
    %c0_312 = arith.constant 0 : index
    %c129_313 = arith.constant 129 : index
    %509 = vector.load %arg22[%c0_312, %c129_313] : memref<32x1040xbf16, #tpu.memory_space<vmem>>, vector<32x196xbf16>
    %510 = vector.extract_strided_slice %6 {offsets = [2, 0], sizes = [1, 196], strides = [1, 1]} : vector<3x196xbf16> to vector<1x196xbf16>
    %511 = vector.broadcast %510 : vector<1x196xbf16> to vector<32x196xbf16>
    %512 = arith.mulf %509, %511 : vector<32x196xbf16>
    %c160_314 = arith.constant 160 : index
    %c0_315 = arith.constant 0 : index
    %513 = vector.load %arg23[%c160_314, %c0_315] : memref<288x784xbf16, #tpu.memory_space<vmem>>, vector<32x196xbf16>
    tpu.vector_store %arg23[%c160_314, %c0_315], %512 {strides = array<i32>} : memref<288x784xbf16, #tpu.memory_space<vmem>>, vector<32x196xbf16>,
    %c0_316 = arith.constant 0 : index
    %c141_317 = arith.constant 141 : index
    %514 = vector.load %arg22[%c0_316, %c141_317] : memref<32x1040xbf16, #tpu.memory_space<vmem>>, vector<32x196xbf16>
    %515 = vector.extract_strided_slice %6 {offsets = [0, 0], sizes = [1, 196], strides = [1, 1]} : vector<3x196xbf16> to vector<1x196xbf16>
    %516 = vector.broadcast %515 : vector<1x196xbf16> to vector<32x196xbf16>
    %517 = arith.mulf %514, %516 : vector<32x196xbf16>
    %c192_318 = arith.constant 192 : index
    %c0_319 = arith.constant 0 : index
    %518 = vector.load %arg23[%c192_318, %c0_319] : memref<288x784xbf16, #tpu.memory_space<vmem>>, vector<32x196xbf16>
    tpu.vector_store %arg23[%c192_318, %c0_319], %517 {strides = array<i32>} : memref<288x784xbf16, #tpu.memory_space<vmem>>, vector<32x196xbf16>,
    %c0_320 = arith.constant 0 : index
    %c142_321 = arith.constant 142 : index
    %519 = vector.load %arg22[%c0_320, %c142_321] : memref<32x1040xbf16, #tpu.memory_space<vmem>>, vector<32x196xbf16>
    %c224_322 = arith.constant 224 : index
    %c0_323 = arith.constant 0 : index
    %520 = vector.load %arg23[%c224_322, %c0_323] : memref<288x784xbf16, #tpu.memory_space<vmem>>, vector<32x196xbf16>
    tpu.vector_store %arg23[%c224_322, %c0_323], %519 {strides = array<i32>} : memref<288x784xbf16, #tpu.memory_space<vmem>>, vector<32x196xbf16>,
    %c0_324 = arith.constant 0 : index
    %c143_325 = arith.constant 143 : index
    %521 = vector.load %arg22[%c0_324, %c143_325] : memref<32x1040xbf16, #tpu.memory_space<vmem>>, vector<32x196xbf16>
    %522 = vector.extract_strided_slice %6 {offsets = [2, 0], sizes = [1, 196], strides = [1, 1]} : vector<3x196xbf16> to vector<1x196xbf16>
    %523 = vector.broadcast %522 : vector<1x196xbf16> to vector<32x196xbf16>
    %524 = arith.mulf %521, %523 : vector<32x196xbf16>
    %c256_326 = arith.constant 256 : index
    %c0_327 = arith.constant 0 : index
    %525 = vector.load %arg23[%c256_326, %c0_327] : memref<288x784xbf16, #tpu.memory_space<vmem>>, vector<32x196xbf16>
    tpu.vector_store %arg23[%c256_326, %c0_327], %524 {strides = array<i32>} : memref<288x784xbf16, #tpu.memory_space<vmem>>, vector<32x196xbf16>,
    %c0_328 = arith.constant 0 : index
    %c0_329 = arith.constant 0 : index
    %526 = vector.load %arg23[%c0_328, %c0_329] : memref<288x784xbf16, #tpu.memory_space<vmem>>, vector<288x196xbf16>
    %cst_330 = arith.constant dense<0.000000e+00> : vector<64x196xf32>
    %527 = tpu.matmul %415, %526, %cst_330 {dimension_numbers = #tpu.dot_dimension_numbers<[1], [0], [0], [1], [0, 0, 1, 1], [], []>} : vector<64x288xbf16>, vector<288x196xbf16>, vector<64x196xf32> -> vector<64x196xf32>
    %c1_331 = arith.constant 1 : index
    %c0_332 = arith.constant 0 : index
    %c0_333 = arith.constant 0 : index
    %528 = vector.load %arg20[%c1_331, %c0_332, %c0_333] : memref<2x64x196xf32, #tpu.memory_space<vmem>>, vector<1x64x196xf32>
    %529 = vector.shape_cast %528 : vector<1x64x196xf32> to vector<64x196xf32>
    %530 = vector.shape_cast %527 : vector<64x196xf32> to vector<1x64x196xf32>
    tpu.vector_store %arg20[%c1_331, %c0_332, %c0_333], %530 {strides = array<i32>} : memref<2x64x196xf32, #tpu.memory_space<vmem>>, vector<1x64x196xf32>,
    %cst_334 = arith.constant dense<0xFF800000> : vector<64xf32>
    %531 = vector.multi_reduction <maximumf>, %527, %cst_334 [1] : vector<64x196xf32> to vector<64xf32>
    %532 = vector.shape_cast %531 : vector<64xf32> to vector<64x1xf32>
    %c1_335 = arith.constant 1 : index
    %c0_336 = arith.constant 0 : index
    %c0_337 = arith.constant 0 : index
    %533 = vector.load %arg21[%c1_335, %c0_336, %c0_337] : memref<2x64x1xf32, #tpu.memory_space<vmem>>, vector<1x64x1xf32>
    %534 = vector.shape_cast %533 : vector<1x64x1xf32> to vector<64x1xf32>
    %535 = vector.shape_cast %532 : vector<64x1xf32> to vector<1x64x1xf32>
    tpu.vector_store %arg21[%c1_335, %c0_336, %c0_337], %535 {strides = array<i32>} : memref<2x64x1xf32, #tpu.memory_space<vmem>>, vector<1x64x1xf32>,
    %536 = vector.broadcast %532 : vector<64x1xf32> to vector<64x10xf32>
    %537 = arith.mulf %416, %536 : vector<64x10xf32>
    %cst_338 = arith.constant dense<0.000000e+00> : vector<10xf32>
    %538 = vector.multi_reduction <add>, %537, %cst_338 [0] : vector<64x10xf32> to vector<10xf32>
    %539 = vector.shape_cast %538 : vector<10xf32> to vector<1x10xf32>
    %540 = arith.addf %539, %417 : vector<1x10xf32>
    %c1_339 = arith.constant 1 : index
    %c0_340 = arith.constant 0 : index
    %541 = vector.load %arg14[%c1_339, %c0_340] : memref<2x10xf32, #tpu.memory_space<vmem>>, vector<1x10xf32>
    tpu.vector_store %arg14[%c1_339, %c0_340], %540 {strides = array<i32>} : memref<2x10xf32, #tpu.memory_space<vmem>>, vector<1x10xf32>,
    return
  }
  func.func @transform_0(%arg0: i32) -> (i32, i32, i32) {
    %c0_i32 = arith.constant 0 : i32
    %c0_i32_0 = arith.constant 0 : i32
    %c0_i32_1 = arith.constant 0 : i32
    %c0_i32_2 = arith.constant 0 : i32
    return %c0_i32, %c0_i32_0, %c0_i32_1 : i32, i32, i32
  }
  func.func @transform_1(%arg0: i32) -> (i32, i32, i32) {
    %c0_i32 = arith.constant 0 : i32
    %c0_i32_0 = arith.constant 0 : i32
    %c0_i32_1 = arith.constant 0 : i32
    %c0_i32_2 = arith.constant 0 : i32
    return %c0_i32, %c0_i32_0, %c0_i32_1 : i32, i32, i32
  }
  func.func @transform_2(%arg0: i32) -> (i32, i32) {
    %c0_i32 = arith.constant 0 : i32
    %c0_i32_0 = arith.constant 0 : i32
    %c0_i32_1 = arith.constant 0 : i32
    return %c0_i32, %c0_i32_0 : i32, i32
  }
  func.func @transform_3(%arg0: i32) -> (i32, i32) {
    %c0_i32 = arith.constant 0 : i32
    %c0_i32_0 = arith.constant 0 : i32
    %c0_i32_1 = arith.constant 0 : i32
    return %c0_i32, %c0_i32_0 : i32, i32
  }
  func.func @transform_4(%arg0: i32) -> (i32, i32) {
    %c0_i32 = arith.constant 0 : i32
    %c0_i32_0 = arith.constant 0 : i32
    %c0_i32_1 = arith.constant 0 : i32
    return %c0_i32, %c0_i32_0 : i32, i32
  }
  func.func @transform_5(%arg0: i32) -> (i32, i32) {
    %c0_i32 = arith.constant 0 : i32
    %c0_i32_0 = arith.constant 0 : i32
    %c0_i32_1 = arith.constant 0 : i32
    return %c0_i32, %c0_i32_0 : i32, i32
  }
  func.func @transform_6(%arg0: i32) -> (i32, i32) {
    %c0_i32 = arith.constant 0 : i32
    %c0_i32_0 = arith.constant 0 : i32
    %c0_i32_1 = arith.constant 0 : i32
    return %c0_i32, %c0_i32_0 : i32, i32
  }
  func.func @transform_7(%arg0: i32) -> (i32, i32) {
    %c0_i32 = arith.constant 0 : i32
    %c0_i32_0 = arith.constant 0 : i32
    %c0_i32_1 = arith.constant 0 : i32
    return %c0_i32, %c0_i32_0 : i32, i32
  }
  func.func @transform_8(%arg0: i32) -> (i32, i32) {
    %c0_i32 = arith.constant 0 : i32
    %c0_i32_0 = arith.constant 0 : i32
    %c0_i32_1 = arith.constant 0 : i32
    return %c0_i32, %c0_i32_0 : i32, i32
  }
  func.func @transform_9(%arg0: i32) -> (i32, i32) {
    %c0_i32 = arith.constant 0 : i32
    %c0_i32_0 = arith.constant 0 : i32
    %c0_i32_1 = arith.constant 0 : i32
    return %c0_i32, %c0_i32_0 : i32, i32
  }
  func.func @transform_10(%arg0: i32) -> (i32, i32) {
    %c0_i32 = arith.constant 0 : i32
    %c0_i32_0 = arith.constant 0 : i32
    %c0_i32_1 = arith.constant 0 : i32
    return %c0_i32, %c0_i32_0 : i32, i32
  }
  func.func @transform_11(%arg0: i32) -> (i32, i32) {
    %c0_i32 = arith.constant 0 : i32
    %c0_i32_0 = arith.constant 0 : i32
    %c0_i32_1 = arith.constant 0 : i32
    return %c0_i32, %c0_i32_0 : i32, i32
  }
  func.func @transform_12(%arg0: i32) -> (i32, i32) {
    %c0_i32 = arith.constant 0 : i32
    %c0_i32_0 = arith.constant 0 : i32
    %c0_i32_1 = arith.constant 0 : i32
    return %c0_i32, %c0_i32_0 : i32, i32
  }
  func.func @transform_13(%arg0: i32) -> (i32, i32) {
    %c0_i32 = arith.constant 0 : i32
    %c0_i32_0 = arith.constant 0 : i32
    %c0_i32_1 = arith.constant 0 : i32
    return %c0_i32, %c0_i32_0 : i32, i32
  }
  func.func @transform_14(%arg0: i32) -> (i32, i32, i32) {
    %c0_i32 = arith.constant 0 : i32
    %c0_i32_0 = arith.constant 0 : i32
    %c0_i32_1 = arith.constant 0 : i32
    %c0_i32_2 = arith.constant 0 : i32
    return %c0_i32, %c0_i32_0, %c0_i32_1 : i32, i32, i32
  }
  func.func @transform_15(%arg0: i32) -> (i32, i32, i32) {
    %c0_i32 = arith.constant 0 : i32
    %c0_i32_0 = arith.constant 0 : i32
    %c0_i32_1 = arith.constant 0 : i32
    %c0_i32_2 = arith.constant 0 : i32
    return %c0_i32, %c0_i32_0, %c0_i32_1 : i32, i32, i32
  }
  func.func @transform_16(%arg0: i32) -> (i32, i32, i32) {
    %c0_i32 = arith.constant 0 : i32
    %c0_i32_0 = arith.constant 0 : i32
    %c0_i32_1 = arith.constant 0 : i32
    %c0_i32_2 = arith.constant 0 : i32
    return %c0_i32, %c0_i32_0, %c0_i32_1 : i32, i32, i32
  }
  func.func @transform_17(%arg0: i32) -> (i32, i32, i32) {
    %c0_i32 = arith.constant 0 : i32
    %c0_i32_0 = arith.constant 0 : i32
    %c0_i32_1 = arith.constant 0 : i32
    %c0_i32_2 = arith.constant 0 : i32
    return %c0_i32, %c0_i32_0, %c0_i32_1 : i32, i32, i32
  }
  func.func @transform_18(%arg0: i32) -> (i32, i32, i32) {
    %c0_i32 = arith.constant 0 : i32
    %c0_i32_0 = arith.constant 0 : i32
    %c0_i32_1 = arith.constant 0 : i32
    %c0_i32_2 = arith.constant 0 : i32
    return %c0_i32, %c0_i32_0, %c0_i32_1 : i32, i32, i32
  }
  func.func @transform_19(%arg0: i32) -> (i32, i32, i32) {
    %c0_i32 = arith.constant 0 : i32
    %c0_i32_0 = arith.constant 0 : i32
    %c0_i32_1 = arith.constant 0 : i32
    %c0_i32_2 = arith.constant 0 : i32
    return %c0_i32, %c0_i32_0, %c0_i32_1 : i32, i32, i32
  }
  func.func @transform_20(%arg0: i32) -> (i32, i32, i32) {
    %c0_i32 = arith.constant 0 : i32
    %c0_i32_0 = arith.constant 0 : i32
    %c0_i32_1 = arith.constant 0 : i32
    %c0_i32_2 = arith.constant 0 : i32
    return %c0_i32, %c0_i32_0, %c0_i32_1 : i32, i32, i32
  }
}

</mosaic_0001>

<bundles_post_ra>
// kernel: net_forward.1
= control target key start
LH: loop header
LB: loop body
LE: loop exit
PB: predicated region body
PF: predicated region fallthrough
CT: control target
= control target key end

     0   :  { %s14339_s0 = inlined_call_operand.vmem [shape: f32[2,1,784], index: 0, kind: input, shape index: {}]   ;;  %s14340_s1 = inlined_call_operand.vmem [shape: f32[9,8,1], index: 1, kind: input, shape index: {}]   ;;  %s14341_s2 = inlined_call_operand.vmem [shape: bf16[32,72], index: 2, kind: input, shape index: {}]   ;;  %s14342_s3 = inlined_call_operand.vmem [shape: bf16[64,288], index: 3, kind: input, shape index: {}]   ;;  %s14343_s4 = inlined_call_operand.vmem [shape: f32[64,10], index: 4, kind: input, shape index: {}]   ;;  %s14344_s5 = inlined_call_operand.vmem [shape: f32[1,10], index: 5, kind: input, shape index: {}]   ;;  %s14345_s6 = inlined_call_operand.vmem [shape: f32[8,1], index: 6, kind: input, shape index: {}]   ;;  %s14346_s7 = inlined_call_operand.vmem [shape: f32[8,1], index: 7, kind: input, shape index: {}]   ;;  %s14347_s8 = inlined_call_operand.vmem [shape: f32[32,1], index: 8, kind: input, shape index: {}]   ;;  %s14348_s9 = inlined_call_operand.vmem [shape: f32[32,1], index: 9, kind: input, shape index: {}]   ;;  %s14349_s10 = inlined_call_operand.vmem [shape: bf16[3,784], index: 10, kind: input, shape index: {}]   ;;  %s14350_s11 = inlined_call_operand.vmem [shape: bf16[3,196], index: 11, kind: input, shape index: {}]   ;;  %s14351_s12 = inlined_call_operand.vmem [shape: f32[755,196], index: 12, kind: input, shape index: {}]   ;;  %s14352_s13 = inlined_call_operand.hbm [shape: f32[2,10], index: 13, kind: output, shape index: {0}]   ;;  %s14353_s14 = inlined_call_operand.vmem [shape: f32[2,8,784], index: 14, kind: output, shape index: {1}]   ;;  %s14354_s15 = inlined_call_operand.vmem [shape: f32[2,8,784], index: 15, kind: output, shape index: {2}]   ;;  %s14355_s16 = inlined_call_operand.vmem [shape: f32[2,8,784], index: 16, kind: output, shape index: {3}]   ;;  %s14356_s17 = inlined_call_operand.vmem [shape: f32[2,32,784], index: 17, kind: output, shape index: {4}]   ;;  %s14357_s18 = inlined_call_operand.vmem [shape: f32[2,32,196], index: 18, kind: output, shape index: {5}]   ;;  %s14358_s19 = inlined_call_operand.vmem [shape: f32[2,64,196], index: 19, kind: output, shape index: {6}]   ;;  %s14359_s20 = inlined_call_operand.vmem [shape: f32[2,64,1], index: 20, kind: output, shape index: {7}]  }
   0x1   :  { %14496 = sst [smem:[#allocation83_spill]] %s14339_s0 }
   0x2   :  { %14497 = sst [smem:[#allocation84_spill]] %s14340_s1 }
   0x3   :  { %14498 = sst [smem:[#allocation85_spill]] %s14341_s2 }
   0x4   :  { %14499 = sst [smem:[#allocation86_spill]] %s14342_s3 }
   0x5   :  { %14500 = sst [smem:[#allocation87_spill]] %s14343_s4 }
   0x6   :  { %s14501_s23 = sld [smem:[#allocation84_spill]]  ;;  %v71_v2 = vld [vmem:[%s14349_s10] sm:$0xff]  ;;  %v76_v3 = vlaneseq  ;;  %v8180_v4 = vmov 0   ;;  %v8181_v5 = vmov 1983009808   ;;  %s14502_s28 = sld [smem:[#allocation83_spill]] }
   0x7   :  { %7884 = vset.pattern.permute.xlu1 %v8180_v4  ;;  %54 = vst [vmem:[#allocation2] sm:$0xff] %v8180_v4  ;;  %7883 = vset.pattern.permute.xlu0 %v8180_v4  ;;  %v137_v6 = vunpack.c.l.s4 %v8181_v5  ;;  %v135_v8 = vcombine.high %v71_v2, %v71_v2  ;;  %v8334_v12 = vld [vmem:[%s14349_s10 + $0x8] sm:$0x3f]  ;;  %s8182_s10 = smov 101  }
   0x8   :  { %v8319_v7 = vshrl.u32 %v76_v3, 7  ;;  %3277 = vmatprep.mubr.bf16.mxu1 %v8180_v4  ;;  %3224 = vmatprep.mubr.bf16.mxu0 %v8180_v4 }
   0x9   :  { %v138_v9 = vunpack.c.0.s8 %v137_v6 }
   0xa   :  { %v8329_v11 = vsub.s32 0, %v8319_v7  ;;  %v86_v13 = vsub.s32 2, %v8319_v7  ;;  %v8349_v18 = vsub.s32 1, %v8319_v7  ;;  %v90_v26 = vsub.s32 3, %v8319_v7 }
   0xb   :  { %v8338_v14 = vsub.s32 %v138_v9, %v8319_v7  ;;  %v94_v28 = vsub.s32 4, %v8319_v7  ;;  %v98_v29 = vsub.s32 5, %v8319_v7 }
   0xc   :  { %v64_v0 = vld [vmem:[%s14501_s23 + $0x10] sm:$0xff]  ;;  %v63_v1 = vld [vmem:[%s14501_s23 + $0x8] sm:$0xff]  ;;  %v8324_v10 = vld [vmem:[%s14502_s28] sm:$0x7f]  ;;  %14503 = vst [vmem:[#allocation7_spill] sm:$0xff] %v8329_v11 }
   0xd   :  { %404 = vperm.xlu1 %7884, %v64_v0   ;;  %273 = vperm.xlu0 %7883, %v63_v1   ;;  %v8343_v15 = vld [vmem:[%s14502_s28 + $0x7] sm:$0x7f]  ;;  %v79_v16 = vrot.slane %v8324_v10, %v8329_v11  ;;  %v87_v17 = vrot.slane %v8324_v10, %v86_v13  ;;  %14504 = vst [vmem:[#allocation8_spill] sm:$0xff] %v8349_v18 }
   0xe   :  { %v8352_v19 = vrot.slane %v135_v8, %v8338_v14  ;;  %v8355_v20 = vrot.slane %v71_v2, %v8338_v14  ;;  %v8359_v21 = vrot.slane %v8334_v12, %v8338_v14  ;;  %v1247_v27 = vrot.slane %v8343_v15, %v8329_v11 }
   0xf   :  { %v111_v22 = vpack.c.bf16 %v79_v16, %v79_v16  ;;  %v113_v23 = vpack.c.bf16 %v87_v17, %v87_v17  ;;  %v83_v33 = vrot.slane %v8324_v10, %v8349_v18  ;;  %v1255_v34 = vrot.slane %v8343_v15, %v86_v13 }
  0x10   :  { %14505 = vst [vmem:[#allocation9_spill] sm:$0xff] %v8352_v19  ;;  %14506 = vst [vmem:[#allocation10_spill] sm:$0xff] %v8355_v20  ;;  %v8362_v24 = vrot.slane %v8352_v19, 1  ;;  %v8365_v25 = vrot.slane %v8355_v20, 1  ;;  %v8377_v30 = vrot.slane %v8359_v21, 1  ;;  %v8381_v31 = vcombine.high %v8355_v20, %v8355_v20 }
  0x11   :  { %14507 = vst [vmem:[#allocation11_spill] sm:$0xff] %v8359_v21  ;;  %118 = vst [vmem:[#allocation2 + $0x8] sm:$0x1] %v111_v22  ;;  %v8385_v32 = vcombine.high %v8352_v19, %v8352_v19  ;;  %v112_v35 = vpack.c.bf16 %v83_v33, %v83_v33  ;;  %v91_v36 = vrot.slane %v8324_v10, %v90_v26 }
  0x12   :  { %120 = vst [vmem:[#allocation2 + $0x18] sm:$0x1] %v113_v23  ;;  %364 = vrot.lane.b32.xlu1 %v8362_v24, %s8182_s10  ;;  %360 = vrot.lane.b32.xlu0 %v8365_v25, %s8182_s10  ;;  %14508 = vst [vmem:[#allocation12_spill] sm:$0xff] %v8381_v31 }
  0x13   :  { %14509 = vst [vmem:[#allocation13_spill] sm:$0xff] %v8385_v32 }
  0x14   :  { %26 = vsyncpa [#allocation5], 0  ;;  %v95_v37 = vrot.slane %v8324_v10, %v94_v28  ;;  %v99_v38 = vrot.slane %v8324_v10, %v98_v29  ;;  %s8183_s21 = smov 127   ;;  %v8400_v39 = vrot.slane %v8381_v31, 1  ;;  %v8403_v40 = vrot.slane %v8385_v32, 1  ;;  %v65_v63 = vld [vmem:[%s14501_s23 + $0x18] sm:$0xff] }
  0x15   :  { %v1279_v41 = vpack.c.bf16 %v1247_v27, %v1247_v27  ;;  %119 = vst [vmem:[#allocation2 + $0x10] sm:$0x1] %v112_v35  ;;  %v114_v42 = vpack.c.bf16 %v91_v36, %v91_v36  ;;  %v1251_v43 = vrot.slane %v8343_v15, %v8349_v18  ;;  %v1281_v49 = vpack.c.bf16 %v1255_v34, %v1255_v34  ;;  %s8184_s25 = smov 1   ;;  %s8185_s27 = smov 27  }
  0x16   :  { %492 = vrot.lane.b32.xlu1 %v8355_v20, %s8183_s21  ;;  %368 = vrot.lane.b32.xlu0 %v8377_v30, %s8182_s10  ;;  %v115_v44 = vpack.c.bf16 %v95_v37, %v95_v37  ;;  %v116_v45 = vpack.c.bf16 %v99_v38, %v99_v38  ;;  %v1259_v53 = vrot.slane %v8343_v15, %v90_v26  ;;  %vm56_vm0 = vcmask 1047680   ;;  %s8186_s0 = smov 29   ;;  %s8187_s24 = smov 99  }
  0x17   :  { %121 = vst [vmem:[#allocation2 + $0x20] sm:$0x1] %v114_v42  ;;  %v1280_v60 = vpack.c.bf16 %v1251_v43, %v1251_v43  ;;  %v1263_v61 = vrot.slane %v8343_v15, %v94_v28  ;;  %v102_v62 = vsub.s32 6, %v8319_v7  ;;  %vm124_vm1 = vcmask 122880   ;;  %57 = vst.msk [vmem:[#allocation2 + $0x38] sm:$0xff] %vm56_vm0, %v8180_v4  ;;  %s8189_s26 = smov 100  }
  0x18   :  { %v8407_v46 = vld [vmem:[#allocation2 + $0x8] sm:$0x1]  ;;  %122 = vst [vmem:[#allocation2 + $0x28] sm:$0x1] %v115_v44  ;;  %123 = vst [vmem:[#allocation2 + $0x30] sm:$0x1] %v116_v45  ;;  %v8443_v0 = vcombine.high %v8359_v21, %v8359_v21  ;;  %v1282_v5 = vpack.c.bf16 %v1259_v53, %v1259_v53  ;;  %v152_v6 = vcombine.high %v8334_v12, %v8334_v12 }
  0x19   :  { %14510 = vst [vmem:[#allocation14_spill] sm:$0xff] %v8407_v46  ;;  %v8409_v47 = vld [vmem:[#allocation2 + $0x8] sm:$0x1]  ;;  %v8424_v54 = vld [vmem:[#allocation2 + $0x18] sm:$0x1]  ;;  %v1267_v16 = vrot.slane %v8343_v15, %v98_v29  ;;  %v103_v4 = vrot.slane %v8324_v10, %v102_v62  ;;  %v1283_v28 = vpack.c.bf16 %v1263_v61, %v1263_v61  ;;  %v1271_v42 = vrot.slane %v8343_v15, %v102_v62  ;;  %s8190_s28 = smov 98  }
  0x1a   :  { %v8411_v48 = vld [vmem:[#allocation2 + $0x8] sm:$0x1]  ;;  %362 = vrot.lane.b32.xlu1 %v8400_v39, %s8182_s10  ;;  %366 = vrot.lane.b32.xlu0 %v8403_v40, %s8182_s10  ;;  %14512 = vst [vmem:[#allocation16_spill] sm:$0xff] %v8424_v54  ;;  %v8426_v55 = vld [vmem:[#allocation2 + $0x18] sm:$0x1]  ;;  %14514 = vst [vmem:[#allocation18_spill] sm:$0xff] %v8443_v0  ;;  %v8488_v29 = vrot.slane %v152_v6, %v8338_v14 }
  0x1b   :  { %v8413_v50 = vld [vmem:[#allocation2 + $0x8] sm:$0x1]  ;;  %v8428_v56 = vld [vmem:[#allocation2 + $0x18] sm:$0x1]  ;;  %v117_v33 = vpack.c.bf16 %v103_v4, %v103_v4  ;;  %v8481_v7 = vrot.slane %v8443_v0, 1  ;;  %v1284_v37 = vpack.c.bf16 %v1267_v16, %v1267_v16  ;;  %v1285_v61 = vpack.c.bf16 %v1271_v42, %v1271_v42  ;;  %v68_v4 = vld [vmem:[%s14501_s23 + $0x30] sm:$0xff] }
  0x1c   :  { %v8415_v51 = vld [vmem:[#allocation2 + $0x8] sm:$0x1]  ;;  %v8430_v57 = vld [vmem:[#allocation2 + $0x18] sm:$0x1]  ;;  %v8445_v1 = vld [vmem:[#allocation2 + $0x10] sm:$0x1] }
  0x1d   :  { %v8417_v52 = vld [vmem:[#allocation2 + $0x8] sm:$0x1]  ;;  %v8432_v58 = vld [vmem:[#allocation2 + $0x18] sm:$0x1]  ;;  %14515 = vst [vmem:[#allocation19_spill] sm:$0xff] %v8445_v1  ;;  %14519 = vst [vmem:[#allocation23_spill] sm:$0xff] %v8488_v29 }
  0x1e   :  { %14511 = vst [vmem:[#allocation15_spill] sm:$0xff] %v8417_v52  ;;  %1286 = vst [vmem:[#allocation2 + $0x8] sm:$0x1] %v1279_v41  ;;  %v8434_v59 = vld [vmem:[#allocation2 + $0x18] sm:$0x1]  ;;  %496 = vrot.lane.b32.xlu1 %v8352_v19, %s8183_s21  ;;  %494 = vrot.lane.b32.xlu0 %v8381_v31, %s8183_s21  ;;  %v359_v15 = vrot.slane %v8488_v29, 1 }
  0x1f   :  { %14513 = vst [vmem:[#allocation17_spill] sm:$0xff] %v8434_v59  ;;  %1288 = vst [vmem:[#allocation2 + $0x18] sm:$0x1] %v1281_v49  ;;  %v8447_v2 = vld [vmem:[#allocation2 + $0x10] sm:$0x1]  ;;  %v67_v16 = vld [vmem:[%s14501_s23 + $0x28] sm:$0xff] }
  0x20   :  { %v8449_v3 = vld [vmem:[#allocation2 + $0x10] sm:$0x1]  ;;  %v8468_v17 = vld [vmem:[#allocation2 + $0x20] sm:$0x1]  ;;  %v8483_v10 = vld [vmem:[#allocation2 + $0x28] sm:$0x1] }
  0x21   :  { %v8458_v8 = vld [vmem:[#allocation2 + $0x10] sm:$0x1]  ;;  %14516 = vst [vmem:[#allocation20_spill] sm:$0xff] %v8468_v17  ;;  %v8470_v22 = vld [vmem:[#allocation2 + $0x20] sm:$0x1]  ;;  %14518 = vst [vmem:[#allocation22_spill] sm:$0xff] %v8483_v10 }
  0x22   :  { %v8460_v9 = vld [vmem:[#allocation2 + $0x10] sm:$0x1]  ;;  %v8472_v23 = vld [vmem:[#allocation2 + $0x20] sm:$0x1]  ;;  %539 = vperm.xlu1 %7884, %v65_v63   ;;  %498 = vrot.lane.b32.xlu0 %v8385_v32, %s8183_s21  ;;  %v8490_v34 = vld [vmem:[#allocation2 + $0x28] sm:$0x1] }
  0x23   :  { %v8462_v13 = vld [vmem:[#allocation2 + $0x10] sm:$0x1]  ;;  %v8474_v12 = vld [vmem:[#allocation2 + $0x20] sm:$0x1]  ;;  %v8492_v35 = vld [vmem:[#allocation2 + $0x28] sm:$0x1] }
  0x24   :  { %1287 = vst [vmem:[#allocation2 + $0x10] sm:$0x1] %v1280_v60  ;;  %v8476_v26 = vld [vmem:[#allocation2 + $0x20] sm:$0x1]  ;;  %v8494_v36 = vld [vmem:[#allocation2 + $0x28] sm:$0x1] }
  0x25   :  { %v8478_v27 = vld [vmem:[#allocation2 + $0x20] sm:$0x1]  ;;  %125 = vst.msk [vmem:[#allocation2 + $0x38] sm:$0x1] %vm124_vm1, %v117_v33  ;;  %v8497_v38 = vld [vmem:[#allocation2 + $0x28] sm:$0x1] }
  0x26   :  { %14517 = vst [vmem:[#allocation21_spill] sm:$0xff] %v8478_v27  ;;  %1289 = vst [vmem:[#allocation2 + $0x20] sm:$0x1] %v1282_v5  ;;  %v8499_v41 = vld [vmem:[#allocation2 + $0x28] sm:$0x1]  ;;  %500 = vrot.lane.b32.xlu1 %v8359_v21, %s8183_s21  ;;  %370 = vrot.lane.b32.xlu0 %v8481_v7, %s8182_s10  ;;  %v66_v60 = vld [vmem:[%s14501_s23 + $0x20] sm:$0xff] }
  0x27   :  { %14520 = vst [vmem:[#allocation24_spill] sm:$0xff] %v8497_v38  ;;  %14521 = vst [vmem:[#allocation25_spill] sm:$0xff] %v8499_v41  ;;  %v8502_v43 = vld [vmem:[#allocation2 + $0x30] sm:$0x1]  ;;  %vm58_vm2 = vcmask 130048   ;;  %v70_v33 = vld [vmem:[%s14501_s23 + $0x40] sm:$0xff] }
  0x28   :  { %1290 = vst [vmem:[#allocation2 + $0x28] sm:$0x1] %v1283_v28  ;;  %14522 = vst [vmem:[#allocation26_spill] sm:$0xff] %v8502_v43  ;;  %v8504_v14 = vld [vmem:[#allocation2 + $0x30] sm:$0x1]  ;;  %v69_v28 = vld [vmem:[%s14501_s23 + $0x38] sm:$0xff] }
  0x29   :  { %v8506_v44 = vld [vmem:[#allocation2 + $0x30] sm:$0x1]  ;;  %v8609_v42 = vld [vmem:[#allocation2] sm:$0x1]  ;;  %vm374_vm3 = vcmask 826368   ;;  %vm332_vm4 = vcmask 1039360  }
  0x2a   :  { %v8508_v45 = vld [vmem:[#allocation2 + $0x30] sm:$0x1]  ;;  %372 = vrot.lane.b32.xlu1 %v359_v15, %s8182_s10  ;;  %644 = vperm.xlu0 %7883, %v66_v60   ;;  %v8612_v60 = vld [vmem:[#allocation2 + $0x8] sm:$0x1]  ;;  %vm738_vm5 = vcmask 7168   ;;  %vm869_vm6 = vcmask 220160  }
  0x2b   :  { %v8510_v49 = vld [vmem:[#allocation2 + $0x30] sm:$0x1]  ;;  %s8191_s4 = smov 72   ;;  %s8192_s29 = smov 71   ;;  %vm1089_vm7 = vcmask 236544   ;;  %vm182_vm8 = vcmask 809984  }
  0x2c   :  { %14523 = vst [vmem:[#allocation27_spill] sm:$0xff] %v8510_v49  ;;  %v8512_v53 = vld [vmem:[#allocation2 + $0x30] sm:$0x1]  ;;  %v8522_v62 = vld [vmem:[#allocation2 + $0x38] sm:$0x1]  ;;  %s8193_s30 = smov 70  }
  0x2d   :  { %14524 = vst [vmem:[#allocation28_spill] sm:$0xff] %v8512_v53  ;;  %1291 = vst [vmem:[#allocation2 + $0x30] sm:$0x1] %v1284_v37  ;;  %v8524_v63 = vld [vmem:[#allocation2 + $0x38] sm:$0x1]  ;;  %vm463_vm9 = vcmask 1031168  }
  0x2e   :  { %14525 = vst [vmem:[#allocation29_spill] sm:$0xff] %v8524_v63  ;;  %v8526_v5 = vld [vmem:[#allocation2 + $0x38] sm:$0x1]  ;;  %724 = vrot.lane.b32.xlu1 %v8365_v25, %s8184_s25  ;;  %502 = vrot.lane.b32.xlu0 %v8443_v0, %s8183_s21  ;;  %vm606_vm10 = vcmask 818176   ;;  %vm827_vm11 = vcmask 801792   ;;  %vm958_vm12 = vcmask 588800  }
  0x2f   :  { %14526 = vst [vmem:[#allocation30_spill] sm:$0xff] %v8526_v5  ;;  %v8529_v6 = vld [vmem:[#allocation2 + $0x38] sm:$0x1]  ;;  %vm1054_vm13 = vcmask 580608   ;;  %vm1178_vm14 = vcmask 572416   ;;  %vm2385_vm15 = vcmask 125952  }
  0x30   :  { %14527 = vst [vmem:[#allocation31_spill] sm:$0xff] %v8529_v6  ;;  %1292 = vst.msk [vmem:[#allocation2 + $0x38] sm:$0x1] %vm124_vm1, %v1285_v61  ;;  %vm2560_vm0 = vcmask 228352   ;;  %vm2580_vm1 = vcmask 130052   ;;  %s8200_s1 = smov 114  }
  0x32   :  { %728 = vrot.lane.b32.xlu1 %v8362_v24, %s8184_s25  ;;  %726 = vrot.lane.b32.xlu0 %v8400_v39, %s8184_s25 }
  0x34   :  { %v8828_v38 = vld [vmem:[#allocation2 + $0x30] sm:$0x1] }
  0x35   :  { %v1362_v52 = vunpack.c.l.bf16 %v8828_v38 }
  0x36   :  { %504 = vrot.lane.b32.xlu1 %v8488_v29, %s8183_s21  ;;  %768 = vperm.xlu0 %7883, %v67_v16  }
  0x3a   :  { %855 = vrot.lane.b32.xlu1 %v8355_v20, %s8185_s27  ;;  %730 = vrot.lane.b32.xlu0 %v8403_v40, %s8184_s25 }
  0x3e   :  { %859 = vrot.lane.b32.xlu1 %v8352_v19, %s8185_s27  ;;  %857 = vrot.lane.b32.xlu0 %v8381_v31, %s8185_s27 }
  0x42   :  { %732 = vrot.lane.b32.xlu1 %v8377_v30, %s8184_s25  ;;  %899 = vperm.xlu0 %7883, %v68_v4  }
  0x46   :  { %995 = vperm.xlu1 %7884, %v69_v28   ;;  %861 = vrot.lane.b32.xlu0 %v8385_v32, %s8185_s27  ;;  %v1356_v28 = vunpack.c.l.bf16 %v8609_v42 }
  0x4a   :  { %863 = vrot.lane.b32.xlu1 %v8359_v21, %s8185_s27  ;;  %734 = vrot.lane.b32.xlu0 %v8481_v7, %s8184_s25 }
  0x4e   :  { %1077 = vrot.lane.b32.xlu1 %v8400_v39, %s8186_s0  ;;  %1075 = vrot.lane.b32.xlu0 %v8365_v25, %s8186_s0  ;;  %v257_v25 = vld [vmem:[#allocation2] sm:$0x1] }
  0x4f   :  { %v264_v39 = vunpack.c.l.bf16 %v257_v25 }
  0x51   :  { %v279_v37 = vrot.slane %v264_v39, %v8329_v11  ;;  %v1357_v39 = vunpack.c.l.bf16 %v8612_v60 }
  0x52   :  { %1119 = vperm.xlu1 %7884, %v70_v33   ;;  %1079 = vrot.lane.b32.xlu0 %v8362_v24, %s8186_s0  ;;  %v62_v24 = vld [vmem:[%s14501_s23] sm:$0xff]  ;;  %s8188_s23 = smov 126  }
  0x56   :  { %736 = vrot.lane.b32.xlu0 %v359_v15, %s8184_s25  ;;  %865 = vrot.lane.b32.xlu1 %v8443_v0, %s8185_s27 }
  0x5a   :  { %1081 = vrot.lane.b32.xlu0 %v8403_v40, %s8186_s0  ;;  %867 = vrot.lane.b32.xlu1 %v8488_v29, %s8185_s27  ;;  %v267_v40 = vunpack.c.l.bf16 %v8426_v55 }
  0x5c   :  { %v291_v4 = vrot.slane %v267_v40, %v8329_v11 }
  0x5e   :  { %1083 = vrot.lane.b32.xlu0 %v8377_v30, %s8186_s0  ;;  %1085 = vrot.lane.b32.xlu1 %v8481_v7, %s8186_s0  ;;  %v265_v30 = vunpack.c.l.bf16 %v8409_v47 }
  0x60   :  { %v283_v7 = vrot.slane %v265_v30, %v8329_v11 }
  0x62   :  { %1087 = vrot.lane.b32.xlu0 %v359_v15, %s8186_s0  ;;  %168 = vrot.lane.b32.xlu1 %v8355_v20, %s8187_s24  ;;  %v266_v15 = vunpack.c.l.bf16 %v8447_v2  ;;  %v8628_v20 = vld [vmem:[#allocation2 + $0x10] sm:$0x1] }
  0x64   :  { %v287_v30 = vrot.slane %v266_v15, %v8329_v11  ;;  %v8634_v15 = vrot.slane %v1357_v39, %v8329_v11 }
  0x66   :  { %170 = vrot.lane.b32.xlu0 %v8381_v31, %s8187_s24  ;;  %172 = vrot.lane.b32.xlu1 %v8352_v19, %s8187_s24  ;;  %v1366_v31 = vrot.slane %v1356_v28, %v8329_v11 }
  0x6a   :  { %212 = vperm.xlu0 %7883, %v62_v24   ;;  %174 = vrot.lane.b32.xlu1 %v8385_v32, %s8187_s24  ;;  %v8637_v32 = vld [vmem:[#allocation2 + $0x20] sm:$0x1] }
  0x6b   :  { %v1360_v43 = vunpack.c.l.bf16 %v8637_v32 }
  0x6d   :  { %v8665_v1 = vrot.slane %v1360_v43, %v8329_v11 }
  0x6e   :  { %178 = vrot.lane.b32.xlu1 %v8443_v0, %s8187_s24  ;;  %176 = vrot.lane.b32.xlu0 %v8359_v21, %s8187_s24 }
  0x72   :  { %180 = vrot.lane.b32.xlu0 %v8488_v29, %s8187_s24  ;;  %v8624_v29 = vld [vmem:[#allocation2 + $0x18] sm:$0x1] }
  0x73   :  { %v1359_v18 = vunpack.c.l.bf16 %v8624_v29 }
  0x8c   :  { %v8614_v61 = vpop.permute.xlu1 %404  ;;  %v8616_v16 = vpop.permute.xlu0 %273 }
  0x8d   :  { %v305_v33 = vmul.f32 %v283_v7, %v8616_v16  ;;  %v304_v24 = vmul.f32 %v279_v37, %v8616_v16  ;;  %v307_v7 = vmul.f32 %v291_v4, %v8616_v16  ;;  %v306_v37 = vmul.f32 %v287_v30, %v8616_v16 }
  0x8e   :  { %v8647_v4 = vrot.slane %v1359_v18, %v8329_v11  ;;  %v268_v30 = vunpack.c.l.bf16 %v8470_v22  ;;  %v1392_v28 = vmul.f32 %v8634_v15, %v8616_v16  ;;  %v1391_v19 = vmul.f32 %v1366_v31, %v8616_v16 }
  0x8f   :  { %320 = vrot.lane.b32.xlu0 %v305_v33, %s8183_s21  ;;  %318 = vrot.lane.b32.xlu1 %v304_v24, %s8183_s21  ;;  %v1358_v33 = vunpack.c.l.bf16 %v8628_v20  ;;  %v1395_v53 = vmul.f32 %v8665_v1, %v8616_v16 }
  0x90   :  { %v365_v0 = vpop.permute.xlu1 %364  ;;  %v361_v40 = vpop.permute.xlu0 %360  ;;  %v295_v10 = vrot.slane %v268_v30, %v8329_v11  ;;  %v1394_v31 = vmul.f32 %v8647_v4, %v8616_v16 }
  0x91   :  { %v388_v39 = vmul.bf16 %v361_v40, %v257_v25  ;;  %v269_v25 = vunpack.c.l.bf16 %v8490_v34 }
  0x93   :  { %324 = vrot.lane.b32.xlu0 %v307_v7, %s8183_s21  ;;  %322 = vrot.lane.b32.xlu1 %v306_v37, %s8183_s21  ;;  %v8655_v7 = vrot.slane %v1358_v33, %v8329_v11  ;;  %v395_v17 = vunpack.c.l.bf16 %v388_v39  ;;  %v1439_v33 = vmul.bf16 %v8609_v42, %v361_v40  ;;  %v299_v39 = vrot.slane %v269_v25, %v8329_v11 }
  0x94   :  { %v8642_v24 = vpop.permute.xlu1 %492  ;;  %v8644_v21 = vpop.permute.xlu0 %368 }
  0x95   :  { %v1393_v30 = vmul.f32 %v8655_v7, %v8616_v16  ;;  %v309_v25 = vmul.f32 %v299_v39, %v8616_v16 }
  0x97   :  { %1407 = vrot.lane.b32.xlu0 %v1392_v28, %s8183_s21  ;;  %1405 = vrot.lane.b32.xlu1 %v1391_v19, %s8183_s21 }
  0x98   :  { %v363_v18 = vpop.permute.xlu1 %362  ;;  %v367_v37 = vpop.permute.xlu0 %366 }
  0x99   :  { %v376_v54 = vsel %vm374_vm3, %v363_v18, %v365_v0  ;;  %v375_v28 = vsel %vm374_vm3, %v361_v40, %v363_v18  ;;  %v410_v40 = vrot.slane %v395_v17, %v8329_v11  ;;  %v1446_v18 = vunpack.c.l.bf16 %v1439_v33 }
  0x9a   :  { %v390_v19 = vmul.bf16 %v376_v54, %v8447_v2  ;;  %v1440_v6 = vmul.bf16 %v8612_v60, %v375_v28  ;;  %v389_v2 = vmul.bf16 %v375_v28, %v8409_v47  ;;  %v377_v5 = vsel %vm374_vm3, %v365_v0, %v367_v37 }
  0x9b   :  { %1411 = vrot.lane.b32.xlu0 %v1394_v31, %s8183_s21  ;;  %1409 = vrot.lane.b32.xlu1 %v1393_v30, %s8183_s21  ;;  %v308_v31 = vmul.f32 %v295_v10, %v8616_v16  ;;  %v1442_v30 = vmul.bf16 %v8624_v29, %v377_v5  ;;  %v435_v49 = vmul.f32 %v410_v40, %v8614_v61 }
  0x9c   :  { %v397_v46 = vunpack.c.l.bf16 %v390_v19  ;;  %v495_v43 = vpop.permute.xlu0 %494  ;;  %v1447_v19 = vunpack.c.l.bf16 %v1440_v6  ;;  %v497_v41 = vpop.permute.xlu1 %496  ;;  %v396_v33 = vunpack.c.l.bf16 %v389_v2  ;;  %v378_v47 = vsel %vm374_vm3, %v367_v37, %v8644_v21 }
  0x9d   :  { %v391_v0 = vmul.bf16 %v377_v5, %v8426_v55  ;;  %v1456_v10 = vrot.slane %v1446_v18, %v8329_v11  ;;  %v392_v6 = vmul.bf16 %v378_v47, %v8470_v22  ;;  %v1449_v28 = vunpack.c.l.bf16 %v1442_v30  ;;  %v484_v22 = vld [vmem:[#allocation2] sm:$0x1] }
  0x9e   :  { %v418_v17 = vrot.slane %v397_v46, %v8329_v11  ;;  %v1460_v37 = vrot.slane %v1447_v19, %v8329_v11  ;;  %v1441_v55 = vmul.bf16 %v8628_v20, %v376_v54  ;;  %v414_v18 = vrot.slane %v396_v33, %v8329_v11 }
  0x9f   :  { %1413 = vrot.lane.b32.xlu0 %v1395_v53, %s8183_s21  ;;  %326 = vrot.lane.b32.xlu1 %v308_v31, %s8183_s21  ;;  %v398_v5 = vunpack.c.l.bf16 %v391_v0  ;;  %v1481_v40 = vmul.f32 %v1456_v10, %v8614_v61  ;;  %v399_v2 = vunpack.c.l.bf16 %v392_v6  ;;  %v1468_v19 = vrot.slane %v1449_v28, %v8329_v11 }
  0xa0   :  { %v8692_v53 = vpop.permute.xlu0 %498  ;;  %v437_v39 = vmul.f32 %v418_v17, %v8614_v61  ;;  %v1482_v54 = vmul.f32 %v1460_v37, %v8614_v61  ;;  %v1448_v30 = vunpack.c.l.bf16 %v1441_v55  ;;  %v436_v33 = vmul.f32 %v414_v18, %v8614_v61 }
  0xa1   :  { %v8697_v46 = vpop.permute.xlu1 %539  ;;  %v509_v17 = vsel %vm332_vm4, %v497_v41, %v8692_v53  ;;  %v422_v0 = vrot.slane %v398_v5, %v8329_v11  ;;  %v521_v6 = vmul.bf16 %v8642_v24, %v484_v22  ;;  %v426_v5 = vrot.slane %v399_v2, %v8329_v11 }
  0xa2   :  { %v524_v28 = vmul.bf16 %v509_v17, %v8428_v56  ;;  %v1464_v18 = vrot.slane %v1448_v30, %v8329_v11  ;;  %v1443_v56 = vmul.bf16 %v8637_v32, %v378_v47  ;;  %v8742_v30 = vld [vmem:[#allocation2 + $0x28] sm:$0x1] }
  0xa3   :  { %449 = vrot.lane.b32.xlu0 %v435_v49, %s8188_s23  ;;  %328 = vrot.lane.b32.xlu1 %v309_v25, %s8183_s21  ;;  %v507_v49 = vsel %vm332_vm4, %v8642_v24, %v495_v43  ;;  %v529_v22 = vunpack.c.l.bf16 %v521_v6  ;;  %v439_v2 = vmul.f32 %v426_v5, %v8614_v61 }
  0xa4   :  { %v8708_v31 = vpop.permute.xlu0 %370  ;;  %v522_v10 = vmul.bf16 %v507_v49, %v8411_v48  ;;  %v438_v48 = vmul.f32 %v422_v0, %v8614_v61  ;;  %v1483_v0 = vmul.f32 %v1464_v18, %v8614_v61  ;;  %v1450_v6 = vunpack.c.l.bf16 %v1443_v56 }
  0xa5   :  { %v8710_v25 = vpop.permute.xlu1 %500  ;;  %v545_v47 = vrot.slane %v529_v22, %v8329_v11  ;;  %v1530_v22 = vmul.bf16 %v8609_v42, %v8642_v24  ;;  %v1533_v56 = vmul.bf16 %v8624_v29, %v509_v17 }
  0xa7   :  { %453 = vrot.lane.b32.xlu0 %v437_v39, %s8188_s23  ;;  %1495 = vrot.lane.b32.xlu1 %v1481_v40, %s8188_s23  ;;  %v508_v39 = vsel %vm332_vm4, %v495_v43, %v497_v41  ;;  %v1484_v40 = vmul.f32 %v1468_v19, %v8614_v61  ;;  %v532_v43 = vunpack.c.l.bf16 %v524_v28  ;;  %v574_v18 = vmul.f32 %v545_v47, %v8697_v46 }
  0xa8   :  { %v523_v41 = vmul.bf16 %v508_v39, %v8449_v3  ;;  %v379_v47 = vsel %vm374_vm3, %v8644_v21, %v8708_v31  ;;  %v1538_v17 = vunpack.c.l.bf16 %v1530_v22 }
  0xa9   :  { %v8724_v37 = vpop.permute.xlu1 %372  ;;  %v8726_v55 = vpop.permute.xlu0 %644 }
  0xaa   :  { %v531_v3 = vunpack.c.l.bf16 %v523_v41 }
  0xab   :  { %1497 = vrot.lane.b32.xlu0 %v1482_v54, %s8188_s23  ;;  %451 = vrot.lane.b32.xlu1 %v436_v33, %s8188_s23  ;;  %v530_v54 = vunpack.c.l.bf16 %v522_v10 }
  0xac   :  { %v553_v41 = vrot.slane %v531_v3, %v8329_v11 }
  0xad   :  { %v8736_v33 = vpop.permute.xlu1 %724  ;;  %v8738_v19 = vpop.permute.xlu0 %502  ;;  %v549_v10 = vrot.slane %v530_v54, %v8329_v11  ;;  %v1531_v54 = vmul.bf16 %v8612_v60, %v507_v49  ;;  %v1472_v49 = vrot.slane %v1450_v6, %v8329_v11  ;;  %v393_v6 = vmul.bf16 %v379_v47, %v8490_v34 }
  0xae   :  { %v576_v42 = vmul.f32 %v553_v41, %v8697_v46  ;;  %v1549_v34 = vrot.slane %v1538_v17, %v8329_v11 }
  0xaf   :  { %1501 = vrot.lane.b32.xlu0 %v1484_v40, %s8188_s23  ;;  %455 = vrot.lane.b32.xlu1 %v438_v48, %s8188_s23  ;;  %v575_v5 = vmul.f32 %v549_v10, %v8697_v46  ;;  %v557_v48 = vrot.slane %v532_v43, %v8329_v11  ;;  %v1539_v3 = vunpack.c.l.bf16 %v1531_v54  ;;  %v1485_v21 = vmul.f32 %v1472_v49, %v8614_v61 }
  0xb0   :  { %v510_v54 = vsel %vm332_vm4, %v8692_v53, %v8710_v25  ;;  %v400_v41 = vunpack.c.l.bf16 %v393_v6 }
  0xb1   :  { %v8748_v28 = vpop.permute.xlu1 %728  ;;  %v8750_v40 = vpop.permute.xlu0 %726  ;;  %v577_v10 = vmul.f32 %v557_v48, %v8697_v46  ;;  %v1541_v48 = vunpack.c.l.bf16 %v1533_v56  ;;  %v525_v53 = vmul.bf16 %v510_v54, %v8472_v23  ;;  %v635_v23 = vunpack.c.l.bf16 %v8413_v50 }
  0xb3   :  { %457 = vrot.lane.b32.xlu0 %v439_v2, %s8188_s23  ;;  %1499 = vrot.lane.b32.xlu1 %v1483_v0, %s8188_s23  ;;  %v1361_v2 = vunpack.c.l.bf16 %v8742_v30 }
  0xb5   :  { %v8763_v0 = vpop.permute.xlu1 %504  ;;  %v8765_v43 = vpop.permute.xlu0 %768  ;;  %v8774_v24 = vrot.slane %v1361_v2, %v8329_v11 }
  0xb7   :  { %592 = vrot.lane.b32.xlu0 %v575_v5, %s8189_s26  ;;  %590 = vrot.lane.b32.xlu1 %v574_v18, %s8189_s26  ;;  %v1532_v5 = vmul.bf16 %v8628_v20, %v508_v39  ;;  %v1396_v2 = vmul.f32 %v8774_v24, %v8616_v16  ;;  %v1553_v39 = vrot.slane %v1539_v3, %v8329_v11  ;;  %v270_v3 = vunpack.c.l.bf16 %v8504_v14 }
  0xb9   :  { %v8780_v18 = vpop.permute.xlu1 %855  ;;  %v8782_v27 = vpop.permute.xlu0 %730  ;;  %v1540_v22 = vunpack.c.l.bf16 %v1532_v5  ;;  %v1579_v49 = vmul.f32 %v1553_v39, %v8697_v46  ;;  %v533_v39 = vunpack.c.l.bf16 %v525_v53  ;;  %v303_v63 = vrot.slane %v270_v3, %v8329_v11 }
  0xba   :  { %v637_v53 = vunpack.c.l.bf16 %v8430_v57 }
  0xbb   :  { %596 = vrot.lane.b32.xlu0 %v577_v10, %s8189_s26  ;;  %594 = vrot.lane.b32.xlu1 %v576_v42, %s8189_s26  ;;  %v1561_v42 = vrot.slane %v1541_v48, %v8329_v11  ;;  %v1557_v17 = vrot.slane %v1540_v22, %v8329_v11  ;;  %v430_v48 = vrot.slane %v400_v41, %v8329_v11 }
  0xbc   :  { %v1444_v22 = vmul.bf16 %v8742_v30, %v379_v47  ;;  %v650_v41 = vrot.slane %v635_v23, %v8329_v11  ;;  %v561_v3 = vrot.slane %v533_v39, %v8329_v11 }
  0xbd   :  { %v8794_v56 = vpop.permute.xlu1 %859  ;;  %v8796_v10 = vpop.permute.xlu0 %857 }
  0xbe   :  { %v1451_v47 = vunpack.c.l.bf16 %v1444_v22  ;;  %v675_v23 = vmul.f32 %v650_v41, %v8726_v55  ;;  %v578_v39 = vmul.f32 %v561_v3, %v8697_v46 }
  0xbf   :  { %1503 = vrot.lane.b32.xlu0 %v1485_v21, %s8188_s23  ;;  %1415 = vrot.lane.b32.xlu1 %v1396_v2, %s8183_s21  ;;  %v1578_v21 = vmul.f32 %v1549_v34, %v8697_v46  ;;  %v1581_v2 = vmul.f32 %v1561_v42, %v8697_v46  ;;  %v1580_v34 = vmul.f32 %v1557_v17, %v8697_v46 }
  0xc0   :  { %v440_v42 = vmul.f32 %v430_v48, %v8614_v61  ;;  %v310_v17 = vmul.f32 %v303_v63, %v8616_v16  ;;  %v1534_v63 = vmul.bf16 %v8637_v32, %v510_v54  ;;  %v511_v54 = vsel %vm332_vm4, %v8710_v25, %v8738_v19 }
  0xc1   :  { %v8806_v5 = vpop.permute.xlu1 %732  ;;  %v8808_v6 = vpop.permute.xlu0 %899 }
  0xc3   :  { %1596 = vrot.lane.b32.xlu0 %v1579_v49, %s8189_s26  ;;  %1594 = vrot.lane.b32.xlu1 %v1578_v21, %s8189_s26 }
  0xc5   :  { %v8818_v49 = vpop.permute.xlu1 %995  ;;  %v8820_v21 = vpop.permute.xlu0 %861 }
  0xc6   :  { %14528 = vst [vmem:[#allocation32_spill] sm:$0xff] %v8818_v49  ;;  %v658_v49 = vrot.slane %v637_v53, %v8329_v11  ;;  %v1476_v53 = vrot.slane %v1451_v47, %v8329_v11 }
  0xc7   :  { %1600 = vrot.lane.b32.xlu0 %v1581_v2, %s8189_s26  ;;  %1598 = vrot.lane.b32.xlu1 %v1580_v34, %s8189_s26  ;;  %v636_v2 = vunpack.c.l.bf16 %v8458_v8 }
  0xc8   :  { %v677_v41 = vmul.f32 %v658_v49, %v8726_v55  ;;  %v526_v49 = vmul.bf16 %v511_v54, %v8492_v35  ;;  %v1486_v25 = vmul.f32 %v1476_v53, %v8614_v61 }
  0xc9   :  { %v8832_v34 = vpop.permute.xlu1 %863  ;;  %v8834_v48 = vpop.permute.xlu0 %734  ;;  %v654_v59 = vrot.slane %v636_v2, %v8329_v11  ;;  %v8855_v2 = vrot.slane %v1362_v52, %v8329_v11 }
  0xcb   :  { %459 = vrot.lane.b32.xlu0 %v440_v42, %s8188_s23  ;;  %330 = vrot.lane.b32.xlu1 %v310_v17, %s8183_s21  ;;  %v1542_v17 = vunpack.c.l.bf16 %v1534_v63  ;;  %v676_v3 = vmul.f32 %v654_v59, %v8726_v55  ;;  %v1397_v52 = vmul.f32 %v8855_v2, %v8616_v16 }
  0xcd   :  { %v8844_v22 = vpop.permute.xlu1 %1077  ;;  %v8846_v42 = vpop.permute.xlu0 %1075 }
  0xcf   :  { %689 = vrot.lane.b32.xlu0 %v675_v23, %s8187_s24  ;;  %598 = vrot.lane.b32.xlu1 %v578_v39, %s8189_s26  ;;  %v380_v23 = vsel %vm374_vm3, %v8708_v31, %v8724_v37  ;;  %v1565_v39 = vrot.slane %v1542_v17, %v8329_v11  ;;  %v534_v31 = vunpack.c.l.bf16 %v526_v49  ;;  %v752_v17 = vmul.bf16 %v8736_v33, %v8413_v50 }
  0xd0   :  { %v394_v59 = vmul.bf16 %v380_v23, %v8504_v14  ;;  %v740_v14 = vsel %vm738_vm5, %v8750_v40, %v8748_v28 }
  0xd1   :  { %v8863_v47 = vpop.permute.xlu1 %1119  ;;  %v8865_v63 = vpop.permute.xlu0 %1079  ;;  %v1582_v16 = vmul.f32 %v1565_v39, %v8697_v46  ;;  %v754_v49 = vmul.bf16 %v740_v14, %v8430_v57  ;;  %v1535_v57 = vmul.bf16 %v8742_v30, %v511_v54 }
  0xd2   :  { %14529 = vst [vmem:[#allocation33_spill] sm:$0xff] %v8863_v47  ;;  %v401_v53 = vunpack.c.l.bf16 %v394_v59  ;;  %v1638_v59 = vmul.f32 %v8647_v4, %v8726_v55 }
  0xd3   :  { %693 = vrot.lane.b32.xlu0 %v677_v41, %s8187_s24  ;;  %691 = vrot.lane.b32.xlu1 %v676_v3, %s8187_s24  ;;  %v1636_v41 = vmul.f32 %v8634_v15, %v8726_v55  ;;  %v739_v3 = vsel %vm738_vm5, %v8736_v33, %v8750_v40  ;;  %v1637_v40 = vmul.f32 %v8655_v7, %v8726_v55 }
  0xd4   :  { %v434_v39 = vrot.slane %v401_v53, %v8329_v11  ;;  %v753_v50 = vmul.bf16 %v739_v3, %v8458_v8  ;;  %v1445_v8 = vmul.bf16 %v8828_v38, %v380_v23 }
  0xd5   :  { %v8874_v35 = vpop.permute.xlu1 %865  ;;  %v8876_v37 = vpop.permute.xlu0 %736 }
  0xd6   :  { %14530 = vst [vmem:[#allocation34_spill] sm:$0xff] %v8874_v35  ;;  %14531 = vst [vmem:[#allocation35_spill] sm:$0xff] %v8876_v37  ;;  %v759_v37 = vunpack.c.l.bf16 %v752_v17  ;;  %v760_v35 = vunpack.c.l.bf16 %v753_v50  ;;  %v441_v47 = vmul.f32 %v434_v39, %v8614_v61 }
  0xd7   :  { %1505 = vrot.lane.b32.xlu0 %v1486_v25, %s8188_s23  ;;  %1417 = vrot.lane.b32.xlu1 %v1397_v52, %s8183_s21  ;;  %v565_v52 = vrot.slane %v534_v31, %v8329_v11 }
  0xd8   :  { %v778_v50 = vrot.slane %v760_v35, %v8329_v11 }
  0xd9   :  { %v8892_v25 = vpop.permute.xlu0 %1081  ;;  %v579_v53 = vmul.f32 %v565_v52, %v8697_v46  ;;  %v1452_v52 = vunpack.c.l.bf16 %v1445_v8 }
  0xda   :  { %14532 = vst [vmem:[#allocation36_spill] sm:$0xff] %v8892_v25  ;;  %v761_v25 = vunpack.c.l.bf16 %v754_v49  ;;  %v800_v35 = vmul.f32 %v778_v50, %v8765_v43 }
  0xdb   :  { %1650 = vrot.lane.b32.xlu0 %v1636_v41, %s8187_s24  ;;  %1602 = vrot.lane.b32.xlu1 %v1582_v16, %s8189_s26  ;;  %v638_v41 = vunpack.c.l.bf16 %v8474_v12  ;;  %v8902_v16 = vpop.permute.xlu1 %867 }
  0xdc   :  { %v782_v54 = vrot.slane %v761_v25, %v8329_v11 }
  0xdd   :  { %v8907_v31 = vpop.permute.xlu0 %1083  ;;  %v662_v17 = vrot.slane %v638_v41, %v8329_v11  ;;  %v1684_v41 = vmul.bf16 %v8612_v60, %v8736_v33  ;;  %v512_v33 = vsel %vm332_vm4, %v8738_v19, %v8763_v0  ;;  %v741_v19 = vsel %vm738_vm5, %v8748_v28, %v8782_v27 }
  0xde   :  { %14533 = vst [vmem:[#allocation37_spill] sm:$0xff] %v8907_v31  ;;  %v801_v25 = vmul.f32 %v782_v54, %v8765_v43 }
  0xdf   :  { %1654 = vrot.lane.b32.xlu0 %v1638_v59, %s8187_s24  ;;  %1652 = vrot.lane.b32.xlu1 %v1637_v40, %s8187_s24  ;;  %v774_v59 = vrot.slane %v759_v37, %v8329_v11  ;;  %v1543_v40 = vunpack.c.l.bf16 %v1535_v57  ;;  %v8917_v49 = vpop.permute.xlu1 %1085  ;;  %v678_v39 = vmul.f32 %v662_v17, %v8726_v55  ;;  %v1686_v37 = vmul.bf16 %v8624_v29, %v740_v14 }
  0xe0   :  { %v1480_v57 = vrot.slane %v1452_v52, %v8329_v11  ;;  %v1691_v8 = vunpack.c.l.bf16 %v1684_v41 }
  0xe1   :  { %v8919_v31 = vpop.permute.xlu0 %1087  ;;  %v799_v23 = vmul.f32 %v774_v59, %v8765_v43  ;;  %v1693_v14 = vunpack.c.l.bf16 %v1686_v37 }
  0xe2   :  { %v1701_v52 = vrot.slane %v1691_v8, %v8329_v11 }
  0xe3   :  { %600 = vrot.lane.b32.xlu0 %v579_v53, %s8189_s26  ;;  %461 = vrot.lane.b32.xlu1 %v441_v47, %s8188_s23  ;;  %v1569_v47 = vrot.slane %v1543_v40, %v8329_v11  ;;  %v1685_v53 = vmul.bf16 %v8628_v20, %v739_v3  ;;  %v8937_v17 = vpop.permute.xlu1 %168  ;;  %v1487_v3 = vmul.f32 %v1480_v57, %v8614_v61 }
  0xe4   :  { %v1726_v61 = vmul.f32 %v1701_v52, %v8765_v43  ;;  %v871_v57 = vsel %vm869_vm6, %v8796_v10, %v8794_v56 }
  0xe5   :  { %v8939_v59 = vpop.permute.xlu0 %170  ;;  %v1583_v40 = vmul.f32 %v1569_v47, %v8697_v46  ;;  %v1692_v54 = vunpack.c.l.bf16 %v1685_v53  ;;  %v639_v47 = vunpack.c.l.bf16 %v8494_v36  ;;  %v883_v53 = vmul.bf16 %v8780_v18, %v8415_v51 }
  0xe6   :  { %v885_v8 = vmul.bf16 %v871_v57, %v8432_v58 }
  0xe7   :  { %813 = vrot.lane.b32.xlu0 %v799_v23, %s8190_s28  ;;  %695 = vrot.lane.b32.xlu1 %v678_v39, %s8187_s24  ;;  %v527_v23 = vmul.bf16 %v512_v33, %v8506_v44  ;;  %v1709_v39 = vrot.slane %v1693_v14, %v8329_v11  ;;  %v8953_v50 = vpop.permute.xlu1 %172  ;;  %v1639_v44 = vmul.f32 %v8665_v1, %v8726_v55 }
  0xe8   :  { %v1705_v28 = vrot.slane %v1692_v54, %v8329_v11  ;;  %v892_v58 = vunpack.c.l.bf16 %v885_v8 }
  0xe9   :  { %v8955_v41 = vpop.permute.xlu0 %212  ;;  %v535_v37 = vunpack.c.l.bf16 %v527_v23  ;;  %v1728_v14 = vmul.f32 %v1709_v39, %v8765_v43  ;;  %v890_v23 = vunpack.c.l.bf16 %v883_v53 }
  0xea   :  { %v1727_v51 = vmul.f32 %v1705_v28, %v8765_v43 }
  0xeb   :  { %817 = vrot.lane.b32.xlu0 %v801_v25, %s8190_s28  ;;  %815 = vrot.lane.b32.xlu1 %v800_v35, %s8190_s28  ;;  %v755_v25 = vmul.bf16 %v741_v19, %v8474_v12  ;;  %v870_v35 = vsel %vm869_vm6, %v8780_v18, %v8796_v10  ;;  %v666_v12 = vrot.slane %v639_v47, %v8329_v11  ;;  %v8979_v52 = vpop.permute.xlu1 %174 }
  0xec   :  { %v884_v54 = vmul.bf16 %v870_v35, %v8460_v9  ;;  %v905_v28 = vrot.slane %v890_v23, %v8329_v11 }
  0xed   :  { %v8981_v10 = vpop.permute.xlu0 %176  ;;  %v679_v39 = vmul.f32 %v666_v12, %v8726_v55 }
  0xee   :  { %14534 = vst [vmem:[#allocation38_spill] sm:$0xff] %v8981_v10  ;;  %v891_v47 = vunpack.c.l.bf16 %v884_v54  ;;  %v930_v8 = vmul.f32 %v905_v28, %v8808_v6  ;;  %v1776_v54 = vmul.bf16 %v8624_v29, %v871_v57  ;;  %v528_v57 = vmul.bf16 %v8763_v0, %v8522_v62 }
  0xef   :  { %1604 = vrot.lane.b32.xlu0 %v1583_v40, %s8189_s26  ;;  %1507 = vrot.lane.b32.xlu1 %v1487_v3, %s8188_s23  ;;  %v569_v40 = vrot.slane %v535_v37, %v8329_v11  ;;  %v762_v3 = vunpack.c.l.bf16 %v755_v25  ;;  %v913_v37 = vrot.slane %v892_v58, %v8329_v11  ;;  %v8993_v25 = vpop.permute.xlu1 %178  ;;  %s8201_s23 = smov [#allocation4]  }
  0xf0   :  { %14535 = vst [vmem:[#allocation39_spill] sm:$0xff] %v8993_v25  ;;  %v909_v12 = vrot.slane %v891_v47, %v8329_v11  ;;  %v1783_v47 = vunpack.c.l.bf16 %v1776_v54  ;;  %v14543_v25 = vld [vmem:[#allocation17_spill] sm:$0xff] }
  0xf1   :  { %v580_v9 = vmul.f32 %v569_v40, %v8697_v46  ;;  %v8995_v53 = vpop.permute.xlu0 %180 }
  0xf2   :  { %14536 = vst [vmem:[#allocation40_spill] sm:$0xff] %v8995_v53 }
  0xf3   :  { %1740 = vrot.lane.b32.xlu0 %v1726_v61, %s8190_s28  ;;  %1656 = vrot.lane.b32.xlu1 %v1639_v44, %s8187_s24  ;;  %v1536_v61 = vmul.bf16 %v8828_v38, %v512_v33  ;;  %v786_v44 = vrot.slane %v762_v3, %v8329_v11  ;;  %v1774_v3 = vmul.bf16 %v8612_v60, %v8780_v18 }
  0xf4   :  { %v931_v18 = vmul.f32 %v909_v12, %v8808_v6  ;;  %v742_v12 = vsel %vm738_vm5, %v8782_v27, %v8806_v5 }
  0xf5   :  { %v1544_v33 = vunpack.c.l.bf16 %v1536_v61  ;;  %v802_v40 = vmul.f32 %v786_v44, %v8765_v43  ;;  %v1775_v61 = vmul.bf16 %v8628_v20, %v870_v35  ;;  %v1781_v44 = vunpack.c.l.bf16 %v1774_v3 }
  0xf7   :  { %1744 = vrot.lane.b32.xlu0 %v1728_v14, %s8190_s28  ;;  %1742 = vrot.lane.b32.xlu1 %v1727_v51, %s8190_s28  ;;  %v1687_v14 = vmul.bf16 %v8637_v32, %v741_v19  ;;  %v932_v19 = vmul.f32 %v913_v37, %v8808_v6  ;;  %v1573_v58 = vrot.slane %v1544_v33, %v8329_v11 }
  0xf8   :  { %v1640_v37 = vmul.f32 %v8774_v24, %v8726_v55  ;;  %v9028_v33 = vsel %vm869_vm6, %v8794_v56, %v8820_v21  ;;  %v1791_v62 = vrot.slane %v1781_v44, %v8329_v11 }
  0xf9   :  { %v886_v3 = vmul.bf16 %v9028_v33, %v8476_v26 }
  0xfb   :  { %697 = vrot.lane.b32.xlu0 %v679_v39, %s8187_s24  ;;  %602 = vrot.lane.b32.xlu1 %v580_v9, %s8189_s26  ;;  %v1694_v39 = vunpack.c.l.bf16 %v1687_v14  ;;  %v1584_v14 = vmul.f32 %v1573_v58, %v8697_v46  ;;  %v640_v58 = vunpack.c.l.bf16 %v8508_v45  ;;  %v893_v26 = vunpack.c.l.bf16 %v886_v3 }
  0xfd   :  { %v1713_v35 = vrot.slane %v1694_v39, %v8329_v11  ;;  %v536_v39 = vunpack.c.l.bf16 %v528_v57 }
  0xff   :  { %944 = vrot.lane.b32.xlu0 %v930_v8, %s8191_s4  ;;  %819 = vrot.lane.b32.xlu1 %v802_v40, %s8190_s28  ;;  %v1782_v8 = vunpack.c.l.bf16 %v1775_v61  ;;  %v1799_v40 = vrot.slane %v1783_v47, %v8329_v11  ;;  %v756_v61 = vmul.bf16 %v742_v12, %v8494_v36 }
 0x101   :  { %v9006_v51 = vpop.permute.xlu0 %320  ;;  %v9008_v23 = vpop.permute.xlu1 %318  ;;  %v1795_v27 = vrot.slane %v1782_v8, %v8329_v11  ;;  %v1818_v47 = vmul.f32 %v1799_v40, %v8808_v6  ;;  %v763_v57 = vunpack.c.l.bf16 %v756_v61  ;;  %v917_v40 = vrot.slane %v893_v26, %v8329_v11 }
 0x102   :  { %v1688_v26 = vmul.bf16 %v8742_v30, %v742_v12 }
 0x103   :  { %948 = vrot.lane.b32.xlu0 %v932_v19, %s8191_s4  ;;  %946 = vrot.lane.b32.xlu1 %v931_v18, %s8191_s4  ;;  %v1816_v19 = vmul.f32 %v1791_v62, %v8808_v6  ;;  %v1729_v18 = vmul.f32 %v1713_v35, %v8765_v43  ;;  %v1817_v36 = vmul.f32 %v1795_v27, %v8808_v6  ;;  %v9060_v35 = vld [vmem:[#allocation2 + $0x38] sm:$0x1] }
 0x104   :  { %v1537_v8 = vmul.bf16 %v9060_v35, %v8763_v0 }
 0x105   :  { %v9018_v9 = vpop.permute.xlu0 %324  ;;  %v9020_v28 = vpop.permute.xlu1 %322 }
 0x106   :  { %v1545_v0 = vunpack.c.l.bf16 %v1537_v8  ;;  %v1695_v8 = vunpack.c.l.bf16 %v1688_v26 }
 0x107   :  { %1658 = vrot.lane.b32.xlu0 %v1640_v37, %s8187_s24  ;;  %1606 = vrot.lane.b32.xlu1 %v1584_v14, %s8189_s26  ;;  %v670_v37 = vrot.slane %v640_v58, %v8329_v11  ;;  %v573_v14 = vrot.slane %v536_v39, %v8329_v11  ;;  %v987_v58 = vunpack.c.l.bf16 %v8462_v13  ;;  %v790_v39 = vrot.slane %v763_v57, %v8329_v11 }
 0x108   :  { %v1577_v12 = vrot.slane %v1545_v0, %v8329_v11 }
 0x109   :  { %v9040_v54 = vpop.permute.xlu0 %1407  ;;  %v9042_v56 = vpop.permute.xlu1 %1405  ;;  %v581_v61 = vmul.f32 %v573_v14, %v8697_v46  ;;  %v1005_v53 = vrot.slane %v987_v58, %v8329_v11  ;;  %v1777_v58 = vmul.bf16 %v8637_v32, %v9028_v33  ;;  %v9108_v32 = vsel %vm738_vm5, %v8806_v5, %v8834_v48 }
 0x10a   :  { %v1641_v5 = vmul.f32 %v8855_v2, %v8726_v55 }
 0x10b   :  { %1830 = vrot.lane.b32.xlu0 %v1816_v19, %s8191_s4  ;;  %1746 = vrot.lane.b32.xlu1 %v1729_v18, %s8190_s28  ;;  %v680_v19 = vmul.f32 %v670_v37, %v8726_v55  ;;  %v14541_v18 = vld [vmem:[#allocation15_spill] sm:$0xff]  ;;  %v933_v37 = vmul.f32 %v917_v40, %v8808_v6  ;;  %v14544_v40 = vld [vmem:[#allocation32_spill] sm:$0xff]  ;;  %v1784_v26 = vunpack.c.l.bf16 %v1777_v58 }
 0x10d   :  { %v9051_v44 = vpop.permute.xlu0 %1411  ;;  %v9056_v62 = vpop.permute.xlu1 %1409 }
 0x10e   :  { %14537 = vst [vmem:[#allocation41_spill] sm:$0xff] %v9051_v44  ;;  %14538 = vst [vmem:[#allocation42_spill] sm:$0xff] %v9056_v62 }
 0x10f   :  { %1834 = vrot.lane.b32.xlu0 %v1818_v47, %s8191_s4  ;;  %1832 = vrot.lane.b32.xlu1 %v1817_v36, %s8191_s4  ;;  %v986_v47 = vunpack.c.l.bf16 %v14541_v18 }
 0x111   :  { %v9066_v3 = vpop.permute.xlu0 %1413  ;;  %v9071_v27 = vpop.permute.xlu1 %326  ;;  %v1001_v14 = vrot.slane %v986_v47, %v8329_v11 }
 0x112   :  { %14539 = vst [vmem:[#allocation43_spill] sm:$0xff] %v9066_v3  ;;  %14540 = vst [vmem:[#allocation44_spill] sm:$0xff] %v9071_v27  ;;  %v803_v3 = vmul.f32 %v790_v39, %v8765_v43  ;;  %v988_v27 = vunpack.c.l.bf16 %v14543_v25 }
 0x113   :  { %699 = vrot.lane.b32.xlu0 %v680_v19, %s8187_s24  ;;  %604 = vrot.lane.b32.xlu1 %v581_v61, %s8189_s26  ;;  %v1027_v61 = vmul.f32 %v1005_v53, %v14544_v40  ;;  %v1026_v39 = vmul.f32 %v1001_v14, %v14544_v40  ;;  %v1585_v53 = vmul.f32 %v1577_v12, %v8697_v46 }
 0x114   :  { %v1009_v47 = vrot.slane %v988_v27, %v8329_v11  ;;  %v1803_v12 = vrot.slane %v1784_v26, %v8329_v11 }
 0x115   :  { %v9078_v36 = vpop.permute.xlu0 %449  ;;  %v9082_v57 = vpop.permute.xlu1 %328 }
 0x116   :  { %14542 = vst [vmem:[#allocation15_spill] sm:$0xff] %v9082_v57  ;;  %v1028_v27 = vmul.f32 %v1009_v47, %v14544_v40  ;;  %v14547_v47 = vld [vmem:[#allocation24_spill] sm:$0xff] }
 0x117   :  { %950 = vrot.lane.b32.xlu0 %v933_v37, %s8191_s4  ;;  %821 = vrot.lane.b32.xlu1 %v803_v3, %s8190_s28  ;;  %v1717_v3 = vrot.slane %v1695_v8, %v8329_v11  ;;  %v757_v37 = vmul.bf16 %v9108_v32, %v8508_v45 }
 0x119   :  { %v9090_v19 = vpop.permute.xlu0 %453  ;;  %v9095_v57 = vpop.permute.xlu1 %1495  ;;  %v1730_v46 = vmul.f32 %v1717_v3, %v8765_v43  ;;  %v764_v45 = vunpack.c.l.bf16 %v757_v37 }
 0x11b   :  { %1042 = vrot.lane.b32.xlu0 %v1027_v61, %s8192_s29  ;;  %1040 = vrot.lane.b32.xlu1 %v1026_v39, %s8192_s29  ;;  %v873_v61 = vsel %vm869_vm6, %v8820_v21, %v8832_v34  ;;  %v1864_v39 = vmul.f32 %v8634_v15, %v14544_v40  ;;  %v1819_v21 = vmul.f32 %v1803_v12, %v8808_v6 }
 0x11c   :  { %v887_v3 = vmul.bf16 %v873_v61, %v14547_v47  ;;  %v794_v37 = vrot.slane %v764_v45, %v8329_v11  ;;  %v1866_v47 = vmul.f32 %v8647_v4, %v14544_v40  ;;  %v1103_v12 = vmul.bf16 %v8846_v42, %v14541_v18 }
 0x11d   :  { %v9102_v0 = vpop.permute.xlu0 %1497  ;;  %v9110_v33 = vpop.permute.xlu1 %451 }
 0x11e   :  { %v804_v18 = vmul.f32 %v794_v37, %v8765_v43 }
 0x11f   :  { %1608 = vrot.lane.b32.xlu0 %v1585_v53, %s8189_s26  ;;  %1044 = vrot.lane.b32.xlu1 %v1028_v27, %s8192_s29  ;;  %v9138_v53 = vsel %vm1089_vm7, %v8846_v42, %v8844_v22  ;;  %v14549_v27 = vld [vmem:[#allocation29_spill] sm:$0xff] }
 0x120   :  { %v1104_v15 = vmul.bf16 %v9138_v53, %v8462_v13  ;;  %v1091_v13 = vsel %vm1089_vm7, %v8844_v22, %v8865_v63 }
 0x121   :  { %v9117_v14 = vpop.permute.xlu0 %1501  ;;  %v9121_v8 = vpop.permute.xlu1 %455 }
 0x122   :  { %14545 = vst [vmem:[#allocation17_spill] sm:$0xff] %v9117_v14  ;;  %v894_v14 = vunpack.c.l.bf16 %v887_v3  ;;  %v1111_v4 = vunpack.c.l.bf16 %v1104_v15  ;;  %v1778_v15 = vmul.bf16 %v8742_v30, %v873_v61 }
 0x123   :  { %1748 = vrot.lane.b32.xlu0 %v1730_v46, %s8190_s28  ;;  %1660 = vrot.lane.b32.xlu1 %v1641_v5, %s8187_s24  ;;  %v641_v46 = vunpack.c.l.bf16 %v14549_v27 }
 0x124   :  { %v921_v44 = vrot.slane %v894_v14, %v8329_v11  ;;  %v1631_v14 = vunpack.c.l.bf16 %v9060_v35  ;;  %v1785_v61 = vunpack.c.l.bf16 %v1778_v15  ;;  %v1914_v15 = vmul.bf16 %v8624_v29, %v1091_v13 }
 0x125   :  { %v9130_v58 = vpop.permute.xlu0 %457  ;;  %v9140_v26 = vpop.permute.xlu1 %1499  ;;  %v674_v45 = vrot.slane %v641_v46, %v8329_v11  ;;  %v1105_v46 = vmul.bf16 %v1091_v13, %v14543_v25  ;;  %v1689_v25 = vmul.bf16 %v8828_v38, %v9108_v32 }
 0x126   :  { %14546 = vst [vmem:[#allocation32_spill] sm:$0xff] %v9130_v58  ;;  %14548 = vst [vmem:[#allocation24_spill] sm:$0xff] %v9140_v26  ;;  %v14550_v58 = vld [vmem:[#allocation21_spill] sm:$0xff]  ;;  %v9197_v32 = vrot.slane %v1631_v14, %v8329_v11  ;;  %v1921_v13 = vunpack.c.l.bf16 %v1914_v15 }
 0x127   :  { %1878 = vrot.lane.b32.xlu0 %v1864_v39, %s8192_s29  ;;  %1836 = vrot.lane.b32.xlu1 %v1819_v21, %s8191_s4  ;;  %v989_v10 = vunpack.c.l.bf16 %v14550_v58  ;;  %v1865_v39 = vmul.f32 %v8655_v7, %v14544_v40  ;;  %v1110_v7 = vunpack.c.l.bf16 %v1103_v12  ;;  %v681_v22 = vmul.f32 %v674_v45, %v8726_v55 }
 0x129   :  { %v9149_v5 = vpop.permute.xlu0 %592  ;;  %v9156_v26 = vpop.permute.xlu1 %590  ;;  %v1013_v21 = vrot.slane %v989_v10, %v8329_v11  ;;  %v1125_v12 = vrot.slane %v1110_v7, %v8329_v11  ;;  %v1696_v7 = vunpack.c.l.bf16 %v1689_v25  ;;  %v1913_v25 = vmul.bf16 %v8628_v20, %v9138_v53  ;;  %v14556_v20 = vld [vmem:[#allocation27_spill] sm:$0xff] }
 0x12b   :  { %1882 = vrot.lane.b32.xlu0 %v1866_v47, %s8192_s29  ;;  %1880 = vrot.lane.b32.xlu1 %v1865_v39, %s8192_s29  ;;  %v1129_v47 = vrot.slane %v1111_v4, %v8329_v11  ;;  %v1029_v10 = vmul.f32 %v1013_v21, %v14544_v40  ;;  %v1112_v39 = vunpack.c.l.bf16 %v1105_v46  ;;  %v1912_v4 = vmul.bf16 %v8612_v60, %v8846_v42 }
 0x12c   :  { %v1807_v60 = vrot.slane %v1785_v61, %v8329_v11  ;;  %v1721_v14 = vrot.slane %v1696_v7, %v8329_v11  ;;  %v14555_v61 = vld [vmem:[#allocation35_spill] sm:$0xff]  ;;  %v1920_v7 = vunpack.c.l.bf16 %v1913_v25 }
 0x12d   :  { %v9166_v3 = vpop.permute.xlu0 %596  ;;  %v9172_v62 = vpop.permute.xlu1 %594  ;;  %v1133_v46 = vrot.slane %v1112_v39, %v8329_v11  ;;  %v1919_v42 = vunpack.c.l.bf16 %v1912_v4  ;;  %v744_v29 = vsel %vm738_vm5, %v8834_v48, %v14555_v61 }
 0x12f   :  { %823 = vrot.lane.b32.xlu0 %v804_v18, %s8190_s28  ;;  %701 = vrot.lane.b32.xlu1 %v681_v22, %s8187_s24  ;;  %v934_v18 = vmul.f32 %v921_v44, %v8808_v6  ;;  %v14553_v22 = vld [vmem:[#allocation33_spill] sm:$0xff] }
 0x130   :  { %v1150_v44 = vmul.f32 %v1125_v12, %v14553_v22  ;;  %v14554_v12 = vld [vmem:[#allocation34_spill] sm:$0xff] }
 0x131   :  { %v9179_v37 = vpop.permute.xlu0 %1503  ;;  %v9186_v45 = vpop.permute.xlu1 %1415 }
 0x132   :  { %14551 = vst [vmem:[#allocation29_spill] sm:$0xff] %v9179_v37  ;;  %14552 = vst [vmem:[#allocation21_spill] sm:$0xff] %v9186_v45  ;;  %v1151_v37 = vmul.f32 %v1129_v47, %v14553_v22 }
 0x133   :  { %1046 = vrot.lane.b32.xlu0 %v1029_v10, %s8192_s29  ;;  %952 = vrot.lane.b32.xlu1 %v934_v18, %s8191_s4  ;;  %v1642_v10 = vmul.f32 %v9197_v32, %v8726_v55  ;;  %v1152_v18 = vmul.f32 %v1133_v46, %v14553_v22  ;;  %v1929_v55 = vrot.slane %v1919_v42, %v8329_v11 }
 0x134   :  { %v758_v46 = vmul.bf16 %v744_v29, %v14549_v27  ;;  %v1937_v42 = vrot.slane %v1921_v13, %v8329_v11 }
 0x135   :  { %v9193_v21 = vpop.permute.xlu0 %1596  ;;  %v9200_v45 = vpop.permute.xlu1 %1594  ;;  %v1954_v27 = vmul.f32 %v1929_v55, %v14553_v22 }
 0x136   :  { %v1956_v55 = vmul.f32 %v1937_v42, %v14553_v22 }
 0x137   :  { %1166 = vrot.lane.b32.xlu0 %v1151_v37, %s8193_s30  ;;  %1164 = vrot.lane.b32.xlu1 %v1150_v44, %s8193_s30  ;;  %v874_v37 = vsel %vm869_vm6, %v8832_v34, %v14554_v12  ;;  %v1820_v34 = vmul.f32 %v1807_v60, %v8808_v6  ;;  %v14558_v44 = vld [vmem:[#allocation36_spill] sm:$0xff] }
 0x138   :  { %v888_v53 = vmul.bf16 %v874_v37, %v14556_v20  ;;  %v1092_v48 = vsel %vm1089_vm7, %v8865_v63, %v14558_v44  ;;  %v765_v63 = vunpack.c.l.bf16 %v758_v46  ;;  %v1690_v46 = vmul.bf16 %v9060_v35, %v744_v29 }
 0x139   :  { %v9207_v47 = vpop.permute.xlu0 %1600  ;;  %v9217_v39 = vpop.permute.xlu1 %1598  ;;  %v1106_v60 = vmul.bf16 %v1092_v48, %v14550_v58  ;;  %v1779_v58 = vmul.bf16 %v8828_v38, %v874_v37 }
 0x13a   :  { %v895_v15 = vunpack.c.l.bf16 %v888_v53 }
 0x13b   :  { %1662 = vrot.lane.b32.xlu0 %v1642_v10, %s8187_s24  ;;  %1168 = vrot.lane.b32.xlu1 %v1152_v18, %s8193_s30  ;;  %v1731_v10 = vmul.f32 %v1721_v14, %v8765_v43  ;;  %v1933_v18 = vrot.slane %v1920_v7, %v8329_v11  ;;  %v1867_v14 = vmul.f32 %v8665_v1, %v14544_v40  ;;  %v1113_v53 = vunpack.c.l.bf16 %v1106_v60  ;;  %v9265_v60 = vld [vmem:[#allocation2 + $0x20] sm:$0x1] }
 0x13c   :  { %v925_v13 = vrot.slane %v895_v15, %v8329_v11  ;;  %v798_v7 = vrot.slane %v765_v63, %v8329_v11  ;;  %v1786_v37 = vunpack.c.l.bf16 %v1779_v58  ;;  %14561 = vst [vmem:[#allocation35_spill] sm:$0xff] %v9265_v60  ;;  %v1915_v42 = vmul.bf16 %v9265_v60, %v1092_v48  ;;  %v8128_v60 = vld [vmem:[#allocation2] sm:$0x1] }
 0x13d   :  { %v9227_v4 = vpop.permute.xlu0 %459  ;;  %v9234_v61 = vpop.permute.xlu1 %330  ;;  %v1955_v1 = vmul.f32 %v1933_v18, %v14553_v22  ;;  %v1137_v15 = vrot.slane %v1113_v53, %v8329_v11  ;;  %v1697_v18 = vunpack.c.l.bf16 %v1690_v46  ;;  %v875_v58 = vsel %vm869_vm6, %v14554_v12, %v8902_v16  ;;  %v14564_v46 = vld [vmem:[#allocation30_spill] sm:$0xff]  ;;  %v14566_v16 = vld [vmem:[#allocation37_spill] sm:$0xff] }
 0x13e   :  { %14557 = vst [vmem:[#allocation33_spill] sm:$0xff] %v9227_v4  ;;  %14559 = vst [vmem:[#allocation34_spill] sm:$0xff] %v9234_v61  ;;  %v935_v29 = vmul.f32 %v925_v13, %v8808_v6  ;;  %v1811_v48 = vrot.slane %v1786_v37, %v8329_v11  ;;  %v1922_v53 = vunpack.c.l.bf16 %v1915_v42  ;;  %v1093_v12 = vsel %vm1089_vm7, %v14558_v44, %v14566_v16 }
 0x13f   :  { %1838 = vrot.lane.b32.xlu0 %v1820_v34, %s8191_s4  ;;  %1750 = vrot.lane.b32.xlu1 %v1731_v10, %s8190_s28  ;;  %v1153_v13 = vmul.f32 %v1137_v15, %v14553_v22  ;;  %v1780_v37 = vmul.bf16 %v9060_v35, %v875_v58 }
 0x140   :  { %v1941_v15 = vrot.slane %v1922_v53, %v8329_v11 }
 0x141   :  { %v9241_v25 = vpop.permute.xlu0 %689  ;;  %v9245_v20 = vpop.permute.xlu1 %598 }
 0x143   :  { %1968 = vrot.lane.b32.xlu0 %v1954_v27, %s8193_s30  ;;  %1884 = vrot.lane.b32.xlu1 %v1867_v14, %s8192_s29  ;;  %v14560_v27 = vld [vmem:[#allocation25_spill] sm:$0xff]  ;;  %v805_v14 = vmul.f32 %v798_v7, %v8765_v43  ;;  %v1725_v7 = vrot.slane %v1697_v18, %v8329_v11 }
 0x144   :  { %v990_v61 = vunpack.c.l.bf16 %v14560_v27 }
 0x145   :  { %v9253_v34 = vpop.permute.xlu0 %693  ;;  %v9258_v10 = vpop.permute.xlu1 %691 }
 0x147   :  { %1972 = vrot.lane.b32.xlu0 %v1956_v55, %s8193_s30  ;;  %1970 = vrot.lane.b32.xlu1 %v1955_v1, %s8193_s30  ;;  %v1017_v55 = vrot.slane %v990_v61, %v8329_v11 }
 0x149   :  { %v9268_v63 = vpop.permute.xlu0 %1505  ;;  %v9272_v4 = vpop.permute.xlu1 %1417 }
 0x14a   :  { %14562 = vst [vmem:[#allocation27_spill] sm:$0xff] %v9268_v63  ;;  %14563 = vst [vmem:[#allocation36_spill] sm:$0xff] %v9272_v4  ;;  %v889_v4 = vmul.bf16 %v875_v58, %v14564_v46  ;;  %v1030_v63 = vmul.f32 %v1017_v55, %v14544_v40  ;;  %v1732_v55 = vmul.f32 %v1725_v7, %v8765_v43 }
 0x14b   :  { %954 = vrot.lane.b32.xlu0 %v935_v29, %s8191_s4  ;;  %825 = vrot.lane.b32.xlu1 %v805_v14, %s8190_s28  ;;  %v1821_v29 = vmul.f32 %v1811_v48, %v8808_v6  ;;  %v14567_v14 = vld [vmem:[#allocation28_spill] sm:$0xff]  ;;  %v1916_v58 = vmul.bf16 %v8742_v30, %v1093_v12  ;;  %v1957_v48 = vmul.f32 %v1941_v15, %v14553_v22 }
 0x14c   :  { %v991_v18 = vunpack.c.l.bf16 %v14567_v14  ;;  %v896_v46 = vunpack.c.l.bf16 %v889_v4  ;;  %v1094_v4 = vsel %vm1089_vm7, %v14566_v16, %v8917_v49 }
 0x14d   :  { %v9281_v1 = vpop.permute.xlu0 %1650  ;;  %v9286_v61 = vpop.permute.xlu1 %1602  ;;  %v1923_v15 = vunpack.c.l.bf16 %v1916_v58 }
 0x14e   :  { %14565 = vst [vmem:[#allocation25_spill] sm:$0xff] %v9286_v61  ;;  %v1107_v61 = vmul.bf16 %v1093_v12, %v14560_v27  ;;  %v929_v43 = vrot.slane %v896_v46, %v8329_v11  ;;  %v1108_v12 = vmul.bf16 %v1094_v4, %v14567_v14  ;;  %v1917_v14 = vmul.bf16 %v8828_v38, %v1094_v4 }
 0x14f   :  { %1170 = vrot.lane.b32.xlu0 %v1153_v13, %s8193_s30  ;;  %1048 = vrot.lane.b32.xlu1 %v1030_v63, %s8192_s29  ;;  %v1787_v63 = vunpack.c.l.bf16 %v1780_v37  ;;  %v1021_v13 = vrot.slane %v991_v18, %v8329_v11  ;;  %v1868_v37 = vmul.f32 %v8774_v24, %v14544_v40 }
 0x150   :  { %v1114_v27 = vunpack.c.l.bf16 %v1107_v61  ;;  %v936_v61 = vmul.f32 %v929_v43, %v8808_v6  ;;  %v1115_v46 = vunpack.c.l.bf16 %v1108_v12 }
 0x151   :  { %v9296_v42 = vpop.permute.xlu0 %1654  ;;  %v9302_v44 = vpop.permute.xlu1 %1652  ;;  %v1815_v30 = vrot.slane %v1787_v63, %v8329_v11  ;;  %v1031_v18 = vmul.f32 %v1021_v13, %v14544_v40  ;;  %v1945_v63 = vrot.slane %v1923_v15, %v8329_v11  ;;  %v1869_v15 = vmul.f32 %v8855_v2, %v14544_v40 }
 0x152   :  { %v1141_v16 = vrot.slane %v1114_v27, %v8329_v11  ;;  %v14571_v27 = vld [vmem:[#allocation31_spill] sm:$0xff]  ;;  %v1145_v38 = vrot.slane %v1115_v46, %v8329_v11 }
 0x153   :  { %1840 = vrot.lane.b32.xlu0 %v1821_v29, %s8191_s4  ;;  %1752 = vrot.lane.b32.xlu1 %v1732_v55, %s8190_s28  ;;  %v1822_v24 = vmul.f32 %v1815_v30, %v8808_v6  ;;  %v1924_v6 = vunpack.c.l.bf16 %v1917_v14  ;;  %v1958_v12 = vmul.f32 %v1945_v63, %v14553_v22  ;;  %s7144_s28 = sshll.u32 %s8201_s23, 4  ;;  %s7145_s28 = int_to_ptr.vmem [resolvable:$true] %s7144_s28 }
 0x154   :  { %v1154_v43 = vmul.f32 %v1141_v16, %v14553_v22  ;;  %p8161_p1 = scmp.lt.s32.totalorder %s7145_s28, %s7145_s28 }
 0x155   :  { %v9307_v53 = vpop.permute.xlu0 %600  ;;  %v9315_v7 = vpop.permute.xlu1 %461 }
 0x156   :  { %14568 = vst [vmem:[#allocation30_spill] sm:$0xff] %v9307_v53  ;;  %14569 = vst [vmem:[#allocation37_spill] sm:$0xff] %v9315_v7 }
 0x157   :  { %1974 = vrot.lane.b32.xlu0 %v1957_v48, %s8193_s30  ;;  %1886 = vrot.lane.b32.xlu1 %v1868_v37, %s8192_s29  ;;  %v1095_v48 = vsel %vm1089_vm7, %v8917_v49, %v8919_v31  ;;  %v992_v37 = vunpack.c.l.bf16 %v14571_v27 }
 0x158   :  { %v1918_v4 = vmul.bf16 %v9060_v35, %v1095_v48  ;;  %v1109_v31 = vmul.bf16 %v1095_v48, %v14571_v27 }
 0x159   :  { %v9323_v29 = vpop.permute.xlu0 %813  ;;  %v9328_v55 = vpop.permute.xlu1 %695 }
 0x15a   :  { %14570 = vst [vmem:[#allocation28_spill] sm:$0xff] %v9328_v55  ;;  %v1925_v35 = vunpack.c.l.bf16 %v1918_v4  ;;  %v1116_v46 = vunpack.c.l.bf16 %v1109_v31  ;;  %v8129_v55 = vld [vmem:[#allocation2 + $0x8] sm:$0x1] }
 0x15b   :  { %1050 = vrot.lane.b32.xlu0 %v1031_v18, %s8192_s29  ;;  %956 = vrot.lane.b32.xlu1 %v936_v61, %s8191_s4  ;;  %v1025_v18 = vrot.slane %v992_v37, %v8329_v11  ;;  %v1949_v61 = vrot.slane %v1924_v6, %v8329_v11 }
 0x15c   :  { %v1953_v2 = vrot.slane %v1925_v35, %v8329_v11  ;;  %v1149_v27 = vrot.slane %v1116_v46, %v8329_v11 }
 0x15d   :  { %v9335_v58 = vpop.permute.xlu0 %817  ;;  %v9340_v13 = vpop.permute.xlu1 %815  ;;  %v1032_v63 = vmul.f32 %v1025_v18, %v14544_v40 }
 0x15e   :  { %v1960_v6 = vmul.f32 %v1953_v2, %v14553_v22 }
 0x15f   :  { %1842 = vrot.lane.b32.xlu0 %v1822_v24, %s8191_s4  ;;  %1172 = vrot.lane.b32.xlu1 %v1154_v43, %s8193_s30  ;;  %v1155_v24 = vmul.f32 %v1145_v38, %v14553_v22  ;;  %v1959_v43 = vmul.f32 %v1949_v61, %v14553_v22  ;;  %v1870_v38 = vmul.f32 %v9197_v32, %v14544_v40  ;;  %s8156_s4 = scalar_lea.vmem %s7145_s28, 32 }
 0x160   :  { %p8157_p0 = scmp.ne.s32.totalorder %s7145_s28, %s8156_s4  ;;  %p8162_p2 = scmp.lt.s32.totalorder %s8156_s4, %s8156_s4 }
 0x161   :  { %v9348_v30 = vpop.permute.xlu0 %1604  ;;  %v9352_v49 = vpop.permute.xlu1 %1507 }
 0x162   :  { %14572 = vst [vmem:[#allocation31_spill] sm:$0xff] %v9348_v30  ;;  %14573 = vst [vmem:[#allocation45_spill] sm:$0xff] %v9352_v49  ;;  %p8163_p3 = por %p8162_p2, %p8161_p1 }
 0x163   :  { %1976 = vrot.lane.b32.xlu0 %v1958_v12, %s8193_s30  ;;  %1888 = vrot.lane.b32.xlu1 %v1869_v15, %s8192_s29  ;;  %v1156_v12 = vmul.f32 %v1149_v27, %v14553_v22 }
 0x164   :  { %p8164_p4 = pnand %p8163_p3, %p8157_p0 }
 0x165   :  { %v9360_v16 = vpop.permute.xlu0 %1740  ;;  %v9363_v14 = vpop.permute.xlu1 %1656 }
 0x166   :  { %14574 = vst [vmem:[#allocation46_spill] sm:$0xff] %v9363_v14 }
 0x167   :  { %1174 = vrot.lane.b32.xlu0 %v1155_v24, %s8193_s30  ;;  %1052 = vrot.lane.b32.xlu1 %v1032_v63, %s8192_s29 }
 0x169   :  { %v9369_v48 = vpop.permute.xlu0 %1744  ;;  %v9373_v37 = vpop.permute.xlu1 %1742 }
 0x16b   :  { %1978 = vrot.lane.b32.xlu0 %v1959_v43, %s8193_s30  ;;  %1890 = vrot.lane.b32.xlu1 %v1870_v38, %s8192_s29 }
 0x16d   :  { %v9380_v4 = vpop.permute.xlu0 %697  ;;  %v9383_v31 = vpop.permute.xlu1 %602 }
 0x16e   :  { %14575 = vst [vmem:[#allocation47_spill] sm:$0xff] %v9380_v4  ;;  %14576 = vst [vmem:[#allocation48_spill] sm:$0xff] %v9383_v31  ;;  %v14587_v4 = vld [vmem:[#allocation19_spill] sm:$0xff] }
 0x16f   :  { %1980 = vrot.lane.b32.xlu0 %v1960_v6, %s8193_s30  ;;  %1176 = vrot.lane.b32.xlu1 %v1156_v12, %s8193_s30  ;;  %v126_v6 = vld [vmem:[#allocation2] sm:$0x1]  ;;  %v183_v12 = vsel %vm182_vm8, %v8937_v17, %v8939_v59 }
 0x170   :  { %v196_v31 = vmul.bf16 %v8937_v17, %v126_v6 }
 0x171   :  { %v9387_v15 = vpop.permute.xlu0 %944  ;;  %v9389_v18 = vpop.permute.xlu1 %819 }
 0x172   :  { %14577 = vst [vmem:[#allocation49_spill] sm:$0xff] %v9389_v18  ;;  %v203_v30 = vunpack.c.l.bf16 %v196_v31  ;;  %v1301_v31 = vmul.bf16 %v8129_v55, %v183_v12  ;;  %v464_v55 = vsel %vm463_vm9, %v9078_v36, %v9110_v33  ;;  %v9468_v36 = vsel %vm182_vm8, %v8953_v50, %v8979_v52 }
 0x174   :  { %v218_v6 = vrot.slane %v203_v30, %v8329_v11 }
 0x175   :  { %v9391_v40 = vpop.permute.xlu0 %948  ;;  %v9393_v32 = vpop.permute.xlu1 %946 }
 0x179   :  { %v9395_v61 = vpop.permute.xlu0 %1658  ;;  %v9397_v35 = vpop.permute.xlu1 %1606 }
 0x17a   :  { %14578 = vst [vmem:[#allocation50_spill] sm:$0xff] %v9395_v61  ;;  %14579 = vst [vmem:[#allocation51_spill] sm:$0xff] %v9397_v35  ;;  %v14585_v61 = vld [vmem:[#allocation14_spill] sm:$0xff] }
 0x17d   :  { %v9399_v24 = vpop.permute.xlu0 %1830  ;;  %v9401_v22 = vpop.permute.xlu1 %1746 }
 0x17e   :  { %14580 = vst [vmem:[#allocation52_spill] sm:$0xff] %v9401_v22 }
 0x181   :  { %v9403_v46 = vpop.permute.xlu0 %1834  ;;  %v9405_v63 = vpop.permute.xlu1 %1832 }
 0x185   :  { %v9407_v2 = vpop.permute.xlu0 %699  ;;  %v9409_v43 = vpop.permute.xlu1 %604 }
 0x186   :  { %14581 = vst [vmem:[#allocation53_spill] sm:$0xff] %v9407_v2  ;;  %14582 = vst [vmem:[#allocation54_spill] sm:$0xff] %v9409_v43  ;;  %v197_v2 = vmul.bf16 %v183_v12, %v14585_v61  ;;  %v184_v43 = vsel %vm182_vm8, %v8939_v59, %v8953_v50  ;;  %v1300_v59 = vmul.bf16 %v8128_v60, %v8937_v17  ;;  %v8130_v60 = vld [vmem:[#allocation2 + $0x10] sm:$0x1] }
 0x187   :  { %v198_v53 = vmul.bf16 %v184_v43, %v14587_v4  ;;  %v333_v4 = vsel %vm332_vm4, %v9008_v23, %v9006_v51  ;;  %v1302_v30 = vmul.bf16 %v8130_v60, %v184_v43  ;;  %v466_v50 = vsel %vm463_vm9, %v9090_v19, %v9121_v8 }
 0x188   :  { %v204_v22 = vunpack.c.l.bf16 %v197_v2  ;;  %v1307_v23 = vunpack.c.l.bf16 %v1300_v59 }
 0x189   :  { %v9411_v27 = vpop.permute.xlu0 %950  ;;  %v9413_v38 = vpop.permute.xlu1 %821  ;;  %v205_v18 = vunpack.c.l.bf16 %v198_v53  ;;  %v334_v53 = vsel %vm332_vm4, %v9006_v51, %v9020_v28  ;;  %v1308_v51 = vunpack.c.l.bf16 %v1301_v31  ;;  %v1309_v59 = vunpack.c.l.bf16 %v1302_v30 }
 0x18a   :  { %14583 = vst [vmem:[#allocation55_spill] sm:$0xff] %v9411_v27  ;;  %14584 = vst [vmem:[#allocation56_spill] sm:$0xff] %v9413_v38  ;;  %v222_v61 = vrot.slane %v204_v22, %v8329_v11 }
 0x18b   :  { %v226_v17 = vrot.slane %v205_v18, %v8329_v11  ;;  %v607_v18 = vsel %vm606_vm10, %v9156_v26, %v9149_v5 }
 0x18c   :  { %v244_v22 = vmul.f32 %v222_v61, %v8955_v41  ;;  %v608_v61 = vsel %vm606_vm10, %v9149_v5, %v9172_v62 }
 0x18d   :  { %v9418_v35 = vpop.permute.xlu0 %1042  ;;  %v9420_v49 = vpop.permute.xlu1 %1040  ;;  %v245_v31 = vmul.f32 %v226_v17, %v8955_v41 }
 0x191   :  { %v9427_v7 = vpop.permute.xlu0 %1608  ;;  %v9429_v38 = vpop.permute.xlu1 %1044 }
 0x192   :  { %14586 = vst [vmem:[#allocation14_spill] sm:$0xff] %v9427_v7 }
 0x195   :  { %v9432_v14 = vpop.permute.xlu0 %1748  ;;  %v9434_v27 = vpop.permute.xlu1 %1660 }
 0x196   :  { %14588 = vst [vmem:[#allocation19_spill] sm:$0xff] %v9432_v14  ;;  %14589 = vst [vmem:[#allocation57_spill] sm:$0xff] %v9434_v27  ;;  %v243_v27 = vmul.f32 %v218_v6, %v8955_v41  ;;  %v465_v6 = vsel %vm463_vm9, %v9110_v33, %v9090_v19  ;;  %v609_v19 = vsel %vm606_vm10, %v9172_v62, %v9166_v3 }
 0x198   :  { %v346_v12 = vadd.f32 %v333_v4, %v243_v27  ;;  %v335_v27 = vsel %vm332_vm4, %v9020_v28, %v9018_v9  ;;  %v1317_v4 = vrot.slane %v1307_v23, %v8329_v11  ;;  %v704_v28 = vsel %vm182_vm8, %v9241_v25, %v9258_v10 }
 0x199   :  { %v9439_v7 = vpop.permute.xlu0 %1878  ;;  %v9444_v2 = vpop.permute.xlu1 %1836  ;;  %v348_v30 = vadd.f32 %v335_v27, %v245_v31 }
 0x19a   :  { %14590 = vst [vmem:[#allocation58_spill] sm:$0xff] %v9444_v2  ;;  %v347_v2 = vadd.f32 %v334_v53, %v244_v22  ;;  %v477_v33 = vadd.f32 %v464_v55, %v346_v12  ;;  %v14591_v22 = vld [vmem:[#allocation16_spill] sm:$0xff]  ;;  %v1321_v55 = vrot.slane %v1308_v51, %v8329_v11  ;;  %v828_v12 = vsel %vm827_vm11, %v9323_v29, %v9340_v13 }
 0x19b   :  { %v199_v5 = vmul.bf16 %v9468_v36, %v14591_v22  ;;  %v705_v51 = vsel %vm182_vm8, %v9258_v10, %v9253_v34  ;;  %v1342_v31 = vmul.f32 %v1317_v4, %v8955_v41  ;;  %v829_v10 = vsel %vm827_vm11, %v9340_v13, %v9335_v58 }
 0x19c   :  { %v478_v26 = vadd.f32 %v465_v6, %v347_v2  ;;  %v621_v53 = vadd.f32 %v607_v18, %v477_v33  ;;  %v1325_v6 = vrot.slane %v1309_v59, %v8329_v11  ;;  %v479_v18 = vadd.f32 %v466_v50, %v348_v30 }
 0x19d   :  { %v9458_v14 = vpop.permute.xlu0 %1882  ;;  %v9463_v43 = vpop.permute.xlu1 %1880  ;;  %v1419_v33 = vsel %vm332_vm4, %v9042_v56, %v9040_v54  ;;  %v9511_v59 = vunpack.c.l.bf16 %v199_v5  ;;  %v1509_v56 = vsel %vm463_vm9, %v9095_v57, %v9102_v0  ;;  %v1343_v30 = vmul.f32 %v1321_v55, %v8955_v41  ;;  %v14593_v55 = vld [vmem:[#allocation41_spill] sm:$0xff] }
 0x19e   :  { %v622_v17 = vadd.f32 %v608_v61, %v478_v26  ;;  %v717_v23 = vadd.f32 %v9241_v25, %v621_v53  ;;  %v959_v25 = vsel %vm958_vm12, %v9387_v15, %v9393_v32  ;;  %v623_v26 = vadd.f32 %v609_v19, %v479_v18  ;;  %v14592_v19 = vld [vmem:[#allocation42_spill] sm:$0xff] }
 0x19f   :  { %v1432_v22 = vadd.f32 %v1419_v33, %v1342_v31  ;;  %v1610_v57 = vsel %vm606_vm10, %v9200_v45, %v9193_v21  ;;  %v960_v13 = vsel %vm958_vm12, %v9393_v32, %v9391_v40  ;;  %v1056_v45 = vsel %vm1054_vm13, %v9418_v35, %v9429_v38 }
 0x1a0   :  { %v718_v27 = vadd.f32 %v704_v28, %v622_v17  ;;  %v841_v62 = vadd.f32 %v9323_v29, %v717_v23  ;;  %v1055_v28 = vsel %vm1054_vm13, %v9420_v49, %v9418_v35  ;;  %v719_v4 = vadd.f32 %v705_v51, %v623_v26  ;;  %v8131_v26 = vld [vmem:[#allocation2 + $0x18] sm:$0x1] }
 0x1a1   :  { %v9484_v60 = vpop.permute.xlu0 %823  ;;  %v9488_v2 = vpop.permute.xlu1 %701  ;;  %v1420_v23 = vsel %vm332_vm4, %v9040_v54, %v14592_v19  ;;  %v1421_v51 = vsel %vm332_vm4, %v14592_v19, %v14593_v55 }
 0x1a2   :  { %v842_v50 = vadd.f32 %v828_v12, %v718_v27  ;;  %v972_v29 = vadd.f32 %v9387_v15, %v841_v62  ;;  %v1522_v12 = vadd.f32 %v1509_v56, %v1432_v22  ;;  %v843_v18 = vadd.f32 %v829_v10, %v719_v4  ;;  %v14594_v56 = vld [vmem:[#allocation24_spill] sm:$0xff] }
 0x1a3   :  { %v1344_v62 = vmul.f32 %v1325_v6, %v8955_v41  ;;  %v1510_v10 = vsel %vm463_vm9, %v9102_v0, %v14594_v56  ;;  %v1433_v22 = vadd.f32 %v1420_v23, %v1343_v30  ;;  %v230_v0 = vrot.slane %v9511_v59, %v8329_v11 }
 0x1a4   :  { %v973_v5 = vadd.f32 %v959_v25, %v842_v50  ;;  %v1068_v15 = vadd.f32 %v9420_v49, %v972_v29  ;;  %v1624_v25 = vadd.f32 %v1610_v57, %v1522_v12  ;;  %v974_v31 = vadd.f32 %v960_v13, %v843_v18  ;;  %v14595_v29 = vld [vmem:[#allocation17_spill] sm:$0xff] }
 0x1a5   :  { %v9509_v61 = vpop.permute.xlu0 %1046  ;;  %v9514_v53 = vpop.permute.xlu1 %952  ;;  %v1303_v50 = vmul.bf16 %v8131_v26, %v9468_v36  ;;  %v1434_v6 = vadd.f32 %v1421_v51, %v1344_v62  ;;  %v1611_v57 = vsel %vm606_vm10, %v9193_v21, %v9217_v39  ;;  %v1612_v13 = vsel %vm606_vm10, %v9217_v39, %v9207_v47 }
 0x1a6   :  { %v1069_v27 = vadd.f32 %v1055_v28, %v973_v5  ;;  %v1511_v28 = vsel %vm463_vm9, %v14594_v56, %v14595_v29  ;;  %v1677_v4 = vadd.f32 %v9281_v1, %v1624_v25  ;;  %v1070_v5 = vadd.f32 %v1056_v45, %v974_v31  ;;  %v14599_v31 = vld [vmem:[#allocation32_spill] sm:$0xff] }
 0x1a7   :  { %v1524_v19 = vadd.f32 %v1511_v28, %v1434_v6  ;;  %v1310_v18 = vunpack.c.l.bf16 %v1303_v50  ;;  %v1664_v21 = vsel %vm182_vm8, %v9281_v1, %v9302_v44  ;;  %v1665_v39 = vsel %vm182_vm8, %v9302_v44, %v9296_v42 }
 0x1a8   :  { %v1767_v23 = vadd.f32 %v9360_v16, %v1677_v4  ;;  %v246_v44 = vmul.f32 %v230_v0, %v8955_v41  ;;  %v1754_v25 = vsel %vm827_vm11, %v9360_v16, %v9373_v37  ;;  %v1844_v6 = vsel %vm958_vm12, %v9399_v24, %v9405_v63 }
 0x1a9   :  { %v1167_v17 = vpop.permute.xlu0 %1166  ;;  %v1165_v33 = vpop.permute.xlu1 %1164  ;;  %v1845_v16 = vsel %vm958_vm12, %v9405_v63, %v9403_v46  ;;  %v1893_v63 = vsel %vm1054_vm13, %v9463_v43, %v9458_v14 }
 0x1aa   :  { %v1179_v32 = vsel %vm1178_vm14, %v1165_v33, %v1167_v17  ;;  %v1192_v49 = vadd.f32 %v1165_v33, %v1068_v15  ;;  %v1523_v15 = vadd.f32 %v1510_v10, %v1433_v22  ;;  %v14600_v10 = vld [vmem:[#allocation20_spill] sm:$0xff] }
 0x1ab   :  { %v1193_v54 = vadd.f32 %v1179_v32, %v1069_v27  ;;  %v14596_v27 = vld [vmem:[#allocation38_spill] sm:$0xff]  ;;  %v1626_v32 = vadd.f32 %v1612_v13, %v1524_v19  ;;  %v1329_v13 = vrot.slane %v1310_v18, %v8329_v11 }
 0x1ac   :  { %1206 = vrot.lane.b32.xlu1 %v1192_v49, %s8186_s0  ;;  %v186_v59 = vsel %vm182_vm8, %v8979_v52, %v14596_v27  ;;  %v1625_v45 = vadd.f32 %v1611_v57, %v1523_v15  ;;  %v1857_v49 = vadd.f32 %v9399_v24, %v1767_v23  ;;  %v14598_v52 = vld [vmem:[#allocation39_spill] sm:$0xff]  ;;  %v1892_v24 = vsel %vm1054_vm13, %v9439_v7, %v9463_v43  ;;  %v14601_v15 = vld [vmem:[#allocation28_spill] sm:$0xff] }
 0x1ad   :  { %v9553_v35 = vpop.permute.xlu0 %1662  ;;  %1208 = vrot.lane.b32.xlu0 %v1193_v54, %s8186_s0  ;;  %v9557_v36 = vpop.permute.xlu1 %1168  ;;  %v9591_v1 = vsel %vm182_vm8, %v14596_v27, %v14598_v52  ;;  %v467_v54 = vsel %vm463_vm9, %v9121_v8, %v14599_v31  ;;  %v1679_v50 = vadd.f32 %v1665_v39, %v1626_v32  ;;  %v200_v28 = vmul.bf16 %v186_v59, %v14600_v10  ;;  %v14605_v32 = vld [vmem:[#allocation49_spill] sm:$0xff] }
 0x1ae   :  { %v1180_v30 = vsel %vm1178_vm14, %v1167_v17, %v9557_v36  ;;  %v14597_v17 = vld [vmem:[#allocation44_spill] sm:$0xff]  ;;  %v1678_v26 = vadd.f32 %v1664_v21, %v1625_v45  ;;  %v1905_v56 = vadd.f32 %v9439_v7, %v1857_v49  ;;  %v610_v8 = vsel %vm606_vm10, %v9166_v3, %v9245_v20  ;;  %v14603_v21 = vld [vmem:[#allocation35_spill] sm:$0xff] }
 0x1af   :  { %v1194_v12 = vadd.f32 %v1180_v30, %v1070_v5  ;;  %v336_v51 = vsel %vm332_vm4, %v9018_v9, %v14597_v17  ;;  %v1755_v9 = vsel %vm827_vm11, %v9373_v37, %v9369_v48  ;;  %v706_v3 = vsel %vm182_vm8, %v9253_v34, %v14601_v15  ;;  %v14604_v45 = vld [vmem:[#allocation43_spill] sm:$0xff] }
 0x1b0   :  { %v349_v22 = vadd.f32 %v336_v51, %v246_v44  ;;  %v1768_v4 = vadd.f32 %v1754_v25, %v1678_v26  ;;  %v1769_v5 = vadd.f32 %v1755_v9, %v1679_v50  ;;  %v207_v27 = vunpack.c.l.bf16 %v200_v28  ;;  %v14606_v50 = vld [vmem:[#allocation29_spill] sm:$0xff] }
 0x1b1   :  { %v9579_v33 = vpop.permute.xlu0 %1838  ;;  %v9585_v62 = vpop.permute.xlu1 %1750  ;;  %1210 = vrot.lane.b32.xlu1 %v1194_v12, %s8186_s0  ;;  %v14602_v12 = vld [vmem:[#allocation22_spill] sm:$0xff]  ;;  %v1304_v39 = vmul.bf16 %v14603_v21, %v186_v59  ;;  %v1422_v43 = vsel %vm332_vm4, %v14593_v55, %v14604_v45  ;;  %v830_v34 = vsel %vm827_vm11, %v9335_v58, %v14605_v32  ;;  %v1345_v9 = vmul.f32 %v1329_v13, %v8955_v41  ;;  %v14607_v55 = vld [vmem:[#allocation55_spill] sm:$0xff] }
 0x1b2   :  { %v480_v30 = vadd.f32 %v467_v54, %v349_v22  ;;  %v1858_v19 = vadd.f32 %v1844_v6, %v1768_v4  ;;  %v1859_v23 = vadd.f32 %v1845_v16, %v1769_v5  ;;  %v201_v18 = vmul.bf16 %v9591_v1, %v14602_v12  ;;  %v14608_v4 = vld [vmem:[#allocation40_spill] sm:$0xff]  ;;  %v14609_v5 = vld [vmem:[#allocation25_spill] sm:$0xff] }
 0x1b3   :  { %v961_v10 = vsel %vm958_vm12, %v9391_v40, %v14607_v55  ;;  %v1435_v22 = vadd.f32 %v1422_v43, %v1345_v9  ;;  %v14612_v43 = vld [vmem:[#allocation52_spill] sm:$0xff] }
 0x1b4   :  { %v624_v51 = vadd.f32 %v610_v8, %v480_v30  ;;  %v1906_v49 = vadd.f32 %v1892_v24, %v1858_v19  ;;  %v1907_v44 = vadd.f32 %v1893_v63, %v1859_v23  ;;  %v1311_v8 = vunpack.c.l.bf16 %v1304_v39  ;;  %v14610_v19 = vld [vmem:[#allocation46_spill] sm:$0xff] }
 0x1b5   :  { %v1969_v37 = vpop.permute.xlu0 %1968  ;;  %v9614_v57 = vpop.permute.xlu1 %1884  ;;  %v208_v24 = vunpack.c.l.bf16 %v201_v18  ;;  %v234_v63 = vrot.slane %v207_v27, %v8329_v11  ;;  %v14611_v23 = vld [vmem:[#allocation26_spill] sm:$0xff]  ;;  %v1756_v18 = vsel %vm827_vm11, %v9369_v48, %v14612_v43 }
 0x1b6   :  { %v1995_v0 = vadd.f32 %v1969_v37, %v1905_v56  ;;  %v720_v54 = vadd.f32 %v706_v3, %v624_v51  ;;  %v1512_v56 = vsel %vm463_vm9, %v14595_v29, %v14606_v50  ;;  %v1057_v29 = vsel %vm1054_vm13, %v9429_v38, %v9509_v61  ;;  %v14614_v48 = vld [vmem:[#allocation58_spill] sm:$0xff] }
 0x1b7   :  { %v1525_v13 = vadd.f32 %v1512_v56, %v1435_v22  ;;  %v1333_v51 = vrot.slane %v1311_v8, %v8329_v11  ;;  %v1846_v56 = vsel %vm958_vm12, %v9403_v46, %v14614_v48 }
 0x1b8   :  { %2009 = vrot.lane.b32.xlu0 %v1995_v0, %s8186_s0  ;;  %v844_v6 = vadd.f32 %v830_v34, %v720_v54  ;;  %v1613_v0 = vsel %vm606_vm10, %v9207_v47, %v14609_v5  ;;  %v1666_v47 = vsel %vm182_vm8, %v9296_v42, %v14610_v19  ;;  %v8133_v34 = vld [vmem:[#allocation2 + $0x30] sm:$0x1]  ;;  %v238_v54 = vrot.slane %v208_v24, %v8329_v11 }
 0x1b9   :  { %v9630_v7 = vpop.permute.xlu0 %1972  ;;  %v1971_v25 = vpop.permute.xlu1 %1970  ;;  %v1627_v12 = vadd.f32 %v1613_v0, %v1525_v13  ;;  %v1346_v0 = vmul.f32 %v1333_v51, %v8955_v41 }
 0x1ba   :  { %v1982_v26 = vsel %vm1178_vm14, %v1969_v37, %v1971_v25  ;;  %v1983_v59 = vsel %vm1178_vm14, %v1971_v25, %v9630_v7  ;;  %v188_v37 = vsel %vm182_vm8, %v14598_v52, %v14608_v4  ;;  %v975_v30 = vadd.f32 %v961_v10, %v844_v6  ;;  %v8132_v52 = vld [vmem:[#allocation2 + $0x28] sm:$0x1]  ;;  %v14615_v10 = vld [vmem:[#allocation33_spill] sm:$0xff] }
 0x1bb   :  { %v1996_v58 = vadd.f32 %v1982_v26, %v1906_v49  ;;  %v1997_v28 = vadd.f32 %v1983_v59, %v1907_v44  ;;  %v1305_v3 = vmul.bf16 %v8132_v52, %v9591_v1  ;;  %v202_v38 = vmul.bf16 %v188_v37, %v14611_v23  ;;  %v14613_v49 = vld [vmem:[#allocation15_spill] sm:$0xff]  ;;  %v14616_v6 = vld [vmem:[#allocation21_spill] sm:$0xff] }
 0x1bc   :  { %v1071_v21 = vadd.f32 %v1057_v29, %v975_v30  ;;  %v1306_v42 = vmul.bf16 %v8133_v34, %v188_v37  ;;  %v337_v44 = vsel %vm332_vm4, %v14597_v17, %v14613_v49  ;;  %v1680_v25 = vadd.f32 %v1666_v47, %v1627_v12  ;;  %v14619_v47 = vld [vmem:[#allocation47_spill] sm:$0xff] }
 0x1bd   :  { %v9648_v16 = vpop.permute.xlu0 %954  ;;  %2013 = vrot.lane.b32.xlu0 %v1997_v28, %s8186_s0  ;;  %v9660_v40 = vpop.permute.xlu1 %825  ;;  %2011 = vrot.lane.b32.xlu1 %v1996_v58, %s8186_s0  ;;  %v1312_v26 = vunpack.c.l.bf16 %v1305_v3  ;;  %v247_v59 = vmul.f32 %v234_v63, %v8955_v41  ;;  %v468_v58 = vsel %vm463_vm9, %v14599_v31, %v14615_v10  ;;  %v1423_v8 = vsel %vm332_vm4, %v14604_v45, %v14616_v6  ;;  %v14617_v31 = vld [vmem:[#allocation30_spill] sm:$0xff]  ;;  %v14618_v45 = vld [vmem:[#allocation27_spill] sm:$0xff] }
 0x1be   :  { %v1770_v28 = vadd.f32 %v1756_v18, %v1680_v25  ;;  %v1894_v4 = vsel %vm1054_vm13, %v9458_v14, %v9614_v57  ;;  %v1313_v37 = vunpack.c.l.bf16 %v1306_v42  ;;  %v611_v29 = vsel %vm606_vm10, %v9245_v20, %v14617_v31  ;;  %v14620_v20 = vld [vmem:[#allocation34_spill] sm:$0xff]  ;;  %v14621_v18 = vld [vmem:[#allocation31_spill] sm:$0xff] }
 0x1bf   :  { %v350_v17 = vadd.f32 %v337_v44, %v247_v59  ;;  %v1337_v30 = vrot.slane %v1312_v26, %v8329_v11  ;;  %v248_v63 = vmul.f32 %v238_v54, %v8955_v41  ;;  %v1513_v52 = vsel %vm463_vm9, %v14606_v50, %v14618_v45  ;;  %v14623_v54 = vld [vmem:[#allocation37_spill] sm:$0xff]  ;;  %v14624_v59 = vld [vmem:[#allocation50_spill] sm:$0xff] }
 0x1c0   :  { %v1860_v13 = vadd.f32 %v1846_v56, %v1770_v28  ;;  %v1436_v3 = vadd.f32 %v1423_v8, %v1346_v0  ;;  %v707_v23 = vsel %vm182_vm8, %v14601_v15, %v14619_v47  ;;  %v1341_v42 = vrot.slane %v1313_v37, %v8329_v11  ;;  %v14622_v15 = vld [vmem:[#allocation56_spill] sm:$0xff]  ;;  %v14627_v37 = vld [vmem:[#allocation19_spill] sm:$0xff] }
 0x1c1   :  { %v9669_v39 = vpop.permute.xlu0 %1170  ;;  %v9678_v27 = vpop.permute.xlu1 %1048  ;;  %v481_v24 = vadd.f32 %v468_v58, %v350_v17  ;;  %v831_v25 = vsel %vm827_vm11, %v14605_v32, %v14622_v15  ;;  %v469_v26 = vsel %vm463_vm9, %v14615_v10, %v14623_v54  ;;  %v962_v32 = vsel %vm958_vm12, %v14607_v55, %v9514_v53  ;;  %v14625_v17 = vld [vmem:[#allocation36_spill] sm:$0xff] }
 0x1c2   :  { %v1181_v1 = vsel %vm1178_vm14, %v9557_v36, %v9669_v39  ;;  %v209_v36 = vunpack.c.l.bf16 %v202_v38  ;;  %v1908_v38 = vadd.f32 %v1894_v4, %v1860_v13  ;;  %v1526_v44 = vadd.f32 %v1513_v52, %v1436_v3  ;;  %v14626_v8 = vld [vmem:[#allocation48_spill] sm:$0xff] }
 0x1c3   :  { %v1195_v9 = vadd.f32 %v1181_v1, %v1071_v21  ;;  %v338_v21 = vsel %vm332_vm4, %v14613_v49, %v14620_v20  ;;  %v625_v51 = vadd.f32 %v611_v29, %v481_v24  ;;  %v1614_v1 = vsel %vm606_vm10, %v14609_v5, %v14621_v18 }
 0x1c4   :  { %v242_v14 = vrot.slane %v209_v36, %v8329_v11  ;;  %v1347_v49 = vmul.f32 %v1337_v30, %v8955_v41  ;;  %v351_v36 = vadd.f32 %v338_v21, %v248_v63  ;;  %v1628_v58 = vadd.f32 %v1614_v1, %v1526_v44 }
 0x1c5   :  { %v9691_v22 = vpop.permute.xlu0 %1840  ;;  %1212 = vrot.lane.b32.xlu1 %v1195_v9, %s8186_s0  ;;  %v9700_v46 = vpop.permute.xlu1 %1752  ;;  %v721_v5 = vadd.f32 %v707_v23, %v625_v51  ;;  %v1424_v10 = vsel %vm332_vm4, %v14616_v6, %v14625_v17  ;;  %v1757_v0 = vsel %vm827_vm11, %v14612_v43, %v14627_v37  ;;  %v1348_v55 = vmul.f32 %v1341_v42, %v8955_v41  ;;  %v14628_v6 = vld [vmem:[#allocation45_spill] sm:$0xff] }
 0x1c6   :  { %v249_v56 = vmul.f32 %v242_v14, %v8955_v41  ;;  %v482_v13 = vadd.f32 %v469_v26, %v351_v36  ;;  %v1058_v24 = vsel %vm1054_vm13, %v9509_v61, %v9678_v27  ;;  %v1514_v63 = vsel %vm463_vm9, %v14618_v45, %v14628_v6  ;;  %v14630_v61 = vld [vmem:[#allocation51_spill] sm:$0xff] }
 0x1c7   :  { %v845_v4 = vadd.f32 %v831_v25, %v721_v5  ;;  %v1847_v43 = vsel %vm958_vm12, %v14614_v48, %v9579_v33  ;;  %v1437_v41 = vadd.f32 %v1424_v10, %v1347_v49  ;;  %v1438_v3 = vadd.f32 %v14625_v17, %v1348_v55  ;;  %v14631_v49 = vld [vmem:[#allocation57_spill] sm:$0xff]  ;;  %v14633_v17 = vld [vmem:[#allocation54_spill] sm:$0xff] }
 0x1c8   :  { %v1615_v51 = vsel %vm606_vm10, %v14621_v18, %v14630_v61  ;;  %v832_v45 = vsel %vm827_vm11, %v14622_v15, %v9484_v60  ;;  %v1668_v18 = vsel %vm182_vm8, %v14624_v59, %v14631_v49  ;;  %v963_v15 = vsel %vm958_vm12, %v9514_v53, %v9648_v16 }
 0x1c9   :  { %v1975_v12 = vpop.permute.xlu0 %1974  ;;  %v9723_v34 = vpop.permute.xlu1 %1886  ;;  %v976_v14 = vadd.f32 %v962_v32, %v845_v4  ;;  %v14632_v32 = vld [vmem:[#allocation14_spill] sm:$0xff]  ;;  %v613_v10 = vsel %vm606_vm10, %v14626_v8, %v14633_v17  ;;  %vm3170_vm9 = vcmask 1043456  }
 0x1ca   :  { %v1984_v50 = vsel %vm1178_vm14, %v9630_v7, %v1975_v12  ;;  %v1667_v7 = vsel %vm182_vm8, %v14610_v19, %v14624_v59  ;;  %v612_v19 = vsel %vm606_vm10, %v14617_v31, %v14626_v8  ;;  %v14629_v31 = vld [vmem:[#allocation53_spill] sm:$0xff]  ;;  %v1895_v1 = vsel %vm1054_vm13, %v9614_v57, %v9723_v34 }
 0x1cb   :  { %v1998_v9 = vadd.f32 %v1984_v50, %v1908_v38  ;;  %v1681_v30 = vadd.f32 %v1667_v7, %v1628_v58  ;;  %v708_v52 = vsel %vm182_vm8, %v14619_v47, %v14629_v31  ;;  %v626_v23 = vadd.f32 %v612_v19, %v482_v13 }
 0x1cc   :  { %v1072_v47 = vadd.f32 %v1058_v24, %v976_v14  ;;  %v1527_v50 = vadd.f32 %v1514_v63, %v1437_v41  ;;  %v1528_v57 = vadd.f32 %v14628_v6, %v1438_v3  ;;  %v709_v13 = vsel %vm182_vm8, %v14629_v31, %v9488_v2 }
 0x1cd   :  { %v9740_v28 = vpop.permute.xlu0 %1050  ;;  %2015 = vrot.lane.b32.xlu0 %v1998_v9, %s8186_s0  ;;  %v9752_v29 = vpop.permute.xlu1 %956  ;;  %v1771_v38 = vadd.f32 %v1757_v0, %v1681_v30  ;;  %v722_v42 = vadd.f32 %v708_v52, %v626_v23  ;;  %v352_v9 = vadd.f32 %v14620_v20, %v249_v56  ;;  %v1758_v20 = vsel %vm827_vm11, %v14627_v37, %v9585_v62 }
 0x1ce   :  { %v1629_v5 = vadd.f32 %v1615_v51, %v1527_v50  ;;  %v1059_v59 = vsel %vm1054_vm13, %v9678_v27, %v9740_v28  ;;  %v1669_v37 = vsel %vm182_vm8, %v14631_v49, %v9553_v35  ;;  %v1848_v27 = vsel %vm958_vm12, %v9579_v33, %v9691_v22 }
 0x1cf   :  { %v1861_v44 = vadd.f32 %v1847_v43, %v1771_v38  ;;  %v846_v7 = vadd.f32 %v832_v45, %v722_v42  ;;  %v483_v55 = vadd.f32 %v14623_v54, %v352_v9  ;;  %v1759_v54 = vsel %vm827_vm11, %v9585_v62, %v9700_v46 }
 0x1d0   :  { %v1682_v19 = vadd.f32 %v1668_v18, %v1629_v5  ;;  %v833_v2 = vsel %vm827_vm11, %v9484_v60, %v9660_v40  ;;  %v964_v62 = vsel %vm958_vm12, %v9648_v16, %v9752_v29  ;;  %vm5925_vm11 = vcmask 113664  }
 0x1d1   :  { %v1843_v21 = vpop.permute.xlu0 %1842  ;;  %v1173_v48 = vpop.permute.xlu1 %1172  ;;  %v1909_v36 = vadd.f32 %v1895_v1, %v1861_v44  ;;  %v977_v4 = vadd.f32 %v963_v15, %v846_v7  ;;  %v627_v6 = vadd.f32 %v613_v10, %v483_v55 }
 0x1d2   :  { %v1182_v25 = vsel %vm1178_vm14, %v9669_v39, %v1173_v48  ;;  %v1616_v39 = vsel %vm606_vm10, %v14630_v61, %v14632_v32  ;;  %v1772_v30 = vadd.f32 %v1758_v20, %v1682_v19  ;;  %v1849_v41 = vsel %vm958_vm12, %v9691_v22, %v1843_v21 }
 0x1d3   :  { %v1196_v26 = vadd.f32 %v1182_v25, %v1072_v47  ;;  %v1073_v8 = vadd.f32 %v1059_v59, %v977_v4  ;;  %v723_v43 = vadd.f32 %v709_v13, %v627_v6 }
 0x1d4   :  { %v1862_v31 = vadd.f32 %v1848_v27, %v1772_v30 }
 0x1d5   :  { %v1977_v58 = vpop.permute.xlu0 %1976  ;;  %v1889_v56 = vpop.permute.xlu1 %1888  ;;  %1214 = vrot.lane.b32.xlu1 %v1196_v26, %s8186_s0  ;;  %v847_v23 = vadd.f32 %v833_v2, %v723_v43 }
 0x1d6   :  { %v1985_v53 = vsel %vm1178_vm14, %v1975_v12, %v1977_v58  ;;  %v1630_v12 = vadd.f32 %v1616_v39, %v1528_v57  ;;  %v1896_v35 = vsel %vm1054_vm13, %v9723_v34, %v1889_v56 }
 0x1d7   :  { %v1999_v0 = vadd.f32 %v1985_v53, %v1909_v36  ;;  %v1910_v46 = vadd.f32 %v1896_v35, %v1862_v31  ;;  %v978_v21 = vadd.f32 %v964_v62, %v847_v23  ;;  %v14636_v23 = vld [vmem:[#allocation13_spill] sm:$0xff] }
 0x1d8   :  { %v1683_v52 = vadd.f32 %v1669_v37, %v1630_v12 }
 0x1d9   :  { %v1175_v24 = vpop.permute.xlu0 %1174  ;;  %2017 = vrot.lane.b32.xlu0 %v1999_v0, %s8186_s0  ;;  %v1053_v63 = vpop.permute.xlu1 %1052 }
 0x1da   :  { %v1183_v33 = vsel %vm1178_vm14, %v1173_v48, %v1175_v24  ;;  %v1773_v3 = vadd.f32 %v1759_v54, %v1683_v52  ;;  %v1060_v40 = vsel %vm1054_vm13, %v9740_v28, %v1053_v63 }
 0x1db   :  { %v1197_v14 = vadd.f32 %v1183_v33, %v1073_v8  ;;  %v1074_v16 = vadd.f32 %v1060_v40, %v978_v21  ;;  %v14637_v40 = vld [vmem:[#allocation12_spill] sm:$0xff] }
 0x1dc   :  { %v1863_v60 = vadd.f32 %v1849_v41, %v1773_v3  ;;  %v14634_v41 = vld [vmem:[#allocation9_spill] sm:$0xff]  ;;  %v14638_v21 = vld [vmem:[#allocation8_spill] sm:$0xff] }
 0x1dd   :  { %v1979_v34 = vpop.permute.xlu0 %1978  ;;  %1216 = vrot.lane.b32.xlu1 %v1197_v14, %s8186_s0  ;;  %v1891_v61 = vpop.permute.xlu1 %1890  ;;  %v2409_v3 = vpack.i.b16 %v14634_v41, %v14634_v41 }
 0x1de   :  { %v1986_v38 = vsel %vm1178_vm14, %v1977_v58, %v1979_v34  ;;  %v1897_v22 = vsel %vm1054_vm13, %v1889_v56, %v1891_v61  ;;  %vm6148_vm13 = vcmask 932864  }
 0x1df   :  { %v2000_v51 = vadd.f32 %v1986_v38, %v1910_v46  ;;  %v1911_v45 = vadd.f32 %v1897_v22, %v1863_v60  ;;  %v2414_v62 = vrot.slane %v2409_v3, %v8329_v11  ;;  %v14635_v46 = vld [vmem:[#allocation11_spill] sm:$0xff]  ;;  %v2416_v38 = vpack.i.b16 %v14636_v23, %v14636_v23 }
 0x1e1   :  { %v1981_v47 = vpop.permute.xlu0 %1980  ;;  %2019 = vrot.lane.b32.xlu0 %v2000_v51, %s8186_s0  ;;  %v1177_v1 = vpop.permute.xlu1 %1176  ;;  %v2421_v60 = vrot.slane %v2416_v38, %v8329_v11  ;;  %v2402_v51 = vpack.i.b16 %v14637_v40, %v14637_v40 }
 0x1e2   :  { %v1987_v29 = vsel %vm1178_vm14, %v1979_v34, %v1981_v47  ;;  %v1184_v50 = vsel %vm1178_vm14, %v1175_v24, %v1177_v1  ;;  %v2423_v34 = vpack.i.b16 %v14635_v46, %v14635_v46  ;;  %vm6292_vm14 = vcmask 261120  }
 0x1e3   :  { %v2001_v48 = vadd.f32 %v1987_v29, %v1911_v45  ;;  %v1198_v42 = vadd.f32 %v1184_v50, %v1074_v16  ;;  %v9969_v22 = vrot.slane %v2402_v51, %v8329_v11  ;;  %v9977_v45 = vrot.slane %v2409_v3, %v14638_v21 }
 0x1e4   :  { %v2428_v61 = vrot.slane %v2423_v34, %v8329_v11  ;;  %v9984_v47 = vrot.slane %v2423_v34, %v14638_v21  ;;  %v2604_v16 = vrot.slane %v2416_v38, %v14638_v21  ;;  %v2596_v29 = vrot.slane %v2402_v51, %v14638_v21 }
 0x1e5   :  { %2021 = vrot.lane.b32.xlu0 %v2001_v48, %s8186_s0  ;;  %1218 = vrot.lane.b32.xlu1 %v1198_v42, %s8186_s0 }
 0x21e   :  { %v1207_v28 = vpop.permute.xlu1 %1206 }
 0x21f   :  { %v1209_v44 = vpop.permute.xlu0 %1208 }
 0x220   :  { %v9837_v25 = vsel %vm1089_vm7, %v1207_v28, %v1209_v44 }
 0x221   :  { %1234 = vst [vmem:[%s14353_s14] sm:$0xff] %v9837_v25 }
 0x223   :  { %v1211_v9 = vpop.permute.xlu1 %1210 }
 0x224   :  { %v9844_v49 = vsel %vm1089_vm7, %v1209_v44, %v1211_v9 }
 0x225   :  { %1235 = vst [vmem:[%s14353_s14 + $0x8] sm:$0xff] %v9844_v49  ;;  %v2051_v27 = vadd.f32 %v9844_v49, %v9837_v25 }
 0x22a   :  { %v2010_v18 = vpop.permute.xlu0 %2009 }
 0x22f   :  { %v2014_v15 = vpop.permute.xlu0 %2013  ;;  %v2012_v26 = vpop.permute.xlu1 %2011 }
 0x230   :  { %v9851_v57 = vsel %vm1089_vm7, %v2010_v18, %v2012_v26  ;;  %v9854_v5 = vsel %vm1089_vm7, %v2012_v26, %v2014_v15 }
 0x231   :  { %7181 = vst [vmem:[%s14353_s14 + $0x38] sm:$0xff] %v9851_v57  ;;  %7182 = vst [vmem:[%s14353_s14 + $0x40] sm:$0xff] %v9854_v5  ;;  %v2067_v0 = vadd.f32 %v9854_v5, %v9851_v57 }
 0x237   :  { %v1213_v7 = vpop.permute.xlu1 %1212 }
 0x238   :  { %v9865_v36 = vsel %vm1089_vm7, %v1211_v9, %v1213_v7 }
 0x239   :  { %1236 = vst [vmem:[%s14353_s14 + $0x10] sm:$0xff] %v9865_v36  ;;  %v2052_v30 = vadd.f32 %v2051_v27, %v9865_v36 }
 0x23f   :  { %v2016_v58 = vpop.permute.xlu0 %2015 }
 0x240   :  { %v9872_v32 = vsel %vm1089_vm7, %v2014_v15, %v2016_v58 }
 0x241   :  { %7183 = vst [vmem:[%s14353_s14 + $0x48] sm:$0xff] %v9872_v32  ;;  %v2068_v13 = vadd.f32 %v2067_v0, %v9872_v32 }
 0x247   :  { %v1215_v39 = vpop.permute.xlu1 %1214 }
 0x248   :  { %v9879_v20 = vsel %vm1089_vm7, %v1213_v7, %v1215_v39 }
 0x249   :  { %1237 = vst [vmem:[%s14353_s14 + $0x18] sm:$0xff] %v9879_v20  ;;  %v2053_v24 = vadd.f32 %v2052_v30, %v9879_v20 }
 0x24b   :  { %v2018_v59 = vpop.permute.xlu0 %2017 }
 0x24c   :  { %v9886_v53 = vsel %vm1089_vm7, %v2016_v58, %v2018_v59 }
 0x24d   :  { %7184 = vst [vmem:[%s14353_s14 + $0x50] sm:$0xff] %v9886_v53  ;;  %v2069_v8 = vadd.f32 %v2068_v13, %v9886_v53 }
 0x24f   :  { %v1217_v56 = vpop.permute.xlu1 %1216 }
 0x250   :  { %v9893_v17 = vsel %vm1089_vm7, %v1215_v39, %v1217_v56 }
 0x251   :  { %1238 = vst [vmem:[%s14353_s14 + $0x20] sm:$0xff] %v9893_v17  ;;  %v2054_v54 = vadd.f32 %v2053_v24, %v9893_v17 }
 0x253   :  { %v2020_v10 = vpop.permute.xlu0 %2019 }
 0x254   :  { %v9900_v19 = vsel %vm1089_vm7, %v2018_v59, %v2020_v10 }
 0x255   :  { %7185 = vst [vmem:[%s14353_s14 + $0x58] sm:$0xff] %v9900_v19  ;;  %v2070_v6 = vadd.f32 %v2069_v8, %v9900_v19 }
 0x257   :  { %v2022_v4 = vpop.permute.xlu0 %2021  ;;  %v1219_v37 = vpop.permute.xlu1 %1218 }
 0x258   :  { %v9909_v55 = vsel %vm1089_vm7, %v2020_v10, %v2022_v4  ;;  %7187 = vst.msk [vmem:[%s14353_s14 + $0x68] sm:$0xff] %vm58_vm2, %v2022_v4  ;;  %v9922_v12 = vsel %vm1089_vm7, %v1217_v56, %v1219_v37  ;;  %1240 = vst.msk [vmem:[%s14353_s14 + $0x30] sm:$0xff] %vm58_vm2, %v1219_v37 }
 0x259   :  { %7186 = vst [vmem:[%s14353_s14 + $0x60] sm:$0xff] %v9909_v55  ;;  %1239 = vst [vmem:[%s14353_s14 + $0x28] sm:$0xff] %v9922_v12  ;;  %v2071_v33 = vadd.f32 %v2070_v6, %v9909_v55  ;;  %v2055_v2 = vadd.f32 %v2054_v54, %v9922_v12 }
 0x25f   :  { %v9941_v35 = vld [vmem:[%s14353_s14 + $0x68] sm:$0xff]  ;;  %v9949_v52 = vld [vmem:[%s14353_s14 + $0x30] sm:$0xff]  ;;  %s8194_s14 = smov 28  }
 0x260   :  { %v2072_v63 = vsel %vm58_vm2, %v9941_v35, 0.0  ;;  %v2056_v14 = vsel %vm58_vm2, %v9949_v52, 0.0 }
 0x261   :  { %v2073_v31 = vadd.f32 %v2072_v63, %v2071_v33  ;;  %v2057_v43 = vadd.f32 %v2056_v14, %v2055_v2 }
 0x263   :  { %2074 = vadd.xlane.f32.xlu0 %v2073_v31  ;;  %2058 = vadd.xlane.f32.xlu1 %v2057_v43 }
 0x274   :  { %2454 = vrot.lane.b32.xlu1 %v2414_v62, %s8187_s24 }
 0x278   :  { %2458 = vrot.lane.b32.xlu1 %v2428_v61, %s8187_s24 }
 0x279   :  { %2456 = vrot.lane.b32.xlu0 %v2421_v60, %s8187_s24 }
 0x27c   :  { %2711 = vrot.lane.b32.xlu1 %v2414_v62, %s8183_s21 }
 0x27d   :  { %2452 = vrot.lane.b32.xlu0 %v9969_v22, %s8187_s24 }
 0x280   :  { %2715 = vrot.lane.b32.xlu1 %v2428_v61, %s8183_s21 }
 0x281   :  { %2713 = vrot.lane.b32.xlu0 %v2421_v60, %s8183_s21 }
 0x284   :  { %2628 = vrot.lane.b32.xlu1 %v9977_v45, %s8182_s10 }
 0x285   :  { %2709 = vrot.lane.b32.xlu0 %v9969_v22, %s8183_s21 }
 0x288   :  { %2632 = vrot.lane.b32.xlu1 %v9984_v47, %s8182_s10 }
 0x289   :  { %2630 = vrot.lane.b32.xlu0 %v2604_v16, %s8182_s10 }
 0x28c   :  { %2821 = vrot.lane.b32.xlu1 %v9977_v45, %s8184_s25 }
 0x28d   :  { %2626 = vrot.lane.b32.xlu0 %v2596_v29, %s8182_s10 }
 0x290   :  { %2825 = vrot.lane.b32.xlu1 %v9984_v47, %s8184_s25 }
 0x291   :  { %2823 = vrot.lane.b32.xlu0 %v2604_v16, %s8184_s25 }
 0x294   :  { %2910 = vrot.lane.b32.xlu1 %v2414_v62, %s8185_s27 }
 0x295   :  { %2819 = vrot.lane.b32.xlu0 %v2596_v29, %s8184_s25 }
 0x298   :  { %2914 = vrot.lane.b32.xlu1 %v2428_v61, %s8185_s27 }
 0x299   :  { %2912 = vrot.lane.b32.xlu0 %v2421_v60, %s8185_s27 }
 0x29c   :  { %3046 = vrot.lane.b32.xlu1 %v2596_v29, %s8186_s0 }
 0x2f0   :  { %v2075_v1 = vpop.xlane.xlu0 %2074  ;;  %v2059_v48 = vpop.xlane.xlu1 %2058 }
 0x2f1   :  { %v2076_v50 = vadd.f32 %v2075_v1, %v2059_v48 }
 0x2f3   :  { %v10002_v42 = vmul.f32 0.0006377551, %v2076_v50  ;;  %v14639_v50 = vld [vmem:[#allocation18_spill] sm:$0xff] }
 0x2f5   :  { %v2101_v28 = vsub.f32 %v9851_v57, %v10002_v42  ;;  %v2102_v44 = vsub.f32 %v9854_v5, %v10002_v42  ;;  %v2103_v9 = vsub.f32 %v9872_v32, %v10002_v42  ;;  %v2078_v18 = vsub.f32 %v9837_v25, %v10002_v42 }
 0x2f6   :  { %v2104_v15 = vsub.f32 %v9886_v53, %v10002_v42  ;;  %v2105_v58 = vsub.f32 %v9900_v19, %v10002_v42  ;;  %v2079_v39 = vsub.f32 %v9844_v49, %v10002_v42  ;;  %v2080_v10 = vsub.f32 %v9865_v36, %v10002_v42 }
 0x2f7   :  { %v2108_v26 = vmul.f32 %v2101_v28, %v2101_v28  ;;  %v2109_v7 = vmul.f32 %v2102_v44, %v2102_v44  ;;  %v2110_v59 = vmul.f32 %v2103_v9, %v2103_v9  ;;  %v2106_v4 = vsub.f32 %v9909_v55, %v10002_v42 }
 0x2f8   :  { %v2107_v0 = vsub.f32 %v9941_v35, %v10002_v42  ;;  %v2085_v37 = vmul.f32 %v2078_v18, %v2078_v18  ;;  %v2111_v27 = vmul.f32 %v2104_v15, %v2104_v15  ;;  %v2081_v30 = vsub.f32 %v9879_v20, %v10002_v42  ;;  %v14640_v18 = vld [vmem:[#allocation10_spill] sm:$0xff] }
 0x2f9   :  { %v2115_v56 = vadd.f32 %v2109_v7, %v2108_v26  ;;  %v2086_v8 = vmul.f32 %v2079_v39, %v2079_v39  ;;  %v2112_v24 = vmul.f32 %v2105_v58, %v2105_v58  ;;  %v2082_v54 = vsub.f32 %v9893_v17, %v10002_v42  ;;  %v4193_v39 = vld [vmem:[#allocation2] sm:$0xf] }
 0x2fa   :  { %v2087_v33 = vmul.f32 %v2080_v10, %v2080_v10  ;;  %v2113_v2 = vmul.f32 %v2106_v4, %v2106_v4  ;;  %v2114_v31 = vmul.f32 %v2107_v0, %v2107_v0  ;;  %v2084_v14 = vsub.f32 %v9949_v52, %v10002_v42  ;;  %v10072_v4 = vpop.permute.xlu1 %2454 }
 0x2fb   :  { %v2116_v13 = vadd.f32 %v2115_v56, %v2110_v59  ;;  %v2092_v63 = vadd.f32 %v2086_v8, %v2085_v37  ;;  %v2083_v41 = vsub.f32 %v9922_v12, %v10002_v42  ;;  %v2088_v3 = vmul.f32 %v2081_v30, %v2081_v30 }
 0x2fc   :  { %v2089_v34 = vmul.f32 %v2082_v54, %v2082_v54  ;;  %v2120_v38 = vsel %vm58_vm2, %v2114_v31, 0.0  ;;  %v2091_v61 = vmul.f32 %v2084_v14, %v2084_v14  ;;  %v2430_v28 = vpack.i.b16 %v14639_v50, %v14639_v50 }
 0x2fd   :  { %v2117_v6 = vadd.f32 %v2116_v13, %v2111_v27  ;;  %v2093_v62 = vadd.f32 %v2092_v63, %v2087_v33  ;;  %v2090_v40 = vmul.f32 %v2083_v41, %v2083_v41  ;;  %v2395_v15 = vpack.i.b16 %v14640_v18, %v14640_v18  ;;  %v10078_v27 = vpop.permute.xlu0 %2456  ;;  %v2387_v18 = vld [vmem:[#allocation2] sm:$0xf] }
 0x2fe   :  { %v2097_v1 = vsel %vm58_vm2, %v2091_v61, 0.0  ;;  %v2435_v44 = vrot.slane %v2430_v28, %v8329_v11  ;;  %v2612_v9 = vrot.slane %v2430_v28, %v14638_v21  ;;  %v4207_v56 = vrot.slane %v4193_v39, 4  ;;  %v10074_v0 = vpop.permute.xlu1 %2458 }
 0x2ff   :  { %v2118_v43 = vadd.f32 %v2117_v6, %v2112_v24  ;;  %v2094_v23 = vadd.f32 %v2093_v62, %v2088_v3  ;;  %v2400_v7 = vrot.slane %v2395_v15, %v8329_v11  ;;  %14642 = vst [vmem:[#allocation16_spill] sm:$0xff] %v10074_v0 }
 0x301   :  { %v2119_v46 = vadd.f32 %v2118_v43, %v2113_v2  ;;  %v2095_v51 = vadd.f32 %v2094_v23, %v2089_v34  ;;  %v10082_v30 = vpop.permute.xlu0 %2452 }
 0x302   :  { %v10076_v37 = vpop.permute.xlu1 %2711 }
 0x303   :  { %v2121_v60 = vadd.f32 %v2120_v38, %v2119_v46  ;;  %v2096_v29 = vadd.f32 %v2095_v51, %v2090_v40 }
 0x305   :  { %2122 = vadd.xlane.f32.xlu1 %v2121_v60  ;;  %v2098_v48 = vadd.f32 %v2097_v1, %v2096_v29  ;;  %v10086_v24 = vpop.permute.xlu0 %2713 }
 0x306   :  { %v10080_v13 = vpop.permute.xlu1 %2715 }
 0x307   :  { %2099 = vadd.xlane.f32.xlu0 %v2098_v48 }
 0x309   :  { %v10090_v54 = vpop.permute.xlu0 %2709 }
 0x30a   :  { %v10084_v8 = vpop.permute.xlu1 %2628  ;;  %14644 = vst [vmem:[#allocation41_spill] sm:$0xff] %v10090_v54 }
 0x30d   :  { %v10094_v63 = vpop.permute.xlu0 %2630 }
 0x30e   :  { %v10088_v6 = vpop.permute.xlu1 %2632 }
 0x30f   :  { %14643 = vst [vmem:[#allocation42_spill] sm:$0xff] %v10088_v6 }
 0x311   :  { %v10098_v31 = vpop.permute.xlu0 %2626 }
 0x312   :  { %v10092_v33 = vpop.permute.xlu1 %2821 }
 0x315   :  { %v10102_v43 = vpop.permute.xlu0 %2823 }
 0x316   :  { %3050 = vrot.lane.b32.xlu1 %v2604_v16, %s8186_s0  ;;  %v14641_v16 = vld [vmem:[#allocation23_spill] sm:$0xff]  ;;  %v10096_v2 = vpop.permute.xlu1 %2825 }
 0x317   :  { %v2437_v26 = vpack.i.b16 %v14641_v16, %v14641_v16  ;;  %14645 = vst [vmem:[#allocation24_spill] sm:$0xff] %v10096_v2 }
 0x319   :  { %v2616_v58 = vrot.slane %v2437_v26, %v14638_v21  ;;  %v10106_v3 = vpop.permute.xlu0 %2819 }
 0x31a   :  { %2460 = vrot.lane.b32.xlu1 %v2435_v44, %s8187_s24  ;;  %v10100_v14 = vpop.permute.xlu1 %2910  ;;  %14647 = vst [vmem:[#allocation38_spill] sm:$0xff] %v10106_v3 }
 0x31d   :  { %2908 = vrot.lane.b32.xlu0 %v9969_v22, %s8185_s27  ;;  %v2442_v22 = vrot.slane %v2437_v26, %v8329_v11  ;;  %v10110_v46 = vpop.permute.xlu0 %2912 }
 0x31e   :  { %2717 = vrot.lane.b32.xlu1 %v2435_v44, %s8183_s21  ;;  %v10104_v41 = vpop.permute.xlu1 %2914 }
 0x31f   :  { %14646 = vst [vmem:[#allocation17_spill] sm:$0xff] %v10104_v41 }
 0x321   :  { %3048 = vrot.lane.b32.xlu0 %v9977_v45, %s8186_s0  ;;  %v2592_v45 = vrot.slane %v2395_v15, %v14638_v21 }
 0x322   :  { %2634 = vrot.lane.b32.xlu1 %v2612_v9, %s8182_s10  ;;  %v10108_v62 = vpop.permute.xlu1 %3046 }
 0x325   :  { %3052 = vrot.lane.b32.xlu0 %v9984_v47, %s8186_s0  ;;  %v2525_v47 = vld [vmem:[#allocation2] sm:$0xf] }
 0x326   :  { %2827 = vrot.lane.b32.xlu1 %v2612_v9, %s8184_s25  ;;  %v2539_v59 = vrot.slane %v2525_v47, 4  ;;  %v2126_v47 = vld [vmem:[%s14345_s6] sm:$0xff]  ;;  %s8198_s6 = smov 15  }
 0x328   :  { %v7885_v10 = vpack.i.bf16 %v4207_v56, %v2539_v59  ;;  %v4248_v59 = vld [vmem:[#allocation2] sm:$0xf] }
 0x329   :  { %2462 = vrot.lane.b32.xlu0 %v2442_v22, %s8187_s24 }
 0x32a   :  { %2450 = vrot.lane.b32.xlu1 %v2400_v7, %s8187_s24 }
 0x32d   :  { %2719 = vrot.lane.b32.xlu0 %v2442_v22, %s8183_s21 }
 0x32e   :  { %2918 = vrot.lane.b32.xlu1 %v2442_v22, %s8185_s27 }
 0x331   :  { %2636 = vrot.lane.b32.xlu0 %v2616_v58, %s8182_s10 }
 0x332   :  { %2624 = vrot.lane.b32.xlu1 %v2592_v45, %s8182_s10 }
 0x335   :  { %2829 = vrot.lane.b32.xlu0 %v2616_v58, %s8184_s25 }
 0x336   :  { %3056 = vrot.lane.b32.xlu1 %v2616_v58, %s8186_s0  ;;  %v2582_v58 = vld [vmem:[#allocation2] sm:$0xf] }
 0x339   :  { %2916 = vrot.lane.b32.xlu0 %v2435_v44, %s8185_s27 }
 0x33a   :  { %2906 = vrot.lane.b32.xlu1 %v2400_v7, %s8185_s27 }
 0x33d   :  { %2707 = vrot.lane.b32.xlu0 %v2400_v7, %s8183_s21 }
 0x341   :  { %3054 = vrot.lane.b32.xlu0 %v2612_v9, %s8186_s0 }
 0x345   :  { %2817 = vrot.lane.b32.xlu0 %v2592_v45, %s8184_s25 }
 0x349   :  { %3044 = vrot.lane.b32.xlu0 %v2592_v45, %s8186_s0 }
 0x34d   :  { %7886 = vrot.lane.b32.xlu0 %v7885_v10, %s8194_s14 }
 0x392   :  { %v2123_v34 = vpop.xlane.xlu1 %2122 }
 0x394   :  { %v2100_v23 = vpop.xlane.xlu0 %2099 }
 0x395   :  { %v2124_v61 = vadd.f32 %v2123_v34, %v2100_v23 }
 0x396   :  { %v10112_v38 = vpop.permute.xlu1 %3050 }
 0x397   :  { %v2125_v51 = vmul.f32 0.0006377551, %v2124_v61 }
 0x398   :  { %v10114_v60 = vpop.permute.xlu0 %2908 }
 0x399   :  { %v2127_v48 = vadd.f32 1e-05, %v2125_v51 }
 0x39a   :  { %v10116_v40 = vpop.permute.xlu1 %2460 }
 0x39b   :  { %14648 = vst [vmem:[#allocation44_spill] sm:$0xff] %v10116_v40  ;;  %8117 = vrsqrt.f32 %v2127_v48  ;;  %v2699_v48 = vld [vmem:[#allocation2] sm:$0xf] }
 0x39c   :  { %v10118_v29 = vpop.permute.xlu0 %3048 }
 0x39e   :  { %v10120_v1 = vpop.permute.xlu1 %2717 }
 0x3a0   :  { %v10122_v50 = vpop.permute.xlu0 %3052 }
 0x3a1   :  { %14649 = vst [vmem:[#allocation39_spill] sm:$0xff] %v10122_v50 }
 0x3a2   :  { %v10124_v28 = vpop.permute.xlu1 %2634 }
 0x3a3   :  { %14650 = vst [vmem:[#allocation32_spill] sm:$0xff] %v10124_v28 }
 0x3a4   :  { %v10126_v44 = vpop.permute.xlu0 %2462 }
 0x3a5   :  { %v8118_v45 = vpop.eup %8117 }
 0x3a6   :  { %v10128_v9 = vpop.permute.xlu1 %2827  ;;  %v2129_v34 = vmul.f32 %v8118_v45, %v2126_v47 }
 0x3a7   :  { %14651 = vst [vmem:[#allocation20_spill] sm:$0xff] %v10128_v9 }
 0x3a8   :  { %v10130_v15 = vpop.permute.xlu0 %2719  ;;  %v2131_v51 = vmul.f32 %v2129_v34, %v10002_v42 }
 0x3aa   :  { %v10132_v16 = vpop.permute.xlu1 %2450 }
 0x3ab   :  { %v2477_v26 = vmul.bf16 %v10132_v16, %v2387_v18  ;;  %v2130_v18 = vld [vmem:[%s14346_s7] sm:$0xff]  ;;  %s8199_s7 = smov 14  }
 0x3ac   :  { %v10136_v7 = vpop.permute.xlu0 %2636  ;;  %v2132_v45 = vsub.f32 %v2130_v18, %v2131_v51 }
 0x3ad   :  { %2491 = vrot.lane.b32.xlu1 %v2477_v26, %s8186_s0 }
 0x3ae   :  { %v10138_v22 = vpop.permute.xlu1 %2918 }
 0x3b0   :  { %v10143_v39 = vpop.permute.xlu0 %2829 }
 0x3b2   :  { %v10145_v56 = vpop.permute.xlu1 %2624 }
 0x3b3   :  { %14652 = vst [vmem:[#allocation28_spill] sm:$0xff] %v10145_v56  ;;  %v2651_v10 = vmul.bf16 %v10145_v56, %v2582_v58  ;;  %v4255_v23 = vmul.bf16 %v4248_v59, %v10145_v56  ;;  %v4138_v59 = vld [vmem:[#allocation2] sm:$0xf] }
 0x3b4   :  { %v10150_v61 = vpop.permute.xlu0 %2916  ;;  %v4145_v42 = vmul.bf16 %v4138_v59, %v10132_v16 }
 0x3b5   :  { %2665 = vrot.lane.b32.xlu1 %v2651_v10, %s8185_s27  ;;  %14653 = vst [vmem:[#allocation22_spill] sm:$0xff] %v10150_v61  ;;  %v4303_v10 = vld [vmem:[#allocation2] sm:$0xf] }
 0x3b6   :  { %v10171_v18 = vpop.permute.xlu1 %3056 }
 0x3b8   :  { %v10157_v26 = vpop.permute.xlu0 %2707 }
 0x3b9   :  { %4269 = vrot.lane.b32.xlu1 %v4255_v23, %s8185_s27  ;;  %14654 = vst [vmem:[#allocation35_spill] sm:$0xff] %v10157_v26  ;;  %v2735_v58 = vmul.bf16 %v10157_v26, %v2699_v48  ;;  %v4311_v21 = vmul.bf16 %v4303_v10, %v10157_v26 }
 0x3bb   :  { %v2751_v47 = vrot.slane %v2735_v58, 4  ;;  %v4327_v11 = vrot.slane %v4311_v21, 4 }
 0x3bc   :  { %v10165_v23 = vpop.permute.xlu0 %3054 }
 0x3bd   :  { %2341 = vperm.xlu1 %7884, %v2132_v45   ;;  %2759 = vrot.lane.b32.xlu0 %v2751_v47, %s8184_s25  ;;  %14655 = vst [vmem:[#allocation43_spill] sm:$0xff] %v10165_v23  ;;  %v10175_v45 = vpop.permute.xlu1 %2906 }
 0x3be   :  { %14659 = vst [vmem:[#allocation40_spill] sm:$0xff] %v10175_v45 }
 0x3c0   :  { %v10167_v48 = vpop.permute.xlu0 %2817 }
 0x3c1   :  { %4159 = vrot.lane.b32.xlu0 %v4145_v42, %s8186_s0  ;;  %14656 = vst [vmem:[#allocation49_spill] sm:$0xff] %v10167_v48 }
 0x3c4   :  { %v10169_v51 = vpop.permute.xlu0 %3044 }
 0x3c5   :  { %4335 = vrot.lane.b32.xlu0 %v4327_v11, %s8184_s25  ;;  %14657 = vst [vmem:[#allocation29_spill] sm:$0xff] %v10169_v51 }
 0x3c8   :  { %v10173_v58 = vpop.permute.xlu0 %7886 }
 0x3c9   :  { %2329 = vperm.xlu0 %7883, %v2129_v34   ;;  %14658 = vst [vmem:[#allocation55_spill] sm:$0xff] %v10173_v58 }
 0x41f   :  { %v10179_v59 = vpop.permute.xlu1 %2491 }
 0x420   :  { %14661 = vst [vmem:[#allocation46_spill] sm:$0xff] %v10179_v59 }
 0x427   :  { %v10183_v11 = vpop.permute.xlu1 %2665 }
 0x428   :  { %14663 = vst [vmem:[#allocation52_spill] sm:$0xff] %v10183_v11 }
 0x42b   :  { %v10187_v10 = vpop.permute.xlu1 %4269 }
 0x42c   :  { %14665 = vst [vmem:[#allocation58_spill] sm:$0xff] %v10187_v10 }
 0x42f   :  { %v10177_v47 = vpop.permute.xlu0 %2759 }
 0x430   :  { %14660 = vst [vmem:[#allocation25_spill] sm:$0xff] %v10177_v47 }
 0x433   :  { %v10181_v21 = vpop.permute.xlu0 %4159 }
 0x434   :  { %14662 = vst [vmem:[#allocation26_spill] sm:$0xff] %v10181_v21 }
 0x437   :  { %v10185_v34 = vpop.permute.xlu0 %4335 }
 0x438   :  { %14664 = vst [vmem:[#allocation15_spill] sm:$0xff] %v10185_v34 }
 0x43c   :  { %v2342_v3 = vpop.permute.xlu1 %2341 }
 0x448   :  { %v2330_v42 = vpop.permute.xlu0 %2329 }
 0x449   :  { %v2332_v48 = vmul.f32 %v2330_v42, %v9837_v25  ;;  %v2333_v58 = vmul.f32 %v2330_v42, %v9844_v49  ;;  %v2334_v26 = vmul.f32 %v2330_v42, %v9865_v36  ;;  %v2335_v47 = vmul.f32 %v2330_v42, %v9879_v20 }
 0x44a   :  { %v2336_v59 = vmul.f32 %v2330_v42, %v9893_v17  ;;  %v2337_v21 = vmul.f32 %v2330_v42, %v9922_v12  ;;  %v2338_v11 = vmul.f32 %v2330_v42, %v9949_v52  ;;  %v4087_v34 = vmul.f32 %v2330_v42, %v9851_v57 }
 0x44b   :  { %v2344_v10 = vadd.f32 %v2342_v3, %v2332_v48  ;;  %v2345_v45 = vadd.f32 %v2342_v3, %v2333_v58  ;;  %v2346_v54 = vadd.f32 %v2342_v3, %v2334_v26  ;;  %v2347_v51 = vadd.f32 %v2342_v3, %v2335_v47 }
 0x44c   :  { %v2348_v25 = vadd.f32 %v2342_v3, %v2336_v59  ;;  %v2349_v56 = vadd.f32 %v2342_v3, %v2337_v21  ;;  %v2350_v49 = vadd.f32 %v2342_v3, %v2338_v11  ;;  %v4088_v36 = vmul.f32 %v2330_v42, %v9854_v5 }
 0x44d   :  { %2351 = vst [vmem:[%s14354_s15] sm:$0xff] %v2344_v10  ;;  %2352 = vst [vmem:[%s14354_s15 + $0x8] sm:$0xff] %v2345_v45  ;;  %v2358_v57 = vmax.f32 %v2344_v10, 0.0  ;;  %v2359_v20 = vmax.f32 %v2345_v45, 0.0  ;;  %v2360_v17 = vmax.f32 %v2346_v54, 0.0  ;;  %v2361_v5 = vmax.f32 %v2347_v51, 0.0 }
 0x44e   :  { %2353 = vst [vmem:[%s14354_s15 + $0x10] sm:$0xff] %v2346_v54  ;;  %2354 = vst [vmem:[%s14354_s15 + $0x18] sm:$0xff] %v2347_v51  ;;  %v2362_v12 = vmax.f32 %v2348_v25, 0.0  ;;  %v2363_v52 = vmax.f32 %v2349_v56, 0.0  ;;  %v2364_v26 = vmax.f32 %v2350_v49, 0.0  ;;  %v4089_v48 = vmul.f32 %v2330_v42, %v9872_v32 }
 0x44f   :  { %2355 = vst [vmem:[%s14354_s15 + $0x20] sm:$0xff] %v2348_v25  ;;  %2356 = vst [vmem:[%s14354_s15 + $0x28] sm:$0xff] %v2349_v56  ;;  %v2372_v54 = vpack.c.bf16 %v2358_v57, %v2358_v57  ;;  %v2373_v56 = vpack.c.bf16 %v2359_v20, %v2359_v20  ;;  %v2374_v51 = vpack.c.bf16 %v2360_v17, %v2360_v17 }
 0x450   :  { %2357 = vst.msk [vmem:[%s14354_s15 + $0x30] sm:$0xff] %vm58_vm2, %v2350_v49  ;;  %2365 = vst [vmem:[%s14355_s16] sm:$0xff] %v2358_v57  ;;  %v2375_v32 = vpack.c.bf16 %v2361_v5, %v2361_v5  ;;  %v2376_v58 = vpack.c.bf16 %v2362_v12, %v2362_v12  ;;  %v2377_v45 = vpack.c.bf16 %v2363_v52, %v2363_v52 }
 0x451   :  { %2366 = vst [vmem:[%s14355_s16 + $0x8] sm:$0xff] %v2359_v20  ;;  %2367 = vst [vmem:[%s14355_s16 + $0x10] sm:$0xff] %v2360_v17  ;;  %v2378_v47 = vpack.c.bf16 %v2364_v26, %v2364_v26  ;;  %v4090_v59 = vmul.f32 %v2330_v42, %v9886_v53  ;;  %v4091_v21 = vmul.f32 %v2330_v42, %v9900_v19 }
 0x452   :  { %2368 = vst [vmem:[%s14355_s16 + $0x18] sm:$0xff] %v2361_v5  ;;  %2369 = vst [vmem:[%s14355_s16 + $0x20] sm:$0xff] %v2362_v12  ;;  %v4092_v11 = vmul.f32 %v2330_v42, %v9909_v55  ;;  %v4093_v10 = vmul.f32 %v9941_v35, %v2330_v42  ;;  %v4094_v25 = vadd.f32 %v4087_v34, %v2342_v3 }
 0x453   :  { %2370 = vst [vmem:[%s14355_s16 + $0x28] sm:$0xff] %v2363_v52  ;;  %2371 = vst.msk [vmem:[%s14355_s16 + $0x30] sm:$0xff] %vm58_vm2, %v2364_v26  ;;  %v4095_v49 = vadd.f32 %v4088_v36, %v2342_v3  ;;  %v4096_v57 = vadd.f32 %v4089_v48, %v2342_v3  ;;  %v4097_v20 = vadd.f32 %v4090_v59, %v2342_v3 }
 0x454   :  { %2379 = vst [vmem:[#allocation2 + $0x8] sm:$0xf] %v2372_v54  ;;  %2380 = vst [vmem:[#allocation2 + $0x10] sm:$0xf] %v2373_v56  ;;  %v4098_v17 = vadd.f32 %v4091_v21, %v2342_v3  ;;  %v4099_v53 = vadd.f32 %v4092_v11, %v2342_v3  ;;  %v4100_v5 = vadd.f32 %v4093_v10, %v2342_v3  ;;  %v10251_v19 = vmax.f32 %v4094_v25, 0.0 }
 0x455   :  { %2381 = vst [vmem:[#allocation2 + $0x18] sm:$0xf] %v2374_v51  ;;  %2382 = vst [vmem:[#allocation2 + $0x20] sm:$0xf] %v2375_v32  ;;  %v10262_v55 = vmax.f32 %v4095_v49, 0.0  ;;  %v10264_v35 = vmax.f32 %v4096_v57, 0.0  ;;  %v10316_v12 = vsel %vm182_vm8, %v10072_v4, %v10078_v27  ;;  %v10321_v52 = vsel %vm182_vm8, %v10078_v27, %v10074_v0 }
 0x456   :  { %2383 = vst [vmem:[#allocation2 + $0x28] sm:$0xf] %v2376_v58  ;;  %2384 = vst [vmem:[#allocation2 + $0x30] sm:$0xf] %v2377_v45  ;;  %v10266_v3 = vmax.f32 %v4097_v20, 0.0  ;;  %v10278_v34 = vmax.f32 %v4098_v17, 0.0 }
 0x457   :  { %2386 = vst.msk [vmem:[#allocation2 + $0x38] sm:$0xf] %vm2385_vm15, %v2378_v47  ;;  %7221 = vst [vmem:[%s14354_s15 + $0x38] sm:$0xff] %v4094_v25  ;;  %v10280_v42 = vmax.f32 %v4099_v53, 0.0  ;;  %v10282_v36 = vmax.f32 %v4100_v5, 0.0  ;;  %v10332_v25 = vsel %vm182_vm8, %v10082_v30, %v10072_v4  ;;  %v10347_v4 = vsel %vm374_vm3, %v10094_v63, %v10088_v6 }
 0x458   :  { %7222 = vst [vmem:[%s14354_s15 + $0x40] sm:$0xff] %v4095_v49  ;;  %7223 = vst [vmem:[%s14354_s15 + $0x48] sm:$0xff] %v4096_v57  ;;  %v4127_v0 = vpack.c.bf16 %v10266_v3, %v10266_v3 }
 0x459   :  { %7224 = vst [vmem:[%s14354_s15 + $0x50] sm:$0xff] %v4097_v20  ;;  %7225 = vst [vmem:[%s14354_s15 + $0x58] sm:$0xff] %v4098_v17 }
 0x45a   :  { %7226 = vst [vmem:[%s14354_s15 + $0x60] sm:$0xff] %v4099_v53  ;;  %7227 = vst.msk [vmem:[%s14354_s15 + $0x68] sm:$0xff] %vm58_vm2, %v4100_v5  ;;  %s14869_s15 = sld [smem:[#allocation86_spill]] }
 0x45b   :  { %7228 = vst [vmem:[%s14355_s16 + $0x38] sm:$0xff] %v10251_v19  ;;  %7229 = vst [vmem:[%s14355_s16 + $0x40] sm:$0xff] %v10262_v55  ;;  %v2797_v47 = vld [vmem:[#allocation2 + $0x10] sm:$0xf] }
 0x45c   :  { %7230 = vst [vmem:[%s14355_s16 + $0x48] sm:$0xff] %v10264_v35  ;;  %7231 = vst [vmem:[%s14355_s16 + $0x50] sm:$0xff] %v10266_v3  ;;  %v2391_v26 = vld [vmem:[#allocation2 + $0x20] sm:$0xf]  ;;  %v2390_v54 = vld [vmem:[#allocation2 + $0x18] sm:$0xf] }
 0x45d   :  { %7232 = vst [vmem:[%s14355_s16 + $0x58] sm:$0xff] %v10278_v34  ;;  %7233 = vst [vmem:[%s14355_s16 + $0x60] sm:$0xff] %v10280_v42  ;;  %v2799_v48 = vld [vmem:[#allocation2 + $0x20] sm:$0xf]  ;;  %v2481_v56 = vmul.bf16 %v10321_v52, %v2391_v26  ;;  %v2480_v51 = vmul.bf16 %v10316_v12, %v2390_v54  ;;  %v2798_v32 = vld [vmem:[#allocation2 + $0x18] sm:$0xf]  ;;  %v10342_v26 = vsel %vm374_vm3, %v10084_v8, %v10094_v63 }
 0x45e   :  { %7234 = vst.msk [vmem:[%s14355_s16 + $0x68] sm:$0xff] %vm58_vm2, %v10282_v36  ;;  %2806 = vst [vmem:[#allocation3 + $0x88] sm:$0xf] %v2799_v48  ;;  %v2529_v58 = vld [vmem:[#allocation2 + $0x20] sm:$0xf] }
 0x45f   :  { %2805 = vst [vmem:[#allocation3 + $0x80] sm:$0xf] %v2798_v32  ;;  %v2528_v45 = vld [vmem:[#allocation2 + $0x18] sm:$0xf]  ;;  %2499 = vrot.lane.b32.xlu0 %v2481_v56, %s8186_s0  ;;  %2497 = vrot.lane.b32.xlu1 %v2480_v51, %s8186_s0  ;;  %2804 = vst [vmem:[#allocation3 + $0x78] sm:$0xf] %v2797_v47 }
 0x460   :  { %v2543_v27 = vrot.slane %v2529_v58, 4  ;;  %v2542_v59 = vrot.slane %v2528_v45, 4  ;;  %v2527_v21 = vld [vmem:[#allocation2 + $0x10] sm:$0xf]  ;;  %v2800_v10 = vld [vmem:[#allocation2 + $0x28] sm:$0xf] }
 0x461   :  { %v2389_v11 = vld [vmem:[#allocation2 + $0x10] sm:$0xf]  ;;  %14666 = vst [vmem:[#allocation33_spill] sm:$0xff] %v10332_v25  ;;  %2807 = vst [vmem:[#allocation3 + $0x90] sm:$0xf] %v2800_v10  ;;  %v2541_v49 = vrot.slane %v2527_v21, 4  ;;  %v10371_v10 = vsel %vm869_vm6, %v10100_v14, %v10110_v46 }
 0x462   :  { %v2479_v57 = vmul.bf16 %v10332_v25, %v2389_v11  ;;  %v2586_v20 = vld [vmem:[#allocation2 + $0x20] sm:$0xf]  ;;  %v2585_v17 = vld [vmem:[#allocation2 + $0x18] sm:$0xf]  ;;  %v2801_v53 = vld [vmem:[#allocation2 + $0x30] sm:$0xf]  ;;  %v10366_v11 = vsel %vm374_vm3, %v10098_v31, %v10084_v8 }
 0x463   :  { %2554 = vrot.lane.b32.xlu0 %v2543_v27, %s8194_s14  ;;  %2552 = vrot.lane.b32.xlu1 %v2542_v59, %s8194_s14  ;;  %v10337_v5 = vld [vmem:[#allocation2 + $0x20] sm:$0xf]  ;;  %2808 = vst [vmem:[#allocation3 + $0x98] sm:$0xf] %v2801_v53  ;;  %v2796_v48 = vld [vmem:[#allocation2 + $0x8] sm:$0xf]  ;;  %v2655_v54 = vmul.bf16 %v10347_v4, %v2586_v20  ;;  %v2654_v56 = vmul.bf16 %v10342_v26, %v2585_v17 }
 0x464   :  { %v2902_v51 = vld [vmem:[#allocation2 + $0x20] sm:$0xf]  ;;  %v2584_v32 = vld [vmem:[#allocation2 + $0x10] sm:$0xf]  ;;  %2803 = vst [vmem:[#allocation3 + $0x70] sm:$0xf] %v2796_v48  ;;  %v4128_v17 = vpack.c.bf16 %v10278_v34, %v10278_v34 }
 0x465   :  { %v2802_v58 = vld [vmem:[#allocation2 + $0x38] sm:$0xf]  ;;  %v2998_v45 = vrot.slane %v10337_v5, 4  ;;  %v10352_v47 = vld [vmem:[#allocation2 + $0x28] sm:$0xf]  ;;  %14671 = vst [vmem:[#allocation34_spill] sm:$0xff] %v10366_v11  ;;  %v2936_v53 = vmul.bf16 %v10371_v10, %v2902_v51  ;;  %v2653_v5 = vmul.bf16 %v10366_v11, %v2584_v32 }
 0x466   :  { %14667 = vst [vmem:[#allocation21_spill] sm:$0xff] %v10352_v47  ;;  %v10354_v27 = vld [vmem:[#allocation2 + $0x28] sm:$0xf]  ;;  %2809 = vst.msk [vmem:[#allocation3 + $0xa0] sm:$0xf] %vm2385_vm15, %v2802_v58 }
 0x467   :  { %2550 = vrot.lane.b32.xlu0 %v2541_v49, %s8194_s14  ;;  %2495 = vrot.lane.b32.xlu1 %v2479_v57, %s8186_s0  ;;  %14668 = vst [vmem:[#allocation30_spill] sm:$0xff] %v10354_v27  ;;  %v10359_v63 = vld [vmem:[#allocation2 + $0x28] sm:$0xf]  ;;  %v10377_v20 = vld [vmem:[#allocation2 + $0x20] sm:$0xf] }
 0x468   :  { %14669 = vst [vmem:[#allocation27_spill] sm:$0xff] %v10359_v63  ;;  %v10361_v59 = vld [vmem:[#allocation2 + $0x28] sm:$0xf]  ;;  %v2901_v8 = vld [vmem:[#allocation2 + $0x18] sm:$0xf] }
 0x469   :  { %14670 = vst [vmem:[#allocation47_spill] sm:$0xff] %v10361_v59  ;;  %v2903_v21 = vld [vmem:[#allocation2 + $0x28] sm:$0xf]  ;;  %v10383_v48 = vld [vmem:[#allocation2 + $0x18] sm:$0xf]  ;;  %v4130_v59 = vpack.c.bf16 %v10282_v36, %v10282_v36  ;;  %v10426_v36 = vsel %vm869_vm6, %v10110_v46, %v10104_v41  ;;  %v4125_v46 = vpack.c.bf16 %v10262_v55, %v10262_v55 }
 0x46a   :  { %v10373_v49 = vld [vmem:[#allocation2 + $0x28] sm:$0xf]  ;;  %v10389_v58 = vld [vmem:[#allocation2 + $0x38] sm:$0xf]  ;;  %v10393_v6 = vld [vmem:[#allocation2 + $0x10] sm:$0xf]  ;;  %v2937_v41 = vmul.bf16 %v10426_v36, %v2903_v21  ;;  %v4129_v21 = vpack.c.bf16 %v10280_v42, %v10280_v42 }
 0x46b   :  { %2673 = vrot.lane.b32.xlu0 %v2655_v54, %s8185_s27  ;;  %2671 = vrot.lane.b32.xlu1 %v2654_v56, %s8185_s27  ;;  %v10375_v57 = vld [vmem:[#allocation2 + $0x28] sm:$0xf]  ;;  %v10385_v54 = vld [vmem:[#allocation2 + $0x18] sm:$0xf]  ;;  %v10395_v47 = vld [vmem:[#allocation2 + $0x10] sm:$0xf] }
 0x46c   :  { %v10387_v56 = vld [vmem:[#allocation2 + $0x38] sm:$0xf]  ;;  %14673 = vst [vmem:[#allocation56_spill] sm:$0xff] %v10395_v47  ;;  %v10397_v34 = vld [vmem:[#allocation2 + $0x20] sm:$0xf]  ;;  %v2999_v42 = vrot.slane %v10373_v49, 4 }
 0x46d   :  { %v10391_v63 = vld [vmem:[#allocation2 + $0x38] sm:$0xf]  ;;  %14674 = vst [vmem:[#allocation37_spill] sm:$0xff] %v10397_v34  ;;  %v10399_v51 = vld [vmem:[#allocation2 + $0x10] sm:$0xf]  ;;  %v2997_v49 = vrot.slane %v10385_v54, 4 }
 0x46e   :  { %14672 = vst [vmem:[#allocation31_spill] sm:$0xff] %v10391_v63  ;;  %14675 = vst [vmem:[#allocation50_spill] sm:$0xff] %v10399_v51  ;;  %v10401_v32 = vld [vmem:[#allocation2 + $0x28] sm:$0xf]  ;;  %v10417_v51 = vld [vmem:[#allocation2 + $0x10] sm:$0xf] }
 0x46f   :  { %14676 = vst [vmem:[#allocation36_spill] sm:$0xff] %v10401_v32  ;;  %2953 = vrot.lane.b32.xlu0 %v2936_v53, %s8182_s10  ;;  %2669 = vrot.lane.b32.xlu1 %v2653_v5, %s8185_s27  ;;  %v10409_v27 = vld [vmem:[#allocation2 + $0x8] sm:$0xf]  ;;  %14677 = vst [vmem:[#allocation48_spill] sm:$0xff] %v10417_v51  ;;  %v10419_v32 = vld [vmem:[#allocation2 + $0x38] sm:$0xf]  ;;  %v4126_v53 = vpack.c.bf16 %v10264_v35, %v10264_v35 }
 0x470   :  { %v10411_v11 = vld [vmem:[#allocation2 + $0x8] sm:$0xf]  ;;  %4135 = vst [vmem:[#allocation2 + $0x28] sm:$0xf] %v4128_v17  ;;  %14678 = vst [vmem:[#allocation19_spill] sm:$0xff] %v10419_v32 }
 0x471   :  { %v10413_v25 = vld [vmem:[#allocation2 + $0x8] sm:$0xf]  ;;  %v10421_v3 = vld [vmem:[#allocation2 + $0x18] sm:$0xf]  ;;  %v10430_v5 = vld [vmem:[#allocation2 + $0x30] sm:$0xf] }
 0x472   :  { %v10415_v34 = vld [vmem:[#allocation2 + $0x8] sm:$0xf]  ;;  %14679 = vst [vmem:[#allocation45_spill] sm:$0xff] %v10421_v3  ;;  %v10432_v63 = vld [vmem:[#allocation2 + $0x30] sm:$0xf] }
 0x473   :  { %14680 = vst [vmem:[#allocation53_spill] sm:$0xff] %v10432_v63  ;;  %v10434_v47 = vld [vmem:[#allocation2 + $0x30] sm:$0xf]  ;;  %v10438_v17 = vld [vmem:[#allocation2 + $0x8] sm:$0xf]  ;;  %3008 = vrot.lane.b32.xlu0 %v2998_v45, %s8189_s26  ;;  %2955 = vrot.lane.b32.xlu1 %v2937_v41, %s8182_s10  ;;  %v10482_v41 = vsel %vm738_vm5, %v10102_v43, %v10096_v2 }
 0x474   :  { %14681 = vst [vmem:[#allocation51_spill] sm:$0xff] %v10434_v47  ;;  %v10436_v51 = vld [vmem:[#allocation2 + $0x30] sm:$0xf]  ;;  %14682 = vst [vmem:[#allocation57_spill] sm:$0xff] %v10438_v17  ;;  %v10440_v32 = vld [vmem:[#allocation2 + $0x38] sm:$0xf]  ;;  %v4124_v17 = vpack.c.bf16 %v10251_v19, %v10251_v19  ;;  %v10473_v19 = vsel %vm869_vm6, %v10114_v60, %v10100_v14  ;;  %v10491_v14 = vsel %vm1089_vm7, %v10112_v38, %v10122_v50 }
 0x475   :  { %14683 = vst [vmem:[#allocation14_spill] sm:$0xff] %v10440_v32  ;;  %v10442_v3 = vld [vmem:[#allocation2 + $0x20] sm:$0xf]  ;;  %v10447_v35 = vld [vmem:[#allocation2 + $0x8] sm:$0xf]  ;;  %v3075_v54 = vmul.bf16 %v10491_v14, %v10375_v57 }
 0x476   :  { %14684 = vst [vmem:[#allocation54_spill] sm:$0xff] %v10442_v3  ;;  %4137 = vst.msk [vmem:[#allocation2 + $0x38] sm:$0xf] %vm2385_vm15, %v4130_v59  ;;  %v10450_v63 = vld [vmem:[#allocation2 + $0x8] sm:$0xf] }
 0x477   :  { %4134 = vst [vmem:[#allocation2 + $0x20] sm:$0xf] %v4127_v0  ;;  %v10452_v47 = vld [vmem:[#allocation2 + $0x18] sm:$0xf]  ;;  %v10456_v32 = vld [vmem:[#allocation2 + $0x30] sm:$0xf]  ;;  %3010 = vrot.lane.b32.xlu1 %v2999_v42, %s8189_s26 }
 0x478   :  { %4133 = vst [vmem:[#allocation2 + $0x18] sm:$0xf] %v4126_v53  ;;  %v10458_v3 = vld [vmem:[#allocation2 + $0x10] sm:$0xf]  ;;  %v10466_v0 = vld [vmem:[#allocation2 + $0x8] sm:$0xf] }
 0x479   :  { %v10460_v55 = vld [vmem:[#allocation2 + $0x30] sm:$0xf]  ;;  %4132 = vst [vmem:[#allocation2 + $0x10] sm:$0xf] %v4125_v46  ;;  %4131 = vst [vmem:[#allocation2 + $0x8] sm:$0xf] %v4124_v17 }
 0x47a   :  { %14685 = vst [vmem:[#allocation9_spill] sm:$0xff] %v10460_v55  ;;  %v10468_v59 = vld [vmem:[#allocation2 + $0x30] sm:$0xf]  ;;  %v2935_v55 = vmul.bf16 %v10473_v19, %v2901_v8  ;;  %v10484_v45 = vld [vmem:[#allocation2 + $0x28] sm:$0xf] }
 0x47b   :  { %14686 = vst [vmem:[#allocation11_spill] sm:$0xff] %v10468_v59  ;;  %v10475_v53 = vld [vmem:[#allocation2 + $0x30] sm:$0xf]  ;;  %v10486_v46 = vld [vmem:[#allocation2 + $0x28] sm:$0xf]  ;;  %3006 = vrot.lane.b32.xlu1 %v2997_v49, %s8189_s26  ;;  %v10541_v49 = vsel %vm182_vm8, %v10116_v40, %v10126_v44  ;;  %v10580_v59 = vsel %vm374_vm3, %v10124_v28, %v10136_v7  ;;  %v10613_v7 = vsel %vm182_vm8, %v10132_v16, %v10082_v30 }
 0x47c   :  { %14687 = vst [vmem:[#allocation13_spill] sm:$0xff] %v10475_v53  ;;  %4136 = vst [vmem:[#allocation2 + $0x30] sm:$0xf] %v4129_v21  ;;  %2951 = vrot.lane.b32.xlu0 %v2935_v55, %s8182_s10  ;;  %v10499_v17 = vld [vmem:[#allocation2 + $0x28] sm:$0xf]  ;;  %v10504_v21 = vsel %vm1089_vm7, %v10108_v62, %v10118_v29  ;;  %v2483_v57 = vmul.bf16 %v10541_v49, %v10436_v51  ;;  %v2657_v51 = vmul.bf16 %v10580_v59, %v10456_v32 }
 0x47d   :  { %14688 = vst [vmem:[#allocation12_spill] sm:$0xff] %v10486_v46  ;;  %v3073_v42 = vmul.bf16 %v10504_v21, %v10383_v48  ;;  %v10528_v48 = vsel %vm1089_vm7, %v10118_v29, %v10112_v38  ;;  %14690 = vst [vmem:[#allocation10_spill] sm:$0xff] %v10541_v49  ;;  %v2545_v29 = vrot.slane %v10430_v5, 4  ;;  %v10564_v5 = vsel %vm332_vm4, %v10076_v37, %v10086_v24  ;;  %v10608_v32 = vld [vmem:[#allocation2 + $0x38] sm:$0xf] }
 0x47e   :  { %v10506_v53 = vld [vmem:[#allocation2 + $0x20] sm:$0xf]  ;;  %14689 = vst [vmem:[#allocation18_spill] sm:$0xff] %v10528_v48  ;;  %v3074_v55 = vmul.bf16 %v10528_v48, %v10377_v20  ;;  %14691 = vst [vmem:[#allocation23_spill] sm:$0xff] %v10580_v59  ;;  %v2540_v46 = vrot.slane %v10409_v27, 4  ;;  %v10626_v27 = vsel %vm332_vm4, %v10120_v1, %v10130_v15  ;;  %v10631_v30 = vsel %vm738_vm5, %v10128_v9, %v10143_v39 }
 0x47f   :  { %v10508_v50 = vld [vmem:[#allocation2 + $0x20] sm:$0xf]  ;;  %v10515_v8 = vld [vmem:[#allocation2 + $0x18] sm:$0xf]  ;;  %14695 = vst [vmem:[#allocation62_spill] sm:$0xff] %v10608_v32 }
 0x480   :  { %3089 = vrot.lane.b32.xlu0 %v3073_v42, %s8187_s24  ;;  %3091 = vrot.lane.b32.xlu1 %v3074_v55, %s8187_s24  ;;  %v10536_v2 = vld [vmem:[#allocation2 + $0x18] sm:$0xf]  ;;  %v10553_v55 = vsel %vm332_vm4, %v10086_v24, %v10080_v13  ;;  %v10557_v44 = vld [vmem:[#allocation2 + $0x20] sm:$0xf]  ;;  %v10575_v42 = vsel %vm738_vm5, %v10092_v33, %v10102_v43  ;;  %v3001_v43 = vrot.slane %v10387_v56, 4  ;;  %v2996_v24 = vrot.slane %v10393_v6, 4 }
 0x481   :  { %v10548_v20 = vld [vmem:[#allocation2 + $0x18] sm:$0xf]  ;;  %v10593_v40 = vld [vmem:[#allocation2 + $0x20] sm:$0xf]  ;;  %v2478_v6 = vmul.bf16 %v10613_v7, %v10411_v11 }
 0x482   :  { %v10570_v38 = vld [vmem:[#allocation2 + $0x18] sm:$0xf]  ;;  %14692 = vst [vmem:[#allocation59_spill] sm:$0xff] %v10593_v40  ;;  %v10653_v9 = vld [vmem:[#allocation2 + $0x20] sm:$0xf] }
 0x483   :  { %v10597_v28 = vld [vmem:[#allocation2 + $0x30] sm:$0xf]  ;;  %v10635_v16 = vld [vmem:[#allocation2 + $0x18] sm:$0xf]  ;;  %14699 = vst [vmem:[#allocation66_spill] sm:$0xff] %v10653_v9 }
 0x484   :  { %3093 = vrot.lane.b32.xlu0 %v3075_v54, %s8187_s24  ;;  %v10559_v54 = vld [vmem:[#allocation2 + $0x20] sm:$0xf]  ;;  %2503 = vrot.lane.b32.xlu1 %v2483_v57, %s8186_s0  ;;  %14693 = vst [vmem:[#allocation60_spill] sm:$0xff] %v10597_v28  ;;  %v10637_v56 = vld [vmem:[#allocation2 + $0x18] sm:$0xf] }
 0x485   :  { %v10586_v57 = vld [vmem:[#allocation2 + $0x20] sm:$0xf]  ;;  %v10641_v32 = vld [vmem:[#allocation2 + $0x38] sm:$0xf]  ;;  %v10643_v49 = vld [vmem:[#allocation2 + $0x30] sm:$0xf] }
 0x486   :  { %14697 = vst [vmem:[#allocation64_spill] sm:$0xff] %v10641_v32  ;;  %14698 = vst [vmem:[#allocation65_spill] sm:$0xff] %v10643_v49  ;;  %v10645_v28 = vld [vmem:[#allocation2 + $0x18] sm:$0xf]  ;;  %v10671_v9 = vld [vmem:[#allocation2 + $0x30] sm:$0xf] }
 0x487   :  { %v10662_v59 = vld [vmem:[#allocation2 + $0x18] sm:$0xf]  ;;  %14704 = vst [vmem:[#allocation71_spill] sm:$0xff] %v10671_v9  ;;  %v10673_v49 = vld [vmem:[#allocation2 + $0x30] sm:$0xf] }
 0x488   :  { %2558 = vrot.lane.b32.xlu0 %v2545_v29, %s8194_s14  ;;  %v10602_v29 = vsel %vm869_vm6, %v10150_v61, %v10138_v22  ;;  %2677 = vrot.lane.b32.xlu1 %v2657_v51, %s8185_s27  ;;  %v10617_v22 = vld [vmem:[#allocation2 + $0x20] sm:$0xf]  ;;  %v10658_v51 = vsel %vm1089_vm7, %v10165_v23, %v10171_v18  ;;  %v10667_v39 = vld [vmem:[#allocation2 + $0x18] sm:$0xf]  ;;  %14705 = vst [vmem:[#allocation72_spill] sm:$0xff] %v10673_v49 }
 0x489   :  { %14694 = vst [vmem:[#allocation61_spill] sm:$0xff] %v10602_v29  ;;  %v10647_v61 = vld [vmem:[#allocation2 + $0x20] sm:$0xf]  ;;  %14700 = vst [vmem:[#allocation67_spill] sm:$0xff] %v10658_v51  ;;  %v10669_v11 = vld [vmem:[#allocation2 + $0x38] sm:$0xf] }
 0x48a   :  { %14702 = vst [vmem:[#allocation69_spill] sm:$0xff] %v10667_v39  ;;  %14703 = vst [vmem:[#allocation70_spill] sm:$0xff] %v10669_v11  ;;  %v10675_v18 = vld [vmem:[#allocation2 + $0x38] sm:$0xf]  ;;  %v10682_v32 = vld [vmem:[#allocation2 + $0x28] sm:$0xf] }
 0x48b   :  { %14706 = vst [vmem:[#allocation73_spill] sm:$0xff] %v10675_v18  ;;  %v10684_v23 = vld [vmem:[#allocation2 + $0x28] sm:$0xf]  ;;  %v10688_v48 = vld [vmem:[#allocation2 + $0x30] sm:$0xf] }
 0x48c   :  { %2548 = vrot.lane.b32.xlu0 %v2540_v46, %s8194_s14  ;;  %v10621_v46 = vld [vmem:[#allocation2 + $0x30] sm:$0xf]  ;;  %2493 = vrot.lane.b32.xlu1 %v2478_v6, %s8186_s0  ;;  %v2939_v6 = vmul.bf16 %v10602_v29, %v10389_v58  ;;  %v10686_v39 = vld [vmem:[#allocation2 + $0x28] sm:$0xf]  ;;  %14707 = vst [vmem:[#allocation74_spill] sm:$0xff] %v10688_v48  ;;  %v14723_v29 = vld [vmem:[#allocation50_spill] sm:$0xff] }
 0x48d   :  { %14696 = vst [vmem:[#allocation63_spill] sm:$0xff] %v10621_v46  ;;  %v10664_v46 = vld [vmem:[#allocation2] sm:$0xff]  ;;  %v10690_v9 = vld [vmem:[#allocation2 + $0x30] sm:$0xf]  ;;  %v10694_v18 = vld [vmem:[#allocation2 + $0x38] sm:$0xf] }
 0x48e   :  { %14701 = vst [vmem:[#allocation68_spill] sm:$0xff] %v10664_v46  ;;  %5709 = vst [vmem:[#allocation2 + $0x20] sm:$0xff] %v10664_v46  ;;  %v10692_v49 = vld [vmem:[#allocation2 + $0x30] sm:$0xf]  ;;  %v10696_v40 = vld [vmem:[#allocation2 + $0x38] sm:$0xf] }
 0x48f   :  { %5708 = vst [vmem:[#allocation2 + $0x18] sm:$0xff] %v10664_v46  ;;  %14708 = vst [vmem:[#allocation75_spill] sm:$0xff] %v10690_v9  ;;  %v10702_v58 = vld [vmem:[#allocation2 + $0x28] sm:$0xf]  ;;  %v14720_v48 = vld [vmem:[#allocation37_spill] sm:$0xff] }
 0x490   :  { %3014 = vrot.lane.b32.xlu0 %v3001_v43, %s8189_s26  ;;  %14709 = vst [vmem:[#allocation76_spill] sm:$0xff] %v10692_v49  ;;  %14710 = vst [vmem:[#allocation77_spill] sm:$0xff] %v10694_v18  ;;  %v10698_v43 = vld [vmem:[#allocation2 + $0x30] sm:$0xf]  ;;  %2959 = vrot.lane.b32.xlu1 %v2939_v6, %s8182_s10  ;;  %v10704_v11 = vld [vmem:[#allocation2 + $0x28] sm:$0xf] }
 0x491   :  { %14711 = vst [vmem:[#allocation78_spill] sm:$0xff] %v10696_v40  ;;  %14712 = vst [vmem:[#allocation79_spill] sm:$0xff] %v10698_v43  ;;  %v10709_v49 = vld [vmem:[#allocation2 + $0x28] sm:$0xf]  ;;  %v14717_v43 = vld [vmem:[#allocation29_spill] sm:$0xff] }
 0x492   :  { %14713 = vst [vmem:[#allocation80_spill] sm:$0xff] %v10702_v58  ;;  %14714 = vst [vmem:[#allocation81_spill] sm:$0xff] %v10704_v11  ;;  %v14716_v18 = vld [vmem:[#allocation28_spill] sm:$0xff] }
 0x493   :  { %5712 = vst.msk [vmem:[#allocation2 + $0x38] sm:$0xff] %vm58_vm2, %v10664_v46  ;;  %5711 = vst [vmem:[#allocation2 + $0x30] sm:$0xff] %v10664_v46  ;;  %v10714_v9 = vsel %vm374_vm3, %v14716_v18, %v10098_v31  ;;  %v14718_v40 = vld [vmem:[#allocation56_spill] sm:$0xff]  ;;  %v14719_v18 = vld [vmem:[#allocation31_spill] sm:$0xff] }
 0x494   :  { %3004 = vrot.lane.b32.xlu0 %v2996_v24, %s8189_s26  ;;  %14715 = vst [vmem:[#allocation82_spill] sm:$0xff] %v10709_v49  ;;  %5710 = vst [vmem:[#allocation2 + $0x28] sm:$0xff] %v10664_v46  ;;  %v2995_v24 = vrot.slane %v10413_v25, 4  ;;  %v2652_v6 = vmul.bf16 %v10714_v9, %v10415_v34  ;;  %v10725_v49 = vsel %vm1089_vm7, %v14717_v43, %v10108_v62  ;;  %v14721_v34 = vld [vmem:[#allocation41_spill] sm:$0xff]  ;;  %v14722_v62 = vld [vmem:[#allocation40_spill] sm:$0xff] }
 0x495   :  { %v3072_v31 = vmul.bf16 %v10725_v49, %v14718_v40  ;;  %v3077_v46 = vmul.bf16 %v10658_v51, %v14719_v18  ;;  %v2739_v25 = vmul.bf16 %v10553_v55, %v14720_v48  ;;  %v14724_v51 = vld [vmem:[#allocation48_spill] sm:$0xff] }
 0x496   :  { %2667 = vrot.lane.b32.xlu1 %v2652_v6, %s8185_s27  ;;  %v10743_v6 = vsel %vm869_vm6, %v14722_v62, %v10114_v60  ;;  %v14726_v11 = vld [vmem:[#allocation36_spill] sm:$0xff] }
 0x497   :  { %v2755_v40 = vrot.slane %v2739_v25, 4  ;;  %v2934_v18 = vmul.bf16 %v10743_v6, %v14723_v29  ;;  %v2848_v58 = vmul.bf16 %v10482_v41, %v14726_v11  ;;  %v3071_v29 = vmul.bf16 %v14717_v43, %v10447_v35  ;;  %v14731_v35 = vld [vmem:[#allocation38_spill] sm:$0xff] }
 0x498   :  { %3002 = vrot.lane.b32.xlu0 %v2995_v24, %s8189_s26  ;;  %v10738_v24 = vsel %vm332_vm4, %v14721_v34, %v10076_v37 }
 0x499   :  { %v2737_v48 = vmul.bf16 %v10738_v24, %v14724_v51  ;;  %v2862_v60 = vrot.slane %v2848_v58, 4  ;;  %v14727_v51 = vld [vmem:[#allocation19_spill] sm:$0xff] }
 0x49a   :  { %3097 = vrot.lane.b32.xlu1 %v3077_v46, %s8187_s24  ;;  %v2742_v25 = vmul.bf16 %v10130_v15, %v14727_v51  ;;  %v10774_v51 = vsel %vm738_vm5, %v14731_v35, %v10092_v33  ;;  %v14733_v33 = vld [vmem:[#allocation49_spill] sm:$0xff] }
 0x49b   :  { %v2753_v46 = vrot.slane %v2737_v48, 4 }
 0x49c   :  { %3087 = vrot.lane.b32.xlu0 %v3072_v31, %s8187_s24  ;;  %v14725_v31 = vld [vmem:[#allocation57_spill] sm:$0xff]  ;;  %v2758_v48 = vrot.slane %v2742_v25, 4 }
 0x49d   :  { %v2933_v37 = vmul.bf16 %v14722_v62, %v14725_v31  ;;  %v14729_v31 = vld [vmem:[#allocation14_spill] sm:$0xff] }
 0x49e   :  { %2949 = vrot.lane.b32.xlu1 %v2934_v18, %s8182_s10 }
 0x4a0   :  { %2767 = vrot.lane.b32.xlu0 %v2755_v40, %s8184_s25  ;;  %v14728_v40 = vld [vmem:[#allocation45_spill] sm:$0xff] }
 0x4a1   :  { %v2738_v18 = vmul.bf16 %v10564_v5, %v14728_v40 }
 0x4a2   :  { %2947 = vrot.lane.b32.xlu1 %v2933_v37, %s8182_s10  ;;  %v14730_v37 = vld [vmem:[#allocation54_spill] sm:$0xff] }
 0x4a3   :  { %v2754_v11 = vrot.slane %v2738_v18, 4  ;;  %v2847_v58 = vmul.bf16 %v10575_v42, %v14730_v37  ;;  %v14734_v37 = vld [vmem:[#allocation9_spill] sm:$0xff] }
 0x4a4   :  { %2763 = vrot.lane.b32.xlu0 %v2753_v46, %s8184_s25  ;;  %v2850_v46 = vmul.bf16 %v10631_v30, %v14729_v31 }
 0x4a5   :  { %v2861_v40 = vrot.slane %v2847_v58, 4 }
 0x4a6   :  { %3085 = vrot.lane.b32.xlu1 %v3071_v29, %s8187_s24  ;;  %v2864_v25 = vrot.slane %v2850_v46, 4 }
 0x4a8   :  { %2873 = vrot.lane.b32.xlu0 %v2862_v60, %s8183_s21  ;;  %v14732_v60 = vld [vmem:[#allocation35_spill] sm:$0xff] }
 0x4a9   :  { %v10779_v29 = vsel %vm332_vm4, %v14732_v60, %v14721_v34  ;;  %v2844_v60 = vmul.bf16 %v14733_v33, %v10466_v0  ;;  %v14736_v0 = vld [vmem:[#allocation34_spill] sm:$0xff] }
 0x4aa   :  { %2765 = vrot.lane.b32.xlu1 %v2754_v11, %s8184_s25  ;;  %v2736_v18 = vmul.bf16 %v10779_v29, %v10450_v63  ;;  %v10790_v11 = vsel %vm738_vm5, %v14733_v33, %v14731_v35  ;;  %v2741_v63 = vmul.bf16 %v10626_v27, %v14734_v37  ;;  %v4194_v37 = vld [vmem:[#allocation2 + $0x8] sm:$0xf] }
 0x4ab   :  { %v2845_v46 = vmul.bf16 %v10790_v11, %v10458_v3  ;;  %v2858_v35 = vrot.slane %v2844_v60, 4  ;;  %v4249_v60 = vld [vmem:[#allocation2 + $0x8] sm:$0xf] }
 0x4ac   :  { %2773 = vrot.lane.b32.xlu0 %v2758_v48, %s8184_s25  ;;  %v2846_v48 = vmul.bf16 %v10774_v51, %v10452_v47  ;;  %v2752_v31 = vrot.slane %v2736_v18, 4  ;;  %v2757_v58 = vrot.slane %v2741_v63, 4  ;;  %v4195_v18 = vld [vmem:[#allocation2 + $0x10] sm:$0xf] }
 0x4ad   :  { %v2859_v47 = vrot.slane %v2845_v46, 4  ;;  %v4250_v46 = vld [vmem:[#allocation2 + $0x10] sm:$0xf] }
 0x4ae   :  { %2871 = vrot.lane.b32.xlu1 %v2861_v40, %s8183_s21  ;;  %v2860_v34 = vrot.slane %v2846_v48, 4  ;;  %v14735_v40 = vld [vmem:[#allocation33_spill] sm:$0xff]  ;;  %v4139_v48 = vld [vmem:[#allocation2 + $0x8] sm:$0xf]  ;;  %v4257_v63 = vmul.bf16 %v4250_v46, %v14736_v0 }
 0x4af   :  { %v4305_v0 = vld [vmem:[#allocation2 + $0x10] sm:$0xf] }
 0x4b0   :  { %2877 = vrot.lane.b32.xlu0 %v2864_v25, %s8183_s21  ;;  %v4140_v25 = vld [vmem:[#allocation2 + $0x10] sm:$0xf] }
 0x4b1   :  { %v4147_v3 = vmul.bf16 %v4140_v25, %v14735_v40 }
 0x4b2   :  { %2869 = vrot.lane.b32.xlu1 %v2860_v34, %s8183_s21  ;;  %v4146_v34 = vmul.bf16 %v4139_v48, %v10613_v7  ;;  %v4504_v7 = vld [vmem:[#allocation2 + $0x10] sm:$0xf] }
 0x4b3   :  { %v4518_v40 = vrot.slane %v4504_v7, 4 }
 0x4b4   :  { %2761 = vrot.lane.b32.xlu0 %v2752_v31, %s8184_s25  ;;  %v4209_v31 = vrot.slane %v4195_v18, 4  ;;  %v4448_v18 = vld [vmem:[#allocation2 + $0x8] sm:$0xf] }
 0x4b5   :  { %v4455_v48 = vmul.bf16 %v4448_v18, %v14722_v62 }
 0x4b6   :  { %2771 = vrot.lane.b32.xlu1 %v2757_v58, %s8184_s25  ;;  %v4449_v58 = vld [vmem:[#allocation2 + $0x10] sm:$0xf] }
 0x4b7   :  { %v4456_v25 = vmul.bf16 %v4449_v58, %v10743_v6  ;;  %v4519_v6 = vrot.slane %v10637_v56, 4 }
 0x4b8   :  { %2867 = vrot.lane.b32.xlu0 %v2859_v47, %s8183_s21  ;;  %v4208_v47 = vrot.slane %v4194_v37, 4  ;;  %v4559_v37 = vld [vmem:[#allocation2 + $0x10] sm:$0xf] }
 0x4b9   :  { %v4566_v62 = vmul.bf16 %v4559_v37, %v10725_v49 }
 0x4ba   :  { %2865 = vrot.lane.b32.xlu1 %v2858_v35, %s8183_s21  ;;  %v4256_v35 = vmul.bf16 %v4249_v60, %v10714_v9  ;;  %v4503_v9 = vld [vmem:[#allocation2 + $0x8] sm:$0xf]  ;;  %v4313_v60 = vmul.bf16 %v4305_v0, %v10738_v24 }
 0x4bb   :  { %v4517_v46 = vrot.slane %v4503_v9, 4 }
 0x4bc   :  { %4163 = vrot.lane.b32.xlu0 %v4147_v3, %s8186_s0  ;;  %v4457_v3 = vmul.bf16 %v10635_v16, %v10473_v19 }
 0x4be   :  { %4161 = vrot.lane.b32.xlu1 %v4146_v34, %s8186_s0 }
 0x4c0   :  { %4218 = vrot.lane.b32.xlu0 %v4209_v31, %s8194_s14  ;;  %v4558_v31 = vld [vmem:[#allocation2 + $0x8] sm:$0xf] }
 0x4c1   :  { %v4565_v34 = vmul.bf16 %v4558_v31, %v14717_v43  ;;  %v14737_v43 = vmul.bf16 %v10515_v8, %v10504_v21  ;;  %v14739_v8 = vmul.bf16 %v10536_v2, %v10316_v12  ;;  %v4387_v21 = vld [vmem:[#allocation2 + $0x10] sm:$0xf]  ;;  %v4386_v2 = vld [vmem:[#allocation2 + $0x8] sm:$0xf] }
 0x4c2   :  { %4216 = vrot.lane.b32.xlu1 %v4208_v47, %s8194_s14  ;;  %v4393_v9 = vmul.bf16 %v4386_v2, %v14733_v33 }
 0x4c4   :  { %4273 = vrot.lane.b32.xlu0 %v4257_v63, %s8185_s27  ;;  %v4304_v63 = vld [vmem:[#allocation2 + $0x8] sm:$0xf] }
 0x4c5   :  { %v4312_v49 = vmul.bf16 %v4304_v63, %v10779_v29  ;;  %v4329_v29 = vrot.slane %v4313_v60, 4  ;;  %v4210_v63 = vrot.slane %v10662_v59, 4  ;;  %v14741_v59 = vmul.bf16 %v10484_v45, %v10426_v36 }
 0x4c6   :  { %4271 = vrot.lane.b32.xlu1 %v4256_v35, %s8185_s27  ;;  %v14738_v35 = vmul.bf16 %v10506_v53, %v10321_v52  ;;  %v4394_v53 = vmul.bf16 %v4387_v21, %v10790_v11  ;;  %v14744_v36 = vmul.bf16 %v10559_v54, %v10371_v10  ;;  %v4521_v54 = vrot.slane %v10682_v32, 4 }
 0x4c8   :  { %4471 = vrot.lane.b32.xlu0 %v4456_v25, %s8182_s10  ;;  %v4408_v31 = vrot.slane %v4394_v53, 4 }
 0x4ca   :  { %4473 = vrot.lane.b32.xlu1 %v4457_v3, %s8182_s10  ;;  %v4395_v3 = vmul.bf16 %v10645_v28, %v10774_v51 }
 0x4cc   :  { %4526 = vrot.lane.b32.xlu0 %v4518_v40, %s8189_s26  ;;  %v4328_v40 = vrot.slane %v4312_v49, 4 }
 0x4ce   :  { %4528 = vrot.lane.b32.xlu1 %v4519_v6, %s8189_s26  ;;  %v4409_v6 = vrot.slane %v4395_v3, 4  ;;  %v14747_v3 = vmul.bf16 %v10570_v38, %v10564_v5  ;;  %v14748_v38 = vmul.bf16 %v10586_v57, %v10575_v42  ;;  %v4520_v42 = vrot.slane %v10647_v61, 4  ;;  %v14752_v61 = vld [vmem:[#allocation47_spill] sm:$0xff] }
 0x4cf   :  { %v14750_v57 = vmul.bf16 %v10499_v17, %v10491_v14  ;;  %v14753_v14 = vld [vmem:[#allocation46_spill] sm:$0xff] }
 0x4d0   :  { %4469 = vrot.lane.b32.xlu0 %v4455_v48, %s8182_s10  ;;  %v4410_v5 = vrot.slane %v14748_v38, 4 }
 0x4d1   :  { %v10826_v19 = vpop.permute.xlu0 %2499  ;;  %v2498_v16 = vpop.permute.xlu1 %2497 }
 0x4d2   :  { %4524 = vrot.lane.b32.xlu1 %v4517_v46, %s8189_s26  ;;  %v2508_v56 = vsel %vm1089_vm7, %v2498_v16, %v10826_v19  ;;  %v4211_v46 = vrot.slane %v10617_v22, 4  ;;  %v14740_v22 = vmul.bf16 %v10508_v50, %v10347_v4  ;;  %v14742_v50 = vmul.bf16 %v10548_v20, %v10342_v26  ;;  %v14745_v20 = vld [vmem:[#allocation12_spill] sm:$0xff] }
 0x4d3   :  { %2521 = vst [vmem:[#allocation3 + $0x18] sm:$0xf] %v2508_v56 }
 0x4d4   :  { %4579 = vrot.lane.b32.xlu0 %v4565_v34, %s8187_s24 }
 0x4d5   :  { %v10836_v47 = vpop.permute.xlu0 %2554  ;;  %v2553_v58 = vpop.permute.xlu1 %2552 }
 0x4d6   :  { %4581 = vrot.lane.b32.xlu1 %v4566_v62, %s8187_s24  ;;  %v2564_v25 = vsel %vm2560_vm0, %v2553_v58, %v10836_v47  ;;  %v4407_v62 = vrot.slane %v4393_v9, 4 }
 0x4d7   :  { %2577 = vst [vmem:[#allocation3 + $0x18] sm:$0xf0] %v2564_v25 }
 0x4d8   :  { %4583 = vrot.lane.b32.xlu0 %v14737_v43, %s8187_s24 }
 0x4d9   :  { %v10850_v7 = vpop.permute.xlu0 %2550  ;;  %v10852_v24 = vpop.permute.xlu1 %2495 }
 0x4da   :  { %4165 = vrot.lane.b32.xlu1 %v14739_v8, %s8186_s0  ;;  %v2563_v18 = vsel %vm2560_vm0, %v10850_v7, %v2553_v58  ;;  %v2507_v52 = vsel %vm1089_vm7, %v10852_v24, %v2498_v16 }
 0x4db   :  { %2576 = vst [vmem:[#allocation3 + $0x10] sm:$0xf0] %v2563_v18  ;;  %2520 = vst [vmem:[#allocation3 + $0x10] sm:$0xf] %v2507_v52  ;;  %v4330_v18 = vrot.slane %v14747_v3, 4  ;;  %v14749_v52 = vld [vmem:[#allocation55_spill] sm:$0xff] }
 0x4dc   :  { %4167 = vrot.lane.b32.xlu0 %v14738_v35, %s8186_s0  ;;  %v14743_v35 = vmul.bf16 %v10557_v44, %v10553_v55  ;;  %v7888_v53 = vunpack.i.l.bf16 %v14749_v52 }
 0x4dd   :  { %v10863_v12 = vpop.permute.xlu0 %2673  ;;  %v2672_v48 = vpop.permute.xlu1 %2671 }
 0x4de   :  { %4337 = vrot.lane.b32.xlu1 %v4328_v40, %s8184_s25  ;;  %v2682_v28 = vsel %vm869_vm6, %v2672_v48, %v10863_v12  ;;  %v3122_v51 = vld [vmem:[#allocation3 + $0x18] sm:$0xff]  ;;  %v4331_v8 = vrot.slane %v14743_v35, 4 }
 0x4df   :  { %2695 = vst [vmem:[#allocation3 + $0x50] sm:$0xf] %v2682_v28  ;;  %3245 = vmatprep.subr.bf16.mxu1 %v3122_v51  ;;  %v10958_v28 = vsel %vm332_vm4, %v10080_v13, %v10120_v1  ;;  %v14754_v1 = vld [vmem:[#allocation59_spill] sm:$0xff] }
 0x4e0   :  { %4339 = vrot.lane.b32.xlu0 %v4329_v29, %s8184_s25  ;;  %v14746_v29 = vmul.bf16 %v14745_v20, %v10482_v41 }
 0x4e1   :  { %v2954_v11 = vpop.permute.xlu0 %2953  ;;  %v10870_v34 = vpop.permute.xlu1 %2669 }
 0x4e2   :  { %4416 = vrot.lane.b32.xlu1 %v4408_v31, %s8183_s21  ;;  %v2681_v37 = vsel %vm869_vm6, %v10870_v34, %v2672_v48  ;;  %v3121_v16 = vld [vmem:[#allocation3 + $0x10] sm:$0xff]  ;;  %v4411_v40 = vrot.slane %v14746_v29, 4 }
 0x4e3   :  { %2694 = vst [vmem:[#allocation3 + $0x48] sm:$0xf] %v2681_v37  ;;  %3246 = vmatpush1.bf16.msra.mxu1 %v3121_v16  ;;  %v14757_v16 = vld [vmem:[#allocation44_spill] sm:$0xff]  ;;  %v14764_v29 = vld [vmem:[#allocation27_spill] sm:$0xff] }
 0x4e4   :  { %4418 = vrot.lane.b32.xlu0 %v4409_v6, %s8183_s21 }
 0x4e5   :  { %v3009_v33 = vpop.permute.xlu0 %3008  ;;  %v10877_v56 = vpop.permute.xlu1 %2955 }
 0x4e6   :  { %4414 = vrot.lane.b32.xlu1 %v4407_v62, %s8183_s21  ;;  %v2964_v0 = vsel %vm374_vm3, %v2954_v11, %v10877_v56  ;;  %v14758_v62 = vld [vmem:[#allocation16_spill] sm:$0xff] }
 0x4e7   :  { %2977 = vst [vmem:[#allocation3 + $0xc0] sm:$0xf] %v2964_v0 }
 0x4e8   :  { %4222 = vrot.lane.b32.xlu0 %v4211_v46, %s8194_s14  ;;  %v14755_v46 = vld [vmem:[#allocation18_spill] sm:$0xff] }
 0x4e9   :  { %v10889_v58 = vpop.permute.xlu1 %3010  ;;  %v14756_v37 = vmul.bf16 %v14754_v1, %v14755_v46  ;;  %v14773_v46 = vld [vmem:[#allocation80_spill] sm:$0xff] }
 0x4ea   :  { %4220 = vrot.lane.b32.xlu1 %v4210_v63, %s8194_s14  ;;  %v3020_v49 = vsel %vm606_vm10, %v3009_v33, %v10889_v58 }
 0x4eb   :  { %3033 = vst [vmem:[#allocation3 + $0xc0] sm:$0xf0] %v3020_v49 }
 0x4ec   :  { %4277 = vrot.lane.b32.xlu0 %v14740_v22, %s8185_s27 }
 0x4ed   :  { %v3007_v25 = vpop.permute.xlu1 %3006 }
 0x4ee   :  { %v10887_v43 = vpop.permute.xlu0 %2951  ;;  %4275 = vrot.lane.b32.xlu1 %v14742_v50, %s8185_s27  ;;  %v3019_v21 = vsel %vm606_vm10, %v3007_v25, %v3009_v33  ;;  %v2468_v33 = vsel %vm182_vm8, %v14758_v62, %v14757_v16  ;;  %v14761_v50 = vld [vmem:[#allocation42_spill] sm:$0xff]  ;;  %v14774_v62 = vld [vmem:[#allocation71_spill] sm:$0xff] }
 0x4ef   :  { %v2963_v60 = vsel %vm374_vm3, %v10887_v43, %v2954_v11  ;;  %3032 = vst [vmem:[#allocation3 + $0xb8] sm:$0xf0] %v3019_v21  ;;  %v2740_v11 = vmul.bf16 %v10958_v28, %v14752_v61  ;;  %v14763_v21 = vld [vmem:[#allocation24_spill] sm:$0xff]  ;;  %v4150_v20 = vmul.bf16 %v10684_v23, %v2468_v33 }
 0x4f0   :  { %2976 = vst [vmem:[#allocation3 + $0xb8] sm:$0xf] %v2963_v60  ;;  %4477 = vrot.lane.b32.xlu0 %v14741_v59, %s8182_s10  ;;  %v14760_v59 = vld [vmem:[#allocation32_spill] sm:$0xff] }
 0x4f1   :  { %v2756_v22 = vrot.slane %v2740_v11, 4  ;;  %v2642_v35 = vsel %vm374_vm3, %v14761_v50, %v14760_v59  ;;  %v14770_v11 = vld [vmem:[#allocation60_spill] sm:$0xff] }
 0x4f2   :  { %v10903_v4 = vpop.permute.xlu0 %3089  ;;  %4475 = vrot.lane.b32.xlu1 %v14744_v36, %s8182_s10  ;;  %v3092_v26 = vpop.permute.xlu1 %3091 }
 0x4f3   :  { %v3101_v55 = vsel %vm182_vm8, %v10903_v4, %v3092_v26 }
 0x4f4   :  { %4343 = vrot.lane.b32.xlu0 %v4331_v8, %s8184_s25  ;;  %3114 = vst [vmem:[#allocation3 + $0xf0] sm:$0xf] %v3101_v55  ;;  %v14762_v8 = vld [vmem:[#allocation20_spill] sm:$0xff] }
 0x4f5   :  { %v10994_v36 = vsel %vm738_vm5, %v14763_v21, %v14762_v8 }
 0x4f6   :  { %v10914_v45 = vpop.permute.xlu0 %3093  ;;  %4341 = vrot.lane.b32.xlu1 %v4330_v18, %s8184_s25  ;;  %v10930_v41 = vpop.permute.xlu1 %2503 }
 0x4f7   :  { %v3102_v44 = vsel %vm182_vm8, %v3092_v26, %v10914_v45  ;;  %2524 = vst.msk [vmem:[#allocation3 + $0x30] sm:$0xf] %vm2385_vm15, %v10930_v41 }
 0x4f8   :  { %3115 = vst [vmem:[#allocation3 + $0xf8] sm:$0xf] %v3102_v44  ;;  %4422 = vrot.lane.b32.xlu0 %v4411_v40, %s8183_s21  ;;  %v2656_v40 = vmul.bf16 %v2642_v35, %v14764_v29  ;;  %v14765_v44 = vld [vmem:[#allocation52_spill] sm:$0xff] }
 0x4fa   :  { %v10928_v10 = vpop.permute.xlu0 %2558  ;;  %4420 = vrot.lane.b32.xlu1 %v4410_v5, %s8183_s21  ;;  %v10943_v2 = vpop.permute.xlu1 %2677  ;;  %v14766_v5 = vld [vmem:[#allocation11_spill] sm:$0xff] }
 0x4fb   :  { %2581 = vst.msk [vmem:[#allocation3 + $0x30] sm:$0xf0] %vm2580_vm1, %v10928_v10 }
 0x4fc   :  { %4532 = vrot.lane.b32.xlu0 %v4521_v54, %s8189_s26  ;;  %2698 = vst.msk [vmem:[#allocation3 + $0x68] sm:$0xf] %vm2385_vm15, %v10943_v2 }
 0x4fe   :  { %v2549_v48 = vpop.permute.xlu0 %2548  ;;  %4530 = vrot.lane.b32.xlu1 %v4520_v42, %s8189_s26  ;;  %v2494_v31 = vpop.permute.xlu1 %2493  ;;  %v14767_v42 = vld [vmem:[#allocation22_spill] sm:$0xff] }
 0x4ff   :  { %v2561_v32 = vsel %vm2560_vm0, %v7888_v53, %v2549_v48  ;;  %v2562_v6 = vsel %vm2560_vm0, %v2549_v48, %v10850_v7  ;;  %v14751_v7 = vld [vmem:[#allocation30_spill] sm:$0xff]  ;;  %v2505_v17 = vsel %vm1089_vm7, %v14753_v14, %v2494_v31  ;;  %v2506_v13 = vsel %vm1089_vm7, %v2494_v31, %v10852_v24  ;;  %v14759_v24 = vld [vmem:[#allocation21_spill] sm:$0xff] }
 0x500   :  { %2574 = vst [vmem:[#allocation3] sm:$0xf0] %v2561_v32  ;;  %2575 = vst [vmem:[#allocation3 + $0x8] sm:$0xf0] %v2562_v6  ;;  %4587 = vrot.lane.b32.xlu0 %v14750_v57, %s8187_s24  ;;  %v2544_v9 = vrot.slane %v14751_v7, 4  ;;  %v2482_v49 = vmul.bf16 %v2468_v33, %v14759_v24  ;;  %v2849_v53 = vmul.bf16 %v10994_v36, %v14766_v5  ;;  %v4212_v32 = vrot.slane %v10686_v39, 4 }
 0x501   :  { %2518 = vst [vmem:[#allocation3] sm:$0xf] %v2505_v17  ;;  %2519 = vst [vmem:[#allocation3 + $0x8] sm:$0xf] %v2506_v13  ;;  %v14768_v57 = vld [vmem:[#allocation17_spill] sm:$0xff]  ;;  %v14771_v14 = vld [vmem:[#allocation10_spill] sm:$0xff] }
 0x502   :  { %v10961_v51 = vpop.permute.xlu0 %3014  ;;  %4585 = vrot.lane.b32.xlu1 %v14756_v37, %s8187_s24  ;;  %v10980_v63 = vpop.permute.xlu1 %2959  ;;  %v2863_v6 = vrot.slane %v2849_v53, 4  ;;  %v2924_v31 = vsel %vm869_vm6, %v14768_v57, %v14767_v42  ;;  %v14769_v39 = vld [vmem:[#allocation13_spill] sm:$0xff]  ;;  %v14772_v17 = vmul.bf16 %v14770_v11, %v14771_v14  ;;  %v4260_v37 = vmul.bf16 %v14773_v46, %v2642_v35  ;;  %v14787_v57 = vld [vmem:[#allocation64_spill] sm:$0xff] }
 0x503   :  { %3036 = vst.msk [vmem:[#allocation3 + $0xd8] sm:$0xf0] %vm2580_vm1, %v10961_v51  ;;  %v2938_v61 = vmul.bf16 %v2924_v31, %v14769_v39  ;;  %v4213_v33 = vrot.slane %v14774_v62, 4  ;;  %v14778_v35 = vld [vmem:[#allocation53_spill] sm:$0xff] }
 0x504   :  { %2556 = vrot.lane.b32.xlu0 %v2544_v9, %s8194_s14  ;;  %2980 = vst.msk [vmem:[#allocation3 + $0xd8] sm:$0xf] %vm2385_vm15, %v10980_v63  ;;  %v3000_v8 = vrot.slane %v14778_v35, 4  ;;  %v14790_v11 = vld [vmem:[#allocation25_spill] sm:$0xff] }
 0x505   :  { %v14791_v46 = vld [vmem:[#allocation65_spill] sm:$0xff] }
 0x506   :  { %v3005_v0 = vpop.permute.xlu0 %3004  ;;  %2501 = vrot.lane.b32.xlu1 %v2482_v49, %s8186_s0  ;;  %v14777_v49 = vld [vmem:[#allocation51_spill] sm:$0xff] }
 0x507   :  { %v3018_v60 = vsel %vm606_vm10, %v3005_v0, %v3007_v25 }
 0x508   :  { %3031 = vst [vmem:[#allocation3 + $0xb0] sm:$0xf0] %v3018_v60  ;;  %2769 = vrot.lane.b32.xlu0 %v2756_v22, %s8184_s25  ;;  %v2668_v26 = vpop.permute.xlu1 %2667  ;;  %v3120_v54 = vld [vmem:[#allocation3 + $0x8] sm:$0xff]  ;;  %v3119_v38 = vld [vmem:[#allocation3] sm:$0xff] }
 0x509   :  { %v2679_v3 = vsel %vm869_vm6, %v14765_v44, %v2668_v26  ;;  %v2680_v18 = vsel %vm869_vm6, %v2668_v26, %v10870_v34  ;;  %3192 = vmatprep.subr.bf16.mxu0 %v3120_v54  ;;  %v14779_v26 = vld [vmem:[#allocation81_spill] sm:$0xff]  ;;  %v14784_v54 = vld [vmem:[#allocation23_spill] sm:$0xff] }
 0x50a   :  { %v3003_v25 = vpop.permute.xlu0 %3002  ;;  %2692 = vst [vmem:[#allocation3 + $0x38] sm:$0xf] %v2679_v3  ;;  %2693 = vst [vmem:[#allocation3 + $0x40] sm:$0xf] %v2680_v18  ;;  %2675 = vrot.lane.b32.xlu1 %v2656_v40, %s8185_s27  ;;  %3193 = vmatpush1.bf16.msra.mxu0 %v3119_v38  ;;  %v14781_v44 = vld [vmem:[#allocation61_spill] sm:$0xff]  ;;  %v14783_v18 = vld [vmem:[#allocation63_spill] sm:$0xff] }
 0x50b   :  { %v3017_v55 = vsel %vm606_vm10, %v3003_v25, %v3005_v0  ;;  %v14776_v0 = vld [vmem:[#allocation39_spill] sm:$0xff]  ;;  %v14785_v38 = vmul.bf16 %v14783_v18, %v14784_v54  ;;  %v3143_v54 = vld [vmem:[#allocation3 + $0xc0] sm:$0xff] }
 0x50c   :  { %3030 = vst [vmem:[#allocation3 + $0xa8] sm:$0xf0] %v3017_v55  ;;  %4169 = vrot.lane.b32.xlu0 %v4150_v20, %s8186_s0  ;;  %v11007_v48 = vpop.permute.xlu1 %3097  ;;  %v4316_v20 = vmul.bf16 %v14779_v26, %v10958_v28  ;;  %v14780_v55 = vld [vmem:[#allocation62_spill] sm:$0xff] }
 0x50d   :  { %3118 = vst.msk [vmem:[#allocation3 + $0x110] sm:$0xf] %vm2385_vm15, %v11007_v48  ;;  %v14782_v3 = vmul.bf16 %v14780_v55, %v14781_v44  ;;  %v14797_v55 = vld [vmem:[#allocation69_spill] sm:$0xff]  ;;  %v14798_v44 = vld [vmem:[#allocation70_spill] sm:$0xff] }
 0x50e   :  { %v3088_v23 = vpop.permute.xlu0 %3087  ;;  %2875 = vrot.lane.b32.xlu1 %v2863_v6, %s8183_s21  ;;  %v4332_v53 = vrot.slane %v4316_v20, 4  ;;  %v14796_v20 = vld [vmem:[#allocation75_spill] sm:$0xff] }
 0x50f   :  { %v3100_v34 = vsel %vm182_vm8, %v3088_v23, %v10903_v4 }
 0x510   :  { %3113 = vst [vmem:[#allocation3 + $0xe8] sm:$0xf] %v3100_v34  ;;  %4224 = vrot.lane.b32.xlu0 %v4212_v32, %s8194_s14  ;;  %v2950_v9 = vpop.permute.xlu1 %2949  ;;  %v14786_v32 = vld [vmem:[#allocation72_spill] sm:$0xff] }
 0x511   :  { %v2962_v4 = vsel %vm374_vm3, %v2950_v9, %v10887_v43  ;;  %v14775_v43 = vld [vmem:[#allocation43_spill] sm:$0xff]  ;;  %v4460_v34 = vmul.bf16 %v14786_v32, %v2924_v31 }
 0x512   :  { %v11019_v7 = vpop.permute.xlu0 %2767  ;;  %2975 = vst [vmem:[#allocation3 + $0xb0] sm:$0xf] %v2962_v4  ;;  %4171 = vrot.lane.b32.xlu1 %v14772_v17, %s8186_s0  ;;  %v11036_v22 = vsel %vm1089_vm7, %v14776_v0, %v14775_v43 }
 0x513   :  { %v3076_v59 = vmul.bf16 %v11036_v22, %v14777_v49 }
 0x514   :  { %2957 = vrot.lane.b32.xlu0 %v2938_v61, %s8182_s10  ;;  %v2948_v1 = vpop.permute.xlu1 %2947  ;;  %v14789_v61 = vld [vmem:[#allocation74_spill] sm:$0xff] }
 0x515   :  { %v2961_v16 = vsel %vm374_vm3, %v2948_v1, %v2950_v9  ;;  %v14788_v9 = vmul.bf16 %v14787_v57, %v10631_v30  ;;  %v4398_v4 = vmul.bf16 %v14789_v61, %v10994_v36  ;;  %v14802_v57 = vld [vmem:[#allocation76_spill] sm:$0xff] }
 0x516   :  { %v2764_v13 = vpop.permute.xlu0 %2763  ;;  %2974 = vst [vmem:[#allocation3 + $0xa8] sm:$0xf] %v2961_v16  ;;  %4226 = vrot.lane.b32.xlu1 %v4213_v33, %s8194_s14  ;;  %s8196_s14 = smov 115  }
 0x517   :  { %v4413_v39 = vrot.slane %v14788_v9, 4  ;;  %v4412_v49 = vrot.slane %v4398_v4, 4  ;;  %v4570_v9 = vmul.bf16 %v14802_v57, %v11036_v22  ;;  %v3150_v4 = vld [vmem:[#allocation3 + $0xf8] sm:$0xf] }
 0x518   :  { %4279 = vrot.lane.b32.xlu0 %v4260_v37, %s8185_s27  ;;  %v3086_v24 = vpop.permute.xlu1 %3085  ;;  %v14792_v37 = vmul.bf16 %v14791_v46, %v10626_v27  ;;  %v4372_v46 = vld [vmem:[#allocation2 + $0x8] sm:$0xf] }
 0x519   :  { %v3099_v50 = vsel %vm182_vm8, %v3086_v24, %v3088_v23 }
 0x51a   :  { %v11039_v60 = vpop.permute.xlu0 %2873  ;;  %3112 = vst [vmem:[#allocation3 + $0xe0] sm:$0xf] %v3099_v50  ;;  %3012 = vrot.lane.b32.xlu1 %v3000_v8, %s8189_s26  ;;  %v4333_v16 = vrot.slane %v14792_v37, 4  ;;  %v14795_v50 = vld [vmem:[#allocation66_spill] sm:$0xff] }
 0x51c   :  { %3095 = vrot.lane.b32.xlu0 %v3076_v59, %s8187_s24  ;;  %v2766_v25 = vpop.permute.xlu1 %2765  ;;  %v14794_v59 = vld [vmem:[#allocation78_spill] sm:$0xff] }
 0x51d   :  { %v2777_v29 = vsel %vm738_vm5, %v2764_v13, %v2766_v25  ;;  %v2778_v40 = vsel %vm738_vm5, %v2766_v25, %v11019_v7 }
 0x51e   :  { %v2774_v21 = vpop.permute.xlu0 %2773  ;;  %2791 = vst [vmem:[#allocation3 + $0x48] sm:$0xf0] %v2777_v29  ;;  %2792 = vst [vmem:[#allocation3 + $0x50] sm:$0xf0] %v2778_v40  ;;  %4281 = vrot.lane.b32.xlu1 %v14785_v38, %s8185_s27  ;;  %v4522_v29 = vrot.slane %v14796_v20, 4  ;;  %s14804_s27 = sld [smem:[#allocation85_spill]] }
 0x520   :  { %4481 = vrot.lane.b32.xlu0 %v14782_v3, %s8182_s10  ;;  %v2872_v28 = vpop.permute.xlu1 %2871  ;;  %v14799_v3 = vld [vmem:[#allocation67_spill] sm:$0xff] }
 0x521   :  { %v2882_v23 = vsel %vm332_vm4, %v2872_v28, %v11039_v60  ;;  %v14800_v18 = vmul.bf16 %v14798_v44, %v14799_v3 }
 0x522   :  { %v11060_v5 = vpop.permute.xlu0 %2877  ;;  %2895 = vst [vmem:[#allocation3 + $0x88] sm:$0xf0] %v2882_v23  ;;  %4479 = vrot.lane.b32.xlu1 %v4460_v34, %s8182_s10 }
 0x523   :  { %2898 = vst.msk [vmem:[#allocation3 + $0xa0] sm:$0xf0] %vm2580_vm1, %v11060_v5 }
 0x524   :  { %4345 = vrot.lane.b32.xlu0 %v4332_v53, %s8184_s25  ;;  %v2870_v42 = vpop.permute.xlu1 %2869  ;;  %v14801_v53 = vld [vmem:[#allocation26_spill] sm:$0xff] }
 0x525   :  { %v2881_v31 = vsel %vm332_vm4, %v2870_v42, %v2872_v28  ;;  %v3129_v1 = vld [vmem:[#allocation3 + $0x50] sm:$0xff]  ;;  %v3128_v62 = vld [vmem:[#allocation3 + $0x48] sm:$0xff] }
 0x526   :  { %v2762_v6 = vpop.permute.xlu0 %2761  ;;  %2894 = vst [vmem:[#allocation3 + $0x80] sm:$0xf0] %v2881_v31  ;;  %3247 = vmatprep.subr.bf16.mxu1 %v3129_v1  ;;  %4347 = vrot.lane.b32.xlu1 %v4333_v16, %s8184_s25 }
 0x527   :  { %v2775_v14 = vsel %vm738_vm5, %v14790_v11, %v2762_v6  ;;  %v2776_v17 = vsel %vm738_vm5, %v2762_v6, %v2764_v13  ;;  %3248 = vmatpush1.bf16.msra.mxu1 %v3128_v62  ;;  %v14793_v13 = vld [vmem:[#allocation73_spill] sm:$0xff]  ;;  %v3149_v11 = vld [vmem:[#allocation3 + $0xf0] sm:$0xf] }
 0x528   :  { %2789 = vst [vmem:[#allocation3 + $0x38] sm:$0xf0] %v2775_v14  ;;  %2790 = vst [vmem:[#allocation3 + $0x40] sm:$0xf0] %v2776_v17  ;;  %4426 = vrot.lane.b32.xlu0 %v4413_v39, %s8183_s21  ;;  %v11083_v36 = vpop.permute.xlu1 %2771  ;;  %v4523_v33 = vrot.slane %v14793_v13, 4  ;;  %v14803_v39 = vld [vmem:[#allocation77_spill] sm:$0xff]  ;;  %v7889_v14 = vunpack.i.h.bf16 %v14749_v52 }
 0x529   :  { %v2781_v0 = vsel %vm738_vm5, %v11083_v36, %v2774_v21  ;;  %v3136_v24 = vld [vmem:[#allocation3 + $0x88] sm:$0xff]  ;;  %v4373_v6 = vld [vmem:[#allocation2 + $0x10] sm:$0xf]  ;;  %v4318_v61 = vmul.bf16 %v14803_v39, %v10130_v15  ;;  %v3178_v37 = vsel %vm3170_vm9, %v3149_v11, 0  ;;  %v11129_v52 = vld [vmem:[%s14804_s27] sm:$0xff]  }
 0x52a   :  { %v2868_v30 = vpop.permute.xlu0 %2867  ;;  %v11086_v43 = vld [vmem:[#allocation3 + $0xa0] sm:$0xff]  ;;  %2795 = vst.msk [vmem:[#allocation3 + $0x68] sm:$0xf0] %vm2580_vm1, %v2781_v0  ;;  %3249 = vmatprep.subr.bf16.mxu1 %v3136_v24  ;;  %4382 = vst [vmem:[#allocation3 + $0x88] sm:$0xf] %v14795_v50  ;;  %4424 = vrot.lane.b32.xlu1 %v4412_v49, %s8183_s21  ;;  %v3141_v62 = vld [vmem:[#allocation3 + $0xb0] sm:$0xff] }
 0x52b   :  { %v2880_v27 = vsel %vm332_vm4, %v2868_v30, %v2870_v42  ;;  %4385 = vst.msk [vmem:[#allocation3 + $0xa0] sm:$0xf] %vm2385_vm15, %v14794_v59  ;;  %v3142_v42 = vld [vmem:[#allocation3 + $0xb8] sm:$0xff]  ;;  %v4334_v16 = vrot.slane %v4318_v61, 4  ;;  %v3140_v49 = vld [vmem:[#allocation3 + $0xa8] sm:$0xff] }
 0x52c   :  { %2893 = vst [vmem:[#allocation3 + $0x78] sm:$0xf0] %v2880_v27  ;;  %4536 = vrot.lane.b32.xlu0 %v4523_v33, %s8189_s26  ;;  %v2866_v35 = vpop.permute.xlu1 %2865  ;;  %v14805_v27 = vld [vmem:[#allocation58_spill] sm:$0xff] }
 0x52d   :  { %v2879_v21 = vsel %vm332_vm4, %v2866_v35, %v2868_v30  ;;  %v3135_v26 = vld [vmem:[#allocation3 + $0x80] sm:$0xff]  ;;  %v3125_v30 = vld [vmem:[#allocation3 + $0x30] sm:$0xff]  ;;  %v3148_v59 = vld [vmem:[#allocation3 + $0xe8] sm:$0xf] }
 0x52e   :  { %v11097_v8 = vpop.permute.xlu0 %4163  ;;  %2892 = vst [vmem:[#allocation3 + $0x70] sm:$0xf0] %v2879_v21  ;;  %3250 = vmatpush1.bf16.msra.mxu1 %v3135_v26  ;;  %4381 = vst [vmem:[#allocation3 + $0x80] sm:$0xf] %v14797_v55  ;;  %4534 = vrot.lane.b32.xlu1 %v4522_v29, %s8189_s26  ;;  %v3147_v35 = vld [vmem:[#allocation3 + $0xe0] sm:$0xf] }
 0x52f   :  { %v3127_v25 = vld [vmem:[#allocation3 + $0x40] sm:$0xff]  ;;  %v3126_v40 = vld [vmem:[#allocation3 + $0x38] sm:$0xff]  ;;  %3251 = vmatprep.subr.bf16.mxu1 %v3143_v54  ;;  %v3172_v29 = vsel %vm3170_vm9, %v3147_v35, 0 }
 0x530   :  { %3194 = vmatprep.subr.bf16.mxu0 %v3127_v25  ;;  %4591 = vrot.lane.b32.xlu0 %v14800_v18, %s8187_s24  ;;  %v4162_v28 = vpop.permute.xlu1 %4161  ;;  %v14806_v26 = vld [vmem:[#allocation68_spill] sm:$0xff] }
 0x531   :  { %3195 = vmatpush1.bf16.msra.mxu0 %v3126_v40  ;;  %v4173_v23 = vsel %vm1089_vm7, %v14801_v53, %v4162_v28  ;;  %v4174_v32 = vsel %vm1089_vm7, %v4162_v28, %v11097_v8  ;;  %v3132_v50 = vld [vmem:[#allocation3 + $0x68] sm:$0xff]  ;;  %v11148_v40 = vld [vmem:[%s14804_s27 + $0x8] sm:$0xff]  }
 0x532   :  { %v11107_v38 = vpop.permute.xlu0 %4218  ;;  %4186 = vst [vmem:[#allocation3] sm:$0xf] %v4173_v23  ;;  %4187 = vst [vmem:[#allocation3 + $0x8] sm:$0xf] %v4174_v32  ;;  %3252 = vmatpush1.bf16.msra.mxu1 %v3142_v42  ;;  %4589 = vrot.lane.b32.xlu1 %v4570_v9, %s8187_s24  ;;  %v3146_v54 = vld [vmem:[#allocation3 + $0xd8] sm:$0xff] }
 0x533   :  { %v3134_v34 = vld [vmem:[#allocation3 + $0x78] sm:$0xff]  ;;  %7200 = vmatprep.subr.msk.bf16.mxu1 %vm3170_vm9, %v3150_v4  ;;  %v3153_v32 = vld [vmem:[#allocation3 + $0x110] sm:$0xf] }
 0x534   :  { %3196 = vmatprep.subr.bf16.mxu0 %v3134_v34  ;;  %4380 = vst [vmem:[#allocation3 + $0x78] sm:$0xf] %v4373_v6  ;;  %v4217_v22 = vpop.permute.xlu1 %4216  ;;  %v3190_v57 = vsel %vm3170_vm9, %v3153_v32, 0 }
 0x535   :  { %v4228_v31 = vsel %vm2560_vm0, %v7889_v14, %v4217_v22  ;;  %v4229_v15 = vsel %vm2560_vm0, %v4217_v22, %v11107_v38  ;;  %v3133_v1 = vld [vmem:[#allocation3 + $0x70] sm:$0xff] }
 0x536   :  { %v11120_v17 = vpop.permute.xlu0 %4273  ;;  %4241 = vst [vmem:[#allocation3] sm:$0xf0] %v4228_v31  ;;  %4242 = vst [vmem:[#allocation3 + $0x8] sm:$0xf0] %v4229_v15  ;;  %3197 = vmatpush1.bf16.msra.mxu0 %v3133_v1  ;;  %3254 = vmatpush1.bf16.msra.mxu1 %v3178_v37  ;;  %v14807_v15 = vld [vmem:[#allocation15_spill] sm:$0xff] }
 0x537   :  { %4379 = vst [vmem:[#allocation3 + $0x70] sm:$0xf] %v4372_v46  ;;  %4349 = vrot.lane.b32.xlu1 %v4334_v16, %s8184_s25  ;;  %3198 = vmatprep.subr.bf16.mxu0 %v3141_v62 }
 0x538   :  { %7391 = vmatprep.subr.bf16.mxu1 %v3125_v30  ;;  %v4272_v33 = vpop.permute.xlu1 %4271 }
 0x539   :  { %v4283_v0 = vsel %vm869_vm6, %v14805_v27, %v4272_v33  ;;  %v4284_v24 = vsel %vm869_vm6, %v4272_v33, %v11120_v17  ;;  %7201 = vmatmul.mubr.msk.bf16.vlgmr.msra.gmra.mrb[0].mxu1 %vm958_vm12, %v11129_v52 }
 0x53a   :  { %v4472_v13 = vpop.permute.xlu0 %4471  ;;  %4296 = vst [vmem:[#allocation3 + $0x38] sm:$0xf] %v4283_v0  ;;  %4297 = vst [vmem:[#allocation3 + $0x40] sm:$0xf] %v4284_v24  ;;  %3199 = vmatpush1.bf16.msra.mxu0 %v3140_v49  ;;  %7392 = vmatpush3.bf16.msra.mxu1 %v3125_v30 }
 0x53b   :  { %7197 = vmatprep.subr.msk.bf16.mxu0 %vm3170_vm9, %v3148_v59  ;;  %7393 = vmatprep.subr.bf16.mxu1 %v3132_v50 }
 0x53c   :  { %v11139_v25 = vpop.permute.xlu1 %4473  ;;  %3287 = vmatprep.mubr.bf16.mxu1 %v14806_v26 }
 0x53d   :  { %v4484_v20 = vsel %vm374_vm3, %v4472_v13, %v11139_v25  ;;  %v4614_v9 = vld [vmem:[#allocation3 + $0x8] sm:$0xff]  ;;  %v4613_v14 = vld [vmem:[#allocation3] sm:$0xff] }
 0x53e   :  { %v4527_v21 = vpop.permute.xlu0 %4526  ;;  %4497 = vst [vmem:[#allocation3 + $0xb0] sm:$0xf] %v4484_v20  ;;  %3201 = vmatpush1.bf16.msra.mxu0 %v3172_v29  ;;  %7394 = vmatpush3.bf16.msra.mxu1 %v3132_v50 }
 0x53f   :  { %7395 = vmatprep.subr.bf16.mxu1 %v11086_v43 }
 0x540   :  { %v11151_v44 = vpop.permute.xlu1 %4528 }
 0x541   :  { %v4539_v18 = vsel %vm606_vm10, %v4527_v21, %v11151_v44  ;;  %7198 = vmatmul.mubr.msk.bf16.vlgmr.msra.gmra.mrb[0].mxu0 %vm958_vm12, %v11129_v52  ;;  %7202 = vmatmul.mubr.msk.bf16.gmra.mrb[4].mxu1 %vm958_vm12, %v11148_v40 }
 0x542   :  { %v4470_v55 = vpop.permute.xlu0 %4469  ;;  %4552 = vst [vmem:[#allocation3 + $0xb0] sm:$0xf0] %v4539_v18  ;;  %7396 = vmatpush3.bf16.msra.mxu1 %v11086_v43  ;;  %7401 = vmatprep.mubr.msk.bf16.mxu1 %vm958_vm12, %v11129_v52 }
 0x543   :  { %v4483_v3 = vsel %vm374_vm3, %v4470_v55, %v4472_v13  ;;  %7397 = vmatprep.subr.bf16.mxu1 %v3146_v54  ;;  %3234 = vmatprep.mubr.bf16.mxu0 %v14806_v26 }
 0x544   :  { %4496 = vst [vmem:[#allocation3 + $0xa8] sm:$0xf] %v4483_v3  ;;  %v4525_v53 = vpop.permute.xlu1 %4524 }
 0x545   :  { %v4538_v23 = vsel %vm606_vm10, %v4525_v53, %v4527_v21 }
 0x546   :  { %v4580_v28 = vpop.permute.xlu0 %4579  ;;  %4551 = vst [vmem:[#allocation3 + $0xa8] sm:$0xf0] %v4538_v23  ;;  %7398 = vmatpush3.bf16.msra.mxu1 %v3146_v54 }
 0x547   :  { %7859 = vmatprep.subr.msk.bf16.mxu1 %vm3170_vm9, %v3153_v32 }
 0x548   :  { %v4582_v6 = vpop.permute.xlu1 %4581 }
 0x549   :  { %v4593_v43 = vsel %vm182_vm8, %v4580_v28, %v4582_v6  ;;  %7199 = vmatmul.mubr.msk.bf16.gmra.mrb[4].mxu0 %vm958_vm12, %v11148_v40 }
 0x54a   :  { %v11166_v34 = vpop.permute.xlu0 %4583  ;;  %4606 = vst [vmem:[#allocation3 + $0xe0] sm:$0xf] %v4593_v43  ;;  %7400 = vmatpush3.bf16.msra.mxu1 %v3190_v57  ;;  %3330 = vmatprep.mubr.bf16.mxu0 %v14806_v26 }
 0x54b   :  { %v4594_v42 = vsel %vm182_vm8, %v4582_v6, %v11166_v34  ;;  %4669 = vmatprep.subr.bf16.mxu1 %v4614_v9 }
 0x54c   :  { %4607 = vst [vmem:[#allocation3 + $0xe8] sm:$0xf] %v4594_v42  ;;  %v4166_v61 = vpop.permute.xlu1 %4165 }
 0x54d   :  { %v4175_v4 = vsel %vm1089_vm7, %v11097_v8, %v4166_v61  ;;  %7402 = vmatmul.mubr.msk.bf16.vlgmr.msra.gmra.mrb[8].mxu1 %vm958_vm12, %v11148_v40  ;;  %v4634_v28 = vld [vmem:[#allocation3 + $0xa8] sm:$0xff] }
 0x54e   :  { %v11175_v39 = vpop.permute.xlu0 %4167  ;;  %4188 = vst [vmem:[#allocation3 + $0x10] sm:$0xf] %v4175_v4  ;;  %4670 = vmatpush1.bf16.msra.mxu1 %v4613_v14  ;;  %4701 = vmatprep.mubr.bf16.mxu1 %v14806_v26  ;;  %v11223_v14 = vld [vmem:[#allocation2] sm:$0xff] }
 0x54f   :  { %v4176_v11 = vsel %vm1089_vm7, %v4166_v61, %v11175_v39 }
 0x550   :  { %4189 = vst [vmem:[#allocation3 + $0x18] sm:$0xf] %v4176_v11  ;;  %v4338_v31 = vpop.permute.xlu1 %4337 }
 0x551   :  { %v4351_v1 = vsel %vm738_vm5, %v14807_v15, %v4338_v31  ;;  %v4641_v53 = vld [vmem:[#allocation3 + $0xe0] sm:$0xf] }
 0x552   :  { %v4340_v22 = vpop.permute.xlu0 %4339  ;;  %4365 = vst [vmem:[#allocation3 + $0x38] sm:$0xf0] %v4351_v1 }
 0x553   :  { %v4352_v46 = vsel %vm738_vm5, %v4338_v31, %v4340_v22 }
 0x554   :  { %4366 = vst [vmem:[#allocation3 + $0x40] sm:$0xf0] %v4352_v46  ;;  %v4417_v37 = vpop.permute.xlu1 %4416 }
 0x556   :  { %v4419_v8 = vpop.permute.xlu0 %4418 }
 0x557   :  { %v4429_v16 = vsel %vm332_vm4, %v4417_v37, %v4419_v8 }
 0x558   :  { %4442 = vst [vmem:[#allocation3 + $0x78] sm:$0xf0] %v4429_v16  ;;  %v4415_v30 = vpop.permute.xlu1 %4414 }
 0x559   :  { %v4620_v33 = vld [vmem:[#allocation3 + $0x38] sm:$0xff]  ;;  %v4428_v27 = vsel %vm332_vm4, %v4415_v30, %v4417_v37 }
 0x55a   :  { %v11188_v62 = vpop.permute.xlu0 %4222  ;;  %4441 = vst [vmem:[#allocation3 + $0x70] sm:$0xf0] %v4428_v27 }
 0x55b   :  { %v4621_v13 = vld [vmem:[#allocation3 + $0x40] sm:$0xff] }
 0x55c   :  { %4671 = vmatprep.subr.bf16.mxu1 %v4621_v13  ;;  %v4221_v24 = vpop.permute.xlu1 %4220 }
 0x55d   :  { %4672 = vmatpush1.bf16.msra.mxu1 %v4620_v33  ;;  %v4230_v49 = vsel %vm2560_vm0, %v11107_v38, %v4221_v24  ;;  %v4231_v59 = vsel %vm2560_vm0, %v4221_v24, %v11188_v62  ;;  %v4635_v38 = vld [vmem:[#allocation3 + $0xb0] sm:$0xff] }
 0x55e   :  { %v11191_v0 = vpop.permute.xlu0 %4277  ;;  %4243 = vst [vmem:[#allocation3 + $0x10] sm:$0xf0] %v4230_v49  ;;  %4244 = vst [vmem:[#allocation3 + $0x18] sm:$0xf0] %v4231_v59 }
 0x55f   :  { %v4628_v50 = vld [vmem:[#allocation3 + $0x78] sm:$0xff] }
 0x560   :  { %4673 = vmatprep.subr.bf16.mxu1 %v4628_v50  ;;  %v4276_v21 = vpop.permute.xlu1 %4275 }
 0x561   :  { %v4285_v26 = vsel %vm869_vm6, %v11120_v17, %v4276_v21  ;;  %v4286_v20 = vsel %vm869_vm6, %v4276_v21, %v11191_v0  ;;  %v4627_v29 = vld [vmem:[#allocation3 + $0x70] sm:$0xff]  ;;  %v4642_v17 = vld [vmem:[#allocation3 + $0xe8] sm:$0xf] }
 0x562   :  { %v11197_v35 = vpop.permute.xlu0 %4477  ;;  %4298 = vst [vmem:[#allocation3 + $0x48] sm:$0xf] %v4285_v26  ;;  %4299 = vst [vmem:[#allocation3 + $0x50] sm:$0xf] %v4286_v20  ;;  %4674 = vmatpush1.bf16.msra.mxu1 %v4627_v29 }
 0x563   :  { %4675 = vmatprep.subr.bf16.mxu1 %v4635_v38 }
 0x564   :  { %v4476_v3 = vpop.permute.xlu1 %4475 }
 0x565   :  { %v4485_v18 = vsel %vm374_vm3, %v11139_v25, %v4476_v3  ;;  %v4486_v54 = vsel %vm374_vm3, %v4476_v3, %v11197_v35  ;;  %v4649_v25 = vsel %vm3170_vm9, %v4641_v53, 0  ;;  %v4616_v42 = vld [vmem:[#allocation3 + $0x18] sm:$0xff]  ;;  %v4615_v11 = vld [vmem:[#allocation3 + $0x10] sm:$0xff] }
 0x566   :  { %v11203_v55 = vpop.permute.xlu0 %4343  ;;  %4498 = vst [vmem:[#allocation3 + $0xb8] sm:$0xf] %v4485_v18  ;;  %4499 = vst [vmem:[#allocation3 + $0xc0] sm:$0xf] %v4486_v54  ;;  %4676 = vmatpush1.bf16.msra.mxu1 %v4634_v28 }
 0x567   :  { %7235 = vmatprep.subr.msk.bf16.mxu1 %vm3170_vm9, %v4642_v17 }
 0x568   :  { %v4342_v32 = vpop.permute.xlu1 %4341 }
 0x569   :  { %v4353_v6 = vsel %vm738_vm5, %v4340_v22, %v4342_v32  ;;  %v4354_v43 = vsel %vm738_vm5, %v4342_v32, %v11203_v55 }
 0x56a   :  { %v11210_v23 = vpop.permute.xlu0 %4422  ;;  %4367 = vst [vmem:[#allocation3 + $0x48] sm:$0xf0] %v4353_v6  ;;  %4368 = vst [vmem:[#allocation3 + $0x50] sm:$0xf0] %v4354_v43  ;;  %4678 = vmatpush1.bf16.msra.mxu1 %v4649_v25 }
 0x56b   :  { %4722 = vmatprep.subr.bf16.mxu1 %v4616_v42 }
 0x56c   :  { %v4421_v9 = vpop.permute.xlu1 %4420 }
 0x56d   :  { %v4430_v61 = vsel %vm332_vm4, %v4419_v8, %v4421_v9  ;;  %v4431_v4 = vsel %vm332_vm4, %v4421_v9, %v11210_v23  ;;  %7236 = vmatmul.mubr.msk.bf16.vlgmr.msra.gmra.mrb[12].mxu1 %vm958_vm12, %v11129_v52 }
 0x56e   :  { %v11216_v57 = vpop.permute.xlu0 %4532  ;;  %4443 = vst [vmem:[#allocation3 + $0x80] sm:$0xf0] %v4430_v61  ;;  %4444 = vst [vmem:[#allocation3 + $0x88] sm:$0xf0] %v4431_v4  ;;  %4723 = vmatpush1.bf16.msra.mxu1 %v4615_v11  ;;  %4711 = vmatprep.mubr.bf16.mxu1 %v11223_v14  ;;  %v14808_v4 = vld [vmem:[#allocation79_spill] sm:$0xff]  ;;  %v14809_v11 = vld [vmem:[#allocation82_spill] sm:$0xff] }
 0x570   :  { %v4531_v31 = vpop.permute.xlu1 %4530 }
 0x571   :  { %v4540_v15 = vsel %vm606_vm10, %v11151_v44, %v4531_v31  ;;  %v4541_v1 = vsel %vm606_vm10, %v4531_v31, %v11216_v57  ;;  %v4623_v46 = vld [vmem:[#allocation3 + $0x50] sm:$0xff]  ;;  %v4622_v8 = vld [vmem:[#allocation3 + $0x48] sm:$0xff] }
 0x572   :  { %v11226_v22 = vpop.permute.xlu0 %4587  ;;  %4553 = vst [vmem:[#allocation3 + $0xb8] sm:$0xf0] %v4540_v15  ;;  %4554 = vst [vmem:[#allocation3 + $0xc0] sm:$0xf0] %v4541_v1  ;;  %4724 = vmatprep.subr.bf16.mxu1 %v4623_v46 }
 0x573   :  { %4725 = vmatpush1.bf16.msra.mxu1 %v4622_v8 }
 0x574   :  { %v4586_v13 = vpop.permute.xlu1 %4585 }
 0x575   :  { %v4595_v44 = vsel %vm182_vm8, %v11166_v34, %v4586_v13  ;;  %v4596_v33 = vsel %vm182_vm8, %v4586_v13, %v11226_v22  ;;  %7237 = vmatmul.mubr.msk.bf16.gmra.mrb[16].mxu1 %vm958_vm12, %v11148_v40  ;;  %v4630_v27 = vld [vmem:[#allocation3 + $0x88] sm:$0xff]  ;;  %v4629_v24 = vld [vmem:[#allocation3 + $0x80] sm:$0xff] }
 0x576   :  { %v2557_v37 = vpop.permute.xlu0 %2556  ;;  %4608 = vst [vmem:[#allocation3 + $0xf0] sm:$0xf] %v4595_v44  ;;  %4609 = vst [vmem:[#allocation3 + $0xf8] sm:$0xf] %v4596_v33  ;;  %4726 = vmatprep.subr.bf16.mxu1 %v4630_v27  ;;  %4754 = vmatprep.mubr.bf16.mxu1 %v11223_v14 }
 0x577   :  { %v2565_v16 = vsel %vm2560_vm0, %v10836_v47, %v2557_v37  ;;  %v2566_v30 = vsel %vm2560_vm0, %v2557_v37, %v10928_v10  ;;  %4727 = vmatpush1.bf16.msra.mxu1 %v4629_v24 }
 0x578   :  { %2578 = vst [vmem:[#allocation3 + $0x20] sm:$0xf0] %v2565_v16  ;;  %2579 = vst [vmem:[#allocation3 + $0x28] sm:$0xf0] %v2566_v30  ;;  %v2502_v49 = vpop.permute.xlu1 %2501 }
 0x579   :  { %v2509_v59 = vsel %vm1089_vm7, %v10826_v19, %v2502_v49  ;;  %v2510_v50 = vsel %vm1089_vm7, %v2502_v49, %v10930_v41  ;;  %v4637_v21 = vld [vmem:[#allocation3 + $0xc0] sm:$0xff]  ;;  %v4636_v26 = vld [vmem:[#allocation3 + $0xb8] sm:$0xff] }
 0x57a   :  { %v2770_v47 = vpop.permute.xlu0 %2769  ;;  %2522 = vst [vmem:[#allocation3 + $0x20] sm:$0xf] %v2509_v59  ;;  %2523 = vst [vmem:[#allocation3 + $0x28] sm:$0xf] %v2510_v50  ;;  %4728 = vmatprep.subr.bf16.mxu1 %v4637_v21 }
 0x57b   :  { %v2779_v10 = vsel %vm738_vm5, %v11019_v7, %v2770_v47  ;;  %v2780_v34 = vsel %vm738_vm5, %v2770_v47, %v11083_v36  ;;  %4729 = vmatpush1.bf16.msra.mxu1 %v4636_v26 }
 0x57c   :  { %2793 = vst [vmem:[#allocation3 + $0x58] sm:$0xf0] %v2779_v10  ;;  %2794 = vst [vmem:[#allocation3 + $0x60] sm:$0xf0] %v2780_v34  ;;  %v2676_v7 = vpop.permute.xlu1 %2675 }
 0x57d   :  { %v2683_v36 = vsel %vm869_vm6, %v10863_v12, %v2676_v7  ;;  %v2684_v29 = vsel %vm869_vm6, %v2676_v7, %v10943_v2  ;;  %v4644_v38 = vld [vmem:[#allocation3 + $0xf8] sm:$0xf]  ;;  %v4643_v3 = vld [vmem:[#allocation3 + $0xf0] sm:$0xf] }
 0x57e   :  { %v4170_v20 = vpop.permute.xlu0 %4169  ;;  %2696 = vst [vmem:[#allocation3 + $0x58] sm:$0xf] %v2683_v36  ;;  %2697 = vst [vmem:[#allocation3 + $0x60] sm:$0xf] %v2684_v29  ;;  %7238 = vmatprep.subr.msk.bf16.mxu1 %vm3170_vm9, %v4644_v38  ;;  %v4655_v19 = vsel %vm3170_vm9, %v4643_v3, 0 }
 0x57f   :  { %4731 = vmatpush1.bf16.msra.mxu1 %v4655_v19  ;;  %v4177_v12 = vsel %vm1089_vm7, %v11175_v39, %v4170_v20 }
 0x580   :  { %v2876_v54 = vpop.permute.xlu1 %2875 }
 0x581   :  { %v2883_v2 = vsel %vm332_vm4, %v11039_v60, %v2876_v54  ;;  %v2884_v28 = vsel %vm332_vm4, %v2876_v54, %v11060_v5  ;;  %v3124_v17 = vld [vmem:[#allocation3 + $0x28] sm:$0xff]  ;;  %v3123_v53 = vld [vmem:[#allocation3 + $0x20] sm:$0xff] }
 0x582   :  { %v4225_v41 = vpop.permute.xlu0 %4224  ;;  %2896 = vst [vmem:[#allocation3 + $0x90] sm:$0xf0] %v2883_v2  ;;  %2897 = vst [vmem:[#allocation3 + $0x98] sm:$0xf0] %v2884_v28  ;;  %3298 = vmatprep.subr.bf16.mxu0 %v3124_v17  ;;  %7239 = vmatmul.mubr.msk.bf16.vlgmr.msra.gmra.mrb[20].mxu1 %vm958_vm12, %v11129_v52 }
 0x583   :  { %v4232_v18 = vsel %vm2560_vm0, %v11188_v62, %v4225_v41  ;;  %4190 = vst [vmem:[#allocation3 + $0x20] sm:$0xf] %v4177_v12  ;;  %3299 = vmatpush1.bf16.msra.mxu0 %v3123_v53  ;;  %4764 = vmatprep.mubr.bf16.mxu1 %v11223_v14 }
 0x584   :  { %4245 = vst [vmem:[#allocation3 + $0x20] sm:$0xf0] %v4232_v18  ;;  %v4172_v39 = vpop.permute.xlu1 %4171 }
 0x585   :  { %v4178_v32 = vsel %vm1089_vm7, %v4170_v20, %v4172_v39  ;;  %4192 = vst.msk [vmem:[#allocation3 + $0x30] sm:$0xf] %vm2385_vm15, %v4172_v39  ;;  %v3131_v6 = vld [vmem:[#allocation3 + $0x60] sm:$0xff]  ;;  %v3130_v43 = vld [vmem:[#allocation3 + $0x58] sm:$0xff]  ;;  %vm5706_vm7 = vcmask 1048096  }
 0x586   :  { %v2958_v62 = vpop.permute.xlu0 %2957  ;;  %4191 = vst [vmem:[#allocation3 + $0x28] sm:$0xf] %v4178_v32  ;;  %3300 = vmatprep.subr.bf16.mxu0 %v3131_v6 }
 0x587   :  { %v2965_v60 = vsel %vm374_vm3, %v10877_v56, %v2958_v62  ;;  %v2966_v5 = vsel %vm374_vm3, %v2958_v62, %v10980_v63  ;;  %3301 = vmatpush1.bf16.msra.mxu0 %v3130_v43 }
 0x588   :  { %2978 = vst [vmem:[#allocation3 + $0xc8] sm:$0xf] %v2965_v60  ;;  %2979 = vst [vmem:[#allocation3 + $0xd0] sm:$0xf] %v2966_v5  ;;  %v4227_v56 = vpop.permute.xlu1 %4226 }
 0x589   :  { %v4233_v63 = vsel %vm2560_vm0, %v4225_v41, %v4227_v56  ;;  %4247 = vst.msk [vmem:[#allocation3 + $0x30] sm:$0xf0] %vm2580_vm1, %v4227_v56  ;;  %v3138_v9 = vld [vmem:[#allocation3 + $0x98] sm:$0xff]  ;;  %v3137_v61 = vld [vmem:[#allocation3 + $0x90] sm:$0xff] }
 0x58a   :  { %v4280_v25 = vpop.permute.xlu0 %4279  ;;  %4246 = vst [vmem:[#allocation3 + $0x28] sm:$0xf0] %v4233_v63  ;;  %3302 = vmatprep.subr.bf16.mxu0 %v3138_v9  ;;  %4384 = vst [vmem:[#allocation3 + $0x98] sm:$0xf] %v14808_v4  ;;  %7240 = vmatmul.mubr.msk.bf16.gmra.mrb[24].mxu1 %vm958_vm12, %v11148_v40 }
 0x58b   :  { %v4287_v42 = vsel %vm869_vm6, %v11191_v0, %v4280_v25  ;;  %4383 = vst [vmem:[#allocation3 + $0x90] sm:$0xf] %v14809_v11  ;;  %3303 = vmatpush1.bf16.msra.mxu0 %v3137_v61  ;;  %4807 = vmatprep.mubr.bf16.mxu1 %v11223_v14  ;;  %v4617_v30 = vld [vmem:[#allocation3 + $0x20] sm:$0xff] }
 0x58c   :  { %4300 = vst [vmem:[#allocation3 + $0x58] sm:$0xf] %v4287_v42  ;;  %v3013_v1 = vpop.permute.xlu1 %3012 }
 0x58d   :  { %v3021_v46 = vsel %vm606_vm10, %v10889_v58, %v3013_v1  ;;  %v3022_v8 = vsel %vm606_vm10, %v3013_v1, %v10961_v51 }
 0x58e   :  { %v3096_v31 = vpop.permute.xlu0 %3095  ;;  %3034 = vst [vmem:[#allocation3 + $0xc8] sm:$0xf0] %v3021_v46  ;;  %3035 = vst [vmem:[#allocation3 + $0xd0] sm:$0xf0] %v3022_v8 }
 0x58f   :  { %v3103_v0 = vsel %vm182_vm8, %v10914_v45, %v3096_v31  ;;  %v3104_v15 = vsel %vm182_vm8, %v3096_v31, %v11007_v48 }
 0x590   :  { %3116 = vst [vmem:[#allocation3 + $0x100] sm:$0xf] %v3103_v0  ;;  %3117 = vst [vmem:[#allocation3 + $0x108] sm:$0xf] %v3104_v15  ;;  %v4282_v16 = vpop.permute.xlu1 %4281  ;;  %v4619_v62 = vld [vmem:[#allocation3 + $0x30] sm:$0xff] }
 0x591   :  { %v4288_v45 = vsel %vm869_vm6, %v4280_v25, %v4282_v16  ;;  %4302 = vst.msk [vmem:[#allocation3 + $0x68] sm:$0xf] %vm2385_vm15, %v4282_v16  ;;  %v4618_v48 = vld [vmem:[#allocation3 + $0x28] sm:$0xff]  ;;  %vm4072_vm6 = vcmask 556032  }
 0x592   :  { %v4482_v37 = vpop.permute.xlu0 %4481  ;;  %4301 = vst [vmem:[#allocation3 + $0x60] sm:$0xf] %v4288_v45  ;;  %4775 = vmatprep.subr.bf16.mxu1 %v4618_v48 }
 0x593   :  { %4502 = vst.msk [vmem:[#allocation3 + $0xd8] sm:$0xf] %vm2385_vm15, %v4482_v37  ;;  %4776 = vmatpush1.bf16.msra.mxu1 %v4617_v30 }
 0x594   :  { %v4480_v51 = vpop.permute.xlu1 %4479 }
 0x595   :  { %v4487_v44 = vsel %vm374_vm3, %v11197_v35, %v4480_v51  ;;  %v4488_v33 = vsel %vm374_vm3, %v4480_v51, %v4482_v37  ;;  %v3145_v27 = vld [vmem:[#allocation3 + $0xd0] sm:$0xff]  ;;  %v3144_v24 = vld [vmem:[#allocation3 + $0xc8] sm:$0xff]  ;;  %vm3797_vm3 = vcmask 1042432  }
 0x596   :  { %v4346_v13 = vpop.permute.xlu0 %4345  ;;  %3304 = vmatprep.subr.bf16.mxu0 %v3145_v27  ;;  %4501 = vst [vmem:[#allocation3 + $0xd0] sm:$0xf] %v4488_v33  ;;  %4500 = vst [vmem:[#allocation3 + $0xc8] sm:$0xf] %v4487_v44 }
 0x597   :  { %v4355_v58 = vsel %vm738_vm5, %v11203_v55, %v4346_v13  ;;  %3305 = vmatpush1.bf16.msra.mxu0 %v3144_v24  ;;  %v3152_v10 = vld [vmem:[#allocation3 + $0x108] sm:$0xf]  ;;  %v3151_v34 = vld [vmem:[#allocation3 + $0x100] sm:$0xf] }
 0x598   :  { %4369 = vst [vmem:[#allocation3 + $0x58] sm:$0xf0] %v4355_v58  ;;  %7203 = vmatprep.subr.msk.bf16.mxu0 %vm3170_vm9, %v3152_v10  ;;  %v4348_v55 = vpop.permute.xlu1 %4347  ;;  %v3184_v35 = vsel %vm3170_vm9, %v3151_v34, 0 }
 0x599   :  { %v4356_v49 = vsel %vm738_vm5, %v4346_v13, %v4348_v55 }
 0x59a   :  { %v4427_v47 = vpop.permute.xlu0 %4426  ;;  %4370 = vst [vmem:[#allocation3 + $0x60] sm:$0xf0] %v4356_v49 }
 0x59b   :  { %4447 = vst.msk [vmem:[#allocation3 + $0xa0] sm:$0xf0] %vm2580_vm1, %v4427_v47  ;;  %3307 = vmatpush1.bf16.msra.mxu0 %v3184_v35 }
 0x59c   :  { %v4425_v50 = vpop.permute.xlu1 %4424 }
 0x59d   :  { %v4432_v21 = vsel %vm332_vm4, %v11210_v23, %v4425_v50  ;;  %v4433_v26 = vsel %vm332_vm4, %v4425_v50, %v4427_v47 }
 0x59e   :  { %v4537_v59 = vpop.permute.xlu0 %4536  ;;  %4445 = vst [vmem:[#allocation3 + $0x90] sm:$0xf0] %v4432_v21  ;;  %4446 = vst [vmem:[#allocation3 + $0x98] sm:$0xf0] %v4433_v26  ;;  %7204 = vmatmul.mubr.msk.bf16.vlgmr.msra.gmra.mrb[8].mxu0 %vm958_vm12, %v11129_v52 }
 0x59f   :  { %4557 = vst.msk [vmem:[#allocation3 + $0xd8] sm:$0xf0] %vm2580_vm1, %v4537_v59  ;;  %3340 = vmatprep.mubr.bf16.mxu0 %v11223_v14  ;;  %v4624_v23 = vld [vmem:[#allocation3 + $0x58] sm:$0xff] }
 0x5a0   :  { %v4535_v7 = vpop.permute.xlu1 %4534 }
 0x5a1   :  { %v4542_v36 = vsel %vm606_vm10, %v11216_v57, %v4535_v7  ;;  %v4543_v29 = vsel %vm606_vm10, %v4535_v7, %v4537_v59  ;;  %v4625_v38 = vld [vmem:[#allocation3 + $0x60] sm:$0xff] }
 0x5a2   :  { %v4592_v20 = vpop.permute.xlu0 %4591  ;;  %4555 = vst [vmem:[#allocation3 + $0xc8] sm:$0xf0] %v4542_v36  ;;  %4556 = vst [vmem:[#allocation3 + $0xd0] sm:$0xf0] %v4543_v29  ;;  %4777 = vmatprep.subr.bf16.mxu1 %v4625_v38  ;;  %v4633_v5 = vld [vmem:[#allocation3 + $0xa0] sm:$0xff] }
 0x5a3   :  { %4612 = vst.msk [vmem:[#allocation3 + $0x110] sm:$0xf] %vm2385_vm15, %v4592_v20  ;;  %4778 = vmatpush1.bf16.msra.mxu1 %v4624_v23  ;;  %vm6539_vm15 = vcmask 73728  }
 0x5a4   :  { %v4590_v3 = vpop.permute.xlu1 %4589 }
 0x5a5   :  { %v4597_v19 = vsel %vm182_vm8, %v11226_v22, %v4590_v3  ;;  %v4598_v41 = vsel %vm182_vm8, %v4590_v3, %v4592_v20  ;;  %v4632_v18 = vld [vmem:[#allocation3 + $0x98] sm:$0xff]  ;;  %v4631_v54 = vld [vmem:[#allocation3 + $0x90] sm:$0xff]  ;;  %vm5859_vm8 = vcmask 924672  }
 0x5a6   :  { %4610 = vst [vmem:[#allocation3 + $0x100] sm:$0xf] %v4597_v19  ;;  %4611 = vst [vmem:[#allocation3 + $0x108] sm:$0xf] %v4598_v41  ;;  %4779 = vmatprep.subr.bf16.mxu1 %v4632_v18  ;;  %7205 = vmatmul.mubr.msk.bf16.gmra.mrb[12].mxu0 %vm958_vm12, %v11148_v40  ;;  %v4640_v39 = vld [vmem:[#allocation3 + $0xd8] sm:$0xff] }
 0x5a7   :  { %4780 = vmatpush1.bf16.msra.mxu1 %v4631_v54 }
 0x5a9   :  { %v4350_v57 = vpop.permute.xlu1 %4349  ;;  %v4639_v2 = vld [vmem:[#allocation3 + $0xd0] sm:$0xff]  ;;  %v4638_v28 = vld [vmem:[#allocation3 + $0xc8] sm:$0xff] }
 0x5aa   :  { %v4357_v12 = vsel %vm738_vm5, %v4348_v55, %v4350_v57  ;;  %4781 = vmatprep.subr.bf16.mxu1 %v4639_v2  ;;  %v4647_v32 = vld [vmem:[#allocation3 + $0x110] sm:$0xf] }
 0x5ab   :  { %4371 = vst.msk [vmem:[#allocation3 + $0x68] sm:$0xf0] %vm2580_vm1, %v4357_v12  ;;  %4782 = vmatpush1.bf16.msra.mxu1 %v4638_v28  ;;  %v4667_v6 = vsel %vm3170_vm9, %v4647_v32, 0 }
 0x5ad   :  { %v4646_v22 = vld [vmem:[#allocation3 + $0x108] sm:$0xf]  ;;  %v4645_v17 = vld [vmem:[#allocation3 + $0x100] sm:$0xf] }
 0x5ae   :  { %7241 = vmatprep.subr.msk.bf16.mxu1 %vm3170_vm9, %v4646_v22  ;;  %v4661_v53 = vsel %vm3170_vm9, %v4645_v17, 0  ;;  %v2138_v17 = vld [vmem:[%s14351_s12 + $0x8] sm:$0xff] }
 0x5af   :  { %4784 = vmatpush1.bf16.msra.mxu1 %v4661_v53  ;;  %v2140_v53 = vld [vmem:[%s14351_s12 + $0x18] sm:$0xff] }
 0x5b0   :  { %7405 = vmatprep.subr.bf16.mxu1 %v4619_v62 }
 0x5b2   :  { %7242 = vmatmul.mubr.msk.bf16.vlgmr.msra.gmra.mrb[28].mxu1 %vm958_vm12, %v11129_v52  ;;  %v4626_v60 = vld [vmem:[#allocation3 + $0x68] sm:$0xff] }
 0x5b3   :  { %7406 = vmatpush3.bf16.msra.mxu1 %v4619_v62  ;;  %4817 = vmatprep.mubr.bf16.mxu1 %v11223_v14  ;;  %v7419_v62 = vpack.c.bf16 %v2140_v53, %v2138_v17 }
 0x5b4   :  { %7407 = vmatprep.subr.bf16.mxu1 %v4626_v60 }
 0x5b5   :  { %7420 = vmatprep.subr.bf16.mxu0 %v7419_v62 }
 0x5b7   :  { %7408 = vmatpush3.bf16.msra.mxu1 %v4626_v60 }
 0x5b8   :  { %7409 = vmatprep.subr.bf16.mxu1 %v4633_v5 }
 0x5ba   :  { %7243 = vmatmul.mubr.msk.bf16.gmra.mrb[32].mxu1 %vm958_vm12, %v11148_v40 }
 0x5bb   :  { %7410 = vmatpush3.bf16.msra.mxu1 %v4633_v5  ;;  %7415 = vmatprep.mubr.msk.bf16.mxu1 %vm958_vm12, %v11129_v52 }
 0x5bc   :  { %7411 = vmatprep.subr.bf16.mxu1 %v4640_v39 }
 0x5bf   :  { %7412 = vmatpush3.bf16.msra.mxu1 %v4640_v39 }
 0x5c0   :  { %7860 = vmatprep.subr.msk.bf16.mxu1 %vm3170_vm9, %v4647_v32 }
 0x5c3   :  { %7414 = vmatpush3.bf16.msra.mxu1 %v4667_v6  ;;  %v2137_v6 = vld [vmem:[%s14351_s12] sm:$0xff] }
 0x5c4   :  { %7608 = vmatprep.subr.bf16.mxu1 %v7419_v62 }
 0x5c6   :  { %7416 = vmatmul.mubr.msk.bf16.vlgmr.msra.gmra.mrb[36].mxu1 %vm958_vm12, %v11148_v40  ;;  %vm5888_vm12 = vcmask 121856  }
 0x60c   :  { %v11334_v14 = vpop.f32.mrb[0].mxu1 }
 0x60d   :  { %3402 = vst [vmem:[%s14356_s17 + $0x10] sm:$0xff] %v11334_v14  ;;  %v11340_v43 = vpop.f32.mrb[1].mxu1 }
 0x60e   :  { %3403 = vst [vmem:[%s14356_s17 + $0x18] sm:$0xff] %v11340_v43  ;;  %v11346_v52 = vpop.f32.mrb[2].mxu1 }
 0x60f   :  { %3409 = vst [vmem:[%s14356_s17 + $0x48] sm:$0xff] %v11346_v52  ;;  %v11352_v40 = vpop.f32.mrb[3].mxu1 }
 0x610   :  { %3410 = vst [vmem:[%s14356_s17 + $0x50] sm:$0xff] %v11352_v40 }
 0x614   :  { %v11358_v25 = vpop.f32.mrb[0].mxu0  ;;  %v11360_v42 = vpop.f32.mrb[4].mxu1 }
 0x615   :  { %3400 = vst [vmem:[%s14356_s17] sm:$0xff] %v11358_v25  ;;  %v11366_v56 = vpop.f32.mrb[1].mxu0  ;;  %3416 = vst [vmem:[%s14356_s17 + $0x80] sm:$0xff] %v11360_v42  ;;  %v3291_v63 = vpop.f32.mrb[5].mxu1 }
 0x616   :  { %3401 = vst [vmem:[%s14356_s17 + $0x8] sm:$0xff] %v11366_v56  ;;  %v11376_v9 = vpop.f32.mrb[2].mxu0  ;;  %v7890_v61 = vpack.i.bf16 %v11334_v14, %v11366_v56  ;;  %3417 = vst [vmem:[%s14356_s17 + $0x88] sm:$0xff] %v3291_v63  ;;  %v11383_v4 = vpop.f32.mrb[6].mxu1 }
 0x617   :  { %3407 = vst [vmem:[%s14356_s17 + $0x38] sm:$0xff] %v11376_v9  ;;  %v11389_v11 = vpop.f32.mrb[3].mxu0  ;;  %3423 = vst [vmem:[%s14356_s17 + $0xb8] sm:$0xff] %v11383_v4  ;;  %v11395_v31 = vpop.f32.mrb[7].mxu1 }
 0x618   :  { %3408 = vst [vmem:[%s14356_s17 + $0x40] sm:$0xff] %v11389_v11  ;;  %7891 = vrot.lane.b32.xlu0 %v7890_v61, %s8183_s21  ;;  %3424 = vst [vmem:[%s14356_s17 + $0xc0] sm:$0xff] %v11395_v31  ;;  %v7910_v0 = vpack.i.bf16 %v11346_v52, %v11389_v11 }
 0x61c   :  { %v11408_v15 = vpop.f32.mrb[4].mxu0 }
 0x61d   :  { %3414 = vst [vmem:[%s14356_s17 + $0x70] sm:$0xff] %v11408_v15  ;;  %v11414_v1 = vpop.f32.mrb[5].mxu0 }
 0x61e   :  { %3415 = vst [vmem:[%s14356_s17 + $0x78] sm:$0xff] %v11414_v1  ;;  %v11420_v46 = vpop.f32.mrb[6].mxu0  ;;  %v7925_v8 = vpack.i.bf16 %v11360_v42, %v11414_v1 }
 0x61f   :  { %3421 = vst [vmem:[%s14356_s17 + $0xa8] sm:$0xff] %v11420_v46  ;;  %v11428_v37 = vpop.f32.mrb[7].mxu0 }
 0x620   :  { %3422 = vst [vmem:[%s14356_s17 + $0xb0] sm:$0xff] %v11428_v37  ;;  %v7403_v16 = vpop.f32.mrb[8].mxu1  ;;  %v7940_v45 = vpack.i.bf16 %v11383_v4, %v11428_v37 }
 0x621   :  { %3420 = vst.msk [vmem:[%s14356_s17 + $0xa0] sm:$0xff] %vm58_vm2, %v7403_v16  ;;  %v3385_v48 = vpop.f32.mrb[9].mxu1 }
 0x622   :  { %3406 = vst.msk [vmem:[%s14356_s17 + $0x30] sm:$0xff] %vm58_vm2, %v3385_v48  ;;  %v7404_v30 = vpop.f32.mrb[10].mxu1  ;;  %v2148_v48 = vld [vmem:[%s14351_s12 + $0x58] sm:$0xff] }
 0x623   :  { %3427 = vst.msk [vmem:[%s14356_s17 + $0xd8] sm:$0xff] %vm58_vm2, %v7404_v30  ;;  %v3388_v13 = vpop.f32.mrb[11].mxu1 }
 0x624   :  { %3413 = vst.msk [vmem:[%s14356_s17 + $0x68] sm:$0xff] %vm58_vm2, %v3388_v13 }
 0x640   :  { %v11452_v58 = vpop.f32.mrb[12].mxu1 }
 0x641   :  { %7246 = vst [vmem:[%s14356_s17 + $0xe0] sm:$0xff] %v11452_v58  ;;  %v11458_v51 = vpop.f32.mrb[13].mxu1  ;;  %v7905_v44 = vpack.i.bf16 %v11452_v58, %v11358_v25 }
 0x642   :  { %7247 = vst [vmem:[%s14356_s17 + $0xe8] sm:$0xff] %v11458_v51  ;;  %v11466_v33 = vpop.f32.mrb[14].mxu1  ;;  %v7895_v27 = vpack.i.bf16 %v11458_v51, %v11340_v43 }
 0x643   :  { %7253 = vst [vmem:[%s14356_s17 + $0x118] sm:$0xff] %v11466_v33  ;;  %v11474_v24 = vpop.f32.mrb[15].mxu1  ;;  %v7920_v47 = vpack.i.bf16 %v11466_v33, %v11376_v9 }
 0x644   :  { %7254 = vst [vmem:[%s14356_s17 + $0x120] sm:$0xff] %v11474_v24  ;;  %7896 = vrot.lane.b32.xlu1 %v7895_v27, %s8183_s21  ;;  %v7915_v10 = vpack.i.bf16 %v11474_v24, %v11352_v40  ;;  %v2139_v40 = vld [vmem:[%s14351_s12 + $0x10] sm:$0xff] }
 0x645   :  { %v7421_v61 = vpack.c.bf16 %v2139_v40, %v2137_v6  ;;  %v2147_v27 = vld [vmem:[%s14351_s12 + $0x50] sm:$0xff]  ;;  %v2153_v6 = vld [vmem:[%s14351_s12 + $0x80] sm:$0xff] }
 0x646   :  { %v2155_v40 = vld [vmem:[%s14351_s12 + $0x90] sm:$0xff] }
 0x647   :  { %7422 = vmatpush1.bf16.msra.mxu0 %v7421_v61  ;;  %7610 = vmatpush1.bf16.msra.mxu1 %v7421_v61  ;;  %v2160_v61 = vld [vmem:[%s14351_s12 + $0xb8] sm:$0xff] }
 0x648   :  { %v11485_v34 = vpop.f32.mrb[16].mxu1  ;;  %7906 = vrot.lane.b32.xlu1 %v7905_v44, %s8183_s21  ;;  %v2145_v44 = vld [vmem:[%s14351_s12 + $0x40] sm:$0xff] }
 0x649   :  { %7260 = vst [vmem:[%s14356_s17 + $0x150] sm:$0xff] %v11485_v34  ;;  %v11492_v55 = vpop.f32.mrb[17].mxu1  ;;  %v7935_v49 = vpack.i.bf16 %v11485_v34, %v11408_v15 }
 0x64a   :  { %7261 = vst [vmem:[%s14356_s17 + $0x158] sm:$0xff] %v11492_v55  ;;  %v11500_v35 = vpop.f32.mrb[18].mxu1  ;;  %v7930_v59 = vpack.i.bf16 %v11492_v55, %v3291_v63  ;;  %v2142_v63 = vld [vmem:[%s14351_s12 + $0x28] sm:$0xff] }
 0x64b   :  { %7267 = vst [vmem:[%s14356_s17 + $0x188] sm:$0xff] %v11500_v35  ;;  %v11507_v50 = vpop.f32.mrb[19].mxu1  ;;  %v7950_v21 = vpack.i.bf16 %v11500_v35, %v11420_v46 }
 0x64c   :  { %7268 = vst [vmem:[%s14356_s17 + $0x190] sm:$0xff] %v11507_v50  ;;  %7916 = vrot.lane.b32.xlu1 %v7915_v10, %s8183_s21  ;;  %v7945_v26 = vpack.i.bf16 %v11507_v50, %v11395_v31  ;;  %v2144_v31 = vld [vmem:[%s14351_s12 + $0x38] sm:$0xff] }
 0x64d   :  { %v7423_v16 = vpack.c.bf16 %v2144_v31, %v2142_v63  ;;  %v2152_v10 = vld [vmem:[%s14351_s12 + $0x78] sm:$0xff]  ;;  %v2158_v63 = vld [vmem:[%s14351_s12 + $0xa8] sm:$0xff] }
 0x64f   :  { %7424 = vmatprep.subr.bf16.mxu0 %v7423_v16  ;;  %7612 = vmatprep.subr.bf16.mxu1 %v7423_v16 }
 0x650   :  { %7921 = vrot.lane.b32.xlu1 %v7920_v47, %s8183_s21  ;;  %v2150_v47 = vld [vmem:[%s14351_s12 + $0x68] sm:$0xff] }
 0x654   :  { %7931 = vrot.lane.b32.xlu1 %v7930_v59, %s8183_s21  ;;  %v7429_v59 = vpack.c.bf16 %v2147_v27, %v2145_v44  ;;  %v2162_v44 = vld [vmem:[%s14351_s12 + $0xc8] sm:$0xff]  ;;  %v2164_v27 = vld [vmem:[%s14351_s12 + $0xd8] sm:$0xff] }
 0x655   :  { %v11520_v20 = vpop.f32.mrb[20].mxu1 }
 0x656   :  { %7248 = vst [vmem:[%s14356_s17 + $0xf0] sm:$0xff] %v11520_v20  ;;  %v11526_v7 = vpop.f32.mrb[21].mxu1 }
 0x657   :  { %7249 = vst [vmem:[%s14356_s17 + $0xf8] sm:$0xff] %v11526_v7  ;;  %v11532_v36 = vpop.f32.mrb[22].mxu1  ;;  %v7900_v29 = vpack.i.bf16 %v11526_v7, %v11520_v20 }
 0x658   :  { %7255 = vst [vmem:[%s14356_s17 + $0x128] sm:$0xff] %v11532_v36  ;;  %v4762_v38 = vpop.f32.mrb[23].mxu1  ;;  %7936 = vrot.lane.b32.xlu1 %v7935_v49, %s8183_s21 }
 0x659   :  { %7256 = vst [vmem:[%s14356_s17 + $0x130] sm:$0xff] %v4762_v38  ;;  %7901 = vrot.lane.b32.xlu0 %v7900_v29, %s8183_s21  ;;  %v7955_v23 = vpack.i.bf16 %v4762_v38, %v11532_v36  ;;  %v7431_v29 = vpack.c.bf16 %v2152_v10, %v2150_v47  ;;  %v2149_v38 = vld [vmem:[%s14351_s12 + $0x60] sm:$0xff] }
 0x65c   :  { %7946 = vrot.lane.b32.xlu1 %v7945_v26, %s8183_s21 }
 0x65d   :  { %7911 = vrot.lane.b32.xlu0 %v7910_v0, %s8183_s21  ;;  %v11548_v3 = vpop.f32.mrb[24].mxu1  ;;  %v2141_v0 = vld [vmem:[%s14351_s12 + $0x20] sm:$0xff] }
 0x65e   :  { %7262 = vst [vmem:[%s14356_s17 + $0x160] sm:$0xff] %v11548_v3  ;;  %v4768_v19 = vpop.f32.mrb[25].mxu1 }
 0x65f   :  { %7263 = vst [vmem:[%s14356_s17 + $0x168] sm:$0xff] %v4768_v19  ;;  %v11557_v41 = vpop.f32.mrb[26].mxu1  ;;  %v7960_v18 = vpack.i.bf16 %v4768_v19, %v11548_v3 }
 0x660   :  { %7951 = vrot.lane.b32.xlu1 %v7950_v21, %s8183_s21  ;;  %7269 = vst [vmem:[%s14356_s17 + $0x198] sm:$0xff] %v11557_v41  ;;  %v4772_v54 = vpop.f32.mrb[27].mxu1 }
 0x661   :  { %7926 = vrot.lane.b32.xlu0 %v7925_v8, %s8183_s21  ;;  %7270 = vst [vmem:[%s14356_s17 + $0x1a0] sm:$0xff] %v4772_v54  ;;  %v7965_v57 = vpack.i.bf16 %v4772_v54, %v11557_v41  ;;  %v2143_v8 = vld [vmem:[%s14351_s12 + $0x30] sm:$0xff]  ;;  %v2156_v54 = vld [vmem:[%s14351_s12 + $0x98] sm:$0xff] }
 0x662   :  { %v7425_v30 = vpack.c.bf16 %v2143_v8, %v2141_v0  ;;  %v7437_v0 = vpack.c.bf16 %v2155_v40, %v2153_v6  ;;  %v2167_v6 = vld [vmem:[%s14351_s12 + $0xf0] sm:$0xff]  ;;  %v2170_v40 = vld [vmem:[%s14351_s12 + $0x108] sm:$0xff] }
 0x664   :  { %7426 = vmatpush1.bf16.msra.mxu0 %v7425_v30  ;;  %7614 = vmatpush1.bf16.msra.mxu1 %v7425_v30  ;;  %v2159_v30 = vld [vmem:[%s14351_s12 + $0xb0] sm:$0xff] }
 0x665   :  { %7941 = vrot.lane.b32.xlu0 %v7940_v45, %s8183_s21  ;;  %v2146_v45 = vld [vmem:[%s14351_s12 + $0x48] sm:$0xff] }
 0x666   :  { %v7427_v13 = vpack.c.bf16 %v2148_v48, %v2146_v45  ;;  %v7439_v45 = vpack.c.bf16 %v2160_v61, %v2158_v63  ;;  %v2157_v48 = vld [vmem:[%s14351_s12 + $0xa0] sm:$0xff]  ;;  %v2172_v63 = vld [vmem:[%s14351_s12 + $0x118] sm:$0xff] }
 0x668   :  { %7428 = vmatprep.subr.bf16.mxu0 %v7427_v13  ;;  %7616 = vmatprep.subr.bf16.mxu1 %v7427_v13 }
 0x669   :  { %7956 = vrot.lane.b32.xlu0 %v7955_v23, %s8183_s21  ;;  %v2151_v23 = vld [vmem:[%s14351_s12 + $0x70] sm:$0xff]  ;;  %7430 = vmatpush1.bf16.msra.mxu0 %v7429_v59 }
 0x66a   :  { %v7433_v53 = vpack.c.bf16 %v2151_v23, %v2149_v38  ;;  %7618 = vmatpush1.bf16.msra.mxu1 %v7429_v59  ;;  %7432 = vmatprep.subr.bf16.mxu0 %v7431_v29  ;;  %v7441_v59 = vpack.c.bf16 %v2159_v30, %v2157_v48  ;;  %v2163_v38 = vld [vmem:[%s14351_s12 + $0xd0] sm:$0xff]  ;;  %v2166_v23 = vld [vmem:[%s14351_s12 + $0xe8] sm:$0xff]  ;;  %v7451_v48 = vpack.c.bf16 %v2172_v63, %v2170_v40  ;;  %v2169_v30 = vld [vmem:[%s14351_s12 + $0x100] sm:$0xff] }
 0x66b   :  { %7620 = vmatprep.subr.bf16.mxu1 %v7431_v29  ;;  %v2161_v29 = vld [vmem:[%s14351_s12 + $0xc0] sm:$0xff]  ;;  %v2179_v40 = vld [vmem:[%s14351_s12 + $0x150] sm:$0xff]  ;;  %v2182_v63 = vld [vmem:[%s14351_s12 + $0x168] sm:$0xff] }
 0x66d   :  { %7961 = vrot.lane.b32.xlu0 %v7960_v18, %s8183_s21  ;;  %v2154_v18 = vld [vmem:[%s14351_s12 + $0x88] sm:$0xff]  ;;  %7434 = vmatpush1.bf16.msra.mxu0 %v7433_v53 }
 0x66e   :  { %v7435_v62 = vpack.c.bf16 %v2156_v54, %v2154_v18  ;;  %7622 = vmatpush1.bf16.msra.mxu1 %v7433_v53  ;;  %v2168_v18 = vld [vmem:[%s14351_s12 + $0xf8] sm:$0xff]  ;;  %v7445_v54 = vpack.c.bf16 %v2163_v38, %v2161_v29  ;;  %v2173_v38 = vld [vmem:[%s14351_s12 + $0x120] sm:$0xff] }
 0x66f   :  { %v7447_v53 = vpack.c.bf16 %v2168_v18, %v2166_v23  ;;  %v2175_v23 = vld [vmem:[%s14351_s12 + $0x130] sm:$0xff]  ;;  %v2178_v18 = vld [vmem:[%s14351_s12 + $0x148] sm:$0xff] }
 0x670   :  { %7436 = vmatprep.subr.bf16.mxu0 %v7435_v62  ;;  %7624 = vmatprep.subr.bf16.mxu1 %v7435_v62  ;;  %v2165_v62 = vld [vmem:[%s14351_s12 + $0xe0] sm:$0xff] }
 0x671   :  { %7966 = vrot.lane.b32.xlu0 %v7965_v57, %s8183_s21  ;;  %v11580_v12 = vpop.f32.mrb[8].mxu0  ;;  %7438 = vmatpush1.bf16.msra.mxu0 %v7437_v0 }
 0x672   :  { %3404 = vst [vmem:[%s14356_s17 + $0x20] sm:$0xff] %v11580_v12  ;;  %v11586_v2 = vpop.f32.mrb[9].mxu0  ;;  %7626 = vmatpush1.bf16.msra.mxu1 %v7437_v0  ;;  %7440 = vmatprep.subr.bf16.mxu0 %v7439_v45  ;;  %v7449_v0 = vpack.c.bf16 %v2167_v6, %v2165_v62  ;;  %v2177_v6 = vld [vmem:[%s14351_s12 + $0x140] sm:$0xff] }
 0x673   :  { %3405 = vst [vmem:[%s14356_s17 + $0x28] sm:$0xff] %v11586_v2  ;;  %v11592_v28 = vpop.f32.mrb[10].mxu0  ;;  %7628 = vmatprep.subr.bf16.mxu1 %v7439_v45 }
 0x674   :  { %3411 = vst [vmem:[%s14356_s17 + $0x58] sm:$0xff] %v11592_v28  ;;  %v11598_v22 = vpop.f32.mrb[11].mxu0 }
 0x675   :  { %3412 = vst [vmem:[%s14356_s17 + $0x60] sm:$0xff] %v11598_v22  ;;  %7442 = vmatpush1.bf16.msra.mxu0 %v7441_v59 }
 0x676   :  { %7630 = vmatpush1.bf16.msra.mxu1 %v7441_v59  ;;  %v2176_v59 = vld [vmem:[%s14351_s12 + $0x138] sm:$0xff] }
 0x679   :  { %v11610_v60 = vpop.f32.mrb[12].mxu0 }
 0x67a   :  { %3418 = vst [vmem:[%s14356_s17 + $0x90] sm:$0xff] %v11610_v60  ;;  %v11616_v5 = vpop.f32.mrb[13].mxu0 }
 0x67b   :  { %3419 = vst [vmem:[%s14356_s17 + $0x98] sm:$0xff] %v11616_v5  ;;  %v11622_v39 = vpop.f32.mrb[14].mxu0 }
 0x67c   :  { %3425 = vst [vmem:[%s14356_s17 + $0xc8] sm:$0xff] %v11622_v39  ;;  %v11628_v32 = vpop.f32.mrb[15].mxu0 }
 0x67d   :  { %3426 = vst [vmem:[%s14356_s17 + $0xd0] sm:$0xff] %v11628_v32 }
 0x685   :  { %v11670_v49 = vpop.f32.mrb[28].mxu1 }
 0x686   :  { %7250 = vst [vmem:[%s14356_s17 + $0x100] sm:$0xff] %v11670_v49  ;;  %v7970_v21 = vpack.i.bf16 %v11670_v49, %v11580_v12  ;;  %v11678_v26 = vpop.f32.mrb[29].mxu1 }
 0x687   :  { %7251 = vst [vmem:[%s14356_s17 + $0x108] sm:$0xff] %v11678_v26  ;;  %v11690_v19 = vpop.f32.mrb[30].mxu1 }
 0x688   :  { %7971 = vrot.lane.b32.xlu1 %v7970_v21, %s8183_s21  ;;  %7257 = vst [vmem:[%s14356_s17 + $0x138] sm:$0xff] %v11690_v19  ;;  %v11703_v57 = vpop.f32.mrb[31].mxu1  ;;  %v7990_v17 = vpack.i.bf16 %v11690_v19, %v11592_v28  ;;  %v7443_v21 = vpack.c.bf16 %v2164_v27, %v2162_v44  ;;  %v2171_v44 = vld [vmem:[%s14351_s12 + $0x110] sm:$0xff]  ;;  %v2174_v27 = vld [vmem:[%s14351_s12 + $0x128] sm:$0xff] }
 0x689   :  { %7258 = vst [vmem:[%s14356_s17 + $0x140] sm:$0xff] %v11703_v57  ;;  %v7455_v29 = vpack.c.bf16 %v2176_v59, %v2174_v27  ;;  %v2188_v27 = vld [vmem:[%s14351_s12 + $0x198] sm:$0xff] }
 0x68a   :  { %7444 = vmatprep.subr.bf16.mxu0 %v7443_v21  ;;  %7632 = vmatprep.subr.bf16.mxu1 %v7443_v21  ;;  %v7453_v21 = vpack.c.bf16 %v2171_v44, %v2169_v30  ;;  %v2183_v30 = vld [vmem:[%s14351_s12 + $0x170] sm:$0xff]  ;;  %v2186_v44 = vld [vmem:[%s14351_s12 + $0x188] sm:$0xff] }
 0x68b   :  { %7446 = vmatpush1.bf16.msra.mxu0 %v7445_v54  ;;  %7634 = vmatpush1.bf16.msra.mxu1 %v7445_v54  ;;  %v2180_v54 = vld [vmem:[%s14351_s12 + $0x158] sm:$0xff] }
 0x68c   :  { %7448 = vmatprep.subr.bf16.mxu0 %v7447_v53  ;;  %7636 = vmatprep.subr.bf16.mxu1 %v7447_v53  ;;  %v7457_v53 = vpack.c.bf16 %v2175_v23, %v2173_v38  ;;  %v7459_v62 = vpack.c.bf16 %v2180_v54, %v2178_v18  ;;  %v2187_v38 = vld [vmem:[%s14351_s12 + $0x190] sm:$0xff]  ;;  %v2190_v23 = vld [vmem:[%s14351_s12 + $0x1a8] sm:$0xff]  ;;  %v2192_v18 = vld [vmem:[%s14351_s12 + $0x1b8] sm:$0xff] }
 0x68d   :  { %v11723_v31 = vpop.f32.mrb[32].mxu1 }
 0x68e   :  { %7264 = vst [vmem:[%s14356_s17 + $0x170] sm:$0xff] %v11723_v31  ;;  %v11729_v8 = vpop.f32.mrb[33].mxu1  ;;  %v8005_v16 = vpack.i.bf16 %v11723_v31, %v11610_v60 }
 0x68f   :  { %7265 = vst [vmem:[%s14356_s17 + $0x178] sm:$0xff] %v11729_v8  ;;  %v11743_v13 = vpop.f32.mrb[34].mxu1  ;;  %7450 = vmatpush1.bf16.msra.mxu0 %v7449_v0  ;;  %7638 = vmatpush1.bf16.msra.mxu1 %v7449_v0  ;;  %v7461_v0 = vpack.c.bf16 %v2179_v40, %v2177_v6  ;;  %v2191_v6 = vld [vmem:[%s14351_s12 + $0x1b0] sm:$0xff]  ;;  %v7892_v40 = vpop.permute.xlu0 %7891 }
 0x690   :  { %7271 = vst [vmem:[%s14356_s17 + $0x1a8] sm:$0xff] %v11743_v13  ;;  %v8020_v47 = vpack.i.bf16 %v11743_v13, %v11622_v39  ;;  %v11757_v10 = vpop.f32.mrb[35].mxu1  ;;  %7452 = vmatprep.subr.bf16.mxu0 %v7451_v48  ;;  %7640 = vmatprep.subr.bf16.mxu1 %v7451_v48  ;;  %v2181_v48 = vld [vmem:[%s14351_s12 + $0x160] sm:$0xff] }
 0x691   :  { %7272 = vst [vmem:[%s14356_s17 + $0x1b0] sm:$0xff] %v11757_v10  ;;  %v7465_v59 = vpack.c.bf16 %v2183_v30, %v2181_v48  ;;  %v2193_v48 = vld [vmem:[%s14351_s12 + $0x1c0] sm:$0xff]  ;;  %v2195_v30 = vld [vmem:[%s14351_s12 + $0x1d0] sm:$0xff] }
 0x693   :  { %7454 = vmatpush1.bf16.msra.mxu0 %v7453_v21  ;;  %7642 = vmatpush1.bf16.msra.mxu1 %v7453_v21  ;;  %v7467_v21 = vpack.c.bf16 %v2188_v27, %v2186_v44  ;;  %v7894_v44 = vunpack.i.h.bf16 %v7892_v40  ;;  %v7893_v27 = vunpack.i.l.bf16 %v7892_v40 }
 0x694   :  { %7456 = vmatprep.subr.bf16.mxu0 %v7455_v29  ;;  %7644 = vmatprep.subr.bf16.mxu1 %v7455_v29  ;;  %v2185_v29 = vld [vmem:[%s14351_s12 + $0x180] sm:$0xff] }
 0x695   :  { %v7469_v54 = vpack.c.bf16 %v2187_v38, %v2185_v29  ;;  %v3529_v29 = vsel %vm332_vm4, %v7893_v27, %v7894_v44 }
 0x697   :  { %7458 = vmatpush1.bf16.msra.mxu0 %v7457_v53  ;;  %7646 = vmatpush1.bf16.msra.mxu1 %v7457_v53  ;;  %v7471_v53 = vpack.c.bf16 %v2192_v18, %v2190_v23  ;;  %v2198_v18 = vld [vmem:[%s14351_s12 + $0x1e8] sm:$0xff] }
 0x698   :  { %7460 = vmatprep.subr.bf16.mxu0 %v7459_v62  ;;  %7648 = vmatprep.subr.bf16.mxu1 %v7459_v62  ;;  %v2189_v62 = vld [vmem:[%s14351_s12 + $0x1a0] sm:$0xff] }
 0x699   :  { %v7417_v61 = vpop.f32.mrb[36].mxu1 }
 0x69a   :  { %7266 = vst.msk [vmem:[%s14356_s17 + $0x180] sm:$0xff] %vm58_vm2, %v7417_v61  ;;  %v4862_v45 = vpop.f32.mrb[37].mxu1  ;;  %v2184_v61 = vld [vmem:[%s14351_s12 + $0x178] sm:$0xff] }
 0x69b   :  { %7252 = vst.msk [vmem:[%s14356_s17 + $0x110] sm:$0xff] %vm58_vm2, %v4862_v45  ;;  %v7463_v45 = vpack.c.bf16 %v2184_v61, %v2182_v63  ;;  %7462 = vmatpush1.bf16.msra.mxu0 %v7461_v0  ;;  %7650 = vmatpush1.bf16.msra.mxu1 %v7461_v0  ;;  %v7473_v63 = vpack.c.bf16 %v2191_v6, %v2189_v62  ;;  %v2194_v61 = vld [vmem:[%s14351_s12 + $0x1c8] sm:$0xff]  ;;  %v2196_v0 = vld [vmem:[%s14351_s12 + $0x1d8] sm:$0xff]  ;;  %v7418_v23 = vpop.f32.mrb[38].mxu1 }
 0x69c   :  { %7273 = vst.msk [vmem:[%s14356_s17 + $0x1b8] sm:$0xff] %vm58_vm2, %v7418_v23  ;;  %v4865_v40 = vpop.f32.mrb[39].mxu1 }
 0x69d   :  { %7464 = vmatprep.subr.bf16.mxu0 %v7463_v45  ;;  %7652 = vmatprep.subr.bf16.mxu1 %v7463_v45  ;;  %v7475_v45 = vpack.c.bf16 %v2196_v0, %v2194_v61  ;;  %v11897_v61 = vmax.f32 %v11366_v56, %v3529_v29  ;;  %7259 = vst.msk [vmem:[%s14356_s17 + $0x148] sm:$0xff] %vm58_vm2, %v4865_v40  ;;  %vm3784_vm2 = vcmask 941056  }
 0x69f   :  { %7466 = vmatpush1.bf16.msra.mxu0 %v7465_v59  ;;  %7654 = vmatpush1.bf16.msra.mxu1 %v7465_v59  ;;  %v7477_v59 = vpack.c.bf16 %v2195_v30, %v2193_v48 }
 0x6a0   :  { %7468 = vmatprep.subr.bf16.mxu0 %v7467_v21  ;;  %7656 = vmatprep.subr.bf16.mxu1 %v7467_v21 }
 0x6a3   :  { %7470 = vmatpush1.bf16.msra.mxu0 %v7469_v54  ;;  %7658 = vmatpush1.bf16.msra.mxu1 %v7469_v54  ;;  %v2200_v54 = vld [vmem:[%s14351_s12 + $0x1f8] sm:$0xff] }
 0x6a4   :  { %7472 = vmatprep.subr.bf16.mxu0 %v7471_v53  ;;  %7660 = vmatprep.subr.bf16.mxu1 %v7471_v53  ;;  %v2197_v53 = vld [vmem:[%s14351_s12 + $0x1e0] sm:$0xff]  ;;  %v7479_v6 = vpack.c.bf16 %v2200_v54, %v2198_v18 }
 0x6a7   :  { %7474 = vmatpush1.bf16.msra.mxu0 %v7473_v63  ;;  %7662 = vmatpush1.bf16.msra.mxu1 %v7473_v63  ;;  %v2199_v63 = vld [vmem:[%s14351_s12 + $0x1f0] sm:$0xff] }
 0x6a8   :  { %7476 = vmatprep.subr.bf16.mxu0 %v7475_v45  ;;  %7664 = vmatprep.subr.bf16.mxu1 %v7475_v45  ;;  %v7481_v48 = vpack.c.bf16 %v2199_v63, %v2197_v53 }
 0x6ab   :  { %7478 = vmatpush1.bf16.msra.mxu0 %v7477_v59  ;;  %7666 = vmatpush1.bf16.msra.mxu1 %v7477_v59 }
 0x6ac   :  { %7480 = vmatprep.subr.bf16.mxu0 %v7479_v6  ;;  %7668 = vmatprep.subr.bf16.mxu1 %v7479_v6 }
 0x6af   :  { %7482 = vmatpush1.bf16.msra.mxu0 %v7481_v48  ;;  %7670 = vmatpush1.bf16.msra.mxu1 %v7481_v48 }
 0x6b6   :  { %v11873_v21 = vpop.permute.xlu1 %7896 }
 0x6b7   :  { %v14462_v38 = vunpack.i.l.bf16 %v11873_v21  ;;  %v7899_v30 = vunpack.i.h.bf16 %v11873_v21 }
 0x6b9   :  { %v3530_v62 = vsel %vm332_vm4, %v7894_v44, %v14462_v38 }
 0x6ba   :  { %v11900_v0 = vmax.f32 %v11334_v14, %v3530_v62  ;;  %v7907_v45 = vpop.permute.xlu1 %7906 }
 0x6bb   :  { %v7909_v44 = vunpack.i.h.bf16 %v7907_v45  ;;  %v7908_v23 = vunpack.i.l.bf16 %v7907_v45 }
 0x6bc   :  { %v7975_v56 = vpack.i.bf16 %v11900_v0, %v11897_v61 }
 0x6bd   :  { %v3528_v59 = vsel %vm332_vm4, %v7908_v23, %v7893_v27  ;;  %v5006_v14 = vsel %vm332_vm4, %v7909_v44, %v7899_v30 }
 0x6be   :  { %v11912_v29 = vmax.f32 %v11358_v25, %v3528_v59  ;;  %v11915_v18 = vmax.f32 %v11452_v58, %v5006_v14  ;;  %7976 = vrot.lane.b32.xlu0 %v7975_v56, %s8189_s26  ;;  %v11920_v53 = vpop.permute.xlu1 %7916 }
 0x6bf   :  { %v14460_v45 = vunpack.i.l.bf16 %v11920_v53 }
 0x6c0   :  { %v7980_v54 = vpack.i.bf16 %v11915_v18, %v11912_v29 }
 0x6c2   :  { %7981 = vrot.lane.b32.xlu0 %v7980_v54, %s8189_s26  ;;  %v7922_v27 = vpop.permute.xlu1 %7921 }
 0x6c6   :  { %3490 = vrot.lane.b32.xlu0 %v11586_v2, %s8183_s21  ;;  %v11933_v6 = vpop.permute.xlu1 %7931 }
 0x6c7   :  { %v14461_v54 = vunpack.i.l.bf16 %v11933_v6 }
 0x6ca   :  { %7991 = vrot.lane.b32.xlu0 %v7990_v17, %s8183_s21  ;;  %v7937_v59 = vpop.permute.xlu1 %7936 }
 0x6cb   :  { %v11929_v25 = vpop.permute.xlu0 %7901 }
 0x6cc   :  { %v7904_v58 = vunpack.i.h.bf16 %v11929_v25  ;;  %v7903_v62 = vunpack.i.l.bf16 %v11929_v25 }
 0x6ce   :  { %v5007_v40 = vsel %vm332_vm4, %v7899_v30, %v7903_v62  ;;  %v5008_v2 = vsel %vm332_vm4, %v7903_v62, %v7904_v58 }
 0x6cf   :  { %v11940_v63 = vmax.f32 %v11458_v51, %v5007_v40  ;;  %v11943_v19 = vmax.f32 %v11520_v20, %v5008_v2  ;;  %v7912_v17 = vpop.permute.xlu0 %7911 }
 0x6d0   :  { %v7914_v48 = vunpack.i.h.bf16 %v7912_v17  ;;  %v7913_v44 = vunpack.i.l.bf16 %v7912_v17 }
 0x6d1   :  { %v7985_v23 = vpack.i.bf16 %v11943_v19, %v11940_v63 }
 0x6d2   :  { %v3534_v30 = vsel %vm332_vm4, %v7913_v44, %v7914_v48  ;;  %v3535_v56 = vsel %vm332_vm4, %v7914_v48, %v14460_v45  ;;  %v7919_v45 = vunpack.i.h.bf16 %v11920_v53 }
 0x6d3   :  { %v11953_v51 = vmax.f32 %v11389_v11, %v3534_v30  ;;  %v11956_v20 = vmax.f32 %v11346_v52, %v3535_v56  ;;  %v7927_v14 = vpop.permute.xlu0 %7926  ;;  %7986 = vrot.lane.b32.xlu1 %v7985_v23, %s8189_s26  ;;  %v7924_v52 = vunpack.i.h.bf16 %v7922_v27  ;;  %v7923_v23 = vunpack.i.l.bf16 %v7922_v27  ;;  %v11971_v30 = vpop.permute.xlu1 %7946 }
 0x6d4   :  { %v7929_v62 = vunpack.i.h.bf16 %v7927_v14  ;;  %v7928_v40 = vunpack.i.l.bf16 %v7927_v14 }
 0x6d5   :  { %14810 = vst [vmem:[#allocation28_spill] sm:$0xff] %v11956_v20  ;;  %v7995_v2 = vpack.i.bf16 %v11956_v20, %v11953_v51  ;;  %v14835_v20 = vunpack.i.l.bf16 %v11971_v30 }
 0x6d6   :  { %v3539_v17 = vsel %vm332_vm4, %v7928_v40, %v7929_v62  ;;  %v3540_v11 = vsel %vm332_vm4, %v7929_v62, %v14461_v54  ;;  %v3533_v62 = vsel %vm332_vm4, %v7923_v23, %v7913_v44 }
 0x6d7   :  { %v11966_v48 = vpop.permute.xlu0 %7941  ;;  %4968 = vrot.lane.b32.xlu1 %v11678_v26, %s8183_s21  ;;  %7996 = vrot.lane.b32.xlu0 %v7995_v2, %s8189_s26  ;;  %v11974_v56 = vmax.f32 %v11414_v1, %v3539_v17  ;;  %v11977_v14 = vmax.f32 %v11360_v42, %v3540_v11  ;;  %v5011_v42 = vsel %vm332_vm4, %v7924_v52, %v7919_v45  ;;  %v14467_v1 = vunpack.i.l.bf16 %v11971_v30 }
 0x6d8   :  { %v7944_v54 = vunpack.i.h.bf16 %v11966_v48  ;;  %v7943_v26 = vunpack.i.l.bf16 %v11966_v48  ;;  %v11994_v27 = vmax.f32 %v11376_v9, %v3533_v62  ;;  %v12003_v17 = vmax.f32 %v11466_v33, %v5011_v42 }
 0x6d9   :  { %14811 = vst [vmem:[#allocation29_spill] sm:$0xff] %v11977_v14  ;;  %v8010_v44 = vpack.i.bf16 %v11977_v14, %v11974_v56  ;;  %v7938_v48 = vunpack.i.l.bf16 %v7937_v59 }
 0x6da   :  { %v3544_v2 = vsel %vm332_vm4, %v7943_v26, %v7944_v54  ;;  %v8000_v11 = vpack.i.bf16 %v12003_v17, %v11994_v27 }
 0x6db   :  { %v11983_v38 = vpop.permute.xlu0 %7956  ;;  %3502 = vrot.lane.b32.xlu1 %v11598_v22, %s8183_s21  ;;  %8006 = vrot.lane.b32.xlu0 %v8005_v16, %s8183_s21  ;;  %v3545_v22 = vsel %vm332_vm4, %v7944_v54, %v14467_v1  ;;  %v12009_v9 = vmax.f32 %v11428_v37, %v3544_v2  ;;  %v7939_v37 = vunpack.i.h.bf16 %v7937_v59 }
 0x6dc   :  { %v12012_v31 = vmax.f32 %v11383_v4, %v3545_v22  ;;  %v14466_v54 = vunpack.i.h.bf16 %v11983_v38  ;;  %v7958_v33 = vunpack.i.l.bf16 %v11983_v38  ;;  %v7934_v4 = vunpack.i.h.bf16 %v11933_v6 }
 0x6de   :  { %14812 = vst [vmem:[#allocation56_spill] sm:$0xff] %v12012_v31  ;;  %v8025_v52 = vpack.i.bf16 %v12012_v31, %v12009_v9  ;;  %v5012_v23 = vsel %vm332_vm4, %v7919_v45, %v7958_v33  ;;  %v5013_v62 = vsel %vm332_vm4, %v7958_v33, %v14466_v54  ;;  %v5016_v13 = vsel %vm332_vm4, %v7939_v37, %v7934_v4 }
 0x6df   :  { %4980 = vrot.lane.b32.xlu1 %v11703_v57, %s8183_s21  ;;  %8011 = vrot.lane.b32.xlu0 %v8010_v44, %s8189_s26  ;;  %v12014_v16 = vpop.permute.xlu0 %7961  ;;  %v3538_v57 = vsel %vm332_vm4, %v7938_v48, %v7928_v40  ;;  %v12045_v45 = vmax.f32 %v11474_v24, %v5012_v23  ;;  %v12048_v59 = vmax.f32 %v11532_v36, %v5013_v62  ;;  %v7949_v36 = vunpack.i.h.bf16 %v11971_v30 }
 0x6e0   :  { %v14465_v42 = vunpack.i.h.bf16 %v12014_v16  ;;  %v7963_v44 = vunpack.i.l.bf16 %v12014_v16  ;;  %v12062_v24 = vmax.f32 %v11485_v34, %v5016_v13  ;;  %v14830_v31 = vunpack.i.l.bf16 %v11933_v6 }
 0x6e1   :  { %14813 = vst [vmem:[#allocation31_spill] sm:$0xff] %v12048_v59  ;;  %v8040_v34 = vpack.i.bf16 %v12048_v59, %v12045_v45 }
 0x6e2   :  { %v5017_v40 = vsel %vm332_vm4, %v7934_v4, %v7963_v44  ;;  %v5018_v2 = vsel %vm332_vm4, %v7963_v44, %v14465_v42 }
 0x6e3   :  { %8001 = vrot.lane.b32.xlu1 %v8000_v11, %s8189_s26  ;;  %8021 = vrot.lane.b32.xlu0 %v8020_v47, %s8183_s21  ;;  %v12035_v39 = vpop.permute.xlu0 %7966  ;;  %v12042_v47 = vmax.f32 %v11408_v15, %v3538_v57  ;;  %v12059_v15 = vld [vmem:[%s14356_s17 + $0x30] sm:$0xff]  ;;  %v7952_v11 = vpop.permute.xlu1 %7951  ;;  %v12070_v33 = vmax.f32 %v11492_v55, %v5017_v40  ;;  %v12073_v48 = vmax.f32 %v11548_v3, %v5018_v2 }
 0x6e4   :  { %v7968_v22 = vunpack.i.l.bf16 %v12035_v39  ;;  %v7954_v55 = vunpack.i.h.bf16 %v7952_v11  ;;  %v7953_v57 = vunpack.i.l.bf16 %v7952_v11  ;;  %v12139_v11 = vld [vmem:[%s14356_s17 + $0x68] sm:$0xff] }
 0x6e5   :  { %14814 = vst [vmem:[#allocation37_spill] sm:$0xff] %v12073_v48  ;;  %v8015_v37 = vpack.i.bf16 %v12062_v24, %v12042_v47  ;;  %v8045_v23 = vpack.i.bf16 %v12073_v48, %v12070_v33 }
 0x6e6   :  { %v3543_v62 = vsel %vm332_vm4, %v7953_v57, %v7943_v26  ;;  %v5021_v44 = vsel %vm332_vm4, %v7954_v55, %v7949_v36  ;;  %v12118_v26 = vld [vmem:[%s14356_s17 + $0x110] sm:$0xff] }
 0x6e7   :  { %3514 = vrot.lane.b32.xlu1 %v11616_v5, %s8183_s21  ;;  %8026 = vrot.lane.b32.xlu0 %v8025_v52, %s8189_s26  ;;  %v14464_v5 = vunpack.i.h.bf16 %v12035_v39  ;;  %v12099_v13 = vmax.f32 %v11420_v46, %v3543_v62  ;;  %v2204_v46 = vld [vmem:[%s14351_s12 + $0x218] sm:$0xff]  ;;  %14816 = vst [vmem:[#allocation40_spill] sm:$0xff] %v12118_v26  ;;  %v2203_v62 = vld [vmem:[%s14351_s12 + $0x210] sm:$0xff] }
 0x6e9   :  { %v5023_v4 = vsel %vm332_vm4, %v7968_v22, %v14464_v5  ;;  %v2205_v5 = vld [vmem:[%s14351_s12 + $0x220] sm:$0xff] }
 0x6ea   :  { %v12089_v52 = vmax.f32 %v11557_v41, %v5023_v4  ;;  %v12104_v41 = vmax.f32 %v11500_v35, %v5021_v44 }
 0x6eb   :  { %4992 = vrot.lane.b32.xlu1 %v11729_v8, %s8183_s21  ;;  %3600 = vrot.lane.b32.xlu0 %v12059_v15, %s8183_s21  ;;  %v5022_v8 = vsel %vm332_vm4, %v7949_v36, %v7968_v22 }
 0x6ec   :  { %v12086_v3 = vmax.f32 %v11507_v50, %v5022_v8  ;;  %14815 = vst [vmem:[#allocation41_spill] sm:$0xff] %v12089_v52  ;;  %v8030_v40 = vpack.i.bf16 %v12104_v41, %v12099_v13 }
 0x6ee   :  { %v8050_v50 = vpack.i.bf16 %v12089_v52, %v12086_v3 }
 0x6ef   :  { %8016 = vrot.lane.b32.xlu1 %v8015_v37, %s8189_s26  ;;  %8041 = vrot.lane.b32.xlu0 %v8040_v34, %s8189_s26  ;;  %v12146_v37 = vld [vmem:[%s14356_s17 + $0xa0] sm:$0xff] }
 0x6f3   :  { %3526 = vrot.lane.b32.xlu1 %v11628_v32, %s8183_s21  ;;  %8046 = vrot.lane.b32.xlu0 %v8045_v23, %s8189_s26  ;;  %v2202_v32 = vld [vmem:[%s14351_s12 + $0x208] sm:$0xff]  ;;  %v2201_v23 = vld [vmem:[%s14351_s12 + $0x200] sm:$0xff] }
 0x6f4   :  { %v7483_v35 = vpack.c.bf16 %v2204_v46, %v2202_v32  ;;  %v2208_v32 = vld [vmem:[%s14351_s12 + $0x238] sm:$0xff] }
 0x6f6   :  { %7484 = vmatprep.subr.bf16.mxu0 %v7483_v35  ;;  %7672 = vmatprep.subr.bf16.mxu1 %v7483_v35 }
 0x6f7   :  { %5004 = vrot.lane.b32.xlu1 %v11757_v10, %s8183_s21  ;;  %8051 = vrot.lane.b32.xlu0 %v8050_v50, %s8189_s26  ;;  %v2206_v50 = vld [vmem:[%s14351_s12 + $0x228] sm:$0xff] }
 0x6fa   :  { %v12122_v10 = vpop.permute.xlu1 %7971 }
 0x6fb   :  { %v14468_v2 = vunpack.i.h.bf16 %v12122_v10  ;;  %8031 = vrot.lane.b32.xlu1 %v8030_v40, %s8189_s26  ;;  %5078 = vrot.lane.b32.xlu0 %v12118_v26, %s8183_s21  ;;  %v7973_v8 = vunpack.i.l.bf16 %v12122_v10  ;;  %v12182_v40 = vpack.c.bf16 %v2203_v62, %v2201_v23 }
 0x6fd   :  { %v5009_v22 = vsel %vm332_vm4, %v7904_v58, %v14468_v2 }
 0x6fe   :  { %v12134_v36 = vmax.f32 %v11526_v7, %v5009_v22  ;;  %v12153_v7 = vld [vmem:[%s14356_s17 + $0xd8] sm:$0xff] }
 0x6ff   :  { %3602 = vrot.lane.b32.xlu0 %v12139_v11, %s8183_s21  ;;  %14817 = vst [vmem:[#allocation50_spill] sm:$0xff] %v12153_v7 }
 0x703   :  { %3604 = vrot.lane.b32.xlu0 %v12146_v37, %s8183_s21 }
 0x707   :  { %3606 = vrot.lane.b32.xlu0 %v12153_v7, %s8183_s21 }
 0x730   :  { %v12157_v25 = vpop.permute.xlu0 %7976 }
 0x731   :  { %v14463_v58 = vunpack.i.h.bf16 %v12157_v25  ;;  %v7978_v34 = vunpack.i.l.bf16 %v12157_v25 }
 0x733   :  { %v3713_v4 = vsel %vm606_vm10, %v7978_v34, %v14463_v58  ;;  %v12187_v58 = vpack.c.bf16 %v2208_v32, %v2206_v50  ;;  %v2216_v32 = vld [vmem:[%s14351_s12 + $0x278] sm:$0xff] }
 0x734   :  { %v7982_v55 = vpop.permute.xlu0 %7981  ;;  %v3761_v57 = vmax.f32 %v11897_v61, %v3713_v4  ;;  %v14818_v61 = vunpack.i.l.bf16 %v11873_v21  ;;  %v2207_v21 = vld [vmem:[%s14351_s12 + $0x230] sm:$0xff] }
 0x735   :  { %v7983_v44 = vunpack.i.l.bf16 %v7982_v55 }
 0x736   :  { %3868 = vmatprep.mubr.f32.mxu0 %v3761_v57  ;;  %v3531_v46 = vsel %vm332_vm4, %v14818_v61, %v7973_v8 }
 0x737   :  { %v3712_v35 = vsel %vm606_vm10, %v7983_v44, %v7978_v34  ;;  %v2210_v34 = vld [vmem:[%s14351_s12 + $0x248] sm:$0xff]  ;;  %v12204_v23 = vmax.f32 %v11340_v43, %v3531_v46  ;;  %v12210_v44 = vpack.c.bf16 %v2207_v21, %v2205_v5  ;;  %v2209_v43 = vld [vmem:[%s14351_s12 + $0x240] sm:$0xff] }
 0x738   :  { %v3760_v22 = vmax.f32 %v11912_v29, %v3712_v35  ;;  %v12185_v4 = vpop.permute.xlu0 %3490  ;;  %v2212_v29 = vld [vmem:[%s14351_s12 + $0x258] sm:$0xff]  ;;  %v2214_v5 = vld [vmem:[%s14351_s12 + $0x268] sm:$0xff]  ;;  %v2213_v35 = vld [vmem:[%s14351_s12 + $0x260] sm:$0xff] }
 0x739   :  { %v3532_v57 = vsel %vm332_vm4, %v7973_v8, %v12185_v4  ;;  %v12215_v50 = vpack.c.bf16 %v2212_v29, %v2210_v34  ;;  %v12234_v46 = vpack.c.bf16 %v2216_v32, %v2214_v5  ;;  %v2218_v21 = vld [vmem:[%s14351_s12 + $0x288] sm:$0xff] }
 0x73a   :  { %v12207_v62 = vmax.f32 %v11580_v12, %v3532_v57  ;;  %3869 = vmatmul.mubr.f32.vlgmr.msra.gmra.mrb[16].mxu0 %v3760_v22  ;;  %v2211_v12 = vld [vmem:[%s14351_s12 + $0x250] sm:$0xff]  ;;  %v2220_v57 = vld [vmem:[%s14351_s12 + $0x298] sm:$0xff]  ;;  %v2222_v32 = vld [vmem:[%s14351_s12 + $0x2a8] sm:$0xff] }
 0x73b   :  { %7486 = vmatpush1.bf16.msra.mxu0 %v12182_v40  ;;  %v12231_v61 = vpack.c.bf16 %v2211_v12, %v2209_v43  ;;  %v2215_v22 = vld [vmem:[%s14351_s12 + $0x270] sm:$0xff]  ;;  %v12252_v29 = vpack.c.bf16 %v2220_v57, %v2218_v21 }
 0x73c   :  { %14819 = vst [vmem:[#allocation48_spill] sm:$0xff] %v12207_v62  ;;  %v8035_v8 = vpack.i.bf16 %v12207_v62, %v12204_v23  ;;  %7488 = vmatprep.subr.bf16.mxu0 %v12187_v58  ;;  %v12249_v34 = vpack.c.bf16 %v2215_v22, %v2213_v35  ;;  %v2219_v43 = vld [vmem:[%s14351_s12 + $0x290] sm:$0xff]  ;;  %v12260_v12 = vpop.permute.xlu0 %7991  ;;  %v2224_v35 = vld [vmem:[%s14351_s12 + $0x2b8] sm:$0xff]  ;;  %v7984_v22 = vunpack.i.h.bf16 %v7982_v55 }
 0x73d   :  { %v7993_v54 = vunpack.i.l.bf16 %v12260_v12  ;;  %v12281_v52 = vpack.c.bf16 %v2224_v35, %v2222_v32  ;;  %v14821_v32 = vunpack.i.h.bf16 %v12122_v10  ;;  %v14823_v10 = vunpack.i.l.bf16 %v11920_v53 }
 0x73e   :  { %8036 = vrot.lane.b32.xlu1 %v8035_v8, %s8189_s26  ;;  %v2217_v8 = vld [vmem:[%s14351_s12 + $0x280] sm:$0xff] }
 0x73f   :  { %7490 = vmatpush1.bf16.msra.mxu0 %v12210_v44  ;;  %v12273_v42 = vpack.c.bf16 %v2219_v43, %v2217_v8  ;;  %v2221_v43 = vld [vmem:[%s14351_s12 + $0x2a0] sm:$0xff] }
 0x740   :  { %7492 = vmatprep.subr.bf16.mxu0 %v12215_v50 }
 0x743   :  { %7494 = vmatpush1.bf16.msra.mxu0 %v12231_v61 }
 0x744   :  { %7496 = vmatprep.subr.bf16.mxu0 %v12234_v46 }
 0x745   :  { %v12262_v5 = vpop.permute.xlu1 %7986 }
 0x746   :  { %v14472_v21 = vunpack.i.h.bf16 %v12262_v5  ;;  %v7988_v57 = vunpack.i.l.bf16 %v12262_v5 }
 0x747   :  { %7498 = vmatpush1.bf16.msra.mxu0 %v12249_v34 }
 0x748   :  { %v5190_v1 = vsel %vm606_vm10, %v7984_v22, %v7988_v57  ;;  %v5191_v2 = vsel %vm606_vm10, %v7988_v57, %v14472_v21  ;;  %7500 = vmatprep.subr.bf16.mxu0 %v12252_v29  ;;  %v2223_v22 = vld [vmem:[%s14351_s12 + $0x2b0] sm:$0xff] }
 0x749   :  { %v12283_v55 = vpop.permute.xlu1 %4968  ;;  %v12285_v48 = vpop.permute.xlu0 %7996  ;;  %v5239_v62 = vmax.f32 %v11940_v63, %v5191_v2  ;;  %v5238_v8 = vmax.f32 %v11915_v18, %v5190_v1  ;;  %v2226_v18 = vld [vmem:[%s14351_s12 + $0x2c8] sm:$0xff]  ;;  %v2228_v63 = vld [vmem:[%s14351_s12 + $0x2d8] sm:$0xff]  ;;  %v3536_v2 = vsel %vm332_vm4, %v14823_v10, %v7993_v54  ;;  %v12320_v59 = vpack.c.bf16 %v2223_v22, %v2221_v43  ;;  %v2225_v10 = vld [vmem:[%s14351_s12 + $0x2c0] sm:$0xff] }
 0x74a   :  { %14820 = vst [vmem:[#allocation57_spill] sm:$0xff] %v12283_v55  ;;  %v5010_v35 = vsel %vm332_vm4, %v14821_v32, %v12283_v55  ;;  %v14474_v57 = vunpack.i.h.bf16 %v12285_v48  ;;  %v14475_v21 = vunpack.i.l.bf16 %v12285_v48  ;;  %v2227_v43 = vld [vmem:[%s14351_s12 + $0x2d0] sm:$0xff]  ;;  %v14831_v7 = vunpack.i.l.bf16 %v12285_v48 }
 0x74b   :  { %v12308_v1 = vmax.f32 %v11670_v49, %v5010_v35  ;;  %5338 = vmatprep.mubr.f32.mxu1 %v5239_v62  ;;  %7502 = vmatpush1.bf16.msra.mxu0 %v12273_v42 }
 0x74c   :  { %5339 = vmatmul.mubr.f32.vlgmr.msra.gmra.mrb[40].mxu1 %v5238_v8  ;;  %v3719_v32 = vsel %vm606_vm10, %v14475_v21, %v14474_v57  ;;  %7504 = vmatprep.subr.bf16.mxu0 %v12281_v52  ;;  %v12330_v8 = vpack.c.bf16 %v2228_v63, %v2226_v18  ;;  %v8136_v18 = vld [vmem:[%s14356_s17 + $0x50] sm:$0xff] }
 0x74d   :  { %14822 = vst [vmem:[#allocation36_spill] sm:$0xff] %v12308_v1  ;;  %v12322_v49 = vpop.permute.xlu1 %3502  ;;  %v12324_v62 = vpop.permute.xlu0 %8006  ;;  %v8055_v53 = vpack.i.bf16 %v12308_v1, %v12134_v36  ;;  %v3767_v35 = vmax.f32 %v11953_v51, %v3719_v32  ;;  %7674 = vmatpush1.bf16.msra.mxu1 %v12182_v40  ;;  %v2230_v51 = vld [vmem:[%s14351_s12 + $0x2e8] sm:$0xff]  ;;  %v2232_v40 = vld [vmem:[%s14351_s12 + $0x2f8] sm:$0xff]  ;;  %v12350_v63 = vmax.f32 %v8136_v18, %v3536_v2  ;;  %v2229_v2 = vld [vmem:[%s14351_s12 + $0x2e0] sm:$0xff] }
 0x74e   :  { %v3537_v22 = vsel %vm332_vm4, %v7993_v54, %v12322_v49  ;;  %7676 = vmatprep.subr.bf16.mxu1 %v12187_v58  ;;  %v12357_v54 = vpack.c.bf16 %v2227_v43, %v2225_v10  ;;  %v2236_v10 = vld [vmem:[%s14351_s12 + $0x318] sm:$0xff]  ;;  %v2235_v43 = vld [vmem:[%s14351_s12 + $0x310] sm:$0xff] }
 0x74f   :  { %14824 = vst [vmem:[#allocation19_spill] sm:$0xff] %v12350_v63  ;;  %v12353_v32 = vmax.f32 %v11592_v28, %v3537_v22  ;;  %8056 = vrot.lane.b32.xlu1 %v8055_v53, %s8189_s26  ;;  %3874 = vmatprep.mubr.f32.mxu0 %v3767_v35  ;;  %v12367_v28 = vpack.c.bf16 %v2232_v40, %v2230_v51  ;;  %v2231_v53 = vld [vmem:[%s14351_s12 + $0x2f0] sm:$0xff]  ;;  %v12378_v35 = vld [vmem:[%s14356_s17 + $0x148] sm:$0xff]  ;;  %v8008_v51 = vunpack.i.l.bf16 %v12324_v62 }
 0x750   :  { %7506 = vmatpush1.bf16.msra.mxu0 %v12320_v59  ;;  %14826 = vst [vmem:[#allocation14_spill] sm:$0xff] %v12378_v35 }
 0x751   :  { %14825 = vst [vmem:[#allocation45_spill] sm:$0xff] %v12353_v32  ;;  %v12359_v58 = vpop.permute.xlu1 %4980  ;;  %v12361_v57 = vpop.permute.xlu0 %8011  ;;  %v8060_v21 = vpack.i.bf16 %v12353_v32, %v12350_v63  ;;  %7678 = vmatpush1.bf16.msra.mxu1 %v12210_v44  ;;  %7508 = vmatprep.subr.bf16.mxu0 %v12330_v8  ;;  %v2234_v44 = vld [vmem:[%s14351_s12 + $0x308] sm:$0xff] }
 0x752   :  { %7680 = vmatprep.subr.bf16.mxu1 %v12215_v50  ;;  %v12394_v50 = vpack.c.bf16 %v2231_v53, %v2229_v2  ;;  %v12402_v22 = vpack.c.bf16 %v2236_v10, %v2234_v44  ;;  %v12414_v53 = vld [vmem:[%s14356_s17 + $0x180] sm:$0xff]  ;;  %v2240_v44 = vld [vmem:[%s14351_s12 + $0x338] sm:$0xff]  ;;  %v14828_v10 = vunpack.i.h.bf16 %v12361_v57  ;;  %v14829_v1 = vunpack.i.l.bf16 %v12361_v57 }
 0x753   :  { %5080 = vrot.lane.b32.xlu1 %v12378_v35, %s8183_s21  ;;  %8061 = vrot.lane.b32.xlu0 %v8060_v21, %s8189_s26  ;;  %v2233_v21 = vld [vmem:[%s14351_s12 + $0x300] sm:$0xff]  ;;  %14827 = vst [vmem:[#allocation54_spill] sm:$0xff] %v12414_v53 }
 0x754   :  { %7510 = vmatpush1.bf16.msra.mxu0 %v12357_v54  ;;  %v3725_v32 = vsel %vm606_vm10, %v14829_v1, %v14828_v10  ;;  %v12437_v35 = vpack.c.bf16 %v2235_v43, %v2233_v21  ;;  %v2244_v43 = vld [vmem:[%s14351_s12 + $0x358] sm:$0xff]  ;;  %v2241_v10 = vld [vmem:[%s14351_s12 + $0x340] sm:$0xff] }
 0x755   :  { %v12396_v40 = vpop.permute.xlu1 %8001  ;;  %v12398_v18 = vpop.permute.xlu0 %8021  ;;  %7682 = vmatpush1.bf16.msra.mxu1 %v12231_v61  ;;  %7512 = vmatprep.subr.bf16.mxu0 %v12367_v28  ;;  %v2238_v61 = vld [vmem:[%s14351_s12 + $0x328] sm:$0xff] }
 0x756   :  { %v8003_v2 = vunpack.i.l.bf16 %v12396_v40  ;;  %7684 = vmatprep.subr.bf16.mxu1 %v12234_v46  ;;  %v3541_v46 = vsel %vm332_vm4, %v14830_v31, %v8008_v51  ;;  %v12446_v6 = vpack.c.bf16 %v2240_v44, %v2238_v61  ;;  %v2237_v31 = vld [vmem:[%s14351_s12 + $0x320] sm:$0xff] }
 0x757   :  { %5082 = vrot.lane.b32.xlu1 %v12414_v53, %s8183_s21 }
 0x758   :  { %v3718_v14 = vsel %vm606_vm10, %v8003_v2, %v14831_v7  ;;  %7514 = vmatpush1.bf16.msra.mxu0 %v12394_v50  ;;  %v2239_v7 = vld [vmem:[%s14351_s12 + $0x330] sm:$0xff] }
 0x759   :  { %v12439_v26 = vpop.permute.xlu1 %3514  ;;  %v12441_v55 = vpop.permute.xlu0 %8026  ;;  %v3766_v53 = vmax.f32 %v11994_v27, %v3718_v14  ;;  %7686 = vmatpush1.bf16.msra.mxu1 %v12249_v34  ;;  %7516 = vmatprep.subr.bf16.mxu0 %v12402_v22  ;;  %v12459_v14 = vld [vmem:[%s14356_s17 + $0x1b8] sm:$0xff]  ;;  %v3773_v27 = vmax.f32 %v11974_v56, %v3725_v32  ;;  %v2242_v34 = vld [vmem:[%s14351_s12 + $0x348] sm:$0xff]  ;;  %v12480_v56 = vpack.c.bf16 %v2239_v7, %v2237_v31 }
 0x75a   :  { %v3542_v1 = vsel %vm332_vm4, %v8008_v51, %v12439_v26  ;;  %14832 = vst [vmem:[#allocation38_spill] sm:$0xff] %v12459_v14  ;;  %7688 = vmatprep.subr.bf16.mxu1 %v12252_v29  ;;  %v8137_v51 = vld [vmem:[%s14356_s17 + $0x88] sm:$0xff]  ;;  %v14491_v29 = vunpack.i.h.bf16 %v12441_v55  ;;  %v14492_v32 = vunpack.i.l.bf16 %v12441_v55  ;;  %v2248_v7 = vld [vmem:[%s14351_s12 + $0x378] sm:$0xff] }
 0x75b   :  { %v12472_v21 = vmax.f32 %v8137_v51, %v3541_v46  ;;  %v12475_v2 = vmax.f32 %v11610_v60, %v3542_v1  ;;  %5084 = vrot.lane.b32.xlu1 %v12459_v14, %s8183_s21  ;;  %3875 = vmatmul.mubr.f32.gmra.mrb[18].mxu0 %v3766_v53  ;;  %v12492_v53 = vpack.c.bf16 %v2244_v43, %v2242_v34  ;;  %v2243_v46 = vld [vmem:[%s14351_s12 + $0x350] sm:$0xff]  ;;  %v8023_v1 = vunpack.i.l.bf16 %v12398_v18  ;;  %v2250_v34 = vld [vmem:[%s14351_s12 + $0x388] sm:$0xff]  ;;  %v2252_v43 = vld [vmem:[%s14351_s12 + $0x398] sm:$0xff] }
 0x75c   :  { %3880 = vmatprep.mubr.f32.mxu0 %v3773_v27  ;;  %7518 = vmatpush1.bf16.msra.mxu0 %v12437_v35  ;;  %v2245_v27 = vld [vmem:[%s14351_s12 + $0x360] sm:$0xff] }
 0x75d   :  { %14833 = vst [vmem:[#allocation35_spill] sm:$0xff] %v12472_v21  ;;  %14834 = vst [vmem:[#allocation49_spill] sm:$0xff] %v12475_v2  ;;  %v12484_v61 = vpop.permute.xlu1 %4992  ;;  %v12486_v44 = vpop.permute.xlu0 %3600  ;;  %v8065_v60 = vpack.i.bf16 %v12475_v2, %v12472_v21  ;;  %7690 = vmatpush1.bf16.msra.mxu1 %v12273_v42  ;;  %7520 = vmatprep.subr.bf16.mxu0 %v12446_v6  ;;  %v2246_v42 = vld [vmem:[%s14351_s12 + $0x368] sm:$0xff]  ;;  %v3546_v63 = vsel %vm332_vm4, %v14835_v20, %v8023_v1 }
 0x75e   :  { %v3621_v31 = vmax.f32 %v12059_v15, %v12486_v44  ;;  %7692 = vmatprep.subr.bf16.mxu1 %v12281_v52  ;;  %v12516_v15 = vpack.c.bf16 %v2243_v46, %v2241_v10  ;;  %v2247_v52 = vld [vmem:[%s14351_s12 + $0x370] sm:$0xff]  ;;  %v3731_v10 = vsel %vm606_vm10, %v14492_v32, %v14491_v29  ;;  %v12536_v46 = vpack.c.bf16 %v2248_v7, %v2246_v42 }
 0x75f   :  { %8066 = vrot.lane.b32.xlu0 %v8065_v60, %s8189_s26  ;;  %v12545_v29 = vpack.c.bf16 %v2247_v52, %v2245_v27  ;;  %v14836_v42 = vunpack.i.l.bf16 %v12361_v57  ;;  %v3779_v32 = vmax.f32 %v12009_v9, %v3731_v10  ;;  %v2249_v9 = vld [vmem:[%s14351_s12 + $0x380] sm:$0xff]  ;;  %v8139_v10 = vld [vmem:[%s14356_s17 + $0xc8] sm:$0xff] }
 0x760   :  { %3668 = vrot.lane.b32.xlu1 %v3621_v31, %s8189_s26  ;;  %7522 = vmatpush1.bf16.msra.mxu0 %v12480_v56  ;;  %v8004_v31 = vunpack.i.h.bf16 %v12396_v40 }
 0x761   :  { %v8017_v51 = vpop.permute.xlu1 %8016  ;;  %v12527_v60 = vpop.permute.xlu0 %8041  ;;  %7694 = vmatpush1.bf16.msra.mxu1 %v12320_v59  ;;  %7524 = vmatprep.subr.bf16.mxu0 %v12492_v53  ;;  %v12547_v59 = vpack.c.bf16 %v2252_v43, %v2250_v34 }
 0x762   :  { %v8018_v2 = vunpack.i.l.bf16 %v8017_v51  ;;  %v8044_v14 = vunpack.i.h.bf16 %v12527_v60  ;;  %v8043_v21 = vunpack.i.l.bf16 %v12527_v60  ;;  %7696 = vmatprep.subr.bf16.mxu1 %v12330_v8  ;;  %v8019_v34 = vunpack.i.h.bf16 %v8017_v51 }
 0x764   :  { %v3724_v7 = vsel %vm606_vm10, %v8018_v2, %v14836_v42  ;;  %v5197_v40 = vsel %vm606_vm10, %v8043_v21, %v8044_v14  ;;  %v5196_v8 = vsel %vm606_vm10, %v8004_v31, %v8043_v21  ;;  %7526 = vmatpush1.bf16.msra.mxu0 %v12516_v15  ;;  %v2251_v21 = vld [vmem:[%s14351_s12 + $0x390] sm:$0xff] }
 0x765   :  { %v12558_v30 = vpop.permute.xlu1 %3526  ;;  %v12560_v20 = vpop.permute.xlu0 %8046  ;;  %v3772_v27 = vmax.f32 %v12042_v47, %v3724_v7  ;;  %v5245_v52 = vmax.f32 %v12045_v45, %v5197_v40  ;;  %v5244_v2 = vmax.f32 %v12003_v17, %v5196_v8  ;;  %7698 = vmatpush1.bf16.msra.mxu1 %v12357_v54  ;;  %7528 = vmatprep.subr.bf16.mxu0 %v12536_v46  ;;  %v8138_v54 = vld [vmem:[%s14356_s17 + $0xc0] sm:$0xff] }
 0x766   :  { %v3547_v47 = vsel %vm332_vm4, %v8023_v1, %v12558_v30  ;;  %v8049_v45 = vunpack.i.h.bf16 %v12560_v20  ;;  %v8048_v17 = vunpack.i.l.bf16 %v12560_v20  ;;  %7700 = vmatprep.subr.bf16.mxu1 %v12367_v28  ;;  %v12581_v43 = vmax.f32 %v8138_v54, %v3546_v63  ;;  %v2254_v1 = vld [vmem:[%s14351_s12 + $0x3a8] sm:$0xff]  ;;  %v2256_v28 = vld [vmem:[%s14351_s12 + $0x3b8] sm:$0xff] }
 0x767   :  { %v12586_v51 = vmax.f32 %v8139_v10, %v3547_v47  ;;  %3881 = vmatmul.mubr.f32.gmra.mrb[20].mxu0 %v3772_v27  ;;  %5344 = vmatprep.mubr.f32.mxu1 %v5245_v52  ;;  %v12598_v42 = vpack.c.bf16 %v2251_v21, %v2249_v9  ;;  %v3608_v52 = vsel %vm332_vm4, %v12185_v4, %v12486_v44  ;;  %v14860_v20 = vld [vmem:[#allocation45_spill] sm:$0xff] }
 0x768   :  { %3886 = vmatprep.mubr.f32.mxu0 %v3779_v32  ;;  %5345 = vmatmul.mubr.f32.gmra.mrb[42].mxu1 %v5244_v2  ;;  %v5203_v63 = vsel %vm606_vm10, %v8048_v17, %v8049_v45  ;;  %v5202_v31 = vsel %vm606_vm10, %v8019_v34, %v8048_v17  ;;  %v12617_v21 = vpack.c.bf16 %v2256_v28, %v2254_v1  ;;  %v12638_v34 = vld [vmem:[%s14356_s17 + $0x28] sm:$0xff] }
 0x769   :  { %v12600_v7 = vpop.permute.xlu1 %5004  ;;  %v12602_v40 = vpop.permute.xlu0 %8051  ;;  %v8070_v8 = vpack.i.bf16 %v12586_v51, %v12581_v43  ;;  %v5251_v27 = vmax.f32 %v12070_v33, %v5203_v63  ;;  %v5250_v32 = vmax.f32 %v12062_v24, %v5202_v31  ;;  %7530 = vmatpush1.bf16.msra.mxu0 %v12545_v29  ;;  %7702 = vmatpush1.bf16.msra.mxu1 %v12394_v50  ;;  %v2253_v24 = vld [vmem:[%s14351_s12 + $0x3a0] sm:$0xff]  ;;  %v2255_v33 = vld [vmem:[%s14351_s12 + $0x3b0] sm:$0xff]  ;;  %v2258_v50 = vld [vmem:[%s14351_s12 + $0x3c8] sm:$0xff] }
 0x76a   :  { %v14494_v2 = vunpack.i.h.bf16 %v12602_v40  ;;  %v8053_v9 = vunpack.i.l.bf16 %v12602_v40  ;;  %7532 = vmatprep.subr.bf16.mxu0 %v12547_v59  ;;  %7704 = vmatprep.subr.bf16.mxu1 %v12402_v22  ;;  %v2260_v22 = vld [vmem:[%s14351_s12 + $0x3d8] sm:$0xff]  ;;  %v3620_v47 = vmax.f32 %v12638_v34, %v3608_v52  ;;  %v12646_v1 = vpack.c.bf16 %v2255_v33, %v2253_v24 }
 0x76b   :  { %8071 = vrot.lane.b32.xlu0 %v8070_v8, %s8189_s26  ;;  %5350 = vmatprep.mubr.f32.mxu1 %v5251_v27  ;;  %v12650_v31 = vpack.c.bf16 %v2260_v22, %v2258_v50  ;;  %v2257_v8 = vld [vmem:[%s14351_s12 + $0x3c0] sm:$0xff]  ;;  %v14837_v27 = vunpack.i.l.bf16 %v12441_v55  ;;  %v7994_v24 = vunpack.i.h.bf16 %v12260_v12  ;;  %v2266_v12 = vld [vmem:[%s14351_s12 + $0x408] sm:$0xff] }
 0x76c   :  { %5351 = vmatmul.mubr.f32.gmra.mrb[44].mxu1 %v5250_v32  ;;  %v5209_v44 = vsel %vm606_vm10, %v8053_v9, %v14494_v2 }
 0x76d   :  { %v8032_v17 = vpop.permute.xlu1 %8031  ;;  %v12641_v54 = vpop.permute.xlu0 %5078  ;;  %v5257_v10 = vmax.f32 %v12086_v3, %v5209_v44  ;;  %7534 = vmatpush1.bf16.msra.mxu0 %v12598_v42  ;;  %7706 = vmatpush1.bf16.msra.mxu1 %v12437_v35  ;;  %v2259_v3 = vld [vmem:[%s14351_s12 + $0x3d0] sm:$0xff]  ;;  %v2262_v35 = vld [vmem:[%s14351_s12 + $0x3e8] sm:$0xff] }
 0x76e   :  { %v8034_v28 = vunpack.i.h.bf16 %v8032_v17  ;;  %v8033_v63 = vunpack.i.l.bf16 %v8032_v17  ;;  %7536 = vmatprep.subr.bf16.mxu0 %v12617_v21  ;;  %7708 = vmatprep.subr.bf16.mxu1 %v12446_v6  ;;  %v2264_v6 = vld [vmem:[%s14351_s12 + $0x3f8] sm:$0xff]  ;;  %v7541_v44 = vpack.c.bf16 %v2259_v3, %v2257_v8  ;;  %v8009_v8 = vunpack.i.h.bf16 %v12324_v62 }
 0x76f   :  { %3666 = vrot.lane.b32.xlu0 %v3620_v47, %s8189_s26  ;;  %5356 = vmatprep.mubr.f32.mxu1 %v5257_v10  ;;  %v2261_v47 = vld [vmem:[%s14351_s12 + $0x3e0] sm:$0xff] }
 0x770   :  { %v3730_v32 = vsel %vm606_vm10, %v8033_v63, %v14837_v27  ;;  %v5208_v52 = vsel %vm606_vm10, %v8034_v28, %v8053_v9  ;;  %v14838_v28 = vunpack.i.h.bf16 %v11983_v38  ;;  %v8142_v27 = vld [vmem:[%s14356_s17 + $0x138] sm:$0xff]  ;;  %v5020_v62 = vsel %vm332_vm4, %v8009_v8, %v12484_v61 }
 0x771   :  { %v3603_v33 = vpop.permute.xlu0 %3602  ;;  %v3778_v50 = vmax.f32 %v12099_v13, %v3730_v32  ;;  %v5256_v22 = vmax.f32 %v12104_v41, %v5208_v52  ;;  %7538 = vmatpush1.bf16.msra.mxu0 %v12646_v1  ;;  %7710 = vmatpush1.bf16.msra.mxu1 %v12480_v56  ;;  %v7543_v13 = vpack.c.bf16 %v2264_v6, %v2262_v35  ;;  %v2263_v41 = vld [vmem:[%s14351_s12 + $0x3f0] sm:$0xff]  ;;  %v2268_v56 = vld [vmem:[%s14351_s12 + $0x418] sm:$0xff] }
 0x772   :  { %v3609_v17 = vsel %vm332_vm4, %v12322_v49, %v3603_v33  ;;  %v3623_v9 = vmax.f32 %v12139_v11, %v3603_v33  ;;  %7540 = vmatprep.subr.bf16.mxu0 %v12650_v31  ;;  %7712 = vmatprep.subr.bf16.mxu1 %v12492_v53  ;;  %v5015_v11 = vsel %vm332_vm4, %v7994_v24, %v12359_v58  ;;  %v12696_v53 = vld [vmem:[%s14356_s17 + $0x60] sm:$0xff] }
 0x773   :  { %v3622_v10 = vmax.f32 %v12696_v53, %v3609_v17  ;;  %3887 = vmatmul.mubr.f32.gmra.mrb[22].mxu0 %v3778_v50  ;;  %5357 = vmatmul.mubr.f32.gmra.mrb[46].mxu1 %v5256_v22  ;;  %v5014_v63 = vsel %vm332_vm4, %v14838_v28, %v7994_v24  ;;  %v7545_v35 = vpack.c.bf16 %v2263_v41, %v2261_v47  ;;  %v12719_v24 = vld [vmem:[%s14356_s17 + $0x98] sm:$0xff]  ;;  %v8144_v50 = vld [vmem:[%s14356_s17 + $0x130] sm:$0xff]  ;;  %v8024_v47 = vunpack.i.h.bf16 %v12398_v18  ;;  %v8146_v18 = vld [vmem:[%s14356_s17 + $0x168] sm:$0xff] }
 0x774   :  { %3682 = vrot.lane.b32.xlu1 %v3623_v9, %s8189_s26  ;;  %v7547_v6 = vpack.c.bf16 %v2268_v56, %v2266_v12  ;;  %v12708_v32 = vmax.f32 %v8142_v27, %v5015_v11  ;;  %v14840_v12 = vunpack.i.h.bf16 %v12035_v39 }
 0x775   :  { %v3605_v3 = vpop.permute.xlu0 %3604  ;;  %3680 = vrot.lane.b32.xlu0 %v3622_v10, %s8189_s26  ;;  %7542 = vmatpush1.bf16.msra.mxu0 %v7541_v44  ;;  %v8148_v10 = vld [vmem:[%s14356_s17 + $0x1a0] sm:$0xff] }
 0x776   :  { %v3610_v52 = vsel %vm332_vm4, %v12439_v26, %v3605_v3  ;;  %v3625_v38 = vmax.f32 %v12146_v37, %v3605_v3  ;;  %7714 = vmatpush1.bf16.msra.mxu1 %v12516_v15  ;;  %7544 = vmatprep.subr.bf16.mxu0 %v7543_v13  ;;  %v12726_v37 = vmax.f32 %v8144_v50, %v5014_v63  ;;  %v14839_v15 = vunpack.i.h.bf16 %v12014_v16 }
 0x777   :  { %v3624_v33 = vmax.f32 %v12719_v24, %v3610_v52  ;;  %7716 = vmatprep.subr.bf16.mxu1 %v12536_v46  ;;  %v8145_v46 = vld [vmem:[%s14356_s17 + $0x170] sm:$0xff]  ;;  %v5025_v16 = vsel %vm332_vm4, %v8024_v47, %v12600_v7  ;;  %v5024_v56 = vsel %vm332_vm4, %v14840_v12, %v8024_v47  ;;  %v2278_v47 = vld [vmem:[%s14351_s12 + $0x468] sm:$0xff] }
 0x778   :  { %3696 = vrot.lane.b32.xlu1 %v3625_v38, %s8189_s26  ;;  %v5019_v22 = vsel %vm332_vm4, %v14839_v15, %v8009_v8  ;;  %v12737_v17 = vmax.f32 %v8145_v46, %v5020_v62  ;;  %v8075_v9 = vpack.i.bf16 %v12708_v32, %v12726_v37  ;;  %v12766_v39 = vmax.f32 %v8148_v10, %v5024_v56  ;;  %v2265_v8 = vld [vmem:[%s14351_s12 + $0x400] sm:$0xff]  ;;  %v2280_v46 = vld [vmem:[%s14351_s12 + $0x478] sm:$0xff]  ;;  %v2279_v12 = vld [vmem:[%s14351_s12 + $0x470] sm:$0xff] }
 0x779   :  { %3694 = vrot.lane.b32.xlu0 %v3624_v33, %s8189_s26  ;;  %7546 = vmatpush1.bf16.msra.mxu0 %v7545_v35  ;;  %v12748_v41 = vmax.f32 %v8146_v18, %v5019_v22  ;;  %v2269_v62 = vld [vmem:[%s14351_s12 + $0x420] sm:$0xff]  ;;  %v2274_v33 = vld [vmem:[%s14351_s12 + $0x448] sm:$0xff]  ;;  %v2275_v22 = vld [vmem:[%s14351_s12 + $0x450] sm:$0xff]  ;;  %v12853_v10 = vpop.permute.xlu0 %3606 }
 0x77a   :  { %7718 = vmatpush1.bf16.msra.mxu1 %v12545_v29  ;;  %7548 = vmatprep.subr.bf16.mxu0 %v7547_v6  ;;  %v8147_v29 = vld [vmem:[%s14356_s17 + $0x1a8] sm:$0xff]  ;;  %v2273_v15 = vld [vmem:[%s14351_s12 + $0x440] sm:$0xff] }
 0x77b   :  { %7720 = vmatprep.subr.bf16.mxu1 %v12547_v59  ;;  %v12757_v11 = vmax.f32 %v8147_v29, %v5025_v16  ;;  %v8080_v59 = vpack.i.bf16 %v12737_v17, %v12748_v41  ;;  %v12836_v16 = vpack.c.bf16 %v2280_v46, %v2278_v47  ;;  %v2277_v18 = vld [vmem:[%s14351_s12 + $0x460] sm:$0xff]  ;;  %v2282_v56 = vld [vmem:[%s14351_s12 + $0x488] sm:$0xff]  ;;  %v2284_v29 = vld [vmem:[%s14351_s12 + $0x498] sm:$0xff] }
 0x77c   :  { %8076 = vrot.lane.b32.xlu1 %v8075_v9, %s8189_s26  ;;  %v12833_v9 = vpack.c.bf16 %v2275_v22, %v2273_v15  ;;  %v2285_v22 = vld [vmem:[%s14351_s12 + $0x4a0] sm:$0xff]  ;;  %v2287_v47 = vld [vmem:[%s14351_s12 + $0x4b0] sm:$0xff] }
 0x77d   :  { %v8085_v28 = vpack.i.bf16 %v12757_v11, %v12766_v39 }
 0x77e   :  { %7722 = vmatpush1.bf16.msra.mxu1 %v12598_v42 }
 0x77f   :  { %7724 = vmatprep.subr.bf16.mxu1 %v12617_v21 }
 0x780   :  { %8081 = vrot.lane.b32.xlu1 %v8080_v59, %s8189_s26  ;;  %v12851_v59 = vpack.c.bf16 %v2279_v12, %v2277_v18  ;;  %v2290_v18 = vld [vmem:[%s14351_s12 + $0x4c8] sm:$0xff] }
 0x782   :  { %7726 = vmatpush1.bf16.msra.mxu1 %v12646_v1  ;;  %v2267_v1 = vld [vmem:[%s14351_s12 + $0x410] sm:$0xff] }
 0x783   :  { %7728 = vmatprep.subr.bf16.mxu1 %v12650_v31  ;;  %v2270_v31 = vld [vmem:[%s14351_s12 + $0x428] sm:$0xff]  ;;  %v12798_v52 = vpack.c.bf16 %v2267_v1, %v2265_v8  ;;  %v2281_v8 = vld [vmem:[%s14351_s12 + $0x480] sm:$0xff]  ;;  %v2283_v1 = vld [vmem:[%s14351_s12 + $0x490] sm:$0xff] }
 0x784   :  { %8086 = vrot.lane.b32.xlu1 %v8085_v28, %s8189_s26 }
 0x786   :  { %7730 = vmatpush1.bf16.msra.mxu1 %v7541_v44  ;;  %v2272_v44 = vld [vmem:[%s14351_s12 + $0x438] sm:$0xff] }
 0x787   :  { %7732 = vmatprep.subr.bf16.mxu1 %v7543_v13  ;;  %v14841_v13 = vunpack.i.h.bf16 %v12157_v25  ;;  %v12800_v38 = vpack.c.bf16 %v2272_v44, %v2270_v31  ;;  %v2271_v25 = vld [vmem:[%s14351_s12 + $0x430] sm:$0xff] }
 0x78a   :  { %7734 = vmatpush1.bf16.msra.mxu1 %v7545_v35 }
 0x78b   :  { %7736 = vmatprep.subr.bf16.mxu1 %v7547_v6 }
 0x7b0   :  { %v12774_v42 = vpop.permute.xlu1 %8036 }
 0x7b1   :  { %v8039_v21 = vunpack.i.h.bf16 %v12774_v42  ;;  %v8038_v63 = vunpack.i.l.bf16 %v12774_v42  ;;  %v3583_v42 = vmax.f32 %v12696_v53, %v12322_v49 }
 0x7b3   :  { %v3714_v3 = vsel %vm606_vm10, %v14841_v13, %v8038_v63  ;;  %v3715_v35 = vsel %vm606_vm10, %v8038_v63, %v8039_v21  ;;  %v12858_v63 = vpack.c.bf16 %v2284_v29, %v2282_v56  ;;  %v2286_v13 = vld [vmem:[%s14351_s12 + $0x4a8] sm:$0xff]  ;;  %v12910_v56 = vpack.c.bf16 %v2287_v47, %v2285_v22 }
 0x7b4   :  { %v3762_v6 = vmax.f32 %v11900_v0, %v3714_v3  ;;  %v3763_v27 = vmax.f32 %v12204_v23, %v3715_v35  ;;  %v2276_v0 = vld [vmem:[%s14351_s12 + $0x458] sm:$0xff]  ;;  %v12815_v23 = vpack.c.bf16 %v2271_v25, %v2269_v62  ;;  %v14842_v35 = vunpack.i.h.bf16 %v12262_v5  ;;  %v2294_v47 = vld [vmem:[%s14351_s12 + $0x4e8] sm:$0xff] }
 0x7b5   :  { %v12818_v50 = vpack.c.bf16 %v2276_v0, %v2274_v33  ;;  %v2288_v3 = vld [vmem:[%s14351_s12 + $0x4b8] sm:$0xff]  ;;  %v14843_v29 = vunpack.i.h.bf16 %v12285_v48 }
 0x7b6   :  { %3957 = vmatprep.mubr.f32.mxu0 %v3763_v27  ;;  %v12878_v27 = vpack.c.bf16 %v2283_v1, %v2281_v8  ;;  %v12890_v15 = vpack.c.bf16 %v2288_v3, %v2286_v13  ;;  %v14845_v3 = vld [vmem:[#allocation28_spill] sm:$0xff] }
 0x7b7   :  { %3958 = vmatmul.mubr.f32.vlgmr.msra.gmra.mrb[16].mxu0 %v3762_v6 }
 0x7b8   :  { %7550 = vmatpush1.bf16.msra.mxu0 %v12798_v52 }
 0x7b9   :  { %7552 = vmatprep.subr.bf16.mxu0 %v12800_v38 }
 0x7bc   :  { %7554 = vmatpush1.bf16.msra.mxu0 %v12815_v23 }
 0x7bd   :  { %7556 = vmatprep.subr.bf16.mxu0 %v12818_v50 }
 0x7c0   :  { %7558 = vmatpush1.bf16.msra.mxu0 %v12833_v9 }
 0x7c1   :  { %v12855_v28 = vpop.permute.xlu1 %8056  ;;  %7560 = vmatprep.subr.bf16.mxu0 %v12836_v16 }
 0x7c2   :  { %v14493_v31 = vunpack.i.h.bf16 %v12855_v28  ;;  %v8058_v44 = vunpack.i.l.bf16 %v12855_v28 }
 0x7c4   :  { %v5192_v6 = vsel %vm606_vm10, %v14842_v35, %v8058_v44  ;;  %7562 = vmatpush1.bf16.msra.mxu0 %v12851_v59  ;;  %v5193_v62 = vsel %vm606_vm10, %v8058_v44, %v14493_v31  ;;  %v14844_v44 = vld [vmem:[#allocation19_spill] sm:$0xff]  ;;  %v2303_v31 = vld [vmem:[%s14351_s12 + $0x530] sm:$0xff] }
 0x7c5   :  { %v5240_v25 = vmax.f32 %v11943_v19, %v5192_v6  ;;  %v12884_v33 = vpop.permute.xlu1 %5080  ;;  %v12886_v0 = vpop.permute.xlu0 %8061  ;;  %7564 = vmatprep.subr.bf16.mxu0 %v12858_v63  ;;  %v5241_v5 = vmax.f32 %v12134_v36, %v5193_v62  ;;  %v2292_v36 = vld [vmem:[%s14351_s12 + $0x4d8] sm:$0xff]  ;;  %v2289_v6 = vld [vmem:[%s14351_s12 + $0x4c0] sm:$0xff]  ;;  %v2291_v62 = vld [vmem:[%s14351_s12 + $0x4d0] sm:$0xff] }
 0x7c6   :  { %v8064_v19 = vunpack.i.h.bf16 %v12886_v0  ;;  %v8063_v46 = vunpack.i.l.bf16 %v12886_v0  ;;  %v12928_v22 = vpack.c.bf16 %v2292_v36, %v2290_v18  ;;  %v14847_v18 = vld [vmem:[#allocation57_spill] sm:$0xff]  ;;  %v3589_v0 = vmax.f32 %v12719_v24, %v12439_v26 }
 0x7c7   :  { %5427 = vmatprep.mubr.f32.mxu1 %v5241_v5  ;;  %v5086_v36 = vsel %vm332_vm4, %v14847_v18, %v12641_v54 }
 0x7c8   :  { %7566 = vmatpush1.bf16.msra.mxu0 %v12878_v27  ;;  %5428 = vmatmul.mubr.f32.vlgmr.msra.gmra.mrb[40].mxu1 %v5240_v25  ;;  %v3721_v12 = vsel %vm606_vm10, %v8063_v46, %v8064_v19  ;;  %v3720_v8 = vsel %vm606_vm10, %v14843_v29, %v8063_v46  ;;  %v14846_v25 = vld [vmem:[#allocation54_spill] sm:$0xff]  ;;  %v12948_v29 = vpack.c.bf16 %v2291_v62, %v2289_v6  ;;  %v12972_v6 = vld [vmem:[%s14356_s17 + $0x108] sm:$0xff] }
 0x7c9   :  { %v5083_v1 = vpop.permute.xlu1 %5082  ;;  %7568 = vmatprep.subr.bf16.mxu0 %v12890_v15  ;;  %v3769_v13 = vmax.f32 %v14844_v44, %v3721_v12  ;;  %v3768_v35 = vmax.f32 %v14845_v3, %v3720_v8  ;;  %7738 = vmatpush1.bf16.msra.mxu1 %v12798_v52  ;;  %v2296_v46 = vld [vmem:[%s14351_s12 + $0x4f8] sm:$0xff]  ;;  %v2293_v8 = vld [vmem:[%s14351_s12 + $0x4e0] sm:$0xff]  ;;  %v14848_v44 = vld [vmem:[#allocation40_spill] sm:$0xff]  ;;  %v5098_v62 = vmax.f32 %v12972_v6, %v5086_v36 }
 0x7ca   :  { %v5088_v48 = vsel %vm332_vm4, %v12484_v61, %v5083_v1  ;;  %v5103_v5 = vmax.f32 %v14846_v25, %v5083_v1  ;;  %7740 = vmatprep.subr.bf16.mxu1 %v12800_v38  ;;  %v12940_v52 = vld [vmem:[%s14356_s17 + $0x178] sm:$0xff]  ;;  %v12951_v38 = vpack.c.bf16 %v2296_v46, %v2294_v47  ;;  %v2295_v1 = vld [vmem:[%s14351_s12 + $0x4f0] sm:$0xff]  ;;  %v2298_v3 = vld [vmem:[%s14351_s12 + $0x508] sm:$0xff] }
 0x7cb   :  { %v5102_v12 = vmax.f32 %v12940_v52, %v5088_v48  ;;  %3963 = vmatprep.mubr.f32.mxu0 %v3769_v13  ;;  %v5099_v13 = vmax.f32 %v14848_v44, %v12641_v54  ;;  %v5087_v54 = vsel %vm332_vm4, %v12359_v58, %v12884_v33  ;;  %v12981_v48 = vpack.c.bf16 %v2295_v1, %v2293_v8  ;;  %v2299_v25 = vld [vmem:[%s14351_s12 + $0x510] sm:$0xff]  ;;  %v14849_v47 = vld [vmem:[#allocation14_spill] sm:$0xff] }
 0x7cc   :  { %7570 = vmatpush1.bf16.msra.mxu0 %v12910_v56  ;;  %5174 = vrot.lane.b32.xlu1 %v5103_v5, %s8189_s26  ;;  %v5101_v46 = vmax.f32 %v14849_v47, %v12884_v33  ;;  %v13003_v8 = vld [vmem:[%s14356_s17 + $0x140] sm:$0xff]  ;;  %v2304_v33 = vld [vmem:[%s14351_s12 + $0x538] sm:$0xff] }
 0x7cd   :  { %3964 = vmatmul.mubr.f32.gmra.mrb[18].mxu0 %v3768_v35  ;;  %5172 = vrot.lane.b32.xlu0 %v5102_v12, %s8189_s26  ;;  %v2300_v35 = vld [vmem:[%s14351_s12 + $0x518] sm:$0xff]  ;;  %v5100_v1 = vmax.f32 %v13003_v8, %v5087_v54  ;;  %v5085_v54 = vpop.permute.xlu1 %5084 }
 0x7ce   :  { %7572 = vmatprep.subr.bf16.mxu0 %v12928_v22  ;;  %7742 = vmatpush1.bf16.msra.mxu1 %v12815_v23  ;;  %v2297_v23 = vld [vmem:[%s14351_s12 + $0x500] sm:$0xff]  ;;  %v12993_v5 = vpack.c.bf16 %v2300_v35, %v2298_v3  ;;  %v14850_v35 = vunpack.i.h.bf16 %v12361_v57 }
 0x7cf   :  { %7744 = vmatprep.subr.bf16.mxu1 %v12818_v50  ;;  %v13006_v44 = vpack.c.bf16 %v2299_v25, %v2297_v23  ;;  %v14852_v25 = vld [vmem:[#allocation29_spill] sm:$0xff]  ;;  %v14853_v57 = vld [vmem:[#allocation50_spill] sm:$0xff] }
 0x7d0   :  { %7574 = vmatpush1.bf16.msra.mxu0 %v12948_v29  ;;  %5146 = vrot.lane.b32.xlu1 %v5099_v13, %s8189_s26  ;;  %v2302_v13 = vld [vmem:[%s14351_s12 + $0x528] sm:$0xff] }
 0x7d1   :  { %5144 = vrot.lane.b32.xlu0 %v5098_v62, %s8189_s26  ;;  %v12990_v50 = vpop.permute.xlu0 %8066  ;;  %7576 = vmatprep.subr.bf16.mxu0 %v12951_v38 }
 0x7d2   :  { %v14495_v12 = vunpack.i.h.bf16 %v12990_v50  ;;  %v8068_v36 = vunpack.i.l.bf16 %v12990_v50  ;;  %7746 = vmatpush1.bf16.msra.mxu1 %v12833_v9  ;;  %v3611_v9 = vsel %vm332_vm4, %v12558_v30, %v12853_v10  ;;  %v14861_v26 = vunpack.i.h.bf16 %v12990_v50 }
 0x7d3   :  { %7748 = vmatprep.subr.bf16.mxu1 %v12836_v16  ;;  %v14851_v16 = vld [vmem:[#allocation35_spill] sm:$0xff] }
 0x7d4   :  { %7578 = vmatpush1.bf16.msra.mxu0 %v12981_v48  ;;  %5160 = vrot.lane.b32.xlu1 %v5101_v46, %s8189_s26  ;;  %v3727_v3 = vsel %vm606_vm10, %v8068_v36, %v14495_v12  ;;  %v3726_v62 = vsel %vm606_vm10, %v14850_v35, %v8068_v36  ;;  %v2301_v46 = vld [vmem:[%s14351_s12 + $0x520] sm:$0xff]  ;;  %v3627_v36 = vmax.f32 %v14853_v57, %v12853_v10 }
 0x7d5   :  { %5158 = vrot.lane.b32.xlu0 %v5100_v1, %s8189_s26  ;;  %7580 = vmatprep.subr.bf16.mxu0 %v12993_v5  ;;  %v3775_v23 = vmax.f32 %v14851_v16, %v3727_v3  ;;  %v3774_v47 = vmax.f32 %v14852_v25, %v3726_v62  ;;  %v13038_v35 = vpack.c.bf16 %v2304_v33, %v2302_v13  ;;  %v2306_v1 = vld [vmem:[%s14351_s12 + $0x548] sm:$0xff]  ;;  %v2308_v3 = vld [vmem:[%s14351_s12 + $0x558] sm:$0xff]  ;;  %v13050_v62 = vld [vmem:[%s14356_s17 + $0xd0] sm:$0xff] }
 0x7d6   :  { %7750 = vmatpush1.bf16.msra.mxu1 %v12851_v59  ;;  %v3626_v16 = vmax.f32 %v13050_v62, %v3611_v9  ;;  %v5089_v10 = vsel %vm332_vm4, %v12600_v7, %v5085_v54  ;;  %v13058_v13 = vpack.c.bf16 %v2303_v31, %v2301_v46  ;;  %v13061_v59 = vpack.c.bf16 %v2308_v3, %v2306_v1  ;;  %v2305_v33 = vld [vmem:[%s14351_s12 + $0x540] sm:$0xff]  ;;  %v2310_v31 = vld [vmem:[%s14351_s12 + $0x568] sm:$0xff]  ;;  %v2312_v25 = vld [vmem:[%s14351_s12 + $0x578] sm:$0xff] }
 0x7d7   :  { %3969 = vmatprep.mubr.f32.mxu0 %v3775_v23  ;;  %7752 = vmatprep.subr.bf16.mxu1 %v12858_v63  ;;  %v2307_v63 = vld [vmem:[%s14351_s12 + $0x550] sm:$0xff]  ;;  %v14854_v9 = vld [vmem:[#allocation38_spill] sm:$0xff] }
 0x7d8   :  { %7582 = vmatpush1.bf16.msra.mxu0 %v13006_v44  ;;  %3710 = vrot.lane.b32.xlu1 %v3627_v36, %s8189_s26  ;;  %v5105_v23 = vmax.f32 %v14854_v9, %v5085_v54  ;;  %v13087_v54 = vpack.c.bf16 %v2307_v63, %v2305_v33  ;;  %v2309_v36 = vld [vmem:[%s14351_s12 + $0x560] sm:$0xff]  ;;  %v14855_v9 = vunpack.i.h.bf16 %v12441_v55  ;;  %v2315_v55 = vld [vmem:[%s14351_s12 + $0x590] sm:$0xff] }
 0x7d9   :  { %3970 = vmatmul.mubr.f32.gmra.mrb[20].mxu0 %v3774_v47  ;;  %3708 = vrot.lane.b32.xlu0 %v3626_v16, %s8189_s26  ;;  %v13081_v47 = vld [vmem:[%s14356_s17 + $0x1b0] sm:$0xff]  ;;  %v2314_v16 = vld [vmem:[%s14351_s12 + $0x588] sm:$0xff] }
 0x7da   :  { %7584 = vmatprep.subr.bf16.mxu0 %v13038_v35  ;;  %7754 = vmatpush1.bf16.msra.mxu1 %v12878_v27  ;;  %v5104_v46 = vmax.f32 %v13081_v47, %v5089_v10  ;;  %v13093_v27 = vpack.c.bf16 %v2312_v25, %v2310_v31  ;;  %v2316_v10 = vld [vmem:[%s14351_s12 + $0x598] sm:$0xff]  ;;  %v3577_v31 = vmax.f32 %v12638_v34, %v12185_v4  ;;  %v3669_v25 = vpop.permute.xlu1 %3668  ;;  %v2318_v34 = vld [vmem:[%s14351_s12 + $0x5a8] sm:$0xff] }
 0x7db   :  { %7756 = vmatprep.subr.bf16.mxu1 %v12890_v15  ;;  %v2311_v15 = vld [vmem:[%s14351_s12 + $0x570] sm:$0xff]  ;;  %v13125_v12 = vpack.c.bf16 %v2316_v10, %v2314_v16  ;;  %v2317_v10 = vld [vmem:[%s14351_s12 + $0x5a0] sm:$0xff] }
 0x7dc   :  { %7586 = vmatpush1.bf16.msra.mxu0 %v13058_v13  ;;  %5188 = vrot.lane.b32.xlu1 %v5105_v23, %s8189_s26  ;;  %v13115_v63 = vpack.c.bf16 %v2311_v15, %v2309_v36  ;;  %v2313_v36 = vld [vmem:[%s14351_s12 + $0x580] sm:$0xff] }
 0x7dd   :  { %5186 = vrot.lane.b32.xlu0 %v5104_v46, %s8189_s26  ;;  %v13090_v57 = vpop.permute.xlu0 %8071  ;;  %7588 = vmatprep.subr.bf16.mxu0 %v13061_v59 }
 0x7de   :  { %v8074_v1 = vunpack.i.h.bf16 %v13090_v57  ;;  %v8073_v3 = vunpack.i.l.bf16 %v13090_v57  ;;  %7758 = vmatpush1.bf16.msra.mxu1 %v12910_v56 }
 0x7df   :  { %7760 = vmatprep.subr.bf16.mxu1 %v12928_v22  ;;  %v14856_v22 = vld [vmem:[#allocation56_spill] sm:$0xff] }
 0x7e0   :  { %7590 = vmatpush1.bf16.msra.mxu0 %v13087_v54  ;;  %v3733_v33 = vsel %vm606_vm10, %v8073_v3, %v8074_v1  ;;  %v3732_v23 = vsel %vm606_vm10, %v14855_v9, %v8073_v3  ;;  %v13143_v3 = vpack.c.bf16 %v2315_v55, %v2313_v36  ;;  %v2326_v36 = vld [vmem:[%s14351_s12 + $0x5e8] sm:$0x7] }
 0x7e1   :  { %v3667_v46 = vpop.permute.xlu0 %3666  ;;  %7592 = vmatprep.subr.bf16.mxu0 %v13093_v27  ;;  %v3781_v56 = vmax.f32 %v12581_v43, %v3733_v33  ;;  %v3780_v2 = vmax.f32 %v14856_v22, %v3732_v23  ;;  %v2320_v43 = vld [vmem:[%s14351_s12 + $0x5b8] sm:$0xff]  ;;  %v2322_v33 = vld [vmem:[%s14351_s12 + $0x5c8] sm:$0xff] }
 0x7e2   :  { %v3717_v4 = vsel %vm606_vm10, %v3667_v46, %v3669_v25  ;;  %7762 = vmatpush1.bf16.msra.mxu1 %v12948_v29  ;;  %v13146_v16 = vpack.c.bf16 %v2320_v43, %v2318_v34  ;;  %v2319_v29 = vld [vmem:[%s14351_s12 + $0x5b0] sm:$0xff]  ;;  %v2325_v34 = vld [vmem:[%s14351_s12 + $0x5e0] sm:$0x7] }
 0x7e3   :  { %v3765_v15 = vmax.f32 %v3577_v31, %v3717_v4  ;;  %3975 = vmatprep.mubr.f32.mxu0 %v3781_v56  ;;  %7764 = vmatprep.subr.bf16.mxu1 %v12951_v38  ;;  %v13164_v9 = vpack.c.bf16 %v2319_v29, %v2317_v10  ;;  %v2321_v31 = vld [vmem:[%s14351_s12 + $0x5c0] sm:$0xff]  ;;  %v2323_v25 = vld [vmem:[%s14351_s12 + $0x5d0] sm:$0xff] }
 0x7e4   :  { %7594 = vmatpush1.bf16.msra.mxu0 %v13115_v63  ;;  %v14858_v29 = vld [vmem:[#allocation48_spill] sm:$0xff] }
 0x7e5   :  { %3976 = vmatmul.mubr.f32.gmra.mrb[22].mxu0 %v3780_v2  ;;  %7596 = vmatprep.subr.bf16.mxu0 %v13125_v12  ;;  %v2324_v2 = vld [vmem:[%s14351_s12 + $0x5d8] sm:$0xff] }
 0x7e6   :  { %7210 = vmatprep.mubr.msk.f32.mxu0 %vm3784_vm2, %v3765_v15  ;;  %v3683_v38 = vpop.permute.xlu1 %3682  ;;  %7766 = vmatpush1.bf16.msra.mxu1 %v12981_v48  ;;  %v13167_v23 = vpack.c.bf16 %v2324_v2, %v2322_v33  ;;  %v14857_v15 = vld [vmem:[#allocation31_spill] sm:$0xff]  ;;  %v14859_v2 = vld [vmem:[#allocation37_spill] sm:$0xff] }
 0x7e7   :  { %7768 = vmatprep.subr.bf16.mxu1 %v12993_v5  ;;  %v3681_v48 = vpop.permute.xlu0 %3680  ;;  %v7605_v5 = vpack.c.bf16 %v2323_v25, %v2321_v31 }
 0x7e8   :  { %7598 = vmatpush1.bf16.msra.mxu0 %v13143_v3  ;;  %v3723_v4 = vsel %vm606_vm10, %v3681_v48, %v3683_v38  ;;  %v3722_v49 = vsel %vm606_vm10, %v8064_v19, %v3681_v48 }
 0x7e9   :  { %7600 = vmatprep.subr.bf16.mxu0 %v13146_v16  ;;  %v3770_v48 = vmax.f32 %v14860_v20, %v3722_v49 }
 0x7ea   :  { %v3697_v56 = vpop.permute.xlu1 %3696  ;;  %7770 = vmatpush1.bf16.msra.mxu1 %v13006_v44 }
 0x7eb   :  { %7772 = vmatprep.subr.bf16.mxu1 %v13038_v35  ;;  %v3716_v35 = vsel %vm606_vm10, %v8039_v21, %v3667_v46  ;;  %v3695_v21 = vpop.permute.xlu0 %3694 }
 0x7ec   :  { %7602 = vmatpush1.bf16.msra.mxu0 %v13164_v9  ;;  %v3764_v38 = vmax.f32 %v14858_v29, %v3716_v35  ;;  %v3729_v53 = vsel %vm606_vm10, %v3695_v21, %v3697_v56  ;;  %v14863_v35 = vld [vmem:[#allocation41_spill] sm:$0xff] }
 0x7ed   :  { %7604 = vmatprep.subr.bf16.mxu0 %v13167_v23  ;;  %v3777_v24 = vmax.f32 %v3589_v0, %v3729_v53 }
 0x7ee   :  { %v13179_v22 = vpop.permute.xlu1 %8076  ;;  %7774 = vmatpush1.bf16.msra.mxu1 %v13058_v13 }
 0x7ef   :  { %v8079_v55 = vunpack.i.h.bf16 %v13179_v22  ;;  %v8078_v44 = vunpack.i.l.bf16 %v13179_v22  ;;  %7776 = vmatprep.subr.bf16.mxu1 %v13061_v59 }
 0x7f0   :  { %7606 = vmatpush1.bf16.msra.mxu0 %v7605_v5 }
 0x7f1   :  { %7208 = vmatprep.subr.msk.mxu0 %vm3797_vm3, %v2326_v36  ;;  %v5199_v13 = vsel %vm606_vm10, %v8078_v44, %v8079_v55  ;;  %v5198_v59 = vsel %vm606_vm10, %v8044_v14, %v8078_v44  ;;  %v3771_v14 = vmax.f32 %v3583_v42, %v3723_v4  ;;  %v14864_v4 = vld [vmem:[#allocation49_spill] sm:$0xff] }
 0x7f2   :  { %v13204_v46 = vpop.permute.xlu1 %8081  ;;  %v5247_v43 = vmax.f32 %v12726_v37, %v5199_v13  ;;  %v5246_v10 = vmax.f32 %v14857_v15, %v5198_v59  ;;  %7778 = vmatpush1.bf16.msra.mxu1 %v13087_v54 }
 0x7f3   :  { %v8084_v33 = vunpack.i.h.bf16 %v13204_v46  ;;  %v8083_v60 = vunpack.i.l.bf16 %v13204_v46  ;;  %7780 = vmatprep.subr.bf16.mxu1 %v13093_v27  ;;  %v5073_v46 = vmax.f32 %v13081_v47, %v12600_v7 }
 0x7f4   :  { %7209 = vmatpush1.msk.msra.mxu0 %vm3797_vm3, %v2325_v34  ;;  %5433 = vmatprep.mubr.f32.mxu1 %v5247_v43  ;;  %v14866_v43 = vld [vmem:[#allocation36_spill] sm:$0xff] }
 0x7f5   :  { %4047 = vmatmul.mubr.f32.vlgmr.msra.gmra.mrb[16].mxu0 %v3764_v38  ;;  %5434 = vmatmul.mubr.f32.gmra.mrb[42].mxu1 %v5246_v10  ;;  %v5205_v37 = vsel %vm606_vm10, %v8083_v60, %v8084_v33  ;;  %v5204_v54 = vsel %vm606_vm10, %v8049_v45, %v8083_v60  ;;  %v3728_v45 = vsel %vm606_vm10, %v14861_v26, %v3695_v21 }
 0x7f6   :  { %7211 = vmatprep.mubr.msk.f32.mxu0 %vm3784_vm2, %v3771_v14  ;;  %v13227_v19 = vpop.permute.xlu1 %8086  ;;  %v5253_v27 = vmax.f32 %v12748_v41, %v5205_v37  ;;  %v5252_v31 = vmax.f32 %v14859_v2, %v5204_v54  ;;  %7782 = vmatpush1.bf16.msra.mxu1 %v13115_v63  ;;  %v14862_v63 = vunpack.i.h.bf16 %v12602_v40  ;;  %v3776_v13 = vmax.f32 %v14864_v4, %v3728_v45 }
 0x7f7   :  { %v8089_v25 = vunpack.i.h.bf16 %v13227_v19  ;;  %v8088_v56 = vunpack.i.l.bf16 %v13227_v19  ;;  %7784 = vmatprep.subr.bf16.mxu1 %v13125_v12 }
 0x7f8   :  { %5439 = vmatprep.mubr.f32.mxu1 %v5253_v27 }
 0x7f9   :  { %4053 = vmatmul.mubr.f32.gmra.mrb[18].mxu0 %v3770_v48  ;;  %5440 = vmatmul.mubr.f32.gmra.mrb[44].mxu1 %v5252_v31  ;;  %v5211_v41 = vsel %vm606_vm10, %v8088_v56, %v8089_v25  ;;  %v5210_v44 = vsel %vm606_vm10, %v14862_v63, %v8088_v56 }
 0x7fa   :  { %7212 = vmatprep.mubr.msk.f32.mxu0 %vm3784_vm2, %v3777_v24  ;;  %v5259_v12 = vmax.f32 %v12766_v39, %v5211_v41  ;;  %v5258_v50 = vmax.f32 %v14863_v35, %v5210_v44  ;;  %7786 = vmatpush1.bf16.msra.mxu1 %v13143_v3  ;;  %v5055_v3 = vmax.f32 %v12972_v6, %v14847_v18 }
 0x7fb   :  { %7788 = vmatprep.subr.bf16.mxu1 %v13146_v16  ;;  %v14865_v16 = vunpack.i.h.bf16 %v12855_v28  ;;  %v5067_v6 = vmax.f32 %v12940_v52, %v12484_v61 }
 0x7fc   :  { %5445 = vmatprep.mubr.f32.mxu1 %v5259_v12 }
 0x7fd   :  { %4059 = vmatmul.mubr.f32.gmra.mrb[20].mxu0 %v3776_v13  ;;  %5446 = vmatmul.mubr.f32.gmra.mrb[46].mxu1 %v5258_v50 }
 0x7fe   :  { %7790 = vmatpush1.bf16.msra.mxu1 %v13164_v9 }
 0x7ff   :  { %7792 = vmatprep.subr.bf16.mxu1 %v13167_v23 }
 0x802   :  { %7794 = vmatpush1.bf16.msra.mxu1 %v7605_v5 }
 0x803   :  { %7302 = vmatprep.subr.msk.mxu1 %vm3797_vm3, %v2326_v36  ;;  %v5061_v36 = vmax.f32 %v13003_v8, %v12359_v58  ;;  %v3595_v58 = vmax.f32 %v13050_v62, %v12558_v30 }
 0x806   :  { %7303 = vmatpush1.msk.msra.mxu1 %vm3797_vm3, %v2325_v34 }
 0x83e   :  { %v5175_v40 = vpop.permute.xlu1 %5174 }
 0x83f   :  { %v5173_v39 = vpop.permute.xlu0 %5172 }
 0x840   :  { %v5207_v10 = vsel %vm606_vm10, %v5173_v39, %v5175_v40  ;;  %v5206_v8 = vsel %vm606_vm10, %v8084_v33, %v5173_v39 }
 0x841   :  { %v5255_v22 = vmax.f32 %v5067_v6, %v5207_v10  ;;  %v5254_v62 = vmax.f32 %v12737_v17, %v5206_v8 }
 0x842   :  { %v5147_v59 = vpop.permute.xlu1 %5146 }
 0x843   :  { %v5145_v42 = vpop.permute.xlu0 %5144 }
 0x844   :  { %v5194_v21 = vsel %vm606_vm10, %v14865_v16, %v5145_v42  ;;  %v5195_v9 = vsel %vm606_vm10, %v5145_v42, %v5147_v59 }
 0x845   :  { %v5242_v23 = vmax.f32 %v14866_v43, %v5194_v21  ;;  %v5243_v5 = vmax.f32 %v5055_v3, %v5195_v9 }
 0x846   :  { %v5161_v15 = vpop.permute.xlu1 %5160 }
 0x847   :  { %v5159_v34 = vpop.permute.xlu0 %5158  ;;  %7304 = vmatprep.mubr.msk.f32.mxu1 %vm3784_vm2, %v5243_v5 }
 0x848   :  { %v5200_v28 = vsel %vm606_vm10, %v8079_v55, %v5159_v34  ;;  %v5201_v18 = vsel %vm606_vm10, %v5159_v34, %v5161_v15  ;;  %5517 = vmatmul.mubr.f32.vlgmr.msra.gmra.mrb[40].mxu1 %v5242_v23 }
 0x849   :  { %v5249_v29 = vmax.f32 %v5061_v36, %v5201_v18  ;;  %v5248_v38 = vmax.f32 %v12708_v32, %v5200_v28 }
 0x84a   :  { %v3711_v60 = vpop.permute.xlu1 %3710 }
 0x84b   :  { %v3709_v49 = vpop.permute.xlu0 %3708  ;;  %7305 = vmatprep.mubr.msk.f32.mxu1 %vm3784_vm2, %v5249_v29 }
 0x84c   :  { %v3734_v55 = vsel %vm606_vm10, %v8074_v1, %v3709_v49  ;;  %v3735_v61 = vsel %vm606_vm10, %v3709_v49, %v3711_v60  ;;  %5523 = vmatmul.mubr.f32.gmra.mrb[42].mxu1 %v5248_v38 }
 0x84d   :  { %v3783_v32 = vmax.f32 %v3595_v58, %v3735_v61  ;;  %7306 = vmatprep.mubr.msk.f32.mxu1 %vm3784_vm2, %v5255_v22  ;;  %v3782_v30 = vmax.f32 %v12586_v51, %v3734_v55 }
 0x84e   :  { %v5189_v52 = vpop.permute.xlu1 %5188 }
 0x84f   :  { %v5187_v33 = vpop.permute.xlu0 %5186  ;;  %7213 = vmatprep.mubr.msk.f32.mxu0 %vm3784_vm2, %v3783_v32 }
 0x850   :  { %v5212_v57 = vsel %vm606_vm10, %v8089_v25, %v5187_v33  ;;  %v5213_v1 = vsel %vm606_vm10, %v5187_v33, %v5189_v52  ;;  %4065 = vmatmul.mubr.f32.gmra.mrb[22].mxu0 %v3782_v30  ;;  %5529 = vmatmul.mubr.f32.gmra.mrb[44].mxu1 %v5254_v62  ;;  %vm5987_vm10 = vcmask 105472  }
 0x851   :  { %v5261_v14 = vmax.f32 %v5073_v46, %v5213_v1  ;;  %v5260_v51 = vmax.f32 %v12757_v11, %v5212_v57 }
 0x853   :  { %7307 = vmatprep.mubr.msk.f32.mxu1 %vm3784_vm2, %v5261_v14 }
 0x854   :  { %5535 = vmatmul.mubr.f32.gmra.mrb[46].mxu1 %v5260_v51 }
 0x8c8   :  { %v13295_v17 = vpop.f32.mrb[16].mxu0 }
 0x8c9   :  { %4071 = vst [vmem:[%s14357_s18] sm:$0xff] %v13295_v17  ;;  %v4050_v7 = vpop.f32.mrb[17].mxu0 }
 0x8ca   :  { %4073 = vst.msk [vmem:[%s14357_s18 + $0x8] sm:$0xff] %vm4072_vm6, %v4050_v7 }
 0x8cc   :  { %v13305_v47 = vpop.f32.mrb[18].mxu0 }
 0x8cd   :  { %4074 = vst [vmem:[%s14357_s18 + $0x10] sm:$0xff] %v13305_v47  ;;  %v4056_v11 = vpop.f32.mrb[19].mxu0 }
 0x8ce   :  { %4075 = vst.msk [vmem:[%s14357_s18 + $0x18] sm:$0xff] %vm4072_vm6, %v4056_v11 }
 0x8d0   :  { %v13315_v53 = vpop.f32.mrb[20].mxu0 }
 0x8d1   :  { %4076 = vst [vmem:[%s14357_s18 + $0x20] sm:$0xff] %v13315_v53  ;;  %v4062_v37 = vpop.f32.mrb[21].mxu0  ;;  %v13324_v54 = vld [vmem:[%s14357_s18 + $0x8] sm:$0xff] }
 0x8d2   :  { %4077 = vst.msk [vmem:[%s14357_s18 + $0x28] sm:$0xff] %vm4072_vm6, %v4062_v37  ;;  %v5558_v0 = vsel %vm4072_vm6, %v13324_v54, 0.0 }
 0x8d3   :  { %v5559_v19 = vadd.f32 %v5558_v0, %v13295_v17 }
 0x8d5   :  { %5560 = vadd.xlane.f32.xlu0 %v5559_v19  ;;  %v13336_v27 = vld [vmem:[%s14357_s18 + $0x18] sm:$0xff] }
 0x8d6   :  { %v5562_v2 = vsel %vm4072_vm6, %v13336_v27, 0.0 }
 0x8d7   :  { %v5563_v31 = vadd.f32 %v5562_v2, %v13305_v47 }
 0x8d9   :  { %5564 = vadd.xlane.f32.xlu1 %v5563_v31  ;;  %v13344_v25 = vld [vmem:[%s14357_s18 + $0x28] sm:$0xff] }
 0x8da   :  { %v5566_v56 = vsel %vm4072_vm6, %v13344_v25, 0.0 }
 0x8db   :  { %v5567_v20 = vadd.f32 %v5566_v56, %v13315_v53 }
 0x8dd   :  { %5568 = vadd.xlane.f32.xlu1 %v5567_v20 }
 0x91b   :  { %v13349_v48 = vpop.f32.mrb[40].mxu1 }
 0x91c   :  { %7308 = vst [vmem:[%s14357_s18 + $0x40] sm:$0xff] %v13349_v48  ;;  %v5520_v26 = vpop.f32.mrb[41].mxu1 }
 0x91d   :  { %7309 = vst.msk [vmem:[%s14357_s18 + $0x48] sm:$0xff] %vm4072_vm6, %v5520_v26 }
 0x91f   :  { %v13359_v45 = vpop.f32.mrb[42].mxu1 }
 0x920   :  { %7310 = vst [vmem:[%s14357_s18 + $0x50] sm:$0xff] %v13359_v45  ;;  %v5526_v24 = vpop.f32.mrb[43].mxu1 }
 0x921   :  { %7311 = vst.msk [vmem:[%s14357_s18 + $0x58] sm:$0xff] %vm4072_vm6, %v5526_v24 }
 0x923   :  { %v13369_v41 = vpop.f32.mrb[22].mxu0  ;;  %v13371_v63 = vpop.f32.mrb[44].mxu1 }
 0x924   :  { %4078 = vst [vmem:[%s14357_s18 + $0x30] sm:$0xff] %v13369_v41  ;;  %7312 = vst [vmem:[%s14357_s18 + $0x60] sm:$0xff] %v13371_v63  ;;  %v4068_v44 = vpop.f32.mrb[23].mxu0  ;;  %v5532_v12 = vpop.f32.mrb[45].mxu1  ;;  %v13412_v40 = vld [vmem:[%s14357_s18 + $0x48] sm:$0xff] }
 0x925   :  { %4079 = vst.msk [vmem:[%s14357_s18 + $0x38] sm:$0xff] %vm4072_vm6, %v4068_v44  ;;  %7313 = vst.msk [vmem:[%s14357_s18 + $0x68] sm:$0xff] %vm4072_vm6, %v5532_v12  ;;  %v5582_v16 = vsel %vm4072_vm6, %v13412_v40, 0.0 }
 0x926   :  { %v5583_v9 = vadd.f32 %v5582_v16, %v13349_v48 }
 0x927   :  { %v13389_v35 = vpop.f32.mrb[46].mxu1 }
 0x928   :  { %7314 = vst [vmem:[%s14357_s18 + $0x70] sm:$0xff] %v13389_v35  ;;  %v5538_v50 = vpop.f32.mrb[47].mxu1  ;;  %v13425_v21 = vld [vmem:[%s14357_s18 + $0x58] sm:$0xff] }
 0x929   :  { %7315 = vst.msk [vmem:[%s14357_s18 + $0x78] sm:$0xff] %vm4072_vm6, %v5538_v50  ;;  %v5586_v43 = vsel %vm4072_vm6, %v13425_v21, 0.0 }
 0x92a   :  { %v5587_v5 = vadd.f32 %v5586_v43, %v13359_v45 }
 0x92c   :  { %v13402_v4 = vld [vmem:[%s14357_s18 + $0x68] sm:$0xff]  ;;  %v13407_v13 = vld [vmem:[%s14357_s18 + $0x38] sm:$0xff] }
 0x92d   :  { %v5590_v39 = vsel %vm4072_vm6, %v13402_v4, 0.0  ;;  %v5570_v59 = vsel %vm4072_vm6, %v13407_v13, 0.0 }
 0x92e   :  { %v5591_v3 = vadd.f32 %v5590_v39, %v13371_v63  ;;  %v5571_v42 = vadd.f32 %v5570_v59, %v13369_v41 }
 0x930   :  { %5592 = vadd.xlane.f32.xlu1 %v5591_v3  ;;  %5572 = vadd.xlane.f32.xlu0 %v5571_v42  ;;  %v13433_v23 = vld [vmem:[%s14357_s18 + $0x78] sm:$0xff] }
 0x931   :  { %v5594_v15 = vsel %vm4072_vm6, %v13433_v23, 0.0 }
 0x932   :  { %v5595_v36 = vadd.f32 %v5594_v15, %v13389_v35 }
 0x934   :  { %5584 = vadd.xlane.f32.xlu0 %v5583_v9 }
 0x938   :  { %5588 = vadd.xlane.f32.xlu0 %v5587_v5 }
 0x93c   :  { %5596 = vadd.xlane.f32.xlu0 %v5595_v36 }
 0x962   :  { %v5561_v10 = vpop.xlane.xlu0 %5560 }
 0x966   :  { %v5565_v34 = vpop.xlane.xlu1 %5564 }
 0x96a   :  { %v5569_v28 = vpop.xlane.xlu1 %5568 }
 0x9bd   :  { %v5593_v18 = vpop.xlane.xlu1 %5592  ;;  %v5573_v6 = vpop.xlane.xlu0 %5572 }
 0x9be   :  { %v5600_v29 = vadd.f32 %v5593_v18, %v5569_v28 }
 0x9c0   :  { %v13439_v38 = vmul.f32 0.0025510204, %v5600_v29 }
 0x9c1   :  { %v5585_v60 = vpop.xlane.xlu0 %5584 }
 0x9c2   :  { %v5598_v58 = vadd.f32 %v5585_v60, %v5561_v10  ;;  %v5611_v49 = vsub.f32 %v13344_v25, %v13439_v38  ;;  %v5610_v14 = vsub.f32 %v13315_v53, %v13439_v38  ;;  %v5643_v7 = vsub.f32 %v13402_v4, %v13439_v38 }
 0x9c3   :  { %v5642_v39 = vsub.f32 %v13371_v63, %v13439_v38 }
 0x9c4   :  { %v13441_v8 = vmul.f32 0.0025510204, %v5598_v58  ;;  %v5619_v51 = vmul.f32 %v5611_v49, %v5611_v49  ;;  %v5618_v3 = vmul.f32 %v5610_v14, %v5610_v14  ;;  %v5651_v42 = vmul.f32 %v5643_v7, %v5643_v7 }
 0x9c5   :  { %v5589_v22 = vpop.xlane.xlu0 %5588  ;;  %v5650_v18 = vmul.f32 %v5642_v39, %v5642_v39 }
 0x9c6   :  { %v5599_v55 = vadd.f32 %v5589_v22, %v5565_v34  ;;  %v5606_v61 = vsub.f32 %v13295_v17, %v13441_v8  ;;  %v5607_v32 = vsub.f32 %v13324_v54, %v13441_v8  ;;  %v5638_v30 = vsub.f32 %v13349_v48, %v13441_v8 }
 0x9c7   :  { %v5639_v52 = vsub.f32 %v13412_v40, %v13441_v8  ;;  %v5630_v36 = vsel %vm4072_vm6, %v5619_v51, 0.0  ;;  %v5662_v22 = vsel %vm4072_vm6, %v5651_v42, 0.0 }
 0x9c8   :  { %v13453_v62 = vmul.f32 0.0025510204, %v5599_v55  ;;  %v5614_v46 = vmul.f32 %v5606_v61, %v5606_v61  ;;  %v5615_v33 = vmul.f32 %v5607_v32, %v5607_v32  ;;  %v5646_v31 = vmul.f32 %v5638_v30, %v5638_v30 }
 0x9c9   :  { %v5597_v57 = vpop.xlane.xlu0 %5596  ;;  %v5647_v1 = vmul.f32 %v5639_v52, %v5639_v52  ;;  %v5663_v61 = vadd.f32 %v5662_v22, %v5650_v18  ;;  %v5681_v22 = vld [vmem:[%s14347_s8 + $0x18] sm:$0xff] }
 0x9ca   :  { %v5601_v11 = vadd.f32 %v5597_v57, %v5573_v6  ;;  %v5622_v37 = vsel %vm4072_vm6, %v5615_v33, 0.0  ;;  %v5608_v0 = vsub.f32 %v13305_v47, %v13453_v62  ;;  %v5609_v19 = vsub.f32 %v13336_v27, %v13453_v62 }
 0x9cb   :  { %v5623_v2 = vadd.f32 %v5622_v37, %v5614_v46  ;;  %v5640_v56 = vsub.f32 %v13359_v45, %v13453_v62  ;;  %v5641_v20 = vsub.f32 %v13425_v21, %v13453_v62  ;;  %v5654_v24 = vsel %vm4072_vm6, %v5647_v1, 0.0 }
 0x9cc   :  { %v13468_v26 = vmul.f32 0.0025510204, %v5601_v11  ;;  %v5616_v44 = vmul.f32 %v5608_v0, %v5608_v0  ;;  %v5617_v12 = vmul.f32 %v5609_v19, %v5609_v19  ;;  %v5655_v9 = vadd.f32 %v5654_v24, %v5646_v31 }
 0x9cd   :  { %5624 = vadd.xlane.f32.xlu1 %v5623_v2  ;;  %v5649_v50 = vmul.f32 %v5641_v20, %v5641_v20  ;;  %v5648_v5 = vmul.f32 %v5640_v56, %v5640_v56  ;;  %v5631_v6 = vadd.f32 %v5630_v36, %v5618_v3 }
 0x9ce   :  { %v5626_v59 = vsel %vm4072_vm6, %v5617_v12, 0.0  ;;  %v5613_v16 = vsub.f32 %v13407_v13, %v13468_v26  ;;  %v5612_v15 = vsub.f32 %v13369_v41, %v13468_v26  ;;  %v5645_v28 = vsub.f32 %v13433_v23, %v13468_v26 }
 0x9cf   :  { %v5627_v43 = vadd.f32 %v5626_v59, %v5616_v44  ;;  %v5658_v34 = vsel %vm4072_vm6, %v5649_v50, 0.0  ;;  %v5644_v58 = vsub.f32 %v13389_v35, %v13468_v26  ;;  %v5678_v59 = vld [vmem:[%s14347_s8] sm:$0xff] }
 0x9d0   :  { %v5621_v10 = vmul.f32 %v5613_v16, %v5613_v16  ;;  %v5659_v29 = vadd.f32 %v5658_v34, %v5648_v5  ;;  %v5620_v60 = vmul.f32 %v5612_v15, %v5612_v15  ;;  %v5653_v55 = vmul.f32 %v5645_v28, %v5645_v28  ;;  %v5695_v28 = vld [vmem:[%s14348_s9 + $0x8] sm:$0xff] }
 0x9d1   :  { %5656 = vadd.xlane.f32.xlu1 %v5655_v9  ;;  %5628 = vadd.xlane.f32.xlu0 %v5627_v43  ;;  %v5652_v30 = vmul.f32 %v5644_v58, %v5644_v58  ;;  %v5694_v9 = vld [vmem:[%s14348_s9] sm:$0xff]  ;;  %v5679_v43 = vld [vmem:[%s14347_s8 + $0x8] sm:$0xff]  ;;  %v5696_v58 = vld [vmem:[%s14348_s9 + $0x10] sm:$0xff] }
 0x9d2   :  { %v5634_v49 = vsel %vm4072_vm6, %v5621_v10, 0.0  ;;  %v5666_v52 = vsel %vm4072_vm6, %v5653_v55, 0.0  ;;  %v5680_v10 = vld [vmem:[%s14347_s8 + $0x10] sm:$0xff]  ;;  %s8195_s8 = smov 113  }
 0x9d3   :  { %v5635_v32 = vadd.f32 %v5634_v49, %v5620_v60  ;;  %v5667_v46 = vadd.f32 %v5666_v52, %v5652_v30  ;;  %v13513_v49 = vld [vmem:[#allocation2] sm:$0xff] }
 0x9d4   :  { %5707 = vst.msk [vmem:[#allocation2 + $0x10] sm:$0xff] %vm5706_vm7, %v13513_v49  ;;  %5713 = vst.msk [vmem:[#allocation2 + $0x58] sm:$0xff] %vm5706_vm7, %v13513_v49 }
 0x9d5   :  { %5632 = vadd.xlane.f32.xlu1 %v5631_v6  ;;  %5660 = vadd.xlane.f32.xlu0 %v5659_v29 }
 0x9d9   :  { %5664 = vadd.xlane.f32.xlu1 %v5663_v61  ;;  %5636 = vadd.xlane.f32.xlu0 %v5635_v32 }
 0x9dd   :  { %5668 = vadd.xlane.f32.xlu0 %v5667_v46  ;;  %v5697_v46 = vld [vmem:[%s14348_s9 + $0x18] sm:$0xff]  ;;  %s8197_s9 = smov 13  }
 0xa5a   :  { %v5625_v33 = vpop.xlane.xlu1 %5624 }
 0xa5e   :  { %v5657_v57 = vpop.xlane.xlu1 %5656  ;;  %v5629_v1 = vpop.xlane.xlu0 %5628 }
 0xa5f   :  { %v5670_v14 = vadd.f32 %v5657_v57, %v5625_v33  ;;  %v14867_v57 = vld [vmem:[#allocation7_spill] sm:$0xff] }
 0xa61   :  { %v5674_v51 = vmul.f32 0.0025510204, %v5670_v14 }
 0xa62   :  { %v5633_v7 = vpop.xlane.xlu1 %5632  ;;  %v5661_v11 = vpop.xlane.xlu0 %5660 }
 0xa63   :  { %v5682_v37 = vadd.f32 1e-05, %v5674_v51  ;;  %v5671_v0 = vadd.f32 %v5661_v11, %v5629_v1 }
 0xa65   :  { %8119 = vrsqrt.f32 %v5682_v37  ;;  %v5675_v19 = vmul.f32 0.0025510204, %v5671_v0 }
 0xa66   :  { %v5665_v2 = vpop.xlane.xlu1 %5664  ;;  %v5637_v31 = vpop.xlane.xlu0 %5636 }
 0xa67   :  { %v5683_v56 = vadd.f32 1e-05, %v5675_v19  ;;  %v5672_v20 = vadd.f32 %v5665_v2, %v5633_v7 }
 0xa69   :  { %8121 = vrsqrt.f32 %v5683_v56  ;;  %v5676_v24 = vmul.f32 0.0025510204, %v5672_v20 }
 0xa6a   :  { %v5669_v44 = vpop.xlane.xlu0 %5668 }
 0xa6b   :  { %v5684_v12 = vadd.f32 1e-05, %v5676_v24  ;;  %v5673_v50 = vadd.f32 %v5669_v44, %v5637_v31 }
 0xa6d   :  { %8123 = vrsqrt.f32 %v5684_v12  ;;  %v5677_v39 = vmul.f32 0.0025510204, %v5673_v50 }
 0xa6f   :  { %v8120_v3 = vpop.eup %8119  ;;  %v5685_v42 = vadd.f32 1e-05, %v5677_v39 }
 0xa70   :  { %v5690_v16 = vmul.f32 %v8120_v3, %v5678_v59 }
 0xa71   :  { %8125 = vrsqrt.f32 %v5685_v42 }
 0xa72   :  { %5754 = vperm.xlu1 %7884, %v5690_v16   ;;  %v5698_v5 = vmul.f32 %v5690_v16, %v13441_v8  ;;  %v7324_v8 = vld.sshfl [vmem:[%s14350_s11] sm:$0x33 pattern:$0x76325410] }
 0xa73   :  { %v8122_v15 = vpop.eup %8121  ;;  %v5840_v55 = vpack.i.b16 %v7324_v8, %v7324_v8  ;;  %v5838_v61 = vcombine.high %v7324_v8, %v7324_v8 }
 0xa74   :  { %v5702_v36 = vsub.f32 %v5694_v9, %v5698_v5  ;;  %v5691_v34 = vmul.f32 %v8122_v15, %v5679_v43 }
 0xa75   :  { %v5845_v1 = vrot.slane %v5840_v55, %v14867_v57  ;;  %v5847_v14 = vpack.i.b16 %v5838_v61, %v5838_v61 }
 0xa76   :  { %5782 = vperm.xlu1 %7884, %v5702_v36   ;;  %5759 = vperm.xlu0 %7883, %v5691_v34   ;;  %v5699_v18 = vmul.f32 %v5691_v34, %v13453_v62 }
 0xa77   :  { %v8124_v6 = vpop.eup %8123  ;;  %v5852_v11 = vrot.slane %v5847_v14, %v14867_v57 }
 0xa78   :  { %v5692_v29 = vmul.f32 %v8124_v6, %v5680_v10  ;;  %v5703_v60 = vsub.f32 %v5695_v28, %v5699_v18 }
 0xa7a   :  { %5764 = vperm.xlu0 %7883, %v5692_v29   ;;  %5787 = vperm.xlu1 %7884, %v5703_v60   ;;  %v5700_v62 = vmul.f32 %v5692_v29, %v13439_v38  ;;  %v14868_v38 = vld [vmem:[#allocation8_spill] sm:$0xff] }
 0xa7b   :  { %v8126_v32 = vpop.eup %8125  ;;  %v13525_v7 = vrot.slane %v5840_v55, %v14868_v38 }
 0xa7c   :  { %v5704_v30 = vsub.f32 %v5696_v58, %v5700_v62  ;;  %v5693_v52 = vmul.f32 %v8126_v32, %v5681_v22 }
 0xa7e   :  { %5792 = vperm.xlu0 %7883, %v5704_v30   ;;  %5769 = vperm.xlu1 %7884, %v5693_v52   ;;  %v5701_v33 = vmul.f32 %v5693_v52, %v13468_v26  ;;  %v13532_v26 = vrot.slane %v5847_v14, %v14868_v38 }
 0xa80   :  { %v5705_v51 = vsub.f32 %v5697_v46, %v5701_v33 }
 0xa82   :  { %5797 = vperm.xlu1 %7884, %v5705_v51   ;;  %5855 = vrot.lane.b32.xlu0 %v5845_v1, %s8195_s8 }
 0xa86   :  { %5954 = vrot.lane.b32.xlu0 %v13525_v7, %s8196_s14  ;;  %5857 = vrot.lane.b32.xlu1 %v5852_v11, %s8195_s8 }
 0xa8a   :  { %6006 = vrot.lane.b32.xlu0 %v5845_v1, %s8183_s21  ;;  %5956 = vrot.lane.b32.xlu1 %v13532_v26, %s8196_s14 }
 0xa8e   :  { %6062 = vrot.lane.b32.xlu0 %v13525_v7, %s8184_s25  ;;  %6008 = vrot.lane.b32.xlu1 %v5852_v11, %s8183_s21 }
 0xa92   :  { %6099 = vrot.lane.b32.xlu0 %v5845_v1, %s8197_s9  ;;  %6064 = vrot.lane.b32.xlu1 %v13532_v26, %s8184_s25 }
 0xa96   :  { %6101 = vrot.lane.b32.xlu1 %v5852_v11, %s8197_s9 }
 0xaf1   :  { %v5755_v37 = vpop.permute.xlu1 %5754 }
 0xaf2   :  { %v5772_v0 = vmul.f32 %v5755_v37, %v13295_v17  ;;  %v5773_v19 = vmul.f32 %v5755_v37, %v13324_v54  ;;  %v6549_v56 = vmul.f32 %v5755_v37, %v13349_v48  ;;  %v6550_v34 = vmul.f32 %v13412_v40, %v5755_v37 }
 0xaf5   :  { %v5783_v2 = vpop.permute.xlu1 %5782  ;;  %v5760_v31 = vpop.permute.xlu0 %5759 }
 0xaf6   :  { %v5800_v20 = vadd.f32 %v5783_v2, %v5772_v0  ;;  %v5801_v24 = vadd.f32 %v5783_v2, %v5773_v19  ;;  %v6557_v44 = vadd.f32 %v6549_v56, %v5783_v2  ;;  %v5774_v12 = vmul.f32 %v5760_v31, %v13305_v47 }
 0xaf7   :  { %v5775_v50 = vmul.f32 %v5760_v31, %v13336_v27  ;;  %v6551_v39 = vmul.f32 %v5760_v31, %v13359_v45  ;;  %v6552_v43 = vmul.f32 %v13425_v21, %v5760_v31  ;;  %v6558_v29 = vadd.f32 %v6550_v34, %v5783_v2 }
 0xaf8   :  { %v5808_v9 = vmax.f32 %v5800_v20, 0.0  ;;  %v5809_v54 = vmax.f32 %v5801_v24, 0.0  ;;  %v6565_v5 = vmax.f32 %v6557_v44, 0.0 }
 0xaf9   :  { %v5788_v59 = vpop.permute.xlu1 %5787  ;;  %v5765_v3 = vpop.permute.xlu0 %5764 }
 0xafa   :  { %v5802_v42 = vadd.f32 %v5788_v59, %v5774_v12  ;;  %v5803_v16 = vadd.f32 %v5788_v59, %v5775_v50  ;;  %v6559_v17 = vadd.f32 %v6551_v39, %v5788_v59  ;;  %v6560_v47 = vadd.f32 %v6552_v43, %v5788_v59 }
 0xafb   :  { %v5776_v27 = vmul.f32 %v5765_v3, %v13315_v53  ;;  %v5777_v8 = vmul.f32 %v5765_v3, %v13344_v25  ;;  %v6553_v21 = vmul.f32 %v5765_v3, %v13371_v63  ;;  %v13566_v25 = vpack.i.bf16 %v13513_v49, %v13513_v49 }
 0xafc   :  { %v5810_v48 = vmax.f32 %v5802_v42, 0.0  ;;  %v5811_v15 = vmax.f32 %v5803_v16, 0.0  ;;  %v6567_v36 = vmax.f32 %v6559_v17, 0.0  ;;  %v6568_v32 = vmax.f32 %v6560_v47, 0.0 }
 0xafd   :  { %v5770_v10 = vpop.permute.xlu1 %5769  ;;  %v5793_v45 = vpop.permute.xlu0 %5792  ;;  %v6566_v63 = vmax.f32 %v6558_v29, 0.0  ;;  %v6554_v37 = vmul.f32 %v13402_v4, %v5765_v3 }
 0xafe   :  { %v13553_v28 = vpack.c.bf16 %v5810_v48, %v5808_v9  ;;  %v5817_v18 = vpack.c.bf16 %v5811_v15, %v5809_v54  ;;  %v13555_v6 = vpack.c.bf16 %v6567_v36, %v6565_v5  ;;  %v5804_v60 = vadd.f32 %v5793_v45, %v5776_v27 }
 0xaff   :  { %v5805_v58 = vadd.f32 %v5793_v45, %v5777_v8  ;;  %v5778_v53 = vmul.f32 %v5770_v10, %v13369_v41  ;;  %v5779_v40 = vmul.f32 %v5770_v10, %v13407_v13  ;;  %v6555_v22 = vmul.f32 %v5770_v10, %v13389_v35 }
 0xb00   :  { %5821 = vst.msk [vmem:[#allocation2 + $0x10] sm:$0xff] %vm4072_vm6, %v5817_v18  ;;  %6577 = vst [vmem:[#allocation2 + $0x8] sm:$0xff] %v13555_v6  ;;  %v6561_v62 = vadd.f32 %v6553_v21, %v5793_v45  ;;  %v6556_v33 = vmul.f32 %v13433_v23, %v5770_v10  ;;  %v5812_v57 = vmax.f32 %v5804_v60, 0.0  ;;  %v6574_v11 = vpack.c.bf16 %v6568_v32, %v6566_v63 }
 0xb01   :  { %v5798_v55 = vpop.permute.xlu1 %5797  ;;  %v5856_v61 = vpop.permute.xlu0 %5855  ;;  %v5813_v41 = vmax.f32 %v5805_v58, 0.0  ;;  %v6562_v4 = vadd.f32 %v6554_v37, %v5793_v45 }
 0xb02   :  { %v5806_v30 = vadd.f32 %v5798_v55, %v5778_v53  ;;  %v5807_v52 = vadd.f32 %v5798_v55, %v5779_v40  ;;  %v6563_v46 = vadd.f32 %v6555_v22, %v5798_v55  ;;  %v13570_v13 = vmul.bf16 %v13513_v49, %v5856_v61 }
 0xb03   :  { %v6569_v35 = vmax.f32 %v6561_v62, 0.0  ;;  %v6564_v31 = vadd.f32 %v6556_v33, %v5798_v55  ;;  %v6570_v50 = vmax.f32 %v6562_v4, 0.0 }
 0xb04   :  { %v5814_v1 = vmax.f32 %v5806_v30, 0.0  ;;  %v5815_v14 = vmax.f32 %v5807_v52, 0.0  ;;  %v6571_v51 = vmax.f32 %v6563_v46, 0.0  ;;  %5882 = vrot.lane.b32.xlu1 %v13570_v13, %s8198_s6  ;;  %5876 = vrot.lane.b32.xlu0 %v13570_v13, %s8198_s6 }
 0xb05   :  { %v5955_v38 = vpop.permute.xlu0 %5954  ;;  %v13590_v24 = vpop.permute.xlu1 %5857  ;;  %v6572_v12 = vmax.f32 %v6564_v31, 0.0 }
 0xb06   :  { %v13578_v23 = vmul.bf16 %v13513_v49, %v5955_v38  ;;  %v13582_v19 = vpack.c.bf16 %v5814_v1, %v5812_v57  ;;  %v5819_v2 = vpack.c.bf16 %v5815_v14, %v5813_v41  ;;  %v13584_v56 = vpack.c.bf16 %v6571_v51, %v6569_v35  ;;  %v8106_v51 = vld [vmem:[%s14869_s15 + $0x4] ss:$12 sps:$4 sm:$0xff]  }
 0xb07   :  { %v13580_v0 = vld [vmem:[#allocation2 + $0x10] sm:$0xff]  ;;  %v6576_v39 = vpack.c.bf16 %v6572_v12, %v6570_v50  ;;  %v13617_v17 = vsel %vm5859_vm8, %v5856_v61, %v13590_v24  ;;  %6337 = vmatprep.mubr.bf16.mxu0 %v8106_v51  ;;  %6935 = vmatprep.mubr.bf16.mxu1 %v8106_v51 }
 0xb08   :  { %6055 = vst.msk [vmem:[#allocation3 + $0x1c8] sm:$0xff] %vm4072_vm6, %v13580_v0  ;;  %6578 = vst.msk [vmem:[#allocation2 + $0x10] sm:$0xff] %vm4072_vm6, %v6574_v11  ;;  %8091 = vrot.lane.b32.xlu0 %v13566_v25, %s8199_s7  ;;  %5975 = vrot.lane.b32.xlu1 %v13578_v23, %s8197_s9  ;;  %v5865_v9 = vmul.bf16 %v13617_v17, %v13553_v28  ;;  %v5866_v54 = vmul.bf16 %v13580_v0, %v13590_v24 }
 0xb09   :  { %5823 = vst.msk [vmem:[#allocation2 + $0x58] sm:$0xff] %vm4072_vm6, %v5819_v2  ;;  %v6007_v20 = vpop.permute.xlu0 %6006  ;;  %v13609_v16 = vpop.permute.xlu1 %5956  ;;  %v5868_v18 = vmul.bf16 %v13617_v17, %v13582_v19  ;;  %v6591_v35 = vmul.bf16 %v13584_v56, %v13617_v17 }
 0xb0a   :  { %v13597_v44 = vmul.bf16 %v13513_v49, %v6007_v20  ;;  %v13630_v43 = vsel %vm3784_vm2, %v5955_v38, %v13609_v16  ;;  %v5965_v48 = vmul.bf16 %v13580_v0, %v13609_v16 }
 0xb0b   :  { %v5964_v15 = vmul.bf16 %v13630_v43, %v13553_v28  ;;  %v5967_v40 = vmul.bf16 %v13630_v43, %v13582_v19  ;;  %v6666_v41 = vmul.bf16 %v13555_v6, %v13630_v43 }
 0xb0c   :  { %5981 = vrot.lane.b32.xlu0 %v13578_v23, %s8197_s9  ;;  %6026 = vrot.lane.b32.xlu1 %v13597_v44, %s8184_s25 }
 0xb0d   :  { %v13632_v5 = vpop.permute.xlu1 %6008  ;;  %v13668_v8 = vpop.permute.xlu0 %6062 }
 0xb0e   :  { %v13646_v47 = vsel %vm332_vm4, %v6007_v20, %v13632_v5  ;;  %v6016_v27 = vmul.bf16 %v13580_v0, %v13632_v5  ;;  %v6069_v21 = vmul.bf16 %v13668_v8, %v13553_v28  ;;  %v6071_v30 = vmul.bf16 %v13668_v8, %v13582_v19 }
 0xb0f   :  { %v13603_v59 = vld [vmem:[#allocation2 + $0x10] sm:$0xff]  ;;  %v13605_v3 = vld [vmem:[#allocation3 + $0x1c8] sm:$0xff]  ;;  %v6015_v10 = vmul.bf16 %v13646_v47, %v13553_v28  ;;  %v6018_v32 = vmul.bf16 %v13646_v47, %v13582_v19  ;;  %v6708_v14 = vmul.bf16 %v13555_v6, %v13646_v47 }
 0xb10   :  { %v13607_v42 = vld [vmem:[#allocation2 + $0x58] sm:$0xff]  ;;  %6748 = vst.msk [vmem:[#allocation3 + $0x1c8] sm:$0xff] %vm4072_vm6, %v13603_v59  ;;  %5915 = vrot.lane.b32.xlu0 %v13553_v28, %s8199_s7  ;;  %5917 = vrot.lane.b32.xlu1 %v13580_v0, %s8199_s7  ;;  %v6589_v33 = vmul.bf16 %v13603_v59, %v13590_v24  ;;  %v6667_v57 = vmul.bf16 %v13603_v59, %v13609_v16 }
 0xb11   :  { %6057 = vst.msk [vmem:[#allocation3 + $0x200] sm:$0xff] %vm4072_vm6, %v13607_v42  ;;  %6580 = vst.msk [vmem:[#allocation2 + $0x58] sm:$0xff] %vm4072_vm6, %v6576_v39  ;;  %v5869_v45 = vmul.bf16 %v13607_v42, %v13590_v24  ;;  %v6065_v29 = vpop.permute.xlu1 %6064  ;;  %v13680_v58 = vpop.permute.xlu0 %6099  ;;  %v5968_v22 = vmul.bf16 %v13607_v42, %v13609_v16  ;;  %v6019_v61 = vmul.bf16 %v13607_v42, %v13632_v5 }
 0xb12   :  { %v13678_v60 = vsel %vm738_vm5, %v13668_v8, %v6065_v29  ;;  %v6108_v46 = vmul.bf16 %v13680_v58, %v13582_v19  ;;  %v6709_v1 = vmul.bf16 %v13603_v59, %v13632_v5 }
 0xb13   :  { %v6072_v63 = vmul.bf16 %v13678_v60, %v13607_v42 }
 0xb14   :  { %5878 = vrot.lane.b32.xlu0 %v5865_v9, %s8198_s6  ;;  %5880 = vrot.lane.b32.xlu1 %v5866_v54, %s8198_s6 }
 0xb15   :  { %v6102_v53 = vpop.permute.xlu1 %6101 }
 0xb16   :  { %v13697_v62 = vsel %vm5987_vm10, %v13680_v58, %v6102_v53 }
 0xb17   :  { %v6107_v55 = vmul.bf16 %v13697_v62, %v13580_v0  ;;  %v6109_v52 = vmul.bf16 %v13697_v62, %v13607_v42 }
 0xb18   :  { %v13640_v36 = vld [vmem:[#allocation2 + $0x58] sm:$0xff]  ;;  %v13642_v34 = vld [vmem:[#allocation3 + $0x200] sm:$0xff]  ;;  %5979 = vrot.lane.b32.xlu0 %v5965_v48, %s8197_s9  ;;  %5977 = vrot.lane.b32.xlu1 %v5964_v15, %s8197_s9 }
 0xb19   :  { %6750 = vst.msk [vmem:[#allocation3 + $0x200] sm:$0xff] %vm4072_vm6, %v13640_v36 }
 0xb1c   :  { %6030 = vrot.lane.b32.xlu0 %v6016_v27, %s8184_s25  ;;  %6028 = vrot.lane.b32.xlu1 %v6015_v10, %s8184_s25 }
 0xb20   :  { %5923 = vrot.lane.b32.xlu0 %v13607_v42, %s8199_s7  ;;  %5921 = vrot.lane.b32.xlu1 %v13582_v19, %s8199_s7 }
 0xb24   :  { %5886 = vrot.lane.b32.xlu0 %v5869_v45, %s8198_s6  ;;  %5884 = vrot.lane.b32.xlu1 %v5868_v18, %s8198_s6 }
 0xb28   :  { %6163 = vrot.lane.b32.xlu0 %v13525_v7, %s8198_s6  ;;  %6165 = vrot.lane.b32.xlu1 %v13532_v26, %s8198_s6  ;;  %v6070_v7 = vmul.bf16 %v13678_v60, %v13580_v0  ;;  %v6106_v26 = vmul.bf16 %v13680_v58, %v13553_v28 }
 0xb2c   :  { %6032 = vrot.lane.b32.xlu0 %v13597_v44, %s8184_s25  ;;  %6077 = vrot.lane.b32.xlu1 %v6069_v21, %s8183_s21 }
 0xb30   :  { %6079 = vrot.lane.b32.xlu0 %v6070_v7, %s8183_s21  ;;  %6114 = vrot.lane.b32.xlu1 %v6106_v26, %s8196_s14 }
 0xb34   :  { %5983 = vrot.lane.b32.xlu0 %v5967_v40, %s8197_s9  ;;  %5985 = vrot.lane.b32.xlu1 %v5968_v22, %s8197_s9 }
 0xb38   :  { %6140 = vrot.lane.b32.xlu1 %v13553_v28, %s8200_s1  ;;  %6116 = vrot.lane.b32.xlu0 %v6107_v55, %s8196_s14 }
 0xb3c   :  { %6036 = vrot.lane.b32.xlu1 %v6019_v61, %s8184_s25  ;;  %6034 = vrot.lane.b32.xlu0 %v6018_v32, %s8184_s25 }
 0xb40   :  { %6144 = vrot.lane.b32.xlu1 %v13582_v19, %s8200_s1  ;;  %6142 = vrot.lane.b32.xlu0 %v13580_v0, %s8200_s1 }
 0xb44   :  { %6599 = vrot.lane.b32.xlu1 %v13570_v13, %s8198_s6  ;;  %6146 = vrot.lane.b32.xlu0 %v13607_v42, %s8200_s1 }
 0xb48   :  { %6637 = vrot.lane.b32.xlu1 %v13555_v6, %s8199_s7  ;;  %6605 = vrot.lane.b32.xlu0 %v13570_v13, %s8198_s6  ;;  %v6592_v13 = vmul.bf16 %v13640_v36, %v13590_v24 }
 0xb4c   :  { %8096 = vrot.lane.b32.xlu1 %v13566_v25, %s8199_s7  ;;  %6639 = vrot.lane.b32.xlu0 %v13603_v59, %s8199_s7  ;;  %v6588_v25 = vmul.bf16 %v13555_v6, %v13617_v17 }
 0xb50   :  { %6081 = vrot.lane.b32.xlu1 %v6071_v30, %s8183_s21  ;;  %6083 = vrot.lane.b32.xlu0 %v6072_v63, %s8183_s21 }
 0xb54   :  { %6118 = vrot.lane.b32.xlu1 %v6108_v46, %s8196_s14  ;;  %6120 = vrot.lane.b32.xlu0 %v6109_v52, %s8196_s14  ;;  %v6670_v46 = vmul.bf16 %v13640_v36, %v13609_v16 }
 0xb58   :  { %6601 = vrot.lane.b32.xlu1 %v6588_v25, %s8198_s6  ;;  %6603 = vrot.lane.b32.xlu0 %v6589_v33, %s8198_s6  ;;  %v6669_v33 = vmul.bf16 %v13584_v56, %v13630_v43 }
 0xb5c   :  { %6681 = vrot.lane.b32.xlu1 %v6667_v57, %s8197_s9  ;;  %6679 = vrot.lane.b32.xlu0 %v6666_v41, %s8197_s9 }
 0xb60   :  { %6645 = vrot.lane.b32.xlu1 %v13640_v36, %s8199_s7  ;;  %6643 = vrot.lane.b32.xlu0 %v13584_v56, %s8199_s7 }
 0xb64   :  { %6609 = vrot.lane.b32.xlu1 %v6592_v13, %s8198_s6  ;;  %6607 = vrot.lane.b32.xlu0 %v6591_v35, %s8198_s6 }
 0xb68   :  { %6683 = vrot.lane.b32.xlu1 %v13578_v23, %s8197_s9  ;;  %6677 = vrot.lane.b32.xlu0 %v13578_v23, %s8197_s9 }
 0xb6c   :  { %6723 = vrot.lane.b32.xlu1 %v6709_v1, %s8184_s25  ;;  %6721 = vrot.lane.b32.xlu0 %v6708_v14, %s8184_s25 }
 0xb76   :  { %v5883_v38 = vpop.permute.xlu1 %5882  ;;  %v5877_v11 = vpop.permute.xlu0 %5876 }
 0xb7a   :  { %v13775_v37 = vpop.permute.xlu1 %5975  ;;  %v13777_v23 = vpop.permute.xlu0 %8091 }
 0xb7b   :  { %v8093_v57 = vunpack.i.l.bf16 %v13777_v23  ;;  %v8094_v1 = vunpack.i.h.bf16 %v13777_v23 }
 0xb7e   :  { %v13779_v2 = vpop.permute.xlu1 %6026  ;;  %v13781_v31 = vpop.permute.xlu0 %5981 }
 0xb82   :  { %v5918_v4 = vpop.permute.xlu1 %5917  ;;  %v5916_v20 = vpop.permute.xlu0 %5915 }
 0xb83   :  { %v5927_v24 = vsel %vm5925_vm11, %v5916_v20, %v5918_v4  ;;  %v5926_v16 = vsel %vm5925_vm11, %v8093_v57, %v5916_v20  ;;  %v6711_v20 = vmul.bf16 %v13584_v56, %v13646_v47 }
 0xb84   :  { %5935 = vst.msk [vmem:[#allocation3 + $0x78] sm:$0xff] %vm4072_vm6, %v5927_v24 }
 0xb86   :  { %v5881_v12 = vpop.permute.xlu1 %5880  ;;  %v5879_v50 = vpop.permute.xlu0 %5878 }
 0xb87   :  { %v5890_v39 = vsel %vm5888_vm12, %v5879_v50, %v5881_v12  ;;  %v5889_v45 = vsel %vm5888_vm12, %v5877_v11, %v5879_v50  ;;  %v6712_v11 = vmul.bf16 %v13640_v36, %v13632_v5 }
 0xb88   :  { %5898 = vst.msk [vmem:[#allocation3 + $0x8] sm:$0xff] %vm4072_vm6, %v5890_v39 }
 0xb8a   :  { %v13787_v17 = vpop.permute.xlu1 %5977  ;;  %v5980_v9 = vpop.permute.xlu0 %5979 }
 0xb8b   :  { %v5989_v54 = vsel %vm5987_vm10, %v13787_v17, %v5980_v9  ;;  %v5988_v47 = vsel %vm5987_vm10, %v13775_v37, %v13787_v17  ;;  %v6756_v37 = vmul.bf16 %v13603_v59, %v13678_v60 }
 0xb8c   :  { %5997 = vst.msk [vmem:[#allocation3 + $0xe8] sm:$0xff] %vm4072_vm6, %v5989_v54 }
 0xb8e   :  { %v13792_v48 = vpop.permute.xlu1 %6028  ;;  %v6031_v15 = vpop.permute.xlu0 %6030 }
 0xb8f   :  { %v6039_v27 = vsel %vm738_vm5, %v13792_v48, %v6031_v15  ;;  %v6197_v10 = vld [vmem:[#allocation3 + $0x8] sm:$0xff]  ;;  %v6755_v15 = vmul.bf16 %v13555_v6, %v13668_v8 }
 0xb90   :  { %6047 = vst.msk [vmem:[#allocation3 + $0x158] sm:$0xff] %vm4072_vm6, %v6039_v27  ;;  %6305 = vmatprep.subr.bf16.mxu0 %v6197_v10  ;;  %v6038_v10 = vsel %vm738_vm5, %v13779_v2, %v13792_v48 }
 0xb91   :  { %6306 = vmatpush1.bf16.msra.mxu0 %v5889_v45  ;;  %v6786_v45 = vmul.bf16 %v13603_v59, %v13697_v62 }
 0xb92   :  { %v5922_v18 = vpop.permute.xlu1 %5921  ;;  %v5924_v29 = vpop.permute.xlu0 %5923 }
 0xb93   :  { %v5929_v21 = vsel %vm5925_vm11, %v5922_v18, %v5924_v29  ;;  %v5928_v4 = vsel %vm5925_vm11, %v8094_v1, %v5922_v18  ;;  %v6205_v23 = vld [vmem:[#allocation3 + $0xe8] sm:$0xff] }
 0xb94   :  { %5937 = vst.msk [vmem:[#allocation3 + $0xb0] sm:$0xff] %vm4072_vm6, %v5929_v21 }
 0xb96   :  { %v5885_v7 = vpop.permute.xlu1 %5884  ;;  %v5887_v26 = vpop.permute.xlu0 %5886 }
 0xb97   :  { %v5892_v53 = vsel %vm5888_vm12, %v5885_v7, %v5887_v26  ;;  %v5891_v25 = vsel %vm5888_vm12, %v5883_v38, %v5885_v7  ;;  %v6757_v26 = vmul.bf16 %v13584_v56, %v13668_v8 }
 0xb98   :  { %5900 = vst.msk [vmem:[#allocation3 + $0x40] sm:$0xff] %vm4072_vm6, %v5892_v53  ;;  %v6758_v53 = vmul.bf16 %v13640_v36, %v13678_v60 }
 0xb9a   :  { %v6166_v40 = vpop.permute.xlu1 %6165  ;;  %v13802_v22 = vpop.permute.xlu0 %6163 }
 0xb9b   :  { %v13806_v55 = vsel %vm5888_vm12, %v13802_v22, %v6166_v40  ;;  %v6170_v61 = vmul.bf16 %v13802_v22, %v13553_v28  ;;  %v6172_v43 = vmul.bf16 %v13802_v22, %v13582_v19  ;;  %v6203_v35 = vld [vmem:[#allocation3 + $0xb0] sm:$0xff] }
 0xb9c   :  { %v6171_v32 = vmul.bf16 %v13806_v55, %v13580_v0  ;;  %v6201_v0 = vld [vmem:[#allocation3 + $0x78] sm:$0xff]  ;;  %v6173_v5 = vmul.bf16 %v13806_v55, %v13607_v42  ;;  %v6842_v8 = vmul.bf16 %v13603_v59, %v13806_v55 }
 0xb9d   :  { %6178 = vrot.lane.b32.xlu0 %v6170_v61, %s8195_s8 }
 0xb9e   :  { %v13813_v63 = vpop.permute.xlu1 %6077  ;;  %6180 = vrot.lane.b32.xlu1 %v6171_v32, %s8195_s8  ;;  %v13816_v30 = vpop.permute.xlu0 %6032 }
 0xb9f   :  { %v6199_v52 = vld [vmem:[#allocation3 + $0x40] sm:$0xff] }
 0xba0   :  { %6307 = vmatprep.subr.bf16.mxu0 %v6199_v52 }
 0xba1   :  { %6308 = vmatpush1.bf16.msra.mxu0 %v5891_v25  ;;  %6687 = vrot.lane.b32.xlu0 %v6670_v46, %s8197_s9 }
 0xba2   :  { %v13825_v41 = vpop.permute.xlu1 %6114  ;;  %6309 = vmatprep.subr.bf16.mxu0 %v6201_v0  ;;  %6685 = vrot.lane.b32.xlu1 %v6669_v33, %s8197_s9  ;;  %v13828_v13 = vpop.permute.xlu0 %6079 }
 0xba3   :  { %6092 = vst.msk [vmem:[#allocation3 + $0x238] sm:$0xff] %vm4072_vm6, %v13828_v13  ;;  %v6085_v46 = vsel %vm332_vm4, %v13813_v63, %v13828_v13 }
 0xba5   :  { %6719 = vrot.lane.b32.xlu0 %v13597_v44, %s8184_s25  ;;  %6310 = vmatpush1.bf16.msra.mxu0 %v5926_v16  ;;  %v6843_v16 = vmul.bf16 %v13584_v56, %v13802_v22 }
 0xba6   :  { %v5986_v14 = vpop.permute.xlu1 %5985  ;;  %6182 = vrot.lane.b32.xlu1 %v6172_v43, %s8195_s8  ;;  %v5984_v51 = vpop.permute.xlu0 %5983  ;;  %6311 = vmatprep.subr.bf16.mxu0 %v6203_v35  ;;  %v6844_v35 = vmul.bf16 %v13640_v36, %v13806_v55 }
 0xba7   :  { %v5991_v38 = vsel %vm5987_vm10, %v5984_v51, %v5986_v14  ;;  %v5990_v42 = vsel %vm5987_vm10, %v13781_v31, %v5984_v51  ;;  %v6785_v31 = vmul.bf16 %v13555_v6, %v13680_v58 }
 0xba8   :  { %5999 = vst.msk [vmem:[#allocation3 + $0x120] sm:$0xff] %vm4072_vm6, %v5991_v38 }
 0xba9   :  { %6729 = vrot.lane.b32.xlu0 %v6712_v11, %s8184_s25  ;;  %6312 = vmatpush1.bf16.msra.mxu0 %v5928_v4 }
 0xbaa   :  { %v13847_v24 = vpop.permute.xlu1 %6140  ;;  %6727 = vrot.lane.b32.xlu1 %v6711_v20, %s8184_s25  ;;  %v13850_v12 = vpop.permute.xlu0 %6116  ;;  %6313 = vmatprep.subr.bf16.mxu0 %v6205_v23 }
 0xbab   :  { %6129 = vst.msk [vmem:[#allocation3 + $0x2a8] sm:$0xff] %vm4072_vm6, %v13850_v12  ;;  %v6122_v51 = vsel %vm3784_vm2, %v13825_v41, %v13850_v12 }
 0xbad   :  { %6184 = vrot.lane.b32.xlu0 %v6173_v5, %s8195_s8  ;;  %6314 = vmatpush1.bf16.msra.mxu0 %v5988_v47 }
 0xbae   :  { %v6037_v50 = vpop.permute.xlu1 %6036  ;;  %6725 = vrot.lane.b32.xlu1 %v13597_v44, %s8184_s25  ;;  %v6035_v39 = vpop.permute.xlu0 %6034  ;;  %v6209_v44 = vld [vmem:[#allocation3 + $0x158] sm:$0xff] }
 0xbaf   :  { %v6041_v9 = vsel %vm738_vm5, %v6035_v39, %v6037_v50  ;;  %v6207_v54 = vld [vmem:[#allocation3 + $0x120] sm:$0xff]  ;;  %v6040_v7 = vsel %vm738_vm5, %v13816_v30, %v6035_v39 }
 0xbb0   :  { %6049 = vst.msk [vmem:[#allocation3 + $0x190] sm:$0xff] %vm4072_vm6, %v6041_v9  ;;  %6315 = vmatprep.subr.bf16.mxu0 %v6207_v54 }
 0xbb1   :  { %6763 = vrot.lane.b32.xlu0 %v6755_v15, %s8183_s21  ;;  %6316 = vmatpush1.bf16.msra.mxu0 %v5990_v42 }
 0xbb2   :  { %v13871_v17 = vpop.permute.xlu1 %6144  ;;  %6765 = vrot.lane.b32.xlu1 %v6756_v37, %s8183_s21  ;;  %v13874_v27 = vpop.permute.xlu0 %6142  ;;  %6317 = vmatprep.subr.bf16.mxu0 %v6209_v44  ;;  %v6221_v43 = vld [vmem:[#allocation3 + $0x2a8] sm:$0xff] }
 0xbb3   :  { %6156 = vst.msk [vmem:[#allocation3 + $0x318] sm:$0xff] %vm4072_vm6, %v13874_v27  ;;  %v6149_v50 = vsel %vm6148_vm13, %v13847_v24, %v13874_v27  ;;  %v13969_v24 = vld [vmem:[%s14869_s15] ss:$12 sps:$4 sm:$0xff]   ;;  %v13974_v27 = vld [vmem:[%s14869_s15 + $0x1c] ss:$12 sps:$4 sm:$0xff]  }
 0xbb5   :  { %6793 = vrot.lane.b32.xlu0 %v6785_v31, %s8196_s14  ;;  %6318 = vmatpush1.bf16.msra.mxu0 %v6038_v10 }
 0xbb6   :  { %v6600_v18 = vpop.permute.xlu1 %6599  ;;  %6795 = vrot.lane.b32.xlu1 %v6786_v45, %s8196_s14  ;;  %v13887_v29 = vpop.permute.xlu0 %6146 }
 0xbb7   :  { %6158 = vst.msk [vmem:[#allocation3 + $0x350] sm:$0xff] %vm4072_vm6, %v13887_v29  ;;  %v6211_v21 = vld [vmem:[#allocation3 + $0x190] sm:$0xff]  ;;  %v6150_v37 = vsel %vm6148_vm13, %v13871_v17, %v13887_v29  ;;  %v5723_v17 = vld [vmem:[%s14869_s15 + $0x18] sm:$0xff] }
 0xbb8   :  { %6319 = vmatprep.subr.bf16.mxu0 %v6211_v21  ;;  %v5725_v29 = vld [vmem:[%s14869_s15 + $0x24] sm:$0xff] }
 0xbb9   :  { %6819 = vrot.lane.b32.xlu0 %v13555_v6, %s8200_s1  ;;  %6320 = vmatpush1.bf16.msra.mxu0 %v6040_v7  ;;  %v13986_v7 = vcombine.low %v5723_v17, %v5725_v29 }
 0xbba   :  { %v6638_v2 = vpop.permute.xlu1 %6637  ;;  %6821 = vrot.lane.b32.xlu1 %v13603_v59, %s8200_s1  ;;  %v13897_v48 = vpop.permute.xlu0 %6605  ;;  %6321 = vmatprep.subr.bf16.mxu0 %v13605_v3  ;;  %v6841_v3 = vmul.bf16 %v13555_v6, %v13802_v22  ;;  %v6787_v59 = vmul.bf16 %v13584_v56, %v13680_v58  ;;  %v6225_v41 = vld [vmem:[#allocation3 + $0x318] sm:$0xff] }
 0xbbd   :  { %6767 = vrot.lane.b32.xlu0 %v6757_v26, %s8183_s21  ;;  %6322 = vmatpush1.bf16.msra.mxu0 %v13553_v28  ;;  %v6217_v28 = vld [vmem:[#allocation3 + $0x238] sm:$0xff]  ;;  %v5727_v26 = vld [vmem:[%s14869_s15 + $0x30] sm:$0xff] }
 0xbbe   :  { %v8097_v40 = vpop.permute.xlu1 %8096  ;;  %6769 = vrot.lane.b32.xlu1 %v6758_v53, %s8183_s21  ;;  %v6640_v61 = vpop.permute.xlu0 %6639  ;;  %6323 = vmatprep.subr.bf16.mxu0 %v13642_v34  ;;  %v6227_v54 = vld [vmem:[#allocation3 + $0x350] sm:$0xff] }
 0xbbf   :  { %v8098_v32 = vunpack.i.l.bf16 %v8097_v40  ;;  %v6648_v30 = vsel %vm5925_vm11, %v6638_v2, %v6640_v61  ;;  %v8099_v22 = vunpack.i.h.bf16 %v8097_v40  ;;  %v5729_v53 = vld [vmem:[%s14869_s15 + $0x3c] sm:$0xff] }
 0xbc0   :  { %6656 = vst.msk [vmem:[#allocation3 + $0x78] sm:$0xff] %vm4072_vm6, %v6648_v30  ;;  %v14002_v61 = vcombine.low %v5727_v26, %v5729_v53  ;;  %v5731_v30 = vld [vmem:[%s14869_s15 + $0x48] sm:$0xff] }
 0xbc1   :  { %v13915_v60 = vsel %vm5925_vm11, %v8098_v32, %v6638_v2  ;;  %6849 = vrot.lane.b32.xlu0 %v6841_v3, %s8195_s8  ;;  %6324 = vmatpush1.bf16.msra.mxu0 %v13582_v19  ;;  %v6788_v19 = vmul.bf16 %v13640_v36, %v13697_v62  ;;  %v13991_v2 = vld [vmem:[%s14869_s15 + $0x34] ss:$12 sps:$4 sm:$0xff]   ;;  %v14007_v32 = vld [vmem:[%s14869_s15 + $0x4c] ss:$12 sps:$4 sm:$0xff]  }
 0xbc2   :  { %6655 = vst [vmem:[#allocation3 + $0x70] sm:$0xff] %v13915_v60  ;;  %v6082_v34 = vpop.permute.xlu1 %6081  ;;  %6851 = vrot.lane.b32.xlu1 %v6842_v8, %s8195_s8  ;;  %v6084_v52 = vpop.permute.xlu0 %6083  ;;  %6325 = vmatprep.subr.bf16.mxu0 %v6217_v28  ;;  %v5733_v3 = vld [vmem:[%s14869_s15 + $0x54] sm:$0xff] }
 0xbc3   :  { %6094 = vst.msk [vmem:[#allocation3 + $0x270] sm:$0xff] %vm4072_vm6, %v6084_v52  ;;  %v6086_v62 = vsel %vm332_vm4, %v6082_v34, %v6084_v52  ;;  %v14017_v8 = vcombine.low %v5731_v30, %v5733_v3  ;;  %v8116_v3 = vld [vmem:[%s14869_s15 + $0x50] ss:$12 sps:$4 sm:$0xff]  }
 0xbc5   :  { %6797 = vrot.lane.b32.xlu0 %v6787_v59, %s8196_s14  ;;  %6326 = vmatpush1.bf16.msra.mxu0 %v6085_v46 }
 0xbc6   :  { %v6119_v25 = vpop.permute.xlu1 %6118  ;;  %6799 = vrot.lane.b32.xlu1 %v6788_v19, %s8196_s14  ;;  %v6121_v33 = vpop.permute.xlu0 %6120 }
 0xbc7   :  { %6131 = vst.msk [vmem:[#allocation3 + $0x2e0] sm:$0xff] %vm4072_vm6, %v6121_v33  ;;  %v6123_v4 = vsel %vm3784_vm2, %v6119_v25, %v6121_v33  ;;  %v6872_v21 = vld [vmem:[#allocation3 + $0x78] sm:$0xff] }
 0xbc9   :  { %6823 = vrot.lane.b32.xlu0 %v13584_v56, %s8200_s1 }
 0xbca   :  { %v6602_v58 = vpop.permute.xlu1 %6601  ;;  %6825 = vrot.lane.b32.xlu1 %v13640_v36, %s8200_s1  ;;  %v6604_v63 = vpop.permute.xlu0 %6603  ;;  %v6219_v0 = vld [vmem:[#allocation3 + $0x270] sm:$0xff] }
 0xbcb   :  { %v6611_v57 = vsel %vm5888_vm12, %v6600_v18, %v6602_v58  ;;  %v6612_v13 = vsel %vm5888_vm12, %v6602_v58, %v6604_v63  ;;  %6327 = vmatprep.subr.bf16.mxu0 %v6219_v0 }
 0xbcc   :  { %6619 = vst [vmem:[#allocation3] sm:$0xff] %v6611_v57  ;;  %6620 = vst.msk [vmem:[#allocation3 + $0x8] sm:$0xff] %vm4072_vm6, %v6612_v13  ;;  %6328 = vmatpush1.bf16.msra.mxu0 %v6086_v62 }
 0xbcd   :  { %6853 = vrot.lane.b32.xlu0 %v6843_v16, %s8195_s8  ;;  %6329 = vmatprep.subr.bf16.mxu0 %v6221_v43 }
 0xbce   :  { %v6682_v1 = vpop.permute.xlu1 %6681  ;;  %6855 = vrot.lane.b32.xlu1 %v6844_v35, %s8195_s8  ;;  %v6680_v14 = vpop.permute.xlu0 %6679  ;;  %v6223_v11 = vld [vmem:[#allocation3 + $0x2e0] sm:$0xff]  ;;  %s14870_s8 = sld [smem:[#allocation87_spill]] }
 0xbcf   :  { %v6690_v38 = vsel %vm5987_vm10, %v6680_v14, %v6682_v1 }
 0xbd0   :  { %6698 = vst.msk [vmem:[#allocation3 + $0xe8] sm:$0xff] %vm4072_vm6, %v6690_v38  ;;  %6330 = vmatpush1.bf16.msra.mxu0 %v6122_v51 }
 0xbd1   :  { %6331 = vmatprep.subr.bf16.mxu0 %v6223_v11 }
 0xbd2   :  { %v6646_v36 = vpop.permute.xlu1 %6645  ;;  %v6644_v55 = vpop.permute.xlu0 %6643 }
 0xbd3   :  { %v6649_v20 = vsel %vm5925_vm11, %v8099_v22, %v6644_v55  ;;  %v6650_v23 = vsel %vm5925_vm11, %v6644_v55, %v6646_v36  ;;  %v6868_v5 = vld [vmem:[#allocation3 + $0x8] sm:$0xff] }
 0xbd4   :  { %6657 = vst [vmem:[#allocation3 + $0xa8] sm:$0xff] %v6649_v20  ;;  %6658 = vst.msk [vmem:[#allocation3 + $0xb0] sm:$0xff] %vm4072_vm6, %v6650_v23  ;;  %6332 = vmatpush1.bf16.msra.mxu0 %v6123_v4  ;;  %6903 = vmatprep.subr.bf16.mxu1 %v6868_v5  ;;  %v6884_v36 = vld [vmem:[#allocation3 + $0x1c8] sm:$0xff] }
 0xbd5   :  { %6333 = vmatprep.subr.bf16.mxu0 %v6225_v41  ;;  %6904 = vmatpush1.bf16.msra.mxu1 %v6611_v57  ;;  %v6886_v41 = vld [vmem:[#allocation3 + $0x200] sm:$0xff] }
 0xbd6   :  { %v6610_v12 = vpop.permute.xlu1 %6609  ;;  %v6608_v47 = vpop.permute.xlu0 %6607 }
 0xbd7   :  { %v6613_v39 = vsel %vm5888_vm12, %v13897_v48, %v6608_v47  ;;  %v6614_v9 = vsel %vm5888_vm12, %v6608_v47, %v6610_v12  ;;  %v6876_v40 = vld [vmem:[#allocation3 + $0xe8] sm:$0xff] }
 0xbd8   :  { %6621 = vst [vmem:[#allocation3 + $0x38] sm:$0xff] %v6613_v39  ;;  %6622 = vst.msk [vmem:[#allocation3 + $0x40] sm:$0xff] %vm4072_vm6, %v6614_v9  ;;  %6334 = vmatpush1.bf16.msra.mxu0 %v6149_v50  ;;  %v14046_v50 = vld [vmem:[#allocation2] sm:$0xff] }
 0xbd9   :  { %6335 = vmatprep.subr.bf16.mxu0 %v6227_v54 }
 0xbda   :  { %v6684_v15 = vpop.permute.xlu1 %6683  ;;  %v6678_v42 = vpop.permute.xlu0 %6677 }
 0xbdb   :  { %v6689_v44 = vsel %vm5987_vm10, %v6678_v42, %v6680_v14  ;;  %v6874_v48 = vld [vmem:[#allocation3 + $0xb0] sm:$0xff] }
 0xbdc   :  { %6697 = vst [vmem:[#allocation3 + $0xe0] sm:$0xff] %v6689_v44  ;;  %6336 = vmatpush1.bf16.msra.mxu0 %v6150_v37 }
 0xbde   :  { %v6724_v31 = vpop.permute.xlu1 %6723  ;;  %v6722_v10 = vpop.permute.xlu0 %6721 }
 0xbdf   :  { %v6732_v45 = vsel %vm738_vm5, %v6722_v10, %v6724_v31  ;;  %v6870_v18 = vld [vmem:[#allocation3 + $0x40] sm:$0xff]  ;;  %6338 = vmatmul.mubr.bf16.vlgmr.msra.gmra.mrb[24].mxu0 %v13969_v24 }
 0xbe0   :  { %6740 = vst.msk [vmem:[#allocation3 + $0x158] sm:$0xff] %vm4072_vm6, %v6732_v45  ;;  %6905 = vmatprep.subr.bf16.mxu1 %v6870_v18  ;;  %6347 = vmatprep.mubr.bf16.mxu0 %v13974_v27  ;;  %v8115_v45 = vld [vmem:[%s14869_s15 + $0x38] ss:$12 sps:$4 sm:$0xff]  }
 0xbe1   :  { %6906 = vmatpush1.bf16.msra.mxu1 %v6613_v39 }
 0xbe2   :  { %6907 = vmatprep.subr.bf16.mxu1 %v6872_v21 }
 0xbe5   :  { %6908 = vmatpush1.bf16.msra.mxu1 %v13915_v60 }
 0xbe6   :  { %6909 = vmatprep.subr.bf16.mxu1 %v6874_v48 }
 0xbe7   :  { %6348 = vmatmul.mubr.bf16.gmra.mrb[28].mxu0 %v13986_v7  ;;  %v6880_v16 = vld [vmem:[#allocation3 + $0x158] sm:$0xff] }
 0xbe8   :  { %6357 = vmatprep.mubr.bf16.mxu0 %v13991_v2 }
 0xbe9   :  { %6910 = vmatpush1.bf16.msra.mxu1 %v6649_v20  ;;  %v14037_v20 = vld [vmem:[%s14869_s15 + $0x8] ss:$12 sps:$4 sm:$0xff]  }
 0xbea   :  { %6911 = vmatprep.subr.bf16.mxu1 %v6876_v40 }
 0xbed   :  { %6912 = vmatpush1.bf16.msra.mxu1 %v6689_v44 }
 0xbef   :  { %6358 = vmatmul.mubr.bf16.gmra.mrb[32].mxu0 %v14002_v61 }
 0xbf0   :  { %6367 = vmatprep.mubr.bf16.mxu0 %v14007_v32 }
 0xbf7   :  { %6368 = vmatmul.mubr.bf16.gmra.mrb[36].mxu0 %v14017_v8 }
 0xbf8   :  { %6410 = vmatprep.mubr.bf16.mxu0 %v13513_v49 }
 0xc0f   :  { %v6179_v60 = vpop.permute.xlu0 %6178 }
 0xc10   :  { %v6181_v28 = vpop.permute.xlu1 %6180 }
 0xc11   :  { %6193 = vst.msk [vmem:[#allocation3 + $0x388] sm:$0xff] %vm4072_vm6, %v6181_v28  ;;  %v6186_v63 = vsel %vm5859_vm8, %v6179_v60, %v6181_v28 }
 0xc13   :  { %v6688_v34 = vpop.permute.xlu0 %6687 }
 0xc14   :  { %v6686_v52 = vpop.permute.xlu1 %6685 }
 0xc15   :  { %v6691_v59 = vsel %vm5987_vm10, %v6684_v15, %v6686_v52  ;;  %v6692_v46 = vsel %vm5987_vm10, %v6686_v52, %v6688_v34 }
 0xc16   :  { %6700 = vst.msk [vmem:[#allocation3 + $0x120] sm:$0xff] %vm4072_vm6, %v6692_v46 }
 0xc17   :  { %v6720_v19 = vpop.permute.xlu0 %6719 }
 0xc18   :  { %v6731_v25 = vsel %vm738_vm5, %v6720_v19, %v6722_v10  ;;  %v6183_v33 = vpop.permute.xlu1 %6182  ;;  %v6229_v58 = vld [vmem:[#allocation3 + $0x388] sm:$0xff] }
 0xc19   :  { %6378 = vmatprep.subr.bf16.mxu0 %v6229_v58 }
 0xc1a   :  { %6379 = vmatpush1.bf16.msra.mxu0 %v6186_v63 }
 0xc1b   :  { %v6730_v49 = vpop.permute.xlu0 %6729 }
 0xc1c   :  { %v6728_v0 = vpop.permute.xlu1 %6727 }
 0xc1d   :  { %v6734_v62 = vsel %vm738_vm5, %v6728_v0, %v6730_v49  ;;  %v6878_v57 = vld [vmem:[#allocation3 + $0x120] sm:$0xff] }
 0xc1e   :  { %6742 = vst.msk [vmem:[#allocation3 + $0x190] sm:$0xff] %vm4072_vm6, %v6734_v62  ;;  %6913 = vmatprep.subr.bf16.mxu1 %v6878_v57 }
 0xc1f   :  { %v6185_v13 = vpop.permute.xlu0 %6184  ;;  %6914 = vmatpush1.bf16.msra.mxu1 %v6691_v59 }
 0xc20   :  { %6195 = vst.msk [vmem:[#allocation3 + $0x3c0] sm:$0xff] %vm4072_vm6, %v6185_v13  ;;  %v6726_v43 = vpop.permute.xlu1 %6725  ;;  %6915 = vmatprep.subr.bf16.mxu1 %v6880_v16  ;;  %v6187_v55 = vsel %vm5859_vm8, %v6183_v33, %v6185_v13 }
 0xc21   :  { %v6733_v35 = vsel %vm738_vm5, %v6726_v43, %v6728_v0 }
 0xc23   :  { %v6764_v1 = vpop.permute.xlu0 %6763  ;;  %6916 = vmatpush1.bf16.msra.mxu1 %v6731_v25 }
 0xc24   :  { %v6766_v14 = vpop.permute.xlu1 %6765 }
 0xc25   :  { %v6771_v51 = vsel %vm332_vm4, %v6764_v1, %v6766_v14  ;;  %6778 = vst.msk [vmem:[#allocation3 + $0x238] sm:$0xff] %vm4072_vm6, %v6766_v14  ;;  %v6882_v22 = vld [vmem:[#allocation3 + $0x190] sm:$0xff] }
 0xc26   :  { %6917 = vmatprep.subr.bf16.mxu1 %v6882_v22 }
 0xc27   :  { %v6794_v38 = vpop.permute.xlu0 %6793  ;;  %v6231_v11 = vld [vmem:[#allocation3 + $0x3c0] sm:$0xff]  ;;  %6918 = vmatpush1.bf16.msra.mxu1 %v6733_v35 }
 0xc28   :  { %v6796_v4 = vpop.permute.xlu1 %6795  ;;  %6380 = vmatprep.subr.bf16.mxu0 %v6231_v11  ;;  %6919 = vmatprep.subr.bf16.mxu1 %v6884_v36 }
 0xc29   :  { %v6801_v23 = vsel %vm3784_vm2, %v6794_v38, %v6796_v4  ;;  %6808 = vst.msk [vmem:[#allocation3 + $0x2a8] sm:$0xff] %vm4072_vm6, %v6796_v4  ;;  %6381 = vmatpush1.bf16.msra.mxu0 %v6187_v55 }
 0xc2b   :  { %v6820_v5 = vpop.permute.xlu0 %6819  ;;  %6920 = vmatpush1.bf16.msra.mxu1 %v13555_v6  ;;  %v8114_v6 = vld [vmem:[%s14869_s15 + $0x20] ss:$12 sps:$4 sm:$0xff]  }
 0xc2c   :  { %v6822_v12 = vpop.permute.xlu1 %6821  ;;  %7337 = vmatmul.mubr.msk.bf16.vlgmr.msra.gmra.mrb[24].mxu0 %vm6292_vm14, %v14037_v20  ;;  %6921 = vmatprep.subr.bf16.mxu1 %v6886_v41  ;;  %v6888_v9 = vld [vmem:[#allocation3 + $0x238] sm:$0xff] }
 0xc2d   :  { %v6827_v47 = vsel %vm6148_vm13, %v6820_v5, %v6822_v12  ;;  %6834 = vst.msk [vmem:[#allocation3 + $0x318] sm:$0xff] %vm4072_vm6, %v6822_v12  ;;  %6420 = vmatprep.mubr.bf16.mxu0 %v14046_v50 }
 0xc2f   :  { %v6768_v39 = vpop.permute.xlu0 %6767  ;;  %6922 = vmatpush1.bf16.msra.mxu1 %v13584_v56 }
 0xc30   :  { %v6770_v54 = vpop.permute.xlu1 %6769  ;;  %6923 = vmatprep.subr.bf16.mxu1 %v6888_v9  ;;  %v6892_v17 = vld [vmem:[#allocation3 + $0x2a8] sm:$0xff] }
 0xc31   :  { %v6772_v15 = vsel %vm332_vm4, %v6768_v39, %v6770_v54  ;;  %6780 = vst.msk [vmem:[#allocation3 + $0x270] sm:$0xff] %vm4072_vm6, %v6770_v54  ;;  %vm6516_vm4 = vcmask 80896  }
 0xc33   :  { %v6850_v42 = vpop.permute.xlu0 %6849  ;;  %6924 = vmatpush1.bf16.msra.mxu1 %v6771_v51 }
 0xc34   :  { %v6852_v37 = vpop.permute.xlu1 %6851  ;;  %7338 = vmatmul.mubr.msk.bf16.gmra.mrb[28].mxu0 %vm6292_vm14, %v8114_v6  ;;  %v6896_v28 = vld [vmem:[#allocation3 + $0x318] sm:$0xff] }
 0xc35   :  { %v6857_v44 = vsel %vm5859_vm8, %v6850_v42, %v6852_v37  ;;  %6864 = vst.msk [vmem:[#allocation3 + $0x388] sm:$0xff] %vm4072_vm6, %v6852_v37  ;;  %6430 = vmatprep.mubr.bf16.mxu0 %v14046_v50 }
 0xc37   :  { %v6798_v56 = vpop.permute.xlu0 %6797 }
 0xc38   :  { %v6800_v31 = vpop.permute.xlu1 %6799  ;;  %v6890_v10 = vld [vmem:[#allocation3 + $0x270] sm:$0xff] }
 0xc39   :  { %v6802_v18 = vsel %vm3784_vm2, %v6798_v56, %v6800_v31  ;;  %6810 = vst.msk [vmem:[#allocation3 + $0x2e0] sm:$0xff] %vm4072_vm6, %v6800_v31  ;;  %6925 = vmatprep.subr.bf16.mxu1 %v6890_v10 }
 0xc3a   :  { %6926 = vmatpush1.bf16.msra.mxu1 %v6772_v15 }
 0xc3b   :  { %v6824_v29 = vpop.permute.xlu0 %6823  ;;  %6927 = vmatprep.subr.bf16.mxu1 %v6892_v17 }
 0xc3c   :  { %v6826_v21 = vpop.permute.xlu1 %6825  ;;  %7339 = vmatmul.mubr.msk.bf16.gmra.mrb[32].mxu0 %vm6292_vm14, %v8115_v45  ;;  %v6900_v48 = vld [vmem:[#allocation3 + $0x388] sm:$0xff] }
 0xc3d   :  { %v6828_v26 = vsel %vm6148_vm13, %v6824_v29, %v6826_v21  ;;  %6836 = vst.msk [vmem:[#allocation3 + $0x350] sm:$0xff] %vm4072_vm6, %v6826_v21  ;;  %6976 = vmatprep.subr.bf16.mxu0 %v6900_v48  ;;  %6440 = vmatprep.mubr.bf16.mxu0 %v14046_v50 }
 0xc3e   :  { %6928 = vmatpush1.bf16.msra.mxu1 %v6801_v23  ;;  %6977 = vmatpush1.bf16.msra.mxu0 %v6857_v44 }
 0xc3f   :  { %v6854_v53 = vpop.permute.xlu0 %6853 }
 0xc40   :  { %v6856_v40 = vpop.permute.xlu1 %6855  ;;  %v6894_v30 = vld [vmem:[#allocation3 + $0x2e0] sm:$0xff] }
 0xc41   :  { %v6858_v60 = vsel %vm5859_vm8, %v6854_v53, %v6856_v40  ;;  %6866 = vst.msk [vmem:[#allocation3 + $0x3c0] sm:$0xff] %vm4072_vm6, %v6856_v40  ;;  %6929 = vmatprep.subr.bf16.mxu1 %v6894_v30 }
 0xc42   :  { %6930 = vmatpush1.bf16.msra.mxu1 %v6802_v18 }
 0xc43   :  { %6931 = vmatprep.subr.bf16.mxu1 %v6896_v28 }
 0xc44   :  { %7340 = vmatmul.mubr.msk.bf16.gmra.mrb[36].mxu0 %vm6292_vm14, %v8116_v3  ;;  %v6898_v34 = vld [vmem:[#allocation3 + $0x350] sm:$0xff] }
 0xc45   :  { %7008 = vmatprep.mubr.bf16.mxu0 %v14046_v50 }
 0xc46   :  { %6932 = vmatpush1.bf16.msra.mxu1 %v6827_v47 }
 0xc47   :  { %6933 = vmatprep.subr.bf16.mxu1 %v6898_v34 }
 0xc48   :  { %v6902_v52 = vld [vmem:[#allocation3 + $0x3c0] sm:$0xff] }
 0xc49   :  { %6978 = vmatprep.subr.bf16.mxu0 %v6902_v52 }
 0xc4a   :  { %6934 = vmatpush1.bf16.msra.mxu1 %v6828_v26  ;;  %6979 = vmatpush1.bf16.msra.mxu0 %v6858_v60 }
 0xc4d   :  { %6936 = vmatmul.mubr.bf16.vlgmr.msra.gmra.mrb[48].mxu1 %v13969_v24  ;;  %7349 = vmatmul.mubr.msk.bf16.vlgmr.msra.gmra.mrb[40].mxu0 %vm6292_vm14, %v14037_v20 }
 0xc4e   :  { %6945 = vmatprep.mubr.bf16.mxu1 %v13974_v27  ;;  %7018 = vmatprep.mubr.bf16.mxu0 %v14046_v50 }
 0xc55   :  { %6946 = vmatmul.mubr.bf16.gmra.mrb[52].mxu1 %v13986_v7  ;;  %7350 = vmatmul.mubr.msk.bf16.gmra.mrb[44].mxu0 %vm6292_vm14, %v8114_v6 }
 0xc56   :  { %6955 = vmatprep.mubr.bf16.mxu1 %v13991_v2  ;;  %7028 = vmatprep.mubr.bf16.mxu0 %v14046_v50 }
 0xc5d   :  { %6956 = vmatmul.mubr.bf16.gmra.mrb[56].mxu1 %v14002_v61  ;;  %7351 = vmatmul.mubr.msk.bf16.gmra.mrb[48].mxu0 %vm6292_vm14, %v8115_v45 }
 0xc5e   :  { %6965 = vmatprep.mubr.bf16.mxu1 %v14007_v32  ;;  %7038 = vmatprep.mubr.bf16.mxu0 %v14046_v50 }
 0xc65   :  { %6966 = vmatmul.mubr.bf16.gmra.mrb[60].mxu1 %v14017_v8  ;;  %7352 = vmatmul.mubr.msk.bf16.gmra.mrb[52].mxu0 %vm6292_vm14, %v8116_v3 }
 0xcff   :  { %v6412_v24 = vpop.f32.mrb[24].mxu0 }
 0xd00   :  { %6451 = vst [vmem:[%s14358_s19] sm:$0xff] %v6412_v24  ;;  %v6414_v27 = vpop.f32.mrb[25].mxu0 }
 0xd01   :  { %6452 = vst.msk [vmem:[%s14358_s19 + $0x8] sm:$0xff] %vm4072_vm6, %v6414_v27  ;;  %v6467_v7 = vsel %vm4072_vm6, %v6414_v27, -inf  ;;  %v6416_v2 = vpop.f32.mrb[26].mxu0 }
 0xd02   :  { %v6468_v61 = vmax.f32 %v6412_v24, %v6467_v7  ;;  %6453 = vst [vmem:[%s14358_s19 + $0x10] sm:$0xff] %v6416_v2  ;;  %v6418_v32 = vpop.f32.mrb[27].mxu0 }
 0xd03   :  { %6454 = vst.msk [vmem:[%s14358_s19 + $0x18] sm:$0xff] %vm4072_vm6, %v6418_v32  ;;  %v6471_v8 = vsel %vm4072_vm6, %v6418_v32, -inf }
 0xd04   :  { %v6472_v59 = vmax.f32 %v6416_v2, %v6471_v8  ;;  %6469 = vmax.xlane.f32.xlu0 %v6468_v61 }
 0xd06   :  { %6473 = vmax.xlane.f32.xlu1 %v6472_v59 }
 0xd07   :  { %v6422_v46 = vpop.f32.mrb[28].mxu0 }
 0xd08   :  { %6455 = vst [vmem:[%s14358_s19 + $0x20] sm:$0xff] %v6422_v46  ;;  %v6424_v19 = vpop.f32.mrb[29].mxu0 }
 0xd09   :  { %6456 = vst.msk [vmem:[%s14358_s19 + $0x28] sm:$0xff] %vm4072_vm6, %v6424_v19  ;;  %v6475_v25 = vsel %vm4072_vm6, %v6424_v19, -inf  ;;  %v6426_v33 = vpop.f32.mrb[30].mxu0 }
 0xd0a   :  { %v6476_v58 = vmax.f32 %v6422_v46, %v6475_v25  ;;  %6457 = vst [vmem:[%s14358_s19 + $0x30] sm:$0xff] %v6426_v33  ;;  %v6428_v63 = vpop.f32.mrb[31].mxu0 }
 0xd0b   :  { %6458 = vst.msk [vmem:[%s14358_s19 + $0x38] sm:$0xff] %vm4072_vm6, %v6428_v63  ;;  %v6479_v49 = vsel %vm4072_vm6, %v6428_v63, -inf }
 0xd0c   :  { %v6480_v0 = vmax.f32 %v6426_v33, %v6479_v49  ;;  %6477 = vmax.xlane.f32.xlu1 %v6476_v58 }
 0xd0f   :  { %v6432_v62 = vpop.f32.mrb[32].mxu0 }
 0xd10   :  { %6459 = vst [vmem:[%s14358_s19 + $0x40] sm:$0xff] %v6432_v62  ;;  %6481 = vmax.xlane.f32.xlu1 %v6480_v0  ;;  %v6434_v57 = vpop.f32.mrb[33].mxu0 }
 0xd11   :  { %6460 = vst.msk [vmem:[%s14358_s19 + $0x48] sm:$0xff] %vm4072_vm6, %v6434_v57  ;;  %v6483_v13 = vsel %vm4072_vm6, %v6434_v57, -inf  ;;  %v6436_v16 = vpop.f32.mrb[34].mxu0 }
 0xd12   :  { %v6484_v43 = vmax.f32 %v6432_v62, %v6483_v13  ;;  %6461 = vst [vmem:[%s14358_s19 + $0x50] sm:$0xff] %v6436_v16  ;;  %v6438_v35 = vpop.f32.mrb[35].mxu0 }
 0xd13   :  { %6462 = vst.msk [vmem:[%s14358_s19 + $0x58] sm:$0xff] %vm4072_vm6, %v6438_v35  ;;  %v6487_v1 = vsel %vm4072_vm6, %v6438_v35, -inf }
 0xd14   :  { %v6488_v14 = vmax.f32 %v6436_v16, %v6487_v1  ;;  %6485 = vmax.xlane.f32.xlu1 %v6484_v43 }
 0xd17   :  { %v6442_v51 = vpop.f32.mrb[36].mxu0 }
 0xd18   :  { %6463 = vst [vmem:[%s14358_s19 + $0x60] sm:$0xff] %v6442_v51  ;;  %6489 = vmax.xlane.f32.xlu1 %v6488_v14  ;;  %v6444_v22 = vpop.f32.mrb[37].mxu0 }
 0xd19   :  { %6464 = vst.msk [vmem:[%s14358_s19 + $0x68] sm:$0xff] %vm4072_vm6, %v6444_v22  ;;  %v6491_v38 = vsel %vm4072_vm6, %v6444_v22, -inf  ;;  %v6446_v11 = vpop.f32.mrb[38].mxu0 }
 0xd1a   :  { %v6492_v36 = vmax.f32 %v6442_v51, %v6491_v38  ;;  %6465 = vst [vmem:[%s14358_s19 + $0x70] sm:$0xff] %v6446_v11  ;;  %v6448_v55 = vpop.f32.mrb[39].mxu0 }
 0xd1b   :  { %6466 = vst.msk [vmem:[%s14358_s19 + $0x78] sm:$0xff] %vm4072_vm6, %v6448_v55  ;;  %v6495_v4 = vsel %vm4072_vm6, %v6448_v55, -inf }
 0xd1c   :  { %v6496_v20 = vmax.f32 %v6446_v11, %v6495_v4  ;;  %6493 = vmax.xlane.f32.xlu1 %v6492_v36 }
 0xd20   :  { %v6937_v23 = vpop.f32.mrb[48].mxu1  ;;  %v7010_v5 = vpop.f32.mrb[40].mxu0  ;;  %6497 = vmax.xlane.f32.xlu1 %v6496_v20 }
 0xd21   :  { %v7011_v41 = vadd.f32 %v7010_v5, %v6937_v23  ;;  %v6939_v12 = vpop.f32.mrb[49].mxu1  ;;  %v7012_v47 = vpop.f32.mrb[41].mxu0 }
 0xd22   :  { %v7013_v50 = vadd.f32 %v7012_v47, %v6939_v12  ;;  %v6941_v39 = vpop.f32.mrb[50].mxu1  ;;  %v7014_v9 = vpop.f32.mrb[42].mxu0  ;;  %v5736_v12 = vld [vmem:[%s14870_s8 + $0x8] sm:$0xff]  ;;  %v5735_v47 = vld [vmem:[%s14870_s8] sm:$0xff] }
 0xd23   :  { %7353 = vst [vmem:[%s14358_s19 + $0x80] sm:$0xff] %v7011_v41  ;;  %v7015_v54 = vadd.f32 %v7014_v9, %v6941_v39  ;;  %v6943_v6 = vpop.f32.mrb[51].mxu1  ;;  %v7016_v15 = vpop.f32.mrb[43].mxu0 }
 0xd24   :  { %7354 = vst.msk [vmem:[%s14358_s19 + $0x88] sm:$0xff] %vm4072_vm6, %v7013_v50  ;;  %v7066_v42 = vsel %vm4072_vm6, %v7013_v50, -inf  ;;  %v7017_v37 = vadd.f32 %v7016_v15, %v6943_v6  ;;  %v5737_v50 = vld [vmem:[%s14870_s8 + $0x10] sm:$0xff] }
 0xd25   :  { %v7067_v44 = vmax.f32 %v7011_v41, %v7066_v42  ;;  %7355 = vst [vmem:[%s14358_s19 + $0x90] sm:$0xff] %v7015_v54  ;;  %v5739_v42 = vld [vmem:[%s14870_s8 + $0x20] sm:$0xff] }
 0xd26   :  { %7356 = vst.msk [vmem:[%s14358_s19 + $0x98] sm:$0xff] %vm4072_vm6, %v7017_v37  ;;  %v7070_v56 = vsel %vm4072_vm6, %v7017_v37, -inf }
 0xd27   :  { %v7071_v31 = vmax.f32 %v7015_v54, %v7070_v56  ;;  %7068 = vmax.xlane.f32.xlu0 %v7067_v44  ;;  %v5738_v54 = vld [vmem:[%s14870_s8 + $0x18] sm:$0xff] }
 0xd28   :  { %v6947_v10 = vpop.f32.mrb[52].mxu1  ;;  %v7020_v45 = vpop.f32.mrb[44].mxu0 }
 0xd29   :  { %v7021_v18 = vadd.f32 %v7020_v45, %v6947_v10  ;;  %v6949_v17 = vpop.f32.mrb[53].mxu1  ;;  %v7022_v29 = vpop.f32.mrb[45].mxu0 }
 0xd2a   :  { %v7023_v21 = vadd.f32 %v7022_v29, %v6949_v17  ;;  %v6951_v48 = vpop.f32.mrb[54].mxu1  ;;  %v7024_v26 = vpop.f32.mrb[46].mxu0 }
 0xd2b   :  { %7357 = vst [vmem:[%s14358_s19 + $0xa0] sm:$0xff] %v7021_v18  ;;  %7072 = vmax.xlane.f32.xlu0 %v7071_v31  ;;  %v7025_v53 = vadd.f32 %v7024_v26, %v6951_v48  ;;  %v6953_v40 = vpop.f32.mrb[55].mxu1  ;;  %v7026_v30 = vpop.f32.mrb[47].mxu0  ;;  %v5740_v31 = vld [vmem:[%s14870_s8 + $0x28] sm:$0xff] }
 0xd2c   :  { %7358 = vst.msk [vmem:[%s14358_s19 + $0xa8] sm:$0xff] %vm4072_vm6, %v7023_v21  ;;  %v7074_v3 = vsel %vm4072_vm6, %v7023_v21, -inf  ;;  %v7027_v60 = vadd.f32 %v7026_v30, %v6953_v40 }
 0xd2d   :  { %v7075_v28 = vmax.f32 %v7021_v18, %v7074_v3  ;;  %7359 = vst [vmem:[%s14358_s19 + $0xb0] sm:$0xff] %v7025_v53 }
 0xd2e   :  { %7360 = vst.msk [vmem:[%s14358_s19 + $0xb8] sm:$0xff] %vm4072_vm6, %v7027_v60  ;;  %v7078_v34 = vsel %vm4072_vm6, %v7027_v60, -inf }
 0xd2f   :  { %v7079_v52 = vmax.f32 %v7025_v53, %v7078_v34  ;;  %7076 = vmax.xlane.f32.xlu0 %v7075_v28  ;;  %v5741_v53 = vld [vmem:[%s14870_s8 + $0x30] sm:$0xff] }
 0xd30   :  { %v6957_v24 = vpop.f32.mrb[56].mxu1  ;;  %v7030_v27 = vpop.f32.mrb[48].mxu0 }
 0xd31   :  { %v7031_v7 = vadd.f32 %v7030_v27, %v6957_v24  ;;  %v6959_v2 = vpop.f32.mrb[57].mxu1  ;;  %v7032_v61 = vpop.f32.mrb[49].mxu0 }
 0xd32   :  { %v7033_v32 = vadd.f32 %v7032_v61, %v6959_v2  ;;  %v6961_v8 = vpop.f32.mrb[58].mxu1  ;;  %v7034_v59 = vpop.f32.mrb[50].mxu0 }
 0xd33   :  { %7361 = vst [vmem:[%s14358_s19 + $0xc0] sm:$0xff] %v7031_v7  ;;  %7080 = vmax.xlane.f32.xlu0 %v7079_v52  ;;  %v7035_v46 = vadd.f32 %v7034_v59, %v6961_v8  ;;  %v6963_v19 = vpop.f32.mrb[59].mxu1  ;;  %v7036_v25 = vpop.f32.mrb[51].mxu0  ;;  %v5742_v52 = vld [vmem:[%s14870_s8 + $0x38] sm:$0xff] }
 0xd34   :  { %7362 = vst.msk [vmem:[%s14358_s19 + $0xc8] sm:$0xff] %vm4072_vm6, %v7033_v32  ;;  %v7082_v33 = vsel %vm4072_vm6, %v7033_v32, -inf  ;;  %v7037_v58 = vadd.f32 %v7036_v25, %v6963_v19 }
 0xd35   :  { %v7083_v63 = vmax.f32 %v7031_v7, %v7082_v33  ;;  %7363 = vst [vmem:[%s14358_s19 + $0xd0] sm:$0xff] %v7035_v46 }
 0xd36   :  { %7364 = vst.msk [vmem:[%s14358_s19 + $0xd8] sm:$0xff] %vm4072_vm6, %v7037_v58  ;;  %v7086_v49 = vsel %vm4072_vm6, %v7037_v58, -inf }
 0xd37   :  { %v7087_v0 = vmax.f32 %v7035_v46, %v7086_v49  ;;  %7084 = vmax.xlane.f32.xlu0 %v7083_v63 }
 0xd38   :  { %v6967_v62 = vpop.f32.mrb[60].mxu1  ;;  %v7040_v57 = vpop.f32.mrb[52].mxu0 }
 0xd39   :  { %v7041_v13 = vadd.f32 %v7040_v57, %v6967_v62  ;;  %v6969_v16 = vpop.f32.mrb[61].mxu1  ;;  %v7042_v43 = vpop.f32.mrb[53].mxu0 }
 0xd3a   :  { %v7043_v35 = vadd.f32 %v7042_v43, %v6969_v16  ;;  %v6971_v1 = vpop.f32.mrb[62].mxu1  ;;  %v7044_v14 = vpop.f32.mrb[54].mxu0 }
 0xd3b   :  { %7365 = vst [vmem:[%s14358_s19 + $0xe0] sm:$0xff] %v7041_v13  ;;  %7088 = vmax.xlane.f32.xlu0 %v7087_v0  ;;  %v7045_v51 = vadd.f32 %v7044_v14, %v6971_v1  ;;  %v6973_v22 = vpop.f32.mrb[63].mxu1  ;;  %v7046_v38 = vpop.f32.mrb[55].mxu0  ;;  %v5743_v0 = vld [vmem:[%s14344_s5] sm:$0x1] }
 0xd3c   :  { %7366 = vst.msk [vmem:[%s14358_s19 + $0xe8] sm:$0xff] %vm4072_vm6, %v7043_v35  ;;  %v7090_v11 = vsel %vm4072_vm6, %v7043_v35, -inf  ;;  %v7047_v36 = vadd.f32 %v7046_v38, %v6973_v22 }
 0xd3d   :  { %v7091_v55 = vmax.f32 %v7041_v13, %v7090_v11  ;;  %7367 = vst [vmem:[%s14358_s19 + $0xf0] sm:$0xff] %v7045_v51 }
 0xd3e   :  { %7368 = vst.msk [vmem:[%s14358_s19 + $0xf8] sm:$0xff] %vm4072_vm6, %v7047_v36  ;;  %v7094_v4 = vsel %vm4072_vm6, %v7047_v36, -inf }
 0xd3f   :  { %v7095_v20 = vmax.f32 %v7045_v51, %v7094_v4  ;;  %7092 = vmax.xlane.f32.xlu0 %v7091_v55 }
 0xd43   :  { %7096 = vmax.xlane.f32.xlu0 %v7095_v20 }
 0xd91   :  { %v6470_v23 = vpop.xlane.xlu0 %6469 }
 0xd92   :  { %6500 = vst.msk [vmem:[%s14359_s20] sm:$0xff] %vm738_vm5, %v6470_v23  ;;  %v6508_v6 = vmul.f32 %v6470_v23, %v5735_v47 }
 0xd93   :  { %v6474_v5 = vpop.xlane.xlu1 %6473 }
 0xd94   :  { %6501 = vst.msk [vmem:[%s14359_s20 + $0x8] sm:$0xff] %vm738_vm5, %v6474_v5  ;;  %v6509_v9 = vmul.f32 %v6474_v5, %v5736_v12  ;;  %v6517_v10 = vsel %vm6516_vm4, %v6508_v6, 0.0 }
 0xd96   :  { %v6518_v44 = vsel %vm6516_vm4, %v6509_v9, 0.0 }
 0xd97   :  { %v6519_v17 = vadd.f32 %v6518_v44, %v6517_v10 }
 0xd99   :  { %v6478_v41 = vpop.xlane.xlu1 %6477 }
 0xd9a   :  { %6502 = vst.msk [vmem:[%s14359_s20 + $0x10] sm:$0xff] %vm738_vm5, %v6478_v41  ;;  %v6510_v15 = vmul.f32 %v6478_v41, %v5737_v50 }
 0xd9c   :  { %v6520_v45 = vsel %vm6516_vm4, %v6510_v15, 0.0 }
 0xd9d   :  { %v6482_v39 = vpop.xlane.xlu1 %6481  ;;  %v6521_v26 = vadd.f32 %v6520_v45, %v6519_v17 }
 0xd9e   :  { %6503 = vst.msk [vmem:[%s14359_s20 + $0x18] sm:$0xff] %vm738_vm5, %v6482_v39  ;;  %v6511_v56 = vmul.f32 %v6482_v39, %v5738_v54 }
 0xda0   :  { %v6522_v21 = vsel %vm6516_vm4, %v6511_v56, 0.0 }
 0xda1   :  { %v6486_v37 = vpop.xlane.xlu1 %6485  ;;  %v6523_v30 = vadd.f32 %v6522_v21, %v6521_v26 }
 0xda2   :  { %6504 = vst.msk [vmem:[%s14359_s20 + $0x20] sm:$0xff] %vm738_vm5, %v6486_v37  ;;  %v6512_v18 = vmul.f32 %v6486_v37, %v5739_v42 }
 0xda4   :  { %v6524_v40 = vsel %vm6516_vm4, %v6512_v18, 0.0 }
 0xda5   :  { %v6490_v29 = vpop.xlane.xlu1 %6489  ;;  %v6525_v34 = vadd.f32 %v6524_v40, %v6523_v30 }
 0xda6   :  { %6505 = vst.msk [vmem:[%s14359_s20 + $0x28] sm:$0xff] %vm738_vm5, %v6490_v29  ;;  %v6513_v48 = vmul.f32 %v6490_v29, %v5740_v31 }
 0xda8   :  { %v6526_v60 = vsel %vm6516_vm4, %v6513_v48, 0.0 }
 0xda9   :  { %v6494_v3 = vpop.xlane.xlu1 %6493  ;;  %v6527_v27 = vadd.f32 %v6526_v60, %v6525_v34 }
 0xdaa   :  { %6506 = vst.msk [vmem:[%s14359_s20 + $0x30] sm:$0xff] %vm738_vm5, %v6494_v3  ;;  %v6514_v28 = vmul.f32 %v6494_v3, %v5741_v53 }
 0xdac   :  { %v6528_v24 = vsel %vm6516_vm4, %v6514_v28, 0.0 }
 0xdad   :  { %v6498_v7 = vpop.xlane.xlu1 %6497  ;;  %v6529_v61 = vadd.f32 %v6528_v24, %v6527_v27 }
 0xdae   :  { %6507 = vst.msk [vmem:[%s14359_s20 + $0x38] sm:$0xff] %vm738_vm5, %v6498_v7  ;;  %v6515_v2 = vmul.f32 %v6498_v7, %v5742_v52 }
 0xdb0   :  { %v6530_v32 = vsel %vm6516_vm4, %v6515_v2, 0.0 }
 0xdb1   :  { %v6531_v8 = vadd.f32 %v6530_v32, %v6529_v61 }
 0xdb3   :  { %v6532_v59 = vrot.slane %v6531_v8, 4 }
 0xdb4   :  { %v7069_v46 = vpop.xlane.xlu0 %7068 }
 0xdb5   :  { %v6533_v19 = vadd.f32 %v6532_v59, %v6531_v8  ;;  %7369 = vst.msk [vmem:[%s14359_s20 + $0x40] sm:$0xff] %vm738_vm5, %v7069_v46  ;;  %v7107_v43 = vmul.f32 %v7069_v46, %v5735_v47 }
 0xdb7   :  { %v6534_v25 = vrot.slane %v6533_v19, 2  ;;  %v7115_v22 = vsel %vm6516_vm4, %v7107_v43, 0.0 }
 0xdb8   :  { %v7073_v33 = vpop.xlane.xlu0 %7072 }
 0xdb9   :  { %v6535_v58 = vadd.f32 %v6534_v25, %v6533_v19  ;;  %7370 = vst.msk [vmem:[%s14359_s20 + $0x48] sm:$0xff] %vm738_vm5, %v7073_v33  ;;  %v7108_v16 = vmul.f32 %v7073_v33, %v5736_v12 }
 0xdbb   :  { %v6536_v63 = vrot.slane %v6535_v58, 1  ;;  %v7116_v14 = vsel %vm6516_vm4, %v7108_v16, 0.0 }
 0xdbc   :  { %v7077_v49 = vpop.xlane.xlu0 %7076  ;;  %v7117_v36 = vadd.f32 %v7116_v14, %v7115_v22 }
 0xdbd   :  { %7371 = vst.msk [vmem:[%s14359_s20 + $0x50] sm:$0xff] %vm738_vm5, %v7077_v49  ;;  %v6537_v62 = vadd.f32 %v6536_v63, %v6535_v58  ;;  %v7109_v35 = vmul.f32 %v7077_v49, %v5737_v50 }
 0xdbf   :  { %v6538_v57 = vadd.f32 %v6537_v62, %v5743_v0  ;;  %v7118_v38 = vsel %vm6516_vm4, %v7109_v35, 0.0 }
 0xdc0   :  { %v7081_v13 = vpop.xlane.xlu0 %7080  ;;  %v7119_v23 = vadd.f32 %v7118_v38, %v7117_v36 }
 0xdc1   :  { %7372 = vst.msk [vmem:[%s14359_s20 + $0x58] sm:$0xff] %vm738_vm5, %v7081_v13  ;;  %v7110_v51 = vmul.f32 %v7081_v13, %v5738_v54 }
 0xdc2   :  { %6540 = vst.msk [vmem:[#allocation4] sm:$0x1] %vm6539_vm15, %v6538_v57 }
 0xdc3   :  { %v7120_v4 = vsel %vm6516_vm4, %v7110_v51, 0.0 }
 0xdc4   :  { %v7085_v1 = vpop.xlane.xlu0 %7084  ;;  %v7121_v41 = vadd.f32 %v7120_v4, %v7119_v23 }
 0xdc5   :  { %7373 = vst.msk [vmem:[%s14359_s20 + $0x60] sm:$0xff] %vm738_vm5, %v7085_v1  ;;  %v7111_v11 = vmul.f32 %v7085_v1, %v5739_v42 }
 0xdc7   :  { %v7122_v5 = vsel %vm6516_vm4, %v7111_v11, 0.0 }
 0xdc8   :  { %v7089_v55 = vpop.xlane.xlu0 %7088  ;;  %v7123_v39 = vadd.f32 %v7122_v5, %v7121_v41 }
 0xdc9   :  { %7374 = vst.msk [vmem:[%s14359_s20 + $0x68] sm:$0xff] %vm738_vm5, %v7089_v55  ;;  %v7112_v20 = vmul.f32 %v7089_v55, %v5740_v31 }
 0xdcb   :  { %v7124_v47 = vsel %vm6516_vm4, %v7112_v20, 0.0 }
 0xdcc   :  { %v7093_v12 = vpop.xlane.xlu0 %7092  ;;  %v7125_v54 = vadd.f32 %v7124_v47, %v7123_v39 }
 0xdcd   :  { %7375 = vst.msk [vmem:[%s14359_s20 + $0x70] sm:$0xff] %vm738_vm5, %v7093_v12  ;;  %v7113_v50 = vmul.f32 %v7093_v12, %v5741_v53 }
 0xdcf   :  { %v7126_v9 = vsel %vm6516_vm4, %v7113_v50, 0.0 }
 0xdd0   :  { %v7097_v6 = vpop.xlane.xlu0 %7096  ;;  %v7127_v42 = vadd.f32 %v7126_v9, %v7125_v54 }
 0xdd1   :  { %7376 = vst.msk [vmem:[%s14359_s20 + $0x78] sm:$0xff] %vm738_vm5, %v7097_v6  ;;  %v7114_v15 = vmul.f32 %v7097_v6, %v5742_v52 }
 0xdd3   :  { %v7128_v37 = vsel %vm6516_vm4, %v7114_v15, 0.0 }
 0xdd4   :  { %v7129_v44 = vadd.f32 %v7128_v37, %v7127_v42 }
 0xdd6   :  { %v7130_v56 = vrot.slane %v7129_v44, 4 }
 0xdd8   :  { %v7131_v31 = vadd.f32 %v7130_v56, %v7129_v44 }
 0xdda   :  { %v7132_v10 = vrot.slane %v7131_v31, 2 }
 0xddc   :  { %v7133_v45 = vadd.f32 %v7132_v10, %v7131_v31 }
 0xdde   :  { %v7134_v18 = vrot.slane %v7133_v45, 1 }
 0xde0   :  { %v7135_v17 = vadd.f32 %v7134_v18, %v7133_v45 }
 0xde2   :  { %v7136_v29 = vadd.f32 %v7135_v17, %v5743_v0 }
 0xde4   :  { %7137 = vst.msk [vmem:[#allocation4 + $0x1] sm:$0x1] %vm6539_vm15, %v7136_v29 }
 0xde5   :  { %8167 = shalt.err (!%p8164_p4)
}
 0xde6   :  { %s8168_s26 = scalar_lea.hbm %s14352_s13, 32 }
 0xde7   :  { %p8169_p5 = scmp.ne.s32.totalorder %s14352_s13, %s8168_s26  ;;  %p8172_p6 = scmp.lt.u32.totalorder %s8168_s26, %s14352_s13 }
 0xde9   :  { %p8174_p7 = pnand %p8172_p6, %p8169_p5 }
 0xdeb   :  { %8177 = shalt.err (!%p8174_p7)
}
 0xdec   :  { %7147 = dma.vmem_to_hbm [thread:$0]  %s7145_s28, 32, %s14352_s13, [#allocation5]  }
 0xded   :  { %8178 = dma.done.wait [#allocation5], 32  }
 0xdee   :  { %8179 = vsyncadd [#allocation5], 4294967264 }
 0xdef   :  { %7179 = vsyncpa [#allocation5], 1 }

</bundles_post_ra>
